<compile_context>
chip_gen: v7x
topology: tpu7x:2x2x1
jax: 0.10.0
libtpu: 0.0.40
codegen_flags: <defaults>
</compile_context>

<pallas_src>
import functools

import jax
import jax.numpy as jnp
from jax.experimental import pallas as pl
from jax.experimental.pallas import tpu as pltpu

EPS = 1e-5
VMEM_LIMIT = 48 * 1024 * 1024  # raise scoped VMEM above the 16/32 MiB defaults


# ---------------------------------------------------------------------------
# shared 3x3-conv helper (traced inside the kernels)
# ---------------------------------------------------------------------------
def _conv3x3(padded, w_flat, H, W, Cin, use_im2col):
    """padded: (H+2, W+2, Cin) f32 value; w_flat: (9*Cin, Cout) f32 value.
    Returns the conv result as (H*W, Cout) f32."""
    Cout = w_flat.shape[1]
    wins = [padded[dy:dy + H, dx:dx + W, :].reshape(H * W, Cin)
            for dy in range(3) for dx in range(3)]
    if use_im2col:
        # one dense-K MXU matmul: (H*W, 9*Cin) @ (9*Cin, Cout), bf16 in / f32 acc
        patches = jnp.concatenate(wins, axis=-1).astype(jnp.bfloat16)
        return jnp.dot(patches, w_flat.astype(jnp.bfloat16),
                       preferred_element_type=jnp.float32)
    # fallback: 9 shifted matmuls accumulated in f32 (only guaranteed-lowering ops)
    acc = jnp.zeros((H * W, Cout), jnp.float32)
    for k, win in enumerate(wins):
        wk = w_flat[k * Cin:(k + 1) * Cin, :].astype(jnp.bfloat16)
        acc = acc + jnp.dot(win.astype(jnp.bfloat16), wk,
                            preferred_element_type=jnp.float32)
    return acc


# ---------------------------------------------------------------------------
# pass 1: conv1 (3x3) + per-tile BN1 statistics (sum, sum of squares)
# ---------------------------------------------------------------------------
def _conv1_stats_kernel(use_im2col, xp_ref, w_ref, y_ref, s_ref, sq_ref):
    _, Hp, Wp, Cin = xp_ref.shape
    H, W = Hp - 2, Wp - 2
    Cout = y_ref.shape[3]
    y = _conv3x3(xp_ref[0], w_ref[...], H, W, Cin, use_im2col)   # (H*W, Cout) f32
    y_ref[...] = y.reshape(1, H, W, Cout)
    # single-pass per-tile partial statistics (reduced/folded outside the kernel)
    s_ref[...] = jnp.sum(y, axis=0, keepdims=True).reshape(1, 1, Cout)
    sq_ref[...] = jnp.sum(y * y, axis=0, keepdims=True).reshape(1, 1, Cout)


# ---------------------------------------------------------------------------
# pass 2: BN1 (folded scale/shift) + ReLU + conv2 (3x3) + per-tile BN2 statistics
# ---------------------------------------------------------------------------
def _bn_relu_conv2_stats_kernel(use_im2col, y1_ref, scale_ref, shift_ref, w_ref,
                                y2_ref, s_ref, sq_ref, pad_ref):
    _, H, W, C = y1_ref.shape
    Cout = y2_ref.shape[3]
    # BN1 folded to a single fused multiply-add, then ReLU
    a = jnp.maximum(y1_ref[0].reshape(H * W, C) * scale_ref[...] + shift_ref[...],
                    0.0)
    # zero only the 1-pixel halo of the persistent VMEM scratch, write the interior
    pad_ref[0:1, :, :] = jnp.zeros((1, W + 2, C), jnp.float32)
    pad_ref[H + 1:H + 2, :, :] = jnp.zeros((1, W + 2, C), jnp.float32)
    pad_ref[1:H + 1, 0:1, :] = jnp.zeros((H, 1, C), jnp.float32)
    pad_ref[1:H + 1, W + 1:W + 2, :] = jnp.zeros((H, 1, C), jnp.float32)
    pad_ref[1:H + 1, 1:W + 1, :] = a.reshape(H, W, C)
    y2 = _conv3x3(pad_ref[...], w_ref[...], H, W, C, use_im2col)
    y2_ref[...] = y2.reshape(1, H, W, Cout)
    s_ref[...] = jnp.sum(y2, axis=0, keepdims=True).reshape(1, 1, Cout)
    sq_ref[...] = jnp.sum(y2 * y2, axis=0, keepdims=True).reshape(1, 1, Cout)


# ---------------------------------------------------------------------------
# pass 3: BN2 (folded) + residual add + ReLU on a lane-dense flattened view
# ---------------------------------------------------------------------------
def _bn_add_relu_kernel(y2_ref, x_ref, scale_ref, shift_ref, o_ref):
    o_ref[...] = jnp.maximum(
        y2_ref[...] * scale_ref[...] + shift_ref[...] + x_ref[...], 0.0)


# ---------------------------------------------------------------------------
# wrapper helpers
# ---------------------------------------------------------------------------
def _fold_bn(part_sum, part_sumsq, gamma, beta, count):
    """Reduce per-tile partials and fold training-mode BN into scale/shift."""
    total = jnp.sum(part_sum, axis=0).reshape(-1)
    total_sq = jnp.sum(part_sumsq, axis=0).reshape(-1)
    mean = total / count
    var = jnp.maximum(total_sq / count - mean * mean, 0.0)   # biased batch variance
    scale = gamma * jax.lax.rsqrt(var + EPS)
    shift = beta - mean * scale
    return scale.reshape(1, -1), shift.reshape(1, -1)


def _pick_row_block(rows):
    """Largest row block that divides `rows`, is a multiple of 8, and is <= 1024."""
    if rows % 8 != 0:
        return rows
    best = 8
    b = 8
    while b <= min(rows, 1024):
        if rows % b == 0:
            best = b
        b += 8
    if best == rows and rows % 16 == 0:
        best = rows // 2   # keep >=2 grid steps so the elementwise pass pipelines too
    return best


@functools.partial(jax.jit, static_argnames=("use_im2col",))
def resblock_forward(x_nchw, params, use_im2col=True):
    """ResBlock forward (training-mode BN). x_nchw: (N, C, H, W) f32 -> same shape."""
    N, C, H, W = x_nchw.shape
    x = jnp.transpose(x_nchw, (0, 2, 3, 1))                      # NHWC (C on lanes)
    # conv weights: OIHW -> HWIO, flattened to (9*C, C) for the im2col matmul
    w1_flat = jnp.transpose(params["w1"], (2, 3, 1, 0)).reshape(9 * C, C)
    w2_flat = jnp.transpose(params["w2"], (2, 3, 1, 0)).reshape(9 * C, C)

    cp = pltpu.CompilerParams(dimension_semantics=("parallel",),
                              vmem_limit_bytes=VMEM_LIMIT)

    # ---- pass 1: conv1 + BN1 partial stats --------------------------------------
    xp = jnp.pad(x, ((0, 0), (1, 1), (1, 1), (0, 0)))            # pad once, outside
    y1, s1, sq1 = pl.pallas_call(
        functools.partial(_conv1_stats_kernel, use_im2col),
        out_shape=(jax.ShapeDtypeStruct((N, H, W, C), jnp.float32),
                   jax.ShapeDtypeStruct((N, 1, C), jnp.float32),
                   jax.ShapeDtypeStruct((N, 1, C), jnp.float32)),
        grid=(N,),
        in_specs=[pl.BlockSpec((1, H + 2, W + 2, C), lambda n: (n, 0, 0, 0)),
                  pl.BlockSpec((9 * C, C), lambda n: (0, 0))],
        out_specs=(pl.BlockSpec((1, H, W, C), lambda n: (n, 0, 0, 0)),
                   pl.BlockSpec((1, 1, C), lambda n: (n, 0, 0)),
                   pl.BlockSpec((1, 1, C), lambda n: (n, 0, 0))),
        compiler_params=cp,
    )(xp, w1_flat)

    count = float(N * H * W)
    scale1, shift1 = _fold_bn(s1, sq1, params["g1"], params["b1"], count)

    # ---- pass 2: BN1-apply + ReLU + conv2 + BN2 partial stats --------------------
    y2, s2, sq2 = pl.pallas_call(
        functools.partial(_bn_relu_conv2_stats_kernel, use_im2col),
        out_shape=(jax.ShapeDtypeStruct((N, H, W, C), jnp.float32),
                   jax.ShapeDtypeStruct((N, 1, C), jnp.float32),
                   jax.ShapeDtypeStruct((N, 1, C), jnp.float32)),
        grid=(N,),
        in_specs=[pl.BlockSpec((1, H, W, C), lambda n: (n, 0, 0, 0)),
                  pl.BlockSpec((1, C), lambda n: (0, 0)),
                  pl.BlockSpec((1, C), lambda n: (0, 0)),
                  pl.BlockSpec((9 * C, C), lambda n: (0, 0))],
        out_specs=(pl.BlockSpec((1, H, W, C), lambda n: (n, 0, 0, 0)),
                   pl.BlockSpec((1, 1, C), lambda n: (n, 0, 0)),
                   pl.BlockSpec((1, 1, C), lambda n: (n, 0, 0))),
        scratch_shapes=[pltpu.VMEM((H + 2, W + 2, C), jnp.float32)],
        compiler_params=cp,
    )(y1, scale1, shift1, w2_flat)

    scale2, shift2 = _fold_bn(s2, sq2, params["g2"], params["b2"], count)

    # ---- pass 3: BN2-apply + residual add + ReLU (lane-dense view) ----------------
    total = N * H * W * C
    if total % 128 == 0 and 128 % C == 0:
        lanes = 128            # lane-dense: full-width unmasked vector stores
    else:
        lanes = C              # lane-sparse fallback (correct, just slower stores)
    rows = total // lanes
    rep = lanes // C
    br = _pick_row_block(rows)
    y2v = y2.reshape(rows, lanes)
    xv = x.reshape(rows, lanes)
    sc2 = jnp.tile(scale2.reshape(-1), rep).reshape(1, lanes)
    sh2 = jnp.tile(shift2.reshape(-1), rep).reshape(1, lanes)
    out2d = pl.pallas_call(
        _bn_add_relu_kernel,
        out_shape=jax.ShapeDtypeStruct((rows, lanes), jnp.float32),
        grid=(rows // br,),
        in_specs=[pl.BlockSpec((br, lanes), lambda i: (i, 0)),
                  pl.BlockSpec((br, lanes), lambda i: (i, 0)),
                  pl.BlockSpec((1, lanes), lambda i: (0, 0)),
                  pl.BlockSpec((1, lanes), lambda i: (0, 0))],
        out_specs=pl.BlockSpec((br, lanes), lambda i: (i, 0)),
        compiler_params=cp,
    )(y2v, xv, sc2, sh2)

    return jnp.transpose(out2d.reshape(N, H, W, C), (0, 3, 1, 2))   # back to NCHW


# ---------------------------------------------------------------------------
# plain-JAX reference (training-mode BN) for correctness checking
# ---------------------------------------------------------------------------
def reference(x_nchw, params):
    x = jnp.transpose(x_nchw, (0, 2, 3, 1))
    dn = ("NHWC", "HWIO", "NHWC")

    def bn(v, g, b):
        mean = jnp.mean(v, axis=(0, 1, 2), keepdims=True)
        var = jnp.mean((v - mean) ** 2, axis=(0, 1, 2), keepdims=True)
        return (v - mean) * jax.lax.rsqrt(var + EPS) * g.reshape(1, 1, 1, -1) \
            + b.reshape(1, 1, 1, -1)

    w1 = jnp.transpose(params["w1"], (2, 3, 1, 0))
    w2 = jnp.transpose(params["w2"], (2, 3, 1, 0))
    y = jax.lax.conv_general_dilated(x, w1, (1, 1), "SAME", dimension_numbers=dn)
    y = jnp.maximum(bn(y, params["g1"], params["b1"]), 0.0)
    y = jax.lax.conv_general_dilated(y, w2, (1, 1), "SAME", dimension_numbers=dn)
    y = bn(y, params["g2"], params["b2"])
    y = jnp.maximum(y + x, 0.0)
    return jnp.transpose(y, (0, 3, 1, 2))


if __name__ == "__main__":
    key = jax.random.PRNGKey(0)
    N, C, H, W = 2, 4, 16, 16          # in_c == out_c (required by the residual add)
    ks = jax.random.split(key, 7)
    x = jax.random.normal(ks[0], (N, C, H, W), jnp.float32)
    params = dict(
        w1=jax.random.normal(ks[1], (C, C, 3, 3), jnp.float32) / (3.0 * float(C) ** 0.5),
        g1=1.0 + 0.1 * jax.random.normal(ks[2], (C,), jnp.float32),
        b1=0.1 * jax.random.normal(ks[3], (C,), jnp.float32),
        w2=jax.random.normal(ks[4], (C, C, 3, 3), jnp.float32) / (3.0 * float(C) ** 0.5),
        g2=1.0 + 0.1 * jax.random.normal(ks[5], (C,), jnp.float32),
        b2=0.1 * jax.random.normal(ks[6], (C,), jnp.float32),
    )

    try:
        out = jax.block_until_ready(resblock_forward(x, params, use_im2col=True))
    except Exception:
        # Safety net: if concatenate-based im2col does not lower on this Mosaic
        # version, fall back to the 9-tap accumulation path (same math).
        out = jax.block_until_ready(resblock_forward(x, params, use_im2col=False))

    ref = reference(x, params)
    assert out.shape == x.shape
    assert bool(jnp.all(jnp.isfinite(out)))
    max_err = float(jnp.max(jnp.abs(out - ref)))
    assert max_err < 3e-2, max_err      # bf16 MXU inputs vs. f32 reference
    print("KERNEL_OK")
</pallas_src>

<mosaic_0001>
module attributes {stable_mosaic.version = 11 : i64} {
  func.func @_bn_relu_conv2_stats_kernel(%arg0: i32, %arg1: memref<1x16x16x4xf32, #tpu.memory_space<vmem>>, %arg2: memref<1x4xf32, #tpu.memory_space<vmem>>, %arg3: memref<1x4xf32, #tpu.memory_space<vmem>>, %arg4: memref<36x4xf32, #tpu.memory_space<vmem>>, %arg5: memref<1x16x16x4xf32, #tpu.memory_space<vmem>>, %arg6: memref<1x1x4xf32, #tpu.memory_space<vmem>>, %arg7: memref<1x1x4xf32, #tpu.memory_space<vmem>>, %arg8: memref<18x18x4xf32, #tpu.memory_space<vmem>>) attributes {dimension_semantics = [#tpu.dimension_semantics<parallel>], iteration_bounds = array<i64: 2>, scalar_prefetch = 0 : i64, scratch_operands = 1 : i64, tpu.core_type = #tpu.core_type<tc>, window_params = [{transform_indices = @transform_0, window_bounds = array<i64: 1, 16, 16, 4>}, {pipeline_mode = #tpu.pipeline_mode<synchronous>, transform_indices = @transform_1, window_bounds = array<i64: 1, 4>}, {pipeline_mode = #tpu.pipeline_mode<synchronous>, transform_indices = @transform_2, window_bounds = array<i64: 1, 4>}, {pipeline_mode = #tpu.pipeline_mode<synchronous>, transform_indices = @transform_3, window_bounds = array<i64: 36, 4>}, {transform_indices = @transform_4, window_bounds = array<i64: 1, 16, 16, 4>}, {transform_indices = @transform_5, window_bounds = array<i64: 1, 1, 4>}, {transform_indices = @transform_6, window_bounds = array<i64: 1, 1, 4>}]} {
    %c0 = arith.constant 0 : index
    %c0_0 = arith.constant 0 : index
    %c0_1 = arith.constant 0 : index
    %c0_2 = arith.constant 0 : index
    %0 = vector.load %arg1[%c0, %c0_0, %c0_1, %c0_2] : memref<1x16x16x4xf32, #tpu.memory_space<vmem>>, vector<1x16x16x4xf32>
    %1 = vector.shape_cast %0 : vector<1x16x16x4xf32> to vector<16x16x4xf32>
    %2 = vector.shape_cast %1 : vector<16x16x4xf32> to vector<256x4xf32>
    %c0_3 = arith.constant 0 : index
    %c0_4 = arith.constant 0 : index
    %3 = vector.load %arg2[%c0_3, %c0_4] : memref<1x4xf32, #tpu.memory_space<vmem>>, vector<1x4xf32>
    %4 = vector.broadcast %3 : vector<1x4xf32> to vector<256x4xf32>
    %5 = arith.mulf %2, %4 : vector<256x4xf32>
    %c0_5 = arith.constant 0 : index
    %c0_6 = arith.constant 0 : index
    %6 = vector.load %arg3[%c0_5, %c0_6] : memref<1x4xf32, #tpu.memory_space<vmem>>, vector<1x4xf32>
    %7 = vector.broadcast %6 : vector<1x4xf32> to vector<256x4xf32>
    %8 = arith.addf %5, %7 : vector<256x4xf32>
    %cst = arith.constant 0.000000e+00 : f32
    %9 = vector.broadcast %cst : f32 to vector<256x4xf32>
    %10 = arith.maximumf %8, %9 : vector<256x4xf32>
    %cst_7 = arith.constant 0.000000e+00 : f32
    %11 = vector.broadcast %cst_7 : f32 to vector<1x18x4xf32>
    %c0_8 = arith.constant 0 : index
    %c0_9 = arith.constant 0 : index
    %c0_10 = arith.constant 0 : index
    %12 = vector.load %arg8[%c0_8, %c0_9, %c0_10] : memref<18x18x4xf32, #tpu.memory_space<vmem>>, vector<1x18x4xf32>
    tpu.vector_store %arg8[%c0_8, %c0_9, %c0_10], %11 {strides = array<i32>} : memref<18x18x4xf32, #tpu.memory_space<vmem>>, vector<1x18x4xf32>,
    %cst_11 = arith.constant 0.000000e+00 : f32
    %13 = vector.broadcast %cst_11 : f32 to vector<1x18x4xf32>
    %c17 = arith.constant 17 : index
    %c0_12 = arith.constant 0 : index
    %c0_13 = arith.constant 0 : index
    %14 = vector.load %arg8[%c17, %c0_12, %c0_13] : memref<18x18x4xf32, #tpu.memory_space<vmem>>, vector<1x18x4xf32>
    tpu.vector_store %arg8[%c17, %c0_12, %c0_13], %13 {strides = array<i32>} : memref<18x18x4xf32, #tpu.memory_space<vmem>>, vector<1x18x4xf32>,
    %cst_14 = arith.constant 0.000000e+00 : f32
    %15 = vector.broadcast %cst_14 : f32 to vector<16x1x4xf32>
    %c1 = arith.constant 1 : index
    %c0_15 = arith.constant 0 : index
    %c0_16 = arith.constant 0 : index
    %16 = vector.load %arg8[%c1, %c0_15, %c0_16] : memref<18x18x4xf32, #tpu.memory_space<vmem>>, vector<16x1x4xf32>
    tpu.vector_store %arg8[%c1, %c0_15, %c0_16], %15 {strides = array<i32>} : memref<18x18x4xf32, #tpu.memory_space<vmem>>, vector<16x1x4xf32>,
    %cst_17 = arith.constant 0.000000e+00 : f32
    %17 = vector.broadcast %cst_17 : f32 to vector<16x1x4xf32>
    %c1_18 = arith.constant 1 : index
    %c17_19 = arith.constant 17 : index
    %c0_20 = arith.constant 0 : index
    %18 = vector.load %arg8[%c1_18, %c17_19, %c0_20] : memref<18x18x4xf32, #tpu.memory_space<vmem>>, vector<16x1x4xf32>
    tpu.vector_store %arg8[%c1_18, %c17_19, %c0_20], %17 {strides = array<i32>} : memref<18x18x4xf32, #tpu.memory_space<vmem>>, vector<16x1x4xf32>,
    %19 = vector.shape_cast %10 : vector<256x4xf32> to vector<16x16x4xf32>
    %c1_21 = arith.constant 1 : index
    %c1_22 = arith.constant 1 : index
    %c0_23 = arith.constant 0 : index
    %20 = vector.load %arg8[%c1_21, %c1_22, %c0_23] : memref<18x18x4xf32, #tpu.memory_space<vmem>>, vector<16x16x4xf32>
    tpu.vector_store %arg8[%c1_21, %c1_22, %c0_23], %19 {strides = array<i32>} : memref<18x18x4xf32, #tpu.memory_space<vmem>>, vector<16x16x4xf32>,
    %c0_24 = arith.constant 0 : index
    %c0_25 = arith.constant 0 : index
    %c0_26 = arith.constant 0 : index
    %21 = vector.load %arg8[%c0_24, %c0_25, %c0_26] : memref<18x18x4xf32, #tpu.memory_space<vmem>>, vector<18x18x4xf32>
    %c0_27 = arith.constant 0 : index
    %c0_28 = arith.constant 0 : index
    %22 = vector.load %arg4[%c0_27, %c0_28] : memref<36x4xf32, #tpu.memory_space<vmem>>, vector<36x4xf32>
    %23 = vector.extract_strided_slice %21 {offsets = [0, 0, 0], sizes = [16, 16, 4], strides = [1, 1, 1]} : vector<18x18x4xf32> to vector<16x16x4xf32>
    %24 = vector.shape_cast %23 : vector<16x16x4xf32> to vector<256x4xf32>
    %25 = vector.extract_strided_slice %21 {offsets = [0, 1, 0], sizes = [16, 16, 4], strides = [1, 1, 1]} : vector<18x18x4xf32> to vector<16x16x4xf32>
    %26 = vector.shape_cast %25 : vector<16x16x4xf32> to vector<256x4xf32>
    %27 = vector.extract_strided_slice %21 {offsets = [0, 2, 0], sizes = [16, 16, 4], strides = [1, 1, 1]} : vector<18x18x4xf32> to vector<16x16x4xf32>
    %28 = vector.shape_cast %27 : vector<16x16x4xf32> to vector<256x4xf32>
    %29 = vector.extract_strided_slice %21 {offsets = [1, 0, 0], sizes = [16, 16, 4], strides = [1, 1, 1]} : vector<18x18x4xf32> to vector<16x16x4xf32>
    %30 = vector.shape_cast %29 : vector<16x16x4xf32> to vector<256x4xf32>
    %31 = vector.extract_strided_slice %21 {offsets = [1, 1, 0], sizes = [16, 16, 4], strides = [1, 1, 1]} : vector<18x18x4xf32> to vector<16x16x4xf32>
    %32 = vector.shape_cast %31 : vector<16x16x4xf32> to vector<256x4xf32>
    %33 = vector.extract_strided_slice %21 {offsets = [1, 2, 0], sizes = [16, 16, 4], strides = [1, 1, 1]} : vector<18x18x4xf32> to vector<16x16x4xf32>
    %34 = vector.shape_cast %33 : vector<16x16x4xf32> to vector<256x4xf32>
    %35 = vector.extract_strided_slice %21 {offsets = [2, 0, 0], sizes = [16, 16, 4], strides = [1, 1, 1]} : vector<18x18x4xf32> to vector<16x16x4xf32>
    %36 = vector.shape_cast %35 : vector<16x16x4xf32> to vector<256x4xf32>
    %37 = vector.extract_strided_slice %21 {offsets = [2, 1, 0], sizes = [16, 16, 4], strides = [1, 1, 1]} : vector<18x18x4xf32> to vector<16x16x4xf32>
    %38 = vector.shape_cast %37 : vector<16x16x4xf32> to vector<256x4xf32>
    %39 = vector.extract_strided_slice %21 {offsets = [2, 2, 0], sizes = [16, 16, 4], strides = [1, 1, 1]} : vector<18x18x4xf32> to vector<16x16x4xf32>
    %40 = vector.shape_cast %39 : vector<16x16x4xf32> to vector<256x4xf32>
    %41 = tpu.concatenate %24, %26, %28, %30, %32, %34, %36, %38, %40 in 1 : vector<256x4xf32>, vector<256x4xf32>, vector<256x4xf32>, vector<256x4xf32>, vector<256x4xf32>, vector<256x4xf32>, vector<256x4xf32>, vector<256x4xf32>, vector<256x4xf32> -> vector<256x36xf32>
    %42 = arith.truncf %41 : vector<256x36xf32> to vector<256x36xbf16>
    %43 = arith.truncf %22 : vector<36x4xf32> to vector<36x4xbf16>
    %cst_29 = arith.constant dense<0.000000e+00> : vector<256x4xf32>
    %44 = tpu.matmul %42, %43, %cst_29 {dimension_numbers = #tpu.dot_dimension_numbers<[1], [0], [0], [1], [0, 0, 1, 1], [], []>} : vector<256x36xbf16>, vector<36x4xbf16>, vector<256x4xf32> -> vector<256x4xf32>
    %45 = vector.shape_cast %44 : vector<256x4xf32> to vector<1x16x16x4xf32>
    %c0_30 = arith.constant 0 : index
    %c0_31 = arith.constant 0 : index
    %c0_32 = arith.constant 0 : index
    %c0_33 = arith.constant 0 : index
    %46 = vector.load %arg5[%c0_30, %c0_31, %c0_32, %c0_33] : memref<1x16x16x4xf32, #tpu.memory_space<vmem>>, vector<1x16x16x4xf32>
    tpu.vector_store %arg5[%c0_30, %c0_31, %c0_32, %c0_33], %45 {strides = array<i32>} : memref<1x16x16x4xf32, #tpu.memory_space<vmem>>, vector<1x16x16x4xf32>,
    %cst_34 = arith.constant dense<0.000000e+00> : vector<4xf32>
    %47 = vector.multi_reduction <add>, %44, %cst_34 [0] : vector<256x4xf32> to vector<4xf32>
    %48 = vector.shape_cast %47 : vector<4xf32> to vector<1x4xf32>
    %49 = vector.shape_cast %48 : vector<1x4xf32> to vector<1x1x4xf32>
    %c0_35 = arith.constant 0 : index
    %c0_36 = arith.constant 0 : index
    %c0_37 = arith.constant 0 : index
    %50 = vector.load %arg6[%c0_35, %c0_36, %c0_37] : memref<1x1x4xf32, #tpu.memory_space<vmem>>, vector<1x1x4xf32>
    tpu.vector_store %arg6[%c0_35, %c0_36, %c0_37], %49 {strides = array<i32>} : memref<1x1x4xf32, #tpu.memory_space<vmem>>, vector<1x1x4xf32>,
    %51 = arith.mulf %44, %44 : vector<256x4xf32>
    %cst_38 = arith.constant dense<0.000000e+00> : vector<4xf32>
    %52 = vector.multi_reduction <add>, %51, %cst_38 [0] : vector<256x4xf32> to vector<4xf32>
    %53 = vector.shape_cast %52 : vector<4xf32> to vector<1x4xf32>
    %54 = vector.shape_cast %53 : vector<1x4xf32> to vector<1x1x4xf32>
    %c0_39 = arith.constant 0 : index
    %c0_40 = arith.constant 0 : index
    %c0_41 = arith.constant 0 : index
    %55 = vector.load %arg7[%c0_39, %c0_40, %c0_41] : memref<1x1x4xf32, #tpu.memory_space<vmem>>, vector<1x1x4xf32>
    tpu.vector_store %arg7[%c0_39, %c0_40, %c0_41], %54 {strides = array<i32>} : memref<1x1x4xf32, #tpu.memory_space<vmem>>, vector<1x1x4xf32>,
    return
  }
  func.func @transform_0(%arg0: i32) -> (i32, i32, i32, i32) {
    %c0_i32 = arith.constant 0 : i32
    %c0_i32_0 = arith.constant 0 : i32
    %c0_i32_1 = arith.constant 0 : i32
    %c0_i32_2 = arith.constant 0 : i32
    return %arg0, %c0_i32, %c0_i32_0, %c0_i32_1 : i32, i32, i32, i32
  }
  func.func @transform_1(%arg0: i32) -> (i32, i32) {
    %c0_i32 = arith.constant 0 : i32
    %c0_i32_0 = arith.constant 0 : i32
    %c0_i32_1 = arith.constant 0 : i32
    return %c0_i32, %c0_i32_0 : i32, i32
  }
  func.func @transform_2(%arg0: i32) -> (i32, i32) {
    %c0_i32 = arith.constant 0 : i32
    %c0_i32_0 = arith.constant 0 : i32
    %c0_i32_1 = arith.constant 0 : i32
    return %c0_i32, %c0_i32_0 : i32, i32
  }
  func.func @transform_3(%arg0: i32) -> (i32, i32) {
    %c0_i32 = arith.constant 0 : i32
    %c0_i32_0 = arith.constant 0 : i32
    %c0_i32_1 = arith.constant 0 : i32
    return %c0_i32, %c0_i32_0 : i32, i32
  }
  func.func @transform_4(%arg0: i32) -> (i32, i32, i32, i32) {
    %c0_i32 = arith.constant 0 : i32
    %c0_i32_0 = arith.constant 0 : i32
    %c0_i32_1 = arith.constant 0 : i32
    %c0_i32_2 = arith.constant 0 : i32
    return %arg0, %c0_i32, %c0_i32_0, %c0_i32_1 : i32, i32, i32, i32
  }
  func.func @transform_5(%arg0: i32) -> (i32, i32, i32) {
    %c0_i32 = arith.constant 0 : i32
    %c0_i32_0 = arith.constant 0 : i32
    %c0_i32_1 = arith.constant 0 : i32
    return %arg0, %c0_i32, %c0_i32_0 : i32, i32, i32
  }
  func.func @transform_6(%arg0: i32) -> (i32, i32, i32) {
    %c0_i32 = arith.constant 0 : i32
    %c0_i32_0 = arith.constant 0 : i32
    %c0_i32_1 = arith.constant 0 : i32
    return %arg0, %c0_i32, %c0_i32_0 : i32, i32, i32
  }
}

module attributes {stable_mosaic.version = 11 : i64} {
  func.func @_conv1_stats_kernel(%arg0: i32, %arg1: memref<1x18x18x4xf32, #tpu.memory_space<vmem>>, %arg2: memref<36x4xf32, #tpu.memory_space<vmem>>, %arg3: memref<1x16x16x4xf32, #tpu.memory_space<vmem>>, %arg4: memref<1x1x4xf32, #tpu.memory_space<vmem>>, %arg5: memref<1x1x4xf32, #tpu.memory_space<vmem>>) attributes {dimension_semantics = [#tpu.dimension_semantics<parallel>], iteration_bounds = array<i64: 2>, scalar_prefetch = 0 : i64, scratch_operands = 0 : i64, tpu.core_type = #tpu.core_type<tc>, window_params = [{transform_indices = @transform_0, window_bounds = array<i64: 1, 18, 18, 4>}, {pipeline_mode = #tpu.pipeline_mode<synchronous>, transform_indices = @transform_1, window_bounds = array<i64: 36, 4>}, {transform_indices = @transform_2, window_bounds = array<i64: 1, 16, 16, 4>}, {transform_indices = @transform_3, window_bounds = array<i64: 1, 1, 4>}, {transform_indices = @transform_4, window_bounds = array<i64: 1, 1, 4>}]} {
    %c0 = arith.constant 0 : index
    %c0_0 = arith.constant 0 : index
    %c0_1 = arith.constant 0 : index
    %c0_2 = arith.constant 0 : index
    %0 = vector.load %arg1[%c0, %c0_0, %c0_1, %c0_2] : memref<1x18x18x4xf32, #tpu.memory_space<vmem>>, vector<1x18x18x4xf32>
    %1 = vector.shape_cast %0 : vector<1x18x18x4xf32> to vector<18x18x4xf32>
    %c0_3 = arith.constant 0 : index
    %c0_4 = arith.constant 0 : index
    %2 = vector.load %arg2[%c0_3, %c0_4] : memref<36x4xf32, #tpu.memory_space<vmem>>, vector<36x4xf32>
    %3 = vector.extract_strided_slice %1 {offsets = [0, 0, 0], sizes = [16, 16, 4], strides = [1, 1, 1]} : vector<18x18x4xf32> to vector<16x16x4xf32>
    %4 = vector.shape_cast %3 : vector<16x16x4xf32> to vector<256x4xf32>
    %5 = vector.extract_strided_slice %1 {offsets = [0, 1, 0], sizes = [16, 16, 4], strides = [1, 1, 1]} : vector<18x18x4xf32> to vector<16x16x4xf32>
    %6 = vector.shape_cast %5 : vector<16x16x4xf32> to vector<256x4xf32>
    %7 = vector.extract_strided_slice %1 {offsets = [0, 2, 0], sizes = [16, 16, 4], strides = [1, 1, 1]} : vector<18x18x4xf32> to vector<16x16x4xf32>
    %8 = vector.shape_cast %7 : vector<16x16x4xf32> to vector<256x4xf32>
    %9 = vector.extract_strided_slice %1 {offsets = [1, 0, 0], sizes = [16, 16, 4], strides = [1, 1, 1]} : vector<18x18x4xf32> to vector<16x16x4xf32>
    %10 = vector.shape_cast %9 : vector<16x16x4xf32> to vector<256x4xf32>
    %11 = vector.extract_strided_slice %1 {offsets = [1, 1, 0], sizes = [16, 16, 4], strides = [1, 1, 1]} : vector<18x18x4xf32> to vector<16x16x4xf32>
    %12 = vector.shape_cast %11 : vector<16x16x4xf32> to vector<256x4xf32>
    %13 = vector.extract_strided_slice %1 {offsets = [1, 2, 0], sizes = [16, 16, 4], strides = [1, 1, 1]} : vector<18x18x4xf32> to vector<16x16x4xf32>
    %14 = vector.shape_cast %13 : vector<16x16x4xf32> to vector<256x4xf32>
    %15 = vector.extract_strided_slice %1 {offsets = [2, 0, 0], sizes = [16, 16, 4], strides = [1, 1, 1]} : vector<18x18x4xf32> to vector<16x16x4xf32>
    %16 = vector.shape_cast %15 : vector<16x16x4xf32> to vector<256x4xf32>
    %17 = vector.extract_strided_slice %1 {offsets = [2, 1, 0], sizes = [16, 16, 4], strides = [1, 1, 1]} : vector<18x18x4xf32> to vector<16x16x4xf32>
    %18 = vector.shape_cast %17 : vector<16x16x4xf32> to vector<256x4xf32>
    %19 = vector.extract_strided_slice %1 {offsets = [2, 2, 0], sizes = [16, 16, 4], strides = [1, 1, 1]} : vector<18x18x4xf32> to vector<16x16x4xf32>
    %20 = vector.shape_cast %19 : vector<16x16x4xf32> to vector<256x4xf32>
    %21 = tpu.concatenate %4, %6, %8, %10, %12, %14, %16, %18, %20 in 1 : vector<256x4xf32>, vector<256x4xf32>, vector<256x4xf32>, vector<256x4xf32>, vector<256x4xf32>, vector<256x4xf32>, vector<256x4xf32>, vector<256x4xf32>, vector<256x4xf32> -> vector<256x36xf32>
    %22 = arith.truncf %21 : vector<256x36xf32> to vector<256x36xbf16>
    %23 = arith.truncf %2 : vector<36x4xf32> to vector<36x4xbf16>
    %cst = arith.constant dense<0.000000e+00> : vector<256x4xf32>
    %24 = tpu.matmul %22, %23, %cst {dimension_numbers = #tpu.dot_dimension_numbers<[1], [0], [0], [1], [0, 0, 1, 1], [], []>} : vector<256x36xbf16>, vector<36x4xbf16>, vector<256x4xf32> -> vector<256x4xf32>
    %25 = vector.shape_cast %24 : vector<256x4xf32> to vector<1x16x16x4xf32>
    %c0_5 = arith.constant 0 : index
    %c0_6 = arith.constant 0 : index
    %c0_7 = arith.constant 0 : index
    %c0_8 = arith.constant 0 : index
    %26 = vector.load %arg3[%c0_5, %c0_6, %c0_7, %c0_8] : memref<1x16x16x4xf32, #tpu.memory_space<vmem>>, vector<1x16x16x4xf32>
    tpu.vector_store %arg3[%c0_5, %c0_6, %c0_7, %c0_8], %25 {strides = array<i32>} : memref<1x16x16x4xf32, #tpu.memory_space<vmem>>, vector<1x16x16x4xf32>,
    %cst_9 = arith.constant dense<0.000000e+00> : vector<4xf32>
    %27 = vector.multi_reduction <add>, %24, %cst_9 [0] : vector<256x4xf32> to vector<4xf32>
    %28 = vector.shape_cast %27 : vector<4xf32> to vector<1x4xf32>
    %29 = vector.shape_cast %28 : vector<1x4xf32> to vector<1x1x4xf32>
    %c0_10 = arith.constant 0 : index
    %c0_11 = arith.constant 0 : index
    %c0_12 = arith.constant 0 : index
    %30 = vector.load %arg4[%c0_10, %c0_11, %c0_12] : memref<1x1x4xf32, #tpu.memory_space<vmem>>, vector<1x1x4xf32>
    tpu.vector_store %arg4[%c0_10, %c0_11, %c0_12], %29 {strides = array<i32>} : memref<1x1x4xf32, #tpu.memory_space<vmem>>, vector<1x1x4xf32>,
    %31 = arith.mulf %24, %24 : vector<256x4xf32>
    %cst_13 = arith.constant dense<0.000000e+00> : vector<4xf32>
    %32 = vector.multi_reduction <add>, %31, %cst_13 [0] : vector<256x4xf32> to vector<4xf32>
    %33 = vector.shape_cast %32 : vector<4xf32> to vector<1x4xf32>
    %34 = vector.shape_cast %33 : vector<1x4xf32> to vector<1x1x4xf32>
    %c0_14 = arith.constant 0 : index
    %c0_15 = arith.constant 0 : index
    %c0_16 = arith.constant 0 : index
    %35 = vector.load %arg5[%c0_14, %c0_15, %c0_16] : memref<1x1x4xf32, #tpu.memory_space<vmem>>, vector<1x1x4xf32>
    tpu.vector_store %arg5[%c0_14, %c0_15, %c0_16], %34 {strides = array<i32>} : memref<1x1x4xf32, #tpu.memory_space<vmem>>, vector<1x1x4xf32>,
    return
  }
  func.func @transform_0(%arg0: i32) -> (i32, i32, i32, i32) {
    %c0_i32 = arith.constant 0 : i32
    %c0_i32_0 = arith.constant 0 : i32
    %c0_i32_1 = arith.constant 0 : i32
    %c0_i32_2 = arith.constant 0 : i32
    return %arg0, %c0_i32, %c0_i32_0, %c0_i32_1 : i32, i32, i32, i32
  }
  func.func @transform_1(%arg0: i32) -> (i32, i32) {
    %c0_i32 = arith.constant 0 : i32
    %c0_i32_0 = arith.constant 0 : i32
    %c0_i32_1 = arith.constant 0 : i32
    return %c0_i32, %c0_i32_0 : i32, i32
  }
  func.func @transform_2(%arg0: i32) -> (i32, i32, i32, i32) {
    %c0_i32 = arith.constant 0 : i32
    %c0_i32_0 = arith.constant 0 : i32
    %c0_i32_1 = arith.constant 0 : i32
    %c0_i32_2 = arith.constant 0 : i32
    return %arg0, %c0_i32, %c0_i32_0, %c0_i32_1 : i32, i32, i32, i32
  }
  func.func @transform_3(%arg0: i32) -> (i32, i32, i32) {
    %c0_i32 = arith.constant 0 : i32
    %c0_i32_0 = arith.constant 0 : i32
    %c0_i32_1 = arith.constant 0 : i32
    return %arg0, %c0_i32, %c0_i32_0 : i32, i32, i32
  }
  func.func @transform_4(%arg0: i32) -> (i32, i32, i32) {
    %c0_i32 = arith.constant 0 : i32
    %c0_i32_0 = arith.constant 0 : i32
    %c0_i32_1 = arith.constant 0 : i32
    return %arg0, %c0_i32, %c0_i32_0 : i32, i32, i32
  }
}

module attributes {stable_mosaic.version = 11 : i64} {
  func.func @_bn_add_relu_kernel(%arg0: i32, %arg1: memref<8x128xf32, #tpu.memory_space<vmem>>, %arg2: memref<8x128xf32, #tpu.memory_space<vmem>>, %arg3: memref<1x128xf32, #tpu.memory_space<vmem>>, %arg4: memref<1x128xf32, #tpu.memory_space<vmem>>, %arg5: memref<8x128xf32, #tpu.memory_space<vmem>>) attributes {dimension_semantics = [#tpu.dimension_semantics<parallel>], iteration_bounds = array<i64: 2>, scalar_prefetch = 0 : i64, scratch_operands = 0 : i64, tpu.core_type = #tpu.core_type<tc>, window_params = [{transform_indices = @transform_0, window_bounds = array<i64: 8, 128>}, {transform_indices = @transform_1, window_bounds = array<i64: 8, 128>}, {pipeline_mode = #tpu.pipeline_mode<synchronous>, transform_indices = @transform_2, window_bounds = array<i64: 1, 128>}, {pipeline_mode = #tpu.pipeline_mode<synchronous>, transform_indices = @transform_3, window_bounds = array<i64: 1, 128>}, {transform_indices = @transform_4, window_bounds = array<i64: 8, 128>}]} {
    %c0 = arith.constant 0 : index
    %c0_0 = arith.constant 0 : index
    %0 = vector.load %arg1[%c0, %c0_0] : memref<8x128xf32, #tpu.memory_space<vmem>>, vector<8x128xf32>
    %c0_1 = arith.constant 0 : index
    %c0_2 = arith.constant 0 : index
    %1 = vector.load %arg3[%c0_1, %c0_2] : memref<1x128xf32, #tpu.memory_space<vmem>>, vector<1x128xf32>
    %2 = vector.broadcast %1 : vector<1x128xf32> to vector<8x128xf32>
    %3 = arith.mulf %0, %2 : vector<8x128xf32>
    %c0_3 = arith.constant 0 : index
    %c0_4 = arith.constant 0 : index
    %4 = vector.load %arg4[%c0_3, %c0_4] : memref<1x128xf32, #tpu.memory_space<vmem>>, vector<1x128xf32>
    %5 = vector.broadcast %4 : vector<1x128xf32> to vector<8x128xf32>
    %6 = arith.addf %3, %5 : vector<8x128xf32>
    %c0_5 = arith.constant 0 : index
    %c0_6 = arith.constant 0 : index
    %7 = vector.load %arg2[%c0_5, %c0_6] : memref<8x128xf32, #tpu.memory_space<vmem>>, vector<8x128xf32>
    %8 = arith.addf %6, %7 : vector<8x128xf32>
    %cst = arith.constant 0.000000e+00 : f32
    %9 = vector.broadcast %cst : f32 to vector<8x128xf32>
    %10 = arith.maximumf %8, %9 : vector<8x128xf32>
    %c0_7 = arith.constant 0 : index
    %c0_8 = arith.constant 0 : index
    %11 = vector.load %arg5[%c0_7, %c0_8] : memref<8x128xf32, #tpu.memory_space<vmem>>, vector<8x128xf32>
    tpu.vector_store %arg5[%c0_7, %c0_8], %10 {strides = array<i32>} : memref<8x128xf32, #tpu.memory_space<vmem>>, vector<8x128xf32>,
    return
  }
  func.func @transform_0(%arg0: i32) -> (i32, i32) {
    %c0_i32 = arith.constant 0 : i32
    %c0_i32_0 = arith.constant 0 : i32
    return %arg0, %c0_i32 : i32, i32
  }
  func.func @transform_1(%arg0: i32) -> (i32, i32) {
    %c0_i32 = arith.constant 0 : i32
    %c0_i32_0 = arith.constant 0 : i32
    return %arg0, %c0_i32 : i32, i32
  }
  func.func @transform_2(%arg0: i32) -> (i32, i32) {
    %c0_i32 = arith.constant 0 : i32
    %c0_i32_0 = arith.constant 0 : i32
    %c0_i32_1 = arith.constant 0 : i32
    return %c0_i32, %c0_i32_0 : i32, i32
  }
  func.func @transform_3(%arg0: i32) -> (i32, i32) {
    %c0_i32 = arith.constant 0 : i32
    %c0_i32_0 = arith.constant 0 : i32
    %c0_i32_1 = arith.constant 0 : i32
    return %c0_i32, %c0_i32_0 : i32, i32
  }
  func.func @transform_4(%arg0: i32) -> (i32, i32) {
    %c0_i32 = arith.constant 0 : i32
    %c0_i32_0 = arith.constant 0 : i32
    return %arg0, %c0_i32 : i32, i32
  }
}

module attributes {stable_mosaic.version = 11 : i64} {
  func.func @_conv1_stats_kernel(%arg0: i32, %arg1: memref<1x18x18x4xf32, #tpu.memory_space<vmem>>, %arg2: memref<36x4xf32, #tpu.memory_space<vmem>>, %arg3: memref<1x16x16x4xf32, #tpu.memory_space<vmem>>, %arg4: memref<1x1x4xf32, #tpu.memory_space<vmem>>, %arg5: memref<1x1x4xf32, #tpu.memory_space<vmem>>) attributes {dimension_semantics = [#tpu.dimension_semantics<parallel>], iteration_bounds = array<i64: 2>, scalar_prefetch = 0 : i64, scratch_operands = 0 : i64, tpu.core_type = #tpu.core_type<tc>, window_params = [{transform_indices = @transform_0, window_bounds = array<i64: 1, 18, 18, 4>}, {pipeline_mode = #tpu.pipeline_mode<synchronous>, transform_indices = @transform_1, window_bounds = array<i64: 36, 4>}, {transform_indices = @transform_2, window_bounds = array<i64: 1, 16, 16, 4>}, {transform_indices = @transform_3, window_bounds = array<i64: 1, 1, 4>}, {transform_indices = @transform_4, window_bounds = array<i64: 1, 1, 4>}]} {
    %c0 = arith.constant 0 : index
    %c0_0 = arith.constant 0 : index
    %c0_1 = arith.constant 0 : index
    %c0_2 = arith.constant 0 : index
    %0 = vector.load %arg1[%c0, %c0_0, %c0_1, %c0_2] : memref<1x18x18x4xf32, #tpu.memory_space<vmem>>, vector<1x18x18x4xf32>
    %1 = vector.shape_cast %0 : vector<1x18x18x4xf32> to vector<18x18x4xf32>
    %c0_3 = arith.constant 0 : index
    %c0_4 = arith.constant 0 : index
    %2 = vector.load %arg2[%c0_3, %c0_4] : memref<36x4xf32, #tpu.memory_space<vmem>>, vector<36x4xf32>
    %3 = vector.extract_strided_slice %1 {offsets = [0, 0, 0], sizes = [16, 16, 4], strides = [1, 1, 1]} : vector<18x18x4xf32> to vector<16x16x4xf32>
    %4 = vector.shape_cast %3 : vector<16x16x4xf32> to vector<256x4xf32>
    %5 = vector.extract_strided_slice %1 {offsets = [0, 1, 0], sizes = [16, 16, 4], strides = [1, 1, 1]} : vector<18x18x4xf32> to vector<16x16x4xf32>
    %6 = vector.shape_cast %5 : vector<16x16x4xf32> to vector<256x4xf32>
    %7 = vector.extract_strided_slice %1 {offsets = [0, 2, 0], sizes = [16, 16, 4], strides = [1, 1, 1]} : vector<18x18x4xf32> to vector<16x16x4xf32>
    %8 = vector.shape_cast %7 : vector<16x16x4xf32> to vector<256x4xf32>
    %9 = vector.extract_strided_slice %1 {offsets = [1, 0, 0], sizes = [16, 16, 4], strides = [1, 1, 1]} : vector<18x18x4xf32> to vector<16x16x4xf32>
    %10 = vector.shape_cast %9 : vector<16x16x4xf32> to vector<256x4xf32>
    %11 = vector.extract_strided_slice %1 {offsets = [1, 1, 0], sizes = [16, 16, 4], strides = [1, 1, 1]} : vector<18x18x4xf32> to vector<16x16x4xf32>
    %12 = vector.shape_cast %11 : vector<16x16x4xf32> to vector<256x4xf32>
    %13 = vector.extract_strided_slice %1 {offsets = [1, 2, 0], sizes = [16, 16, 4], strides = [1, 1, 1]} : vector<18x18x4xf32> to vector<16x16x4xf32>
    %14 = vector.shape_cast %13 : vector<16x16x4xf32> to vector<256x4xf32>
    %15 = vector.extract_strided_slice %1 {offsets = [2, 0, 0], sizes = [16, 16, 4], strides = [1, 1, 1]} : vector<18x18x4xf32> to vector<16x16x4xf32>
    %16 = vector.shape_cast %15 : vector<16x16x4xf32> to vector<256x4xf32>
    %17 = vector.extract_strided_slice %1 {offsets = [2, 1, 0], sizes = [16, 16, 4], strides = [1, 1, 1]} : vector<18x18x4xf32> to vector<16x16x4xf32>
    %18 = vector.shape_cast %17 : vector<16x16x4xf32> to vector<256x4xf32>
    %19 = vector.extract_strided_slice %1 {offsets = [2, 2, 0], sizes = [16, 16, 4], strides = [1, 1, 1]} : vector<18x18x4xf32> to vector<16x16x4xf32>
    %20 = vector.shape_cast %19 : vector<16x16x4xf32> to vector<256x4xf32>
    %cst = arith.constant 0.000000e+00 : f32
    %21 = vector.broadcast %cst : f32 to vector<256x4xf32>
    %22 = vector.extract_strided_slice %2 {offsets = [0, 0], sizes = [4, 4], strides = [1, 1]} : vector<36x4xf32> to vector<4x4xf32>
    %23 = arith.truncf %22 : vector<4x4xf32> to vector<4x4xbf16>
    %24 = arith.truncf %4 : vector<256x4xf32> to vector<256x4xbf16>
    %cst_5 = arith.constant dense<0.000000e+00> : vector<256x4xf32>
    %25 = tpu.matmul %24, %23, %cst_5 {dimension_numbers = #tpu.dot_dimension_numbers<[1], [0], [0], [1], [0, 0, 1, 1], [], []>} : vector<256x4xbf16>, vector<4x4xbf16>, vector<256x4xf32> -> vector<256x4xf32>
    %26 = arith.addf %21, %25 : vector<256x4xf32>
    %27 = vector.extract_strided_slice %2 {offsets = [4, 0], sizes = [4, 4], strides = [1, 1]} : vector<36x4xf32> to vector<4x4xf32>
    %28 = arith.truncf %27 : vector<4x4xf32> to vector<4x4xbf16>
    %29 = arith.truncf %6 : vector<256x4xf32> to vector<256x4xbf16>
    %cst_6 = arith.constant dense<0.000000e+00> : vector<256x4xf32>
    %30 = tpu.matmul %29, %28, %cst_6 {dimension_numbers = #tpu.dot_dimension_numbers<[1], [0], [0], [1], [0, 0, 1, 1], [], []>} : vector<256x4xbf16>, vector<4x4xbf16>, vector<256x4xf32> -> vector<256x4xf32>
    %31 = arith.addf %26, %30 : vector<256x4xf32>
    %32 = vector.extract_strided_slice %2 {offsets = [8, 0], sizes = [4, 4], strides = [1, 1]} : vector<36x4xf32> to vector<4x4xf32>
    %33 = arith.truncf %32 : vector<4x4xf32> to vector<4x4xbf16>
    %34 = arith.truncf %8 : vector<256x4xf32> to vector<256x4xbf16>
    %cst_7 = arith.constant dense<0.000000e+00> : vector<256x4xf32>
    %35 = tpu.matmul %34, %33, %cst_7 {dimension_numbers = #tpu.dot_dimension_numbers<[1], [0], [0], [1], [0, 0, 1, 1], [], []>} : vector<256x4xbf16>, vector<4x4xbf16>, vector<256x4xf32> -> vector<256x4xf32>
    %36 = arith.addf %31, %35 : vector<256x4xf32>
    %37 = vector.extract_strided_slice %2 {offsets = [12, 0], sizes = [4, 4], strides = [1, 1]} : vector<36x4xf32> to vector<4x4xf32>
    %38 = arith.truncf %37 : vector<4x4xf32> to vector<4x4xbf16>
    %39 = arith.truncf %10 : vector<256x4xf32> to vector<256x4xbf16>
    %cst_8 = arith.constant dense<0.000000e+00> : vector<256x4xf32>
    %40 = tpu.matmul %39, %38, %cst_8 {dimension_numbers = #tpu.dot_dimension_numbers<[1], [0], [0], [1], [0, 0, 1, 1], [], []>} : vector<256x4xbf16>, vector<4x4xbf16>, vector<256x4xf32> -> vector<256x4xf32>
    %41 = arith.addf %36, %40 : vector<256x4xf32>
    %42 = vector.extract_strided_slice %2 {offsets = [16, 0], sizes = [4, 4], strides = [1, 1]} : vector<36x4xf32> to vector<4x4xf32>
    %43 = arith.truncf %42 : vector<4x4xf32> to vector<4x4xbf16>
    %44 = arith.truncf %12 : vector<256x4xf32> to vector<256x4xbf16>
    %cst_9 = arith.constant dense<0.000000e+00> : vector<256x4xf32>
    %45 = tpu.matmul %44, %43, %cst_9 {dimension_numbers = #tpu.dot_dimension_numbers<[1], [0], [0], [1], [0, 0, 1, 1], [], []>} : vector<256x4xbf16>, vector<4x4xbf16>, vector<256x4xf32> -> vector<256x4xf32>
    %46 = arith.addf %41, %45 : vector<256x4xf32>
    %47 = vector.extract_strided_slice %2 {offsets = [20, 0], sizes = [4, 4], strides = [1, 1]} : vector<36x4xf32> to vector<4x4xf32>
    %48 = arith.truncf %47 : vector<4x4xf32> to vector<4x4xbf16>
    %49 = arith.truncf %14 : vector<256x4xf32> to vector<256x4xbf16>
    %cst_10 = arith.constant dense<0.000000e+00> : vector<256x4xf32>
    %50 = tpu.matmul %49, %48, %cst_10 {dimension_numbers = #tpu.dot_dimension_numbers<[1], [0], [0], [1], [0, 0, 1, 1], [], []>} : vector<256x4xbf16>, vector<4x4xbf16>, vector<256x4xf32> -> vector<256x4xf32>
    %51 = arith.addf %46, %50 : vector<256x4xf32>
    %52 = vector.extract_strided_slice %2 {offsets = [24, 0], sizes = [4, 4], strides = [1, 1]} : vector<36x4xf32> to vector<4x4xf32>
    %53 = arith.truncf %52 : vector<4x4xf32> to vector<4x4xbf16>
    %54 = arith.truncf %16 : vector<256x4xf32> to vector<256x4xbf16>
    %cst_11 = arith.constant dense<0.000000e+00> : vector<256x4xf32>
    %55 = tpu.matmul %54, %53, %cst_11 {dimension_numbers = #tpu.dot_dimension_numbers<[1], [0], [0], [1], [0, 0, 1, 1], [], []>} : vector<256x4xbf16>, vector<4x4xbf16>, vector<256x4xf32> -> vector<256x4xf32>
    %56 = arith.addf %51, %55 : vector<256x4xf32>
    %57 = vector.extract_strided_slice %2 {offsets = [28, 0], sizes = [4, 4], strides = [1, 1]} : vector<36x4xf32> to vector<4x4xf32>
    %58 = arith.truncf %57 : vector<4x4xf32> to vector<4x4xbf16>
    %59 = arith.truncf %18 : vector<256x4xf32> to vector<256x4xbf16>
    %cst_12 = arith.constant dense<0.000000e+00> : vector<256x4xf32>
    %60 = tpu.matmul %59, %58, %cst_12 {dimension_numbers = #tpu.dot_dimension_numbers<[1], [0], [0], [1], [0, 0, 1, 1], [], []>} : vector<256x4xbf16>, vector<4x4xbf16>, vector<256x4xf32> -> vector<256x4xf32>
    %61 = arith.addf %56, %60 : vector<256x4xf32>
    %62 = vector.extract_strided_slice %2 {offsets = [32, 0], sizes = [4, 4], strides = [1, 1]} : vector<36x4xf32> to vector<4x4xf32>
    %63 = arith.truncf %62 : vector<4x4xf32> to vector<4x4xbf16>
    %64 = arith.truncf %20 : vector<256x4xf32> to vector<256x4xbf16>
    %cst_13 = arith.constant dense<0.000000e+00> : vector<256x4xf32>
    %65 = tpu.matmul %64, %63, %cst_13 {dimension_numbers = #tpu.dot_dimension_numbers<[1], [0], [0], [1], [0, 0, 1, 1], [], []>} : vector<256x4xbf16>, vector<4x4xbf16>, vector<256x4xf32> -> vector<256x4xf32>
    %66 = arith.addf %61, %65 : vector<256x4xf32>
    %67 = vector.shape_cast %66 : vector<256x4xf32> to vector<1x16x16x4xf32>
    %c0_14 = arith.constant 0 : index
    %c0_15 = arith.constant 0 : index
    %c0_16 = arith.constant 0 : index
    %c0_17 = arith.constant 0 : index
    %68 = vector.load %arg3[%c0_14, %c0_15, %c0_16, %c0_17] : memref<1x16x16x4xf32, #tpu.memory_space<vmem>>, vector<1x16x16x4xf32>
    tpu.vector_store %arg3[%c0_14, %c0_15, %c0_16, %c0_17], %67 {strides = array<i32>} : memref<1x16x16x4xf32, #tpu.memory_space<vmem>>, vector<1x16x16x4xf32>,
    %cst_18 = arith.constant dense<0.000000e+00> : vector<4xf32>
    %69 = vector.multi_reduction <add>, %66, %cst_18 [0] : vector<256x4xf32> to vector<4xf32>
    %70 = vector.shape_cast %69 : vector<4xf32> to vector<1x4xf32>
    %71 = vector.shape_cast %70 : vector<1x4xf32> to vector<1x1x4xf32>
    %c0_19 = arith.constant 0 : index
    %c0_20 = arith.constant 0 : index
    %c0_21 = arith.constant 0 : index
    %72 = vector.load %arg4[%c0_19, %c0_20, %c0_21] : memref<1x1x4xf32, #tpu.memory_space<vmem>>, vector<1x1x4xf32>
    tpu.vector_store %arg4[%c0_19, %c0_20, %c0_21], %71 {strides = array<i32>} : memref<1x1x4xf32, #tpu.memory_space<vmem>>, vector<1x1x4xf32>,
    %73 = arith.mulf %66, %66 : vector<256x4xf32>
    %cst_22 = arith.constant dense<0.000000e+00> : vector<4xf32>
    %74 = vector.multi_reduction <add>, %73, %cst_22 [0] : vector<256x4xf32> to vector<4xf32>
    %75 = vector.shape_cast %74 : vector<4xf32> to vector<1x4xf32>
    %76 = vector.shape_cast %75 : vector<1x4xf32> to vector<1x1x4xf32>
    %c0_23 = arith.constant 0 : index
    %c0_24 = arith.constant 0 : index
    %c0_25 = arith.constant 0 : index
    %77 = vector.load %arg5[%c0_23, %c0_24, %c0_25] : memref<1x1x4xf32, #tpu.memory_space<vmem>>, vector<1x1x4xf32>
    tpu.vector_store %arg5[%c0_23, %c0_24, %c0_25], %76 {strides = array<i32>} : memref<1x1x4xf32, #tpu.memory_space<vmem>>, vector<1x1x4xf32>,
    return
  }
  func.func @transform_0(%arg0: i32) -> (i32, i32, i32, i32) {
    %c0_i32 = arith.constant 0 : i32
    %c0_i32_0 = arith.constant 0 : i32
    %c0_i32_1 = arith.constant 0 : i32
    %c0_i32_2 = arith.constant 0 : i32
    return %arg0, %c0_i32, %c0_i32_0, %c0_i32_1 : i32, i32, i32, i32
  }
  func.func @transform_1(%arg0: i32) -> (i32, i32) {
    %c0_i32 = arith.constant 0 : i32
    %c0_i32_0 = arith.constant 0 : i32
    %c0_i32_1 = arith.constant 0 : i32
    return %c0_i32, %c0_i32_0 : i32, i32
  }
  func.func @transform_2(%arg0: i32) -> (i32, i32, i32, i32) {
    %c0_i32 = arith.constant 0 : i32
    %c0_i32_0 = arith.constant 0 : i32
    %c0_i32_1 = arith.constant 0 : i32
    %c0_i32_2 = arith.constant 0 : i32
    return %arg0, %c0_i32, %c0_i32_0, %c0_i32_1 : i32, i32, i32, i32
  }
  func.func @transform_3(%arg0: i32) -> (i32, i32, i32) {
    %c0_i32 = arith.constant 0 : i32
    %c0_i32_0 = arith.constant 0 : i32
    %c0_i32_1 = arith.constant 0 : i32
    return %arg0, %c0_i32, %c0_i32_0 : i32, i32, i32
  }
  func.func @transform_4(%arg0: i32) -> (i32, i32, i32) {
    %c0_i32 = arith.constant 0 : i32
    %c0_i32_0 = arith.constant 0 : i32
    %c0_i32_1 = arith.constant 0 : i32
    return %arg0, %c0_i32, %c0_i32_0 : i32, i32, i32
  }
}

module attributes {stable_mosaic.version = 11 : i64} {
  func.func @_bn_relu_conv2_stats_kernel(%arg0: i32, %arg1: memref<1x16x16x4xf32, #tpu.memory_space<vmem>>, %arg2: memref<1x4xf32, #tpu.memory_space<vmem>>, %arg3: memref<1x4xf32, #tpu.memory_space<vmem>>, %arg4: memref<36x4xf32, #tpu.memory_space<vmem>>, %arg5: memref<1x16x16x4xf32, #tpu.memory_space<vmem>>, %arg6: memref<1x1x4xf32, #tpu.memory_space<vmem>>, %arg7: memref<1x1x4xf32, #tpu.memory_space<vmem>>, %arg8: memref<18x18x4xf32, #tpu.memory_space<vmem>>) attributes {dimension_semantics = [#tpu.dimension_semantics<parallel>], iteration_bounds = array<i64: 2>, scalar_prefetch = 0 : i64, scratch_operands = 1 : i64, tpu.core_type = #tpu.core_type<tc>, window_params = [{transform_indices = @transform_0, window_bounds = array<i64: 1, 16, 16, 4>}, {pipeline_mode = #tpu.pipeline_mode<synchronous>, transform_indices = @transform_1, window_bounds = array<i64: 1, 4>}, {pipeline_mode = #tpu.pipeline_mode<synchronous>, transform_indices = @transform_2, window_bounds = array<i64: 1, 4>}, {pipeline_mode = #tpu.pipeline_mode<synchronous>, transform_indices = @transform_3, window_bounds = array<i64: 36, 4>}, {transform_indices = @transform_4, window_bounds = array<i64: 1, 16, 16, 4>}, {transform_indices = @transform_5, window_bounds = array<i64: 1, 1, 4>}, {transform_indices = @transform_6, window_bounds = array<i64: 1, 1, 4>}]} {
    %c0 = arith.constant 0 : index
    %c0_0 = arith.constant 0 : index
    %c0_1 = arith.constant 0 : index
    %c0_2 = arith.constant 0 : index
    %0 = vector.load %arg1[%c0, %c0_0, %c0_1, %c0_2] : memref<1x16x16x4xf32, #tpu.memory_space<vmem>>, vector<1x16x16x4xf32>
    %1 = vector.shape_cast %0 : vector<1x16x16x4xf32> to vector<16x16x4xf32>
    %2 = vector.shape_cast %1 : vector<16x16x4xf32> to vector<256x4xf32>
    %c0_3 = arith.constant 0 : index
    %c0_4 = arith.constant 0 : index
    %3 = vector.load %arg2[%c0_3, %c0_4] : memref<1x4xf32, #tpu.memory_space<vmem>>, vector<1x4xf32>
    %4 = vector.broadcast %3 : vector<1x4xf32> to vector<256x4xf32>
    %5 = arith.mulf %2, %4 : vector<256x4xf32>
    %c0_5 = arith.constant 0 : index
    %c0_6 = arith.constant 0 : index
    %6 = vector.load %arg3[%c0_5, %c0_6] : memref<1x4xf32, #tpu.memory_space<vmem>>, vector<1x4xf32>
    %7 = vector.broadcast %6 : vector<1x4xf32> to vector<256x4xf32>
    %8 = arith.addf %5, %7 : vector<256x4xf32>
    %cst = arith.constant 0.000000e+00 : f32
    %9 = vector.broadcast %cst : f32 to vector<256x4xf32>
    %10 = arith.maximumf %8, %9 : vector<256x4xf32>
    %cst_7 = arith.constant 0.000000e+00 : f32
    %11 = vector.broadcast %cst_7 : f32 to vector<1x18x4xf32>
    %c0_8 = arith.constant 0 : index
    %c0_9 = arith.constant 0 : index
    %c0_10 = arith.constant 0 : index
    %12 = vector.load %arg8[%c0_8, %c0_9, %c0_10] : memref<18x18x4xf32, #tpu.memory_space<vmem>>, vector<1x18x4xf32>
    tpu.vector_store %arg8[%c0_8, %c0_9, %c0_10], %11 {strides = array<i32>} : memref<18x18x4xf32, #tpu.memory_space<vmem>>, vector<1x18x4xf32>,
    %cst_11 = arith.constant 0.000000e+00 : f32
    %13 = vector.broadcast %cst_11 : f32 to vector<1x18x4xf32>
    %c17 = arith.constant 17 : index
    %c0_12 = arith.constant 0 : index
    %c0_13 = arith.constant 0 : index
    %14 = vector.load %arg8[%c17, %c0_12, %c0_13] : memref<18x18x4xf32, #tpu.memory_space<vmem>>, vector<1x18x4xf32>
    tpu.vector_store %arg8[%c17, %c0_12, %c0_13], %13 {strides = array<i32>} : memref<18x18x4xf32, #tpu.memory_space<vmem>>, vector<1x18x4xf32>,
    %cst_14 = arith.constant 0.000000e+00 : f32
    %15 = vector.broadcast %cst_14 : f32 to vector<16x1x4xf32>
    %c1 = arith.constant 1 : index
    %c0_15 = arith.constant 0 : index
    %c0_16 = arith.constant 0 : index
    %16 = vector.load %arg8[%c1, %c0_15, %c0_16] : memref<18x18x4xf32, #tpu.memory_space<vmem>>, vector<16x1x4xf32>
    tpu.vector_store %arg8[%c1, %c0_15, %c0_16], %15 {strides = array<i32>} : memref<18x18x4xf32, #tpu.memory_space<vmem>>, vector<16x1x4xf32>,
    %cst_17 = arith.constant 0.000000e+00 : f32
    %17 = vector.broadcast %cst_17 : f32 to vector<16x1x4xf32>
    %c1_18 = arith.constant 1 : index
    %c17_19 = arith.constant 17 : index
    %c0_20 = arith.constant 0 : index
    %18 = vector.load %arg8[%c1_18, %c17_19, %c0_20] : memref<18x18x4xf32, #tpu.memory_space<vmem>>, vector<16x1x4xf32>
    tpu.vector_store %arg8[%c1_18, %c17_19, %c0_20], %17 {strides = array<i32>} : memref<18x18x4xf32, #tpu.memory_space<vmem>>, vector<16x1x4xf32>,
    %19 = vector.shape_cast %10 : vector<256x4xf32> to vector<16x16x4xf32>
    %c1_21 = arith.constant 1 : index
    %c1_22 = arith.constant 1 : index
    %c0_23 = arith.constant 0 : index
    %20 = vector.load %arg8[%c1_21, %c1_22, %c0_23] : memref<18x18x4xf32, #tpu.memory_space<vmem>>, vector<16x16x4xf32>
    tpu.vector_store %arg8[%c1_21, %c1_22, %c0_23], %19 {strides = array<i32>} : memref<18x18x4xf32, #tpu.memory_space<vmem>>, vector<16x16x4xf32>,
    %c0_24 = arith.constant 0 : index
    %c0_25 = arith.constant 0 : index
    %c0_26 = arith.constant 0 : index
    %21 = vector.load %arg8[%c0_24, %c0_25, %c0_26] : memref<18x18x4xf32, #tpu.memory_space<vmem>>, vector<18x18x4xf32>
    %c0_27 = arith.constant 0 : index
    %c0_28 = arith.constant 0 : index
    %22 = vector.load %arg4[%c0_27, %c0_28] : memref<36x4xf32, #tpu.memory_space<vmem>>, vector<36x4xf32>
    %23 = vector.extract_strided_slice %21 {offsets = [0, 0, 0], sizes = [16, 16, 4], strides = [1, 1, 1]} : vector<18x18x4xf32> to vector<16x16x4xf32>
    %24 = vector.shape_cast %23 : vector<16x16x4xf32> to vector<256x4xf32>
    %25 = vector.extract_strided_slice %21 {offsets = [0, 1, 0], sizes = [16, 16, 4], strides = [1, 1, 1]} : vector<18x18x4xf32> to vector<16x16x4xf32>
    %26 = vector.shape_cast %25 : vector<16x16x4xf32> to vector<256x4xf32>
    %27 = vector.extract_strided_slice %21 {offsets = [0, 2, 0], sizes = [16, 16, 4], strides = [1, 1, 1]} : vector<18x18x4xf32> to vector<16x16x4xf32>
    %28 = vector.shape_cast %27 : vector<16x16x4xf32> to vector<256x4xf32>
    %29 = vector.extract_strided_slice %21 {offsets = [1, 0, 0], sizes = [16, 16, 4], strides = [1, 1, 1]} : vector<18x18x4xf32> to vector<16x16x4xf32>
    %30 = vector.shape_cast %29 : vector<16x16x4xf32> to vector<256x4xf32>
    %31 = vector.extract_strided_slice %21 {offsets = [1, 1, 0], sizes = [16, 16, 4], strides = [1, 1, 1]} : vector<18x18x4xf32> to vector<16x16x4xf32>
    %32 = vector.shape_cast %31 : vector<16x16x4xf32> to vector<256x4xf32>
    %33 = vector.extract_strided_slice %21 {offsets = [1, 2, 0], sizes = [16, 16, 4], strides = [1, 1, 1]} : vector<18x18x4xf32> to vector<16x16x4xf32>
    %34 = vector.shape_cast %33 : vector<16x16x4xf32> to vector<256x4xf32>
    %35 = vector.extract_strided_slice %21 {offsets = [2, 0, 0], sizes = [16, 16, 4], strides = [1, 1, 1]} : vector<18x18x4xf32> to vector<16x16x4xf32>
    %36 = vector.shape_cast %35 : vector<16x16x4xf32> to vector<256x4xf32>
    %37 = vector.extract_strided_slice %21 {offsets = [2, 1, 0], sizes = [16, 16, 4], strides = [1, 1, 1]} : vector<18x18x4xf32> to vector<16x16x4xf32>
    %38 = vector.shape_cast %37 : vector<16x16x4xf32> to vector<256x4xf32>
    %39 = vector.extract_strided_slice %21 {offsets = [2, 2, 0], sizes = [16, 16, 4], strides = [1, 1, 1]} : vector<18x18x4xf32> to vector<16x16x4xf32>
    %40 = vector.shape_cast %39 : vector<16x16x4xf32> to vector<256x4xf32>
    %cst_29 = arith.constant 0.000000e+00 : f32
    %41 = vector.broadcast %cst_29 : f32 to vector<256x4xf32>
    %42 = vector.extract_strided_slice %22 {offsets = [0, 0], sizes = [4, 4], strides = [1, 1]} : vector<36x4xf32> to vector<4x4xf32>
    %43 = arith.truncf %42 : vector<4x4xf32> to vector<4x4xbf16>
    %44 = arith.truncf %24 : vector<256x4xf32> to vector<256x4xbf16>
    %cst_30 = arith.constant dense<0.000000e+00> : vector<256x4xf32>
    %45 = tpu.matmul %44, %43, %cst_30 {dimension_numbers = #tpu.dot_dimension_numbers<[1], [0], [0], [1], [0, 0, 1, 1], [], []>} : vector<256x4xbf16>, vector<4x4xbf16>, vector<256x4xf32> -> vector<256x4xf32>
    %46 = arith.addf %41, %45 : vector<256x4xf32>
    %47 = vector.extract_strided_slice %22 {offsets = [4, 0], sizes = [4, 4], strides = [1, 1]} : vector<36x4xf32> to vector<4x4xf32>
    %48 = arith.truncf %47 : vector<4x4xf32> to vector<4x4xbf16>
    %49 = arith.truncf %26 : vector<256x4xf32> to vector<256x4xbf16>
    %cst_31 = arith.constant dense<0.000000e+00> : vector<256x4xf32>
    %50 = tpu.matmul %49, %48, %cst_31 {dimension_numbers = #tpu.dot_dimension_numbers<[1], [0], [0], [1], [0, 0, 1, 1], [], []>} : vector<256x4xbf16>, vector<4x4xbf16>, vector<256x4xf32> -> vector<256x4xf32>
    %51 = arith.addf %46, %50 : vector<256x4xf32>
    %52 = vector.extract_strided_slice %22 {offsets = [8, 0], sizes = [4, 4], strides = [1, 1]} : vector<36x4xf32> to vector<4x4xf32>
    %53 = arith.truncf %52 : vector<4x4xf32> to vector<4x4xbf16>
    %54 = arith.truncf %28 : vector<256x4xf32> to vector<256x4xbf16>
    %cst_32 = arith.constant dense<0.000000e+00> : vector<256x4xf32>
    %55 = tpu.matmul %54, %53, %cst_32 {dimension_numbers = #tpu.dot_dimension_numbers<[1], [0], [0], [1], [0, 0, 1, 1], [], []>} : vector<256x4xbf16>, vector<4x4xbf16>, vector<256x4xf32> -> vector<256x4xf32>
    %56 = arith.addf %51, %55 : vector<256x4xf32>
    %57 = vector.extract_strided_slice %22 {offsets = [12, 0], sizes = [4, 4], strides = [1, 1]} : vector<36x4xf32> to vector<4x4xf32>
    %58 = arith.truncf %57 : vector<4x4xf32> to vector<4x4xbf16>
    %59 = arith.truncf %30 : vector<256x4xf32> to vector<256x4xbf16>
    %cst_33 = arith.constant dense<0.000000e+00> : vector<256x4xf32>
    %60 = tpu.matmul %59, %58, %cst_33 {dimension_numbers = #tpu.dot_dimension_numbers<[1], [0], [0], [1], [0, 0, 1, 1], [], []>} : vector<256x4xbf16>, vector<4x4xbf16>, vector<256x4xf32> -> vector<256x4xf32>
    %61 = arith.addf %56, %60 : vector<256x4xf32>
    %62 = vector.extract_strided_slice %22 {offsets = [16, 0], sizes = [4, 4], strides = [1, 1]} : vector<36x4xf32> to vector<4x4xf32>
    %63 = arith.truncf %62 : vector<4x4xf32> to vector<4x4xbf16>
    %64 = arith.truncf %32 : vector<256x4xf32> to vector<256x4xbf16>
    %cst_34 = arith.constant dense<0.000000e+00> : vector<256x4xf32>
    %65 = tpu.matmul %64, %63, %cst_34 {dimension_numbers = #tpu.dot_dimension_numbers<[1], [0], [0], [1], [0, 0, 1, 1], [], []>} : vector<256x4xbf16>, vector<4x4xbf16>, vector<256x4xf32> -> vector<256x4xf32>
    %66 = arith.addf %61, %65 : vector<256x4xf32>
    %67 = vector.extract_strided_slice %22 {offsets = [20, 0], sizes = [4, 4], strides = [1, 1]} : vector<36x4xf32> to vector<4x4xf32>
    %68 = arith.truncf %67 : vector<4x4xf32> to vector<4x4xbf16>
    %69 = arith.truncf %34 : vector<256x4xf32> to vector<256x4xbf16>
    %cst_35 = arith.constant dense<0.000000e+00> : vector<256x4xf32>
    %70 = tpu.matmul %69, %68, %cst_35 {dimension_numbers = #tpu.dot_dimension_numbers<[1], [0], [0], [1], [0, 0, 1, 1], [], []>} : vector<256x4xbf16>, vector<4x4xbf16>, vector<256x4xf32> -> vector<256x4xf32>
    %71 = arith.addf %66, %70 : vector<256x4xf32>
    %72 = vector.extract_strided_slice %22 {offsets = [24, 0], sizes = [4, 4], strides = [1, 1]} : vector<36x4xf32> to vector<4x4xf32>
    %73 = arith.truncf %72 : vector<4x4xf32> to vector<4x4xbf16>
    %74 = arith.truncf %36 : vector<256x4xf32> to vector<256x4xbf16>
    %cst_36 = arith.constant dense<0.000000e+00> : vector<256x4xf32>
    %75 = tpu.matmul %74, %73, %cst_36 {dimension_numbers = #tpu.dot_dimension_numbers<[1], [0], [0], [1], [0, 0, 1, 1], [], []>} : vector<256x4xbf16>, vector<4x4xbf16>, vector<256x4xf32> -> vector<256x4xf32>
    %76 = arith.addf %71, %75 : vector<256x4xf32>
    %77 = vector.extract_strided_slice %22 {offsets = [28, 0], sizes = [4, 4], strides = [1, 1]} : vector<36x4xf32> to vector<4x4xf32>
    %78 = arith.truncf %77 : vector<4x4xf32> to vector<4x4xbf16>
    %79 = arith.truncf %38 : vector<256x4xf32> to vector<256x4xbf16>
    %cst_37 = arith.constant dense<0.000000e+00> : vector<256x4xf32>
    %80 = tpu.matmul %79, %78, %cst_37 {dimension_numbers = #tpu.dot_dimension_numbers<[1], [0], [0], [1], [0, 0, 1, 1], [], []>} : vector<256x4xbf16>, vector<4x4xbf16>, vector<256x4xf32> -> vector<256x4xf32>
    %81 = arith.addf %76, %80 : vector<256x4xf32>
    %82 = vector.extract_strided_slice %22 {offsets = [32, 0], sizes = [4, 4], strides = [1, 1]} : vector<36x4xf32> to vector<4x4xf32>
    %83 = arith.truncf %82 : vector<4x4xf32> to vector<4x4xbf16>
    %84 = arith.truncf %40 : vector<256x4xf32> to vector<256x4xbf16>
    %cst_38 = arith.constant dense<0.000000e+00> : vector<256x4xf32>
    %85 = tpu.matmul %84, %83, %cst_38 {dimension_numbers = #tpu.dot_dimension_numbers<[1], [0], [0], [1], [0, 0, 1, 1], [], []>} : vector<256x4xbf16>, vector<4x4xbf16>, vector<256x4xf32> -> vector<256x4xf32>
    %86 = arith.addf %81, %85 : vector<256x4xf32>
    %87 = vector.shape_cast %86 : vector<256x4xf32> to vector<1x16x16x4xf32>
    %c0_39 = arith.constant 0 : index
    %c0_40 = arith.constant 0 : index
    %c0_41 = arith.constant 0 : index
    %c0_42 = arith.constant 0 : index
    %88 = vector.load %arg5[%c0_39, %c0_40, %c0_41, %c0_42] : memref<1x16x16x4xf32, #tpu.memory_space<vmem>>, vector<1x16x16x4xf32>
    tpu.vector_store %arg5[%c0_39, %c0_40, %c0_41, %c0_42], %87 {strides = array<i32>} : memref<1x16x16x4xf32, #tpu.memory_space<vmem>>, vector<1x16x16x4xf32>,
    %cst_43 = arith.constant dense<0.000000e+00> : vector<4xf32>
    %89 = vector.multi_reduction <add>, %86, %cst_43 [0] : vector<256x4xf32> to vector<4xf32>
    %90 = vector.shape_cast %89 : vector<4xf32> to vector<1x4xf32>
    %91 = vector.shape_cast %90 : vector<1x4xf32> to vector<1x1x4xf32>
    %c0_44 = arith.constant 0 : index
    %c0_45 = arith.constant 0 : index
    %c0_46 = arith.constant 0 : index
    %92 = vector.load %arg6[%c0_44, %c0_45, %c0_46] : memref<1x1x4xf32, #tpu.memory_space<vmem>>, vector<1x1x4xf32>
    tpu.vector_store %arg6[%c0_44, %c0_45, %c0_46], %91 {strides = array<i32>} : memref<1x1x4xf32, #tpu.memory_space<vmem>>, vector<1x1x4xf32>,
    %93 = arith.mulf %86, %86 : vector<256x4xf32>
    %cst_47 = arith.constant dense<0.000000e+00> : vector<4xf32>
    %94 = vector.multi_reduction <add>, %93, %cst_47 [0] : vector<256x4xf32> to vector<4xf32>
    %95 = vector.shape_cast %94 : vector<4xf32> to vector<1x4xf32>
    %96 = vector.shape_cast %95 : vector<1x4xf32> to vector<1x1x4xf32>
    %c0_48 = arith.constant 0 : index
    %c0_49 = arith.constant 0 : index
    %c0_50 = arith.constant 0 : index
    %97 = vector.load %arg7[%c0_48, %c0_49, %c0_50] : memref<1x1x4xf32, #tpu.memory_space<vmem>>, vector<1x1x4xf32>
    tpu.vector_store %arg7[%c0_48, %c0_49, %c0_50], %96 {strides = array<i32>} : memref<1x1x4xf32, #tpu.memory_space<vmem>>, vector<1x1x4xf32>,
    return
  }
  func.func @transform_0(%arg0: i32) -> (i32, i32, i32, i32) {
    %c0_i32 = arith.constant 0 : i32
    %c0_i32_0 = arith.constant 0 : i32
    %c0_i32_1 = arith.constant 0 : i32
    %c0_i32_2 = arith.constant 0 : i32
    return %arg0, %c0_i32, %c0_i32_0, %c0_i32_1 : i32, i32, i32, i32
  }
  func.func @transform_1(%arg0: i32) -> (i32, i32) {
    %c0_i32 = arith.constant 0 : i32
    %c0_i32_0 = arith.constant 0 : i32
    %c0_i32_1 = arith.constant 0 : i32
    return %c0_i32, %c0_i32_0 : i32, i32
  }
  func.func @transform_2(%arg0: i32) -> (i32, i32) {
    %c0_i32 = arith.constant 0 : i32
    %c0_i32_0 = arith.constant 0 : i32
    %c0_i32_1 = arith.constant 0 : i32
    return %c0_i32, %c0_i32_0 : i32, i32
  }
  func.func @transform_3(%arg0: i32) -> (i32, i32) {
    %c0_i32 = arith.constant 0 : i32
    %c0_i32_0 = arith.constant 0 : i32
    %c0_i32_1 = arith.constant 0 : i32
    return %c0_i32, %c0_i32_0 : i32, i32
  }
  func.func @transform_4(%arg0: i32) -> (i32, i32, i32, i32) {
    %c0_i32 = arith.constant 0 : i32
    %c0_i32_0 = arith.constant 0 : i32
    %c0_i32_1 = arith.constant 0 : i32
    %c0_i32_2 = arith.constant 0 : i32
    return %arg0, %c0_i32, %c0_i32_0, %c0_i32_1 : i32, i32, i32, i32
  }
  func.func @transform_5(%arg0: i32) -> (i32, i32, i32) {
    %c0_i32 = arith.constant 0 : i32
    %c0_i32_0 = arith.constant 0 : i32
    %c0_i32_1 = arith.constant 0 : i32
    return %arg0, %c0_i32, %c0_i32_0 : i32, i32, i32
  }
  func.func @transform_6(%arg0: i32) -> (i32, i32, i32) {
    %c0_i32 = arith.constant 0 : i32
    %c0_i32_0 = arith.constant 0 : i32
    %c0_i32_1 = arith.constant 0 : i32
    return %arg0, %c0_i32, %c0_i32_0 : i32, i32, i32
  }
}

module attributes {stable_mosaic.version = 11 : i64} {
  func.func @_bn_add_relu_kernel(%arg0: i32, %arg1: memref<8x128xf32, #tpu.memory_space<vmem>>, %arg2: memref<8x128xf32, #tpu.memory_space<vmem>>, %arg3: memref<1x128xf32, #tpu.memory_space<vmem>>, %arg4: memref<1x128xf32, #tpu.memory_space<vmem>>, %arg5: memref<8x128xf32, #tpu.memory_space<vmem>>) attributes {dimension_semantics = [#tpu.dimension_semantics<parallel>], iteration_bounds = array<i64: 2>, scalar_prefetch = 0 : i64, scratch_operands = 0 : i64, tpu.core_type = #tpu.core_type<tc>, window_params = [{transform_indices = @transform_0, window_bounds = array<i64: 8, 128>}, {transform_indices = @transform_1, window_bounds = array<i64: 8, 128>}, {pipeline_mode = #tpu.pipeline_mode<synchronous>, transform_indices = @transform_2, window_bounds = array<i64: 1, 128>}, {pipeline_mode = #tpu.pipeline_mode<synchronous>, transform_indices = @transform_3, window_bounds = array<i64: 1, 128>}, {transform_indices = @transform_4, window_bounds = array<i64: 8, 128>}]} {
    %c0 = arith.constant 0 : index
    %c0_0 = arith.constant 0 : index
    %0 = vector.load %arg1[%c0, %c0_0] : memref<8x128xf32, #tpu.memory_space<vmem>>, vector<8x128xf32>
    %c0_1 = arith.constant 0 : index
    %c0_2 = arith.constant 0 : index
    %1 = vector.load %arg3[%c0_1, %c0_2] : memref<1x128xf32, #tpu.memory_space<vmem>>, vector<1x128xf32>
    %2 = vector.broadcast %1 : vector<1x128xf32> to vector<8x128xf32>
    %3 = arith.mulf %0, %2 : vector<8x128xf32>
    %c0_3 = arith.constant 0 : index
    %c0_4 = arith.constant 0 : index
    %4 = vector.load %arg4[%c0_3, %c0_4] : memref<1x128xf32, #tpu.memory_space<vmem>>, vector<1x128xf32>
    %5 = vector.broadcast %4 : vector<1x128xf32> to vector<8x128xf32>
    %6 = arith.addf %3, %5 : vector<8x128xf32>
    %c0_5 = arith.constant 0 : index
    %c0_6 = arith.constant 0 : index
    %7 = vector.load %arg2[%c0_5, %c0_6] : memref<8x128xf32, #tpu.memory_space<vmem>>, vector<8x128xf32>
    %8 = arith.addf %6, %7 : vector<8x128xf32>
    %cst = arith.constant 0.000000e+00 : f32
    %9 = vector.broadcast %cst : f32 to vector<8x128xf32>
    %10 = arith.maximumf %8, %9 : vector<8x128xf32>
    %c0_7 = arith.constant 0 : index
    %c0_8 = arith.constant 0 : index
    %11 = vector.load %arg5[%c0_7, %c0_8] : memref<8x128xf32, #tpu.memory_space<vmem>>, vector<8x128xf32>
    tpu.vector_store %arg5[%c0_7, %c0_8], %10 {strides = array<i32>} : memref<8x128xf32, #tpu.memory_space<vmem>>, vector<8x128xf32>,
    return
  }
  func.func @transform_0(%arg0: i32) -> (i32, i32) {
    %c0_i32 = arith.constant 0 : i32
    %c0_i32_0 = arith.constant 0 : i32
    return %arg0, %c0_i32 : i32, i32
  }
  func.func @transform_1(%arg0: i32) -> (i32, i32) {
    %c0_i32 = arith.constant 0 : i32
    %c0_i32_0 = arith.constant 0 : i32
    return %arg0, %c0_i32 : i32, i32
  }
  func.func @transform_2(%arg0: i32) -> (i32, i32) {
    %c0_i32 = arith.constant 0 : i32
    %c0_i32_0 = arith.constant 0 : i32
    %c0_i32_1 = arith.constant 0 : i32
    return %c0_i32, %c0_i32_0 : i32, i32
  }
  func.func @transform_3(%arg0: i32) -> (i32, i32) {
    %c0_i32 = arith.constant 0 : i32
    %c0_i32_0 = arith.constant 0 : i32
    %c0_i32_1 = arith.constant 0 : i32
    return %c0_i32, %c0_i32_0 : i32, i32
  }
  func.func @transform_4(%arg0: i32) -> (i32, i32) {
    %c0_i32 = arith.constant 0 : i32
    %c0_i32_0 = arith.constant 0 : i32
    return %arg0, %c0_i32 : i32, i32
  }
}

</mosaic_0001>

<bundles_post_ra>
// kernel: tile.14
= control target key start
LH: loop header
LB: loop body
LE: loop exit
PB: predicated region body
PF: predicated region fallthrough
CT: control target
= control target key end

     0   :  { %s40_s0 = inlined_call_operand.vmem [shape: f32[4], index: 0, kind: input, shape index: {}]   ;;  %s41_s1 = inlined_call_operand.vmem [shape: f32[32,4], index: 1, kind: output, shape index: {}]  }
   0x1   :  { %v4_v0 = vld [vmem:[%s40_s0] ss:$0 sm:$0xff] }
   0x2   :  { %5 = vst [vmem:[%s41_s1] sm:$0xff] %v4_v0  ;;  %12 = vst [vmem:[%s41_s1 + $0x8] sm:$0xff] %v4_v0 }
   0x3   :  { %13 = vst [vmem:[%s41_s1 + $0x10] sm:$0xff] %v4_v0  ;;  %14 = vst [vmem:[%s41_s1 + $0x18] sm:$0xff] %v4_v0 }

// kernel: tile.15
= control target key start
LH: loop header
LB: loop body
LE: loop exit
PB: predicated region body
PF: predicated region fallthrough
CT: control target
= control target key end

     0   :  { %s259_s10 = smov 124   ;;  %s260_s11 = smov 116   ;;  %vm3_vm0 = vcmask 31744   ;;  %vm9_vm1 = vcmask 1048544   ;;  %vm15_vm2 = vcmask 1015744   ;;  %vm21_vm3 = vcmask 982944   ;;  %s399_s0 = inlined_call_operand.vmem [shape: f32[32,4], index: 0, kind: input, shape index: {}]   ;;  %s400_s1 = inlined_call_operand.vmem [shape: f32[1,128], index: 1, kind: output, shape index: {}]  }
   0x1   :  { %v197_v0 = vld [vmem:[%s399_s0 + $0x1f] sm:$0x1]   ;;  %v199_v1 = vld [vmem:[%s399_s0 + $0x1d] sm:$0x1]   ;;  %v198_v2 = vld [vmem:[%s399_s0 + $0x1e] sm:$0x1]  }
   0x2   :  { %7 = vrot.lane.b32.xlu0 %v197_v0, %s259_s10  ;;  %19 = vrot.lane.b32.xlu1 %v199_v1, %s260_s11  ;;  %v200_v3 = vld [vmem:[%s399_s0 + $0x1c] sm:$0x1]   ;;  %s261_s16 = smov 120   ;;  %s262_s17 = smov 112   ;;  %v201_v4 = vld [vmem:[%s399_s0 + $0x1b] sm:$0x1]  }
   0x3   :  { %v202_v5 = vld [vmem:[%s399_s0 + $0x1a] sm:$0x1]   ;;  %s263_s22 = smov 108   ;;  %s264_s23 = smov 104   ;;  %v203_v6 = vld [vmem:[%s399_s0 + $0x19] sm:$0x1]  }
   0x4   :  { %v204_v7 = vld [vmem:[%s399_s0 + $0x18] sm:$0x1]   ;;  %s265_s28 = smov 100   ;;  %s266_s29 = smov 96   ;;  %v205_v8 = vld [vmem:[%s399_s0 + $0x17] sm:$0x1]  }
   0x5   :  { %v206_v9 = vld [vmem:[%s399_s0 + $0x16] sm:$0x1]   ;;  %v2_v10 = vld [vmem:[%s399_s0] sm:$0x1]   ;;  %s267_s7 = smov 92   ;;  %s268_s8 = smov 88  }
   0x6   :  { %13 = vrot.lane.b32.xlu0 %v198_v2, %s261_s16  ;;  %25 = vrot.lane.b32.xlu1 %v200_v3, %s262_s17  ;;  %4 = vst.msk [vmem:[#allocation0] sm:$0x1] %vm3_vm0, %v2_v10   ;;  %v207_v11 = vld [vmem:[%s399_s0 + $0x15] sm:$0x1]   ;;  %v208_v12 = vld [vmem:[%s399_s0 + $0x14] sm:$0x1]  }
   0x7   :  { %s269_s13 = smov 84   ;;  %s270_s14 = smov 80   ;;  %v209_v13 = vld [vmem:[%s399_s0 + $0x13] sm:$0x1]   ;;  %v210_v14 = vld [vmem:[%s399_s0 + $0x12] sm:$0x1]  }
   0x8   :  { %s271_s19 = smov 76   ;;  %s272_s20 = smov 72   ;;  %v211_v15 = vld [vmem:[%s399_s0 + $0x11] sm:$0x1]   ;;  %v212_v16 = vld [vmem:[%s399_s0 + $0x10] sm:$0x1]  }
   0x9   :  { %s273_s25 = smov 68   ;;  %s274_s26 = smov 64   ;;  %v213_v17 = vld [vmem:[%s399_s0 + $0xf] sm:$0x1]   ;;  %v214_v18 = vld [vmem:[%s399_s0 + $0xe] sm:$0x1]  }
   0xa   :  { %31 = vrot.lane.b32.xlu0 %v201_v4, %s263_s22  ;;  %37 = vrot.lane.b32.xlu1 %v202_v5, %s264_s23  ;;  %s275_s2 = smov 60   ;;  %s276_s3 = smov 56   ;;  %v215_v19 = vld [vmem:[%s399_s0 + $0xd] sm:$0x1]   ;;  %v216_v20 = vld [vmem:[%s399_s0 + $0xc] sm:$0x1]  }
   0xb   :  { %s278_s9 = smov 48   ;;  %v217_v21 = vld [vmem:[%s399_s0 + $0xb] sm:$0x1]   ;;  %v218_v22 = vld [vmem:[%s399_s0 + $0xa] sm:$0x1]   ;;  %s280_s15 = smov 40  }
   0xc   :  { %v219_v23 = vld [vmem:[%s399_s0 + $0x9] sm:$0x1]   ;;  %v220_v24 = vld [vmem:[%s399_s0 + $0x8] sm:$0x1]   ;;  %s282_s21 = smov 32   ;;  %s284_s27 = smov 24  }
   0xd   :  { %v221_v25 = vld [vmem:[%s399_s0 + $0x7] sm:$0x1]   ;;  %v222_v26 = vld [vmem:[%s399_s0 + $0x6] sm:$0x1]   ;;  %v223_v27 = vld [vmem:[%s399_s0 + $0x5] sm:$0x1]  }
   0xe   :  { %43 = vrot.lane.b32.xlu0 %v203_v6, %s265_s28  ;;  %49 = vrot.lane.b32.xlu1 %v204_v7, %s266_s29  ;;  %v224_v28 = vld [vmem:[%s399_s0 + $0x4] sm:$0x1]   ;;  %s286_s4 = smov 16   ;;  %v225_v29 = vld [vmem:[%s399_s0 + $0x3] sm:$0x1]   ;;  %s288_s10 = smov 8  }
   0xf   :  { %v226_v30 = vld [vmem:[%s399_s0 + $0x2] sm:$0x1]   ;;  %v227_v31 = vld [vmem:[%s399_s0 + $0x1] sm:$0x1]   ;;  %s289_s0 = smov 4   ;;  %vm27_vm4 = vcmask 950144  }
  0x10   :  { %vm33_vm5 = vcmask 917344   ;;  %vm39_vm6 = vcmask 884544   ;;  %vm45_vm7 = vcmask 851744   ;;  %vm51_vm8 = vcmask 818944  }
  0x11   :  { %vm57_vm9 = vcmask 786144   ;;  %vm63_vm10 = vcmask 753344   ;;  %vm69_vm11 = vcmask 720544   ;;  %vm75_vm12 = vcmask 687744  }
  0x12   :  { %55 = vrot.lane.b32.xlu0 %v205_v8, %s267_s7  ;;  %61 = vrot.lane.b32.xlu1 %v206_v9, %s268_s8  ;;  %s277_s8 = smov 52   ;;  %vm81_vm13 = vcmask 654944   ;;  %vm87_vm14 = vcmask 622144   ;;  %vm93_vm15 = vcmask 589344   ;;  %vm99_vm0 = vcmask 556544  }
  0x16   :  { %67 = vrot.lane.b32.xlu0 %v207_v11, %s269_s13  ;;  %73 = vrot.lane.b32.xlu1 %v208_v12, %s270_s14  ;;  %s279_s14 = smov 44  }
  0x1a   :  { %79 = vrot.lane.b32.xlu0 %v209_v13, %s271_s19  ;;  %85 = vrot.lane.b32.xlu1 %v210_v14, %s272_s20  ;;  %s281_s20 = smov 36  }
  0x1e   :  { %91 = vrot.lane.b32.xlu0 %v211_v15, %s273_s25  ;;  %97 = vrot.lane.b32.xlu1 %v212_v16, %s274_s26  ;;  %s283_s26 = smov 28  }
  0x22   :  { %103 = vrot.lane.b32.xlu0 %v213_v17, %s275_s2  ;;  %109 = vrot.lane.b32.xlu1 %v214_v18, %s276_s3  ;;  %s285_s3 = smov 20  }
  0x26   :  { %115 = vrot.lane.b32.xlu0 %v215_v19, %s277_s8  ;;  %121 = vrot.lane.b32.xlu1 %v216_v20, %s278_s9  ;;  %s287_s9 = smov 12  }
  0x2a   :  { %127 = vrot.lane.b32.xlu0 %v217_v21, %s279_s14  ;;  %133 = vrot.lane.b32.xlu1 %v218_v22, %s280_s15 }
  0x2e   :  { %139 = vrot.lane.b32.xlu0 %v219_v23, %s281_s20  ;;  %145 = vrot.lane.b32.xlu1 %v220_v24, %s282_s21 }
  0x32   :  { %151 = vrot.lane.b32.xlu0 %v221_v25, %s283_s26  ;;  %157 = vrot.lane.b32.xlu1 %v222_v26, %s284_s27 }
  0x36   :  { %163 = vrot.lane.b32.xlu0 %v223_v27, %s285_s3  ;;  %169 = vrot.lane.b32.xlu1 %v224_v28, %s286_s4 }
  0x3a   :  { %175 = vrot.lane.b32.xlu0 %v225_v29, %s287_s9  ;;  %181 = vrot.lane.b32.xlu1 %v226_v30, %s288_s10 }
  0x3e   :  { %187 = vrot.lane.b32.xlu0 %v227_v31, %s289_s0 }
  0x74   :  { %v8_v32 = vpop.permute.xlu0 %7   ;;  %v20_v33 = vpop.permute.xlu1 %19  }
  0x75   :  { %10 = vst.msk [vmem:[#allocation0] sm:$0x1] %vm9_vm1, %v8_v32   ;;  %vm105_vm1 = vcmask 523744  }
  0x78   :  { %v14_v34 = vpop.permute.xlu0 %13   ;;  %v26_v35 = vpop.permute.xlu1 %25  }
  0x79   :  { %16 = vst.msk [vmem:[#allocation0] sm:$0x1] %vm15_vm2, %v14_v34   ;;  %vm111_vm2 = vcmask 490944  }
  0x7a   :  { %22 = vst.msk [vmem:[#allocation0] sm:$0x1] %vm21_vm3, %v20_v33   ;;  %vm117_vm3 = vcmask 458144  }
  0x7b   :  { %28 = vst.msk [vmem:[#allocation0] sm:$0x1] %vm27_vm4, %v26_v35   ;;  %vm123_vm4 = vcmask 425344  }
  0x7c   :  { %v32_v36 = vpop.permute.xlu0 %31   ;;  %v38_v37 = vpop.permute.xlu1 %37  }
  0x7d   :  { %34 = vst.msk [vmem:[#allocation0] sm:$0x1] %vm33_vm5, %v32_v36   ;;  %vm129_vm5 = vcmask 392544  }
  0x7e   :  { %40 = vst.msk [vmem:[#allocation0] sm:$0x1] %vm39_vm6, %v38_v37   ;;  %vm135_vm6 = vcmask 359744  }
  0x80   :  { %v44_v38 = vpop.permute.xlu0 %43   ;;  %v50_v39 = vpop.permute.xlu1 %49  }
  0x81   :  { %46 = vst.msk [vmem:[#allocation0] sm:$0x1] %vm45_vm7, %v44_v38   ;;  %vm141_vm7 = vcmask 326944  }
  0x82   :  { %52 = vst.msk [vmem:[#allocation0] sm:$0x1] %vm51_vm8, %v50_v39   ;;  %vm147_vm8 = vcmask 294144  }
  0x84   :  { %v56_v40 = vpop.permute.xlu0 %55   ;;  %v62_v41 = vpop.permute.xlu1 %61  }
  0x85   :  { %58 = vst.msk [vmem:[#allocation0] sm:$0x1] %vm57_vm9, %v56_v40   ;;  %vm153_vm9 = vcmask 261344  }
  0x86   :  { %64 = vst.msk [vmem:[#allocation0] sm:$0x1] %vm63_vm10, %v62_v41   ;;  %vm159_vm10 = vcmask 228544  }
  0x88   :  { %v68_v42 = vpop.permute.xlu0 %67   ;;  %v74_v43 = vpop.permute.xlu1 %73  }
  0x89   :  { %70 = vst.msk [vmem:[#allocation0] sm:$0x1] %vm69_vm11, %v68_v42   ;;  %vm165_vm11 = vcmask 195744  }
  0x8a   :  { %76 = vst.msk [vmem:[#allocation0] sm:$0x1] %vm75_vm12, %v74_v43   ;;  %vm171_vm12 = vcmask 162944  }
  0x8c   :  { %v80_v44 = vpop.permute.xlu0 %79   ;;  %v86_v45 = vpop.permute.xlu1 %85  }
  0x8d   :  { %82 = vst.msk [vmem:[#allocation0] sm:$0x1] %vm81_vm13, %v80_v44   ;;  %vm177_vm13 = vcmask 130144  }
  0x8e   :  { %88 = vst.msk [vmem:[#allocation0] sm:$0x1] %vm87_vm14, %v86_v45   ;;  %vm183_vm14 = vcmask 97344  }
  0x90   :  { %v92_v46 = vpop.permute.xlu0 %91   ;;  %v98_v47 = vpop.permute.xlu1 %97  }
  0x91   :  { %94 = vst.msk [vmem:[#allocation0] sm:$0x1] %vm93_vm15, %v92_v46   ;;  %vm189_vm15 = vcmask 64544  }
  0x92   :  { %100 = vst.msk [vmem:[#allocation0] sm:$0x1] %vm99_vm0, %v98_v47  }
  0x94   :  { %v104_v48 = vpop.permute.xlu0 %103   ;;  %v110_v49 = vpop.permute.xlu1 %109  }
  0x95   :  { %106 = vst.msk [vmem:[#allocation0] sm:$0x1] %vm105_vm1, %v104_v48  }
  0x96   :  { %112 = vst.msk [vmem:[#allocation0] sm:$0x1] %vm111_vm2, %v110_v49  }
  0x98   :  { %v116_v50 = vpop.permute.xlu0 %115   ;;  %v122_v51 = vpop.permute.xlu1 %121  }
  0x99   :  { %118 = vst.msk [vmem:[#allocation0] sm:$0x1] %vm117_vm3, %v116_v50  }
  0x9a   :  { %124 = vst.msk [vmem:[#allocation0] sm:$0x1] %vm123_vm4, %v122_v51  }
  0x9c   :  { %v128_v52 = vpop.permute.xlu0 %127   ;;  %v134_v53 = vpop.permute.xlu1 %133  }
  0x9d   :  { %130 = vst.msk [vmem:[#allocation0] sm:$0x1] %vm129_vm5, %v128_v52  }
  0x9e   :  { %136 = vst.msk [vmem:[#allocation0] sm:$0x1] %vm135_vm6, %v134_v53  }
  0xa0   :  { %v140_v54 = vpop.permute.xlu0 %139   ;;  %v146_v55 = vpop.permute.xlu1 %145  }
  0xa1   :  { %142 = vst.msk [vmem:[#allocation0] sm:$0x1] %vm141_vm7, %v140_v54  }
  0xa2   :  { %148 = vst.msk [vmem:[#allocation0] sm:$0x1] %vm147_vm8, %v146_v55  }
  0xa4   :  { %v152_v56 = vpop.permute.xlu0 %151   ;;  %v158_v57 = vpop.permute.xlu1 %157  }
  0xa5   :  { %154 = vst.msk [vmem:[#allocation0] sm:$0x1] %vm153_vm9, %v152_v56  }
  0xa6   :  { %160 = vst.msk [vmem:[#allocation0] sm:$0x1] %vm159_vm10, %v158_v57  }
  0xa8   :  { %v164_v58 = vpop.permute.xlu0 %163   ;;  %v170_v59 = vpop.permute.xlu1 %169  }
  0xa9   :  { %166 = vst.msk [vmem:[#allocation0] sm:$0x1] %vm165_vm11, %v164_v58  }
  0xaa   :  { %172 = vst.msk [vmem:[#allocation0] sm:$0x1] %vm171_vm12, %v170_v59  }
  0xac   :  { %v176_v60 = vpop.permute.xlu0 %175   ;;  %v182_v61 = vpop.permute.xlu1 %181  }
  0xad   :  { %178 = vst.msk [vmem:[#allocation0] sm:$0x1] %vm177_vm13, %v176_v60  }
  0xae   :  { %184 = vst.msk [vmem:[#allocation0] sm:$0x1] %vm183_vm14, %v182_v61  }
  0xb0   :  { %v188_v62 = vpop.permute.xlu0 %187  }
  0xb1   :  { %190 = vst.msk [vmem:[#allocation0] sm:$0x1] %vm189_vm15, %v188_v62  }
  0xb8   :  { %v194_v63 = vld [vmem:[#allocation0] sm:$0x1] }
  0xb9   :  { %196 = vst [vmem:[%s400_s1] sm:$0x1] %v194_v63 }

// kernel: resblock_forward.5
= control target key start
LH: loop header
LB: loop body
LE: loop exit
PB: predicated region body
PF: predicated region fallthrough
CT: control target
= control target key end

     0   :  { %s320_s15 = smov 0   ;;  %s364_s0 = inlined_call_operand.vmem [shape: f32[16,128], index: 0, kind: input, shape index: {}]   ;;  %s365_s1 = inlined_call_operand.vmem [shape: f32[16,128], index: 1, kind: input, shape index: {}]   ;;  %s366_s2 = inlined_call_operand.vmem [shape: f32[1,128], index: 2, kind: input, shape index: {}]   ;;  %s367_s3 = inlined_call_operand.vmem [shape: f32[1,128], index: 3, kind: input, shape index: {}]   ;;  %s368_s4 = inlined_call_operand.vmem [shape: f32[16,128], index: 4, kind: output, shape index: {}]  }
   0x1 LB: > { %s296_s16 = sadd.s32 4294967295, %s322_s15   ;;  %p300_p0 = scmp.ge.s32.totalorder %s322_s15, 1  ;;  %s322_s15 = sphi %s320_s15, %s14_s15  }
   0x2   : > { %p170_p1 = scmp.lt.s32.totalorder %s322_s15, 3 }
   0x4   : > { %p171_p2 = pnand %p300_p0, %p170_p1 }
   0x5   : > { %p198_p3 = scmp.lt.s32.totalorder (!%p171_p2), %s296_s16, 1  ;;  %v304_v0 = vld [vmem:[%s366_s2] ss:$0 sm:$0xff] (!%p171_p2) }
   0x6   : > { %174 = sbr.rel (%p171_p2) target bundleno = 26 (0x1a), region = 36  ;;  %v305_v2 = vld [vmem:[%s367_s3] ss:$0 sm:$0xff] (!%p171_p2) }
   0xd   : > { %s370_s16 = smov (!%p198_p3, %s296_s16), 1 }
   0xe   : > { %s301_s17 = sshll.u32 %s370_s16, 3 }
   0xf   : > { %s201_s22 = scalar_lea.vmem %s364_s0, %s301_s17  ;;  %s205_s25 = scalar_lea.vmem %s365_s1, %s301_s17 }
  0x10   : > { %v210_v1 = vld [vmem:[%s201_s22] sm:$0xff]  ;;  %s209_s30 = scalar_lea.vmem %s368_s4, %s301_s17 }
  0x11   : > { %v218_v3 = vmul.f32 %v304_v0, %v210_v1  ;;  %v227_v4 = vld [vmem:[%s205_s25] sm:$0xff] }
  0x13   : > { %v226_v5 = vadd.f32 %v305_v2, %v218_v3 }
  0x15   : > { %v228_v6 = vadd.f32 %v227_v4, %v226_v5 }
  0x17   : > { %v229_v7 = vmax.f32 %v228_v6, 0.0 }
  0x19   : > { %230 = vst [vmem:[%s209_s30] sm:$0xff] %v229_v7 }
  0x1a PF: > { %s14_s15 = sadd.s32 1, %s322_s15  }
  0x1b   : > { %p11_p4 = scmp.ge.s32.totalorder %s14_s15, 4  }
  0x1d   :  { %13 = sbr.rel (!%p11_p4) target bundleno = 1 (0x1), region = 69 }

// kernel: resblock_forward.3
= control target key start
LH: loop header
LB: loop body
LE: loop exit
PB: predicated region body
PF: predicated region fallthrough
CT: control target
= control target key end

     0   :  { %s2904_s15 = smov 0   ;;  %s4293_s0 = inlined_call_operand.vmem [shape: f32[2,18,18,4], index: 0, kind: input, shape index: {}]   ;;  %s4294_s1 = inlined_call_operand.vmem [shape: f32[36,4], index: 1, kind: input, shape index: {}]   ;;  %s4295_s2 = inlined_call_operand.vmem [shape: f32[2,16,16,4], index: 2, kind: output, shape index: {0}]   ;;  %s4296_s3 = inlined_call_operand.vmem [shape: f32[2,1,4], index: 3, kind: output, shape index: {1}]   ;;  %s4297_s4 = inlined_call_operand.vmem [shape: f32[2,1,4], index: 4, kind: output, shape index: {2}]  }
   0x1 LB: > { %s2086_s16 = sadd.s32 4294967295, %s2869_s15   ;;  %p2090_p0 = scmp.ge.s32.totalorder %s2869_s15, 1  ;;  %s2869_s15 = sphi %s2904_s15, %s15_s15  }
   0x2   : > { %p167_p1 = scmp.lt.s32.totalorder %s2869_s15, 3 }
   0x4   : > { %p168_p2 = pnand %p2090_p0, %p167_p1 }
   0x6   : > { %171 = sbr.rel (%p168_p2) target bundleno = 637 (0x27d), region = 28 }
   0xd   : > { %p199_p3 = scmp.lt.s32.totalorder %s2086_s16, 1  ;;  %vm323_vm0 = vcmask 1046528   ;;  %s2871_s21 = smov 4   ;;  %vm404_vm1 = vcmask 1045504   ;;  %vm1611_vm2 = vcmask 1041408   ;;  %vm1279_vm3 = vcmask 31744  }
   0xe   : > { %s2872_s22 = smov 8   ;;  %s2873_s23 = smov 12   ;;  %vm1312_vm4 = vcmask 64512   ;;  %vm1345_vm5 = vcmask 97280   ;;  %vm1378_vm6 = vcmask 130048   ;;  %vm1411_vm7 = vcmask 162816  }
   0xf   : > { %s4396_s16 = smov (!%p199_p3, %s2086_s16), 1  ;;  %s2874_s28 = smov 16   ;;  %vm1444_vm8 = vcmask 195584   ;;  %vm1477_vm9 = vcmask 228352   ;;  %vm1510_vm10 = vcmask 261120   ;;  %vm1562_vm11 = vcmask 293888  }
  0x10   : > { %s2178_s17 = smul.u32 432, %s4396_s16  ;;  %s2875_s7 = smov 20   ;;  %vm1877_vm12 = vcmask 24576  }
  0x11   : > { %s2876_s10 = smov 24   ;;  %s2877_s11 = smov 28  }
  0x12   : > { %s2918_s20 = scalar_lea.vmem %s4293_s0, %s2178_s17  ;;  %s2878_s12 = smov 32  }
  0x13   : > { %v2921_v0 = vld [vmem:[%s2918_s20 + $0x30] sm:$0xff]  ;;  %v2924_v1 = vld [vmem:[%s2918_s20 + $0x38] sm:$0xff]  ;;  %v2927_v2 = vld [vmem:[%s2918_s20 + $0x40] sm:$0x3]  ;;  %s2112_s13 = sshll.u32 %s4396_s16, 8  ;;  %s214_s24 = scalar_lea.vmem %s4297_s4, %s4396_s16 }
  0x14   : > { %v334_v3 = vrot.slane %v2921_v0, 1  ;;  %v335_v4 = vrot.slane %v2924_v1, 1  ;;  %v337_v5 = vrot.slane %v2927_v2, 1  ;;  %v2933_v6 = vld [vmem:[%s2918_s20] sm:$0xff]  ;;  %v2936_v7 = vld [vmem:[%s2918_s20 + $0x8] sm:$0xff]  ;;  %v2947_v12 = vld [vmem:[%s2918_s20 + $0x50] sm:$0xff]  ;;  %s4152_s18 = scalar_lea.vmem %s4295_s2, %s2112_s13 }
  0x15   : > { %v2939_v8 = vld [vmem:[%s2918_s20 + $0x10] sm:$0x3]  ;;  %v324_v9 = vrot.slane %v2933_v6, 1  ;;  %v325_v10 = vrot.slane %v2936_v7, 1  ;;  %v2944_v11 = vld [vmem:[%s2918_s20 + $0x48] sm:$0xff]  ;;  %v2956_v17 = vld [vmem:[%s2918_s20 + $0x18] sm:$0xff] }
  0x16   : > { %v336_v13 = vsel %vm323_vm0, %v334_v3, %v335_v4  ;;  %v338_v14 = vsel %vm323_vm0, %v335_v4, %v337_v5  ;;  %v327_v15 = vrot.slane %v2939_v8, 1  ;;  %v2953_v16 = vld [vmem:[%s2918_s20 + $0x58] sm:$0x3]  ;;  %v2959_v18 = vld [vmem:[%s2918_s20 + $0x20] sm:$0xff]  ;;  %v339_v21 = vrot.slane %v2944_v11, 1  ;;  %v2991_v36 = vld [vmem:[%s2918_s20 + $0x68] sm:$0xff] }
  0x17   : > { %v2961_v19 = vpack.i.bf16 %v338_v14, %v336_v13  ;;  %v326_v20 = vsel %vm323_vm0, %v324_v9, %v325_v10  ;;  %v340_v22 = vrot.slane %v2947_v12, 1  ;;  %v2967_v23 = vld [vmem:[%s2918_s20 + $0x28] sm:$0x3]  ;;  %v2970_v24 = vld [vmem:[%s2918_s20 + $0x78] sm:$0xff]  ;;  %v2973_v25 = vld [vmem:[%s2918_s20 + $0x80] sm:$0xff]  ;;  %v342_v27 = vrot.slane %v2953_v16, 1 }
  0x18   : > { %v328_v26 = vsel %vm323_vm0, %v325_v10, %v327_v15  ;;  %v329_v28 = vrot.slane %v2956_v17, 1  ;;  %v330_v29 = vrot.slane %v2959_v18, 1  ;;  %v2980_v30 = vld [vmem:[%s2918_s20 + $0x88] sm:$0x3]  ;;  %v2983_v31 = vld [vmem:[%s2918_s20 + $0x60] sm:$0xff]  ;;  %v332_v34 = vrot.slane %v2967_v23, 1 }
  0x19   : > { %4333 = vst [vmem:[#allocation2_spill] sm:$0xff] %v2961_v19  ;;  %2206 = vrot.lane.b32.xlu1 %v2961_v19, %s2871_s21  ;;  %v2195_v32 = vpack.i.bf16 %v328_v26, %v326_v20  ;;  %v341_v33 = vsel %vm323_vm0, %v339_v21, %v340_v22  ;;  %v349_v35 = vrot.slane %v2970_v24, 1  ;;  %v2994_v37 = vld [vmem:[%s2918_s20 + $0x70] sm:$0x3]  ;;  %v343_v38 = vsel %vm323_vm0, %v340_v22, %v342_v27  ;;  %v3001_v42 = vld [vmem:[%s2918_s20 + $0xa8] sm:$0xff]  ;;  %v3019_v50 = vld [vmem:[%s2918_s20 + $0x98] sm:$0xff] }
  0x1a   : > { %v331_v39 = vsel %vm323_vm0, %v329_v28, %v330_v29  ;;  %v350_v40 = vrot.slane %v2973_v25, 1  ;;  %v352_v41 = vrot.slane %v2980_v30, 1  ;;  %v3004_v43 = vld [vmem:[%s2918_s20 + $0xb0] sm:$0xff]  ;;  %v3007_v44 = vpack.i.bf16 %v343_v38, %v341_v33  ;;  %v3013_v48 = vld [vmem:[%s2918_s20 + $0xb8] sm:$0x3]  ;;  %v3040_v61 = vld [vmem:[%s2918_s20 + $0xe0] sm:$0xff] }
  0x1b   : > { %2196 = vrot.lane.b32.xlu0 %v2195_v32, %s2871_s21  ;;  %v333_v45 = vsel %vm323_vm0, %v330_v29, %v332_v34  ;;  %v344_v46 = vrot.slane %v2983_v31, 1  ;;  %v345_v47 = vrot.slane %v2991_v36, 1  ;;  %v3016_v49 = vld [vmem:[%s2918_s20 + $0x90] sm:$0xff]  ;;  %v347_v54 = vrot.slane %v2994_v37, 1  ;;  %v3027_v55 = vld [vmem:[%s2918_s20 + $0xa0] sm:$0x3] }
  0x1c   : > { %4334 = vst [vmem:[#allocation3_spill] sm:$0xff] %v3007_v44  ;;  %v3021_v51 = vpack.i.bf16 %v333_v45, %v331_v39  ;;  %v351_v52 = vsel %vm323_vm0, %v349_v35, %v350_v40  ;;  %v353_v53 = vsel %vm323_vm0, %v350_v40, %v352_v41  ;;  %v3030_v56 = vld [vmem:[%s2918_s20 + $0xd8] sm:$0xff]  ;;  %v359_v59 = vrot.slane %v3001_v42, 1  ;;  %v3043_v62 = vld [vmem:[%s2918_s20 + $0xe8] sm:$0x3]  ;;  %v3050_v9 = vld [vmem:[%s2918_s20 + $0xc0] sm:$0xff] }
  0x1d   : > { %2211 = vrot.lane.b32.xlu1 %v3007_v44, %s2871_s21  ;;  %v3034_v57 = vpack.i.bf16 %v353_v53, %v351_v52  ;;  %v346_v58 = vsel %vm323_vm0, %v344_v46, %v345_v47  ;;  %v360_v60 = vrot.slane %v3004_v43, 1  ;;  %v348_v63 = vsel %vm323_vm0, %v345_v47, %v347_v54  ;;  %v3053_v10 = vld [vmem:[%s2918_s20 + $0xc8] sm:$0xff]  ;;  %v3063_v21 = vld [vmem:[%s2918_s20 + $0xd0] sm:$0x3]  ;;  %v3083_v39 = vld [vmem:[%s2918_s20 + $0x118] sm:$0x3] }
  0x1e   : > { %4335 = vst [vmem:[#allocation4_spill] sm:$0xff] %v3021_v51  ;;  %v362_v3 = vrot.slane %v3013_v48, 1  ;;  %v354_v4 = vrot.slane %v3016_v49, 1  ;;  %v355_v5 = vrot.slane %v3019_v50, 1  ;;  %v3057_v13 = vpack.i.bf16 %v348_v63, %v346_v58  ;;  %v3070_v29 = vld [vmem:[%s2918_s20 + $0x108] sm:$0xff]  ;;  %v3073_v32 = vld [vmem:[%s2918_s20 + $0x110] sm:$0xff] }
  0x1f   : > { %4336 = vst [vmem:[#allocation5_spill] sm:$0xff] %v3034_v57  ;;  %2201 = vrot.lane.b32.xlu0 %v3021_v51, %s2871_s21  ;;  %v361_v14 = vsel %vm323_vm0, %v359_v59, %v360_v60  ;;  %v357_v15 = vrot.slane %v3027_v55, 1  ;;  %v369_v20 = vrot.slane %v3030_v56, 1  ;;  %v370_v27 = vrot.slane %v3040_v61, 1  ;;  %v3086_v40 = vld [vmem:[%s2918_s20 + $0xf0] sm:$0xff]  ;;  %v3089_v41 = vld [vmem:[%s2918_s20 + $0xf8] sm:$0xff] }
  0x20   : > { %4337 = vst [vmem:[#allocation6_spill] sm:$0xff] %v3057_v13  ;;  %v363_v22 = vsel %vm323_vm0, %v360_v60, %v362_v3  ;;  %v356_v26 = vsel %vm323_vm0, %v354_v4, %v355_v5  ;;  %v372_v28 = vrot.slane %v3043_v62, 1  ;;  %v364_v35 = vrot.slane %v3050_v9, 1  ;;  %v3095_v52 = vld [vmem:[%s2918_s20 + $0x100] sm:$0x3]  ;;  %v3098_v53 = vld [vmem:[%s2918_s20 + $0x138] sm:$0xff] }
  0x21   : > { %2221 = vrot.lane.b32.xlu1 %v3034_v57, %s2871_s21  ;;  %v3077_v33 = vpack.i.bf16 %v363_v22, %v361_v14  ;;  %v358_v34 = vsel %vm323_vm0, %v355_v5, %v357_v15  ;;  %v365_v38 = vrot.slane %v3053_v10, 1  ;;  %v371_v45 = vsel %vm323_vm0, %v369_v20, %v370_v27  ;;  %v3108_v63 = vld [vmem:[%s2918_s20 + $0x140] sm:$0xff]  ;;  %v3111_v3 = vld [vmem:[%s2918_s20 + $0x148] sm:$0x3]  ;;  %v3157_v51 = vld [vmem:[%s2918_s20 + $0x150] sm:$0xff] }
  0x22   : > { %v373_v46 = vsel %vm323_vm0, %v370_v27, %v372_v28  ;;  %v367_v47 = vrot.slane %v3063_v21, 1  ;;  %v3102_v54 = vpack.i.bf16 %v358_v34, %v356_v26  ;;  %v379_v59 = vrot.slane %v3070_v29, 1  ;;  %4340 = vst [vmem:[#allocation9_spill] sm:$0xff] %v3108_v63  ;;  %4341 = vst [vmem:[#allocation10_spill] sm:$0xff] %v3111_v3  ;;  %v3118_v20 = vld [vmem:[%s2918_s20 + $0x120] sm:$0xff]  ;;  %v3121_v22 = vld [vmem:[%s2918_s20 + $0x128] sm:$0xff] }
  0x23   : > { %4338 = vst [vmem:[#allocation7_spill] sm:$0xff] %v3077_v33  ;;  %2216 = vrot.lane.b32.xlu0 %v3057_v13, %s2871_s21  ;;  %v366_v58 = vsel %vm323_vm0, %v364_v35, %v365_v38  ;;  %v380_v60 = vrot.slane %v3073_v32, 1  ;;  %v382_v5 = vrot.slane %v3083_v39, 1  ;;  %v374_v14 = vrot.slane %v3086_v40, 1  ;;  %v3131_v35 = vld [vmem:[%s2918_s20 + $0x130] sm:$0x3] }
  0x24   : > { %4339 = vst [vmem:[#allocation8_spill] sm:$0xff] %v3102_v54  ;;  %v368_v4 = vsel %vm323_vm0, %v365_v38, %v367_v47  ;;  %v375_v15 = vrot.slane %v3089_v41, 1  ;;  %v3125_v26 = vpack.i.bf16 %v373_v46, %v371_v45  ;;  %v377_v28 = vrot.slane %v3095_v52, 1  ;;  %4343 = vst [vmem:[#allocation12_spill] sm:$0xff] %v3131_v35  ;;  %v3138_v46 = vld [vmem:[%s2918_s20 + $0x168] sm:$0xff] }
  0x25   : > { %2231 = vrot.lane.b32.xlu1 %v3077_v33, %s2871_s21  ;;  %v381_v27 = vsel %vm323_vm0, %v379_v59, %v380_v60  ;;  %v389_v34 = vrot.slane %v3098_v53, 1  ;;  %v383_v38 = vsel %vm323_vm0, %v380_v60, %v382_v5  ;;  %v390_v33 = vrot.slane %v3108_v63, 1  ;;  %v3141_v59 = vld [vmem:[%s2918_s20 + $0x170] sm:$0xff]  ;;  %v3163_v63 = vld [vmem:[%s2918_s20 + $0x160] sm:$0x3] }
  0x26   : > { %4342 = vst [vmem:[#allocation11_spill] sm:$0xff] %v3125_v26  ;;  %v376_v47 = vsel %vm323_vm0, %v374_v14, %v375_v15  ;;  %v392_v45 = vrot.slane %v3111_v3, 1  ;;  %4344 = vst [vmem:[#allocation13_spill] sm:$0xff] %v3141_v59  ;;  %v3145_v57 = vpack.i.bf16 %v368_v4, %v366_v58  ;;  %v378_v13 = vsel %vm323_vm0, %v375_v15, %v377_v28  ;;  %v3151_v14 = vld [vmem:[%s2918_s20 + $0x178] sm:$0x3] }
  0x27   : > { %2226 = vrot.lane.b32.xlu0 %v3102_v54, %s2871_s21  ;;  %v384_v60 = vrot.slane %v3118_v20, 1  ;;  %v385_v5 = vrot.slane %v3121_v22, 1  ;;  %v3153_v44 = vpack.i.bf16 %v383_v38, %v381_v27  ;;  %v387_v19 = vrot.slane %v3131_v35, 1  ;;  %v3160_v3 = vld [vmem:[%s2918_s20 + $0x158] sm:$0xff]  ;;  %4346 = vst [vmem:[#allocation15_spill] sm:$0xff] %v3163_v63 }
  0x28   : > { %4345 = vst [vmem:[#allocation14_spill] sm:$0xff] %v3145_v57  ;;  %v3167_v58 = vpack.i.bf16 %v378_v13, %v376_v47  ;;  %v391_v4 = vsel %vm323_vm0, %v389_v34, %v390_v33  ;;  %v399_v15 = vrot.slane %v3138_v46, 1  ;;  %v400_v27 = vrot.slane %v3141_v59, 1 }
  0x29   : > { %2241 = vrot.lane.b32.xlu1 %v3125_v26, %s2871_s21  ;;  %v393_v28 = vsel %vm323_vm0, %v390_v33, %v392_v45  ;;  %v386_v38 = vsel %vm323_vm0, %v384_v60, %v385_v5  ;;  %v388_v54 = vsel %vm323_vm0, %v385_v5, %v387_v19  ;;  %v402_v35 = vrot.slane %v3151_v14, 1 }
  0x2a   : > { %v401_v13 = vsel %vm323_vm0, %v399_v15, %v400_v27  ;;  %v394_v47 = vrot.slane %v3157_v51, 1  ;;  %v395_v34 = vrot.slane %v3160_v3, 1  ;;  %v397_v26 = vrot.slane %v3163_v63, 1 }
  0x2b   : > { %2236 = vrot.lane.b32.xlu0 %v3145_v57, %s2871_s21  ;;  %v403_v59 = vsel %vm323_vm0, %v400_v27, %v402_v35  ;;  %v410_v33 = vrot.slane %v2956_v17, 2  ;;  %v411_v45 = vrot.slane %v2959_v18, 2  ;;  %v413_v19 = vrot.slane %v2967_v23, 2 }
  0x2c   : > { %v408_v60 = vrot.slane %v2939_v8, 2  ;;  %v3189_v5 = vpack.i.bf16 %v393_v28, %v391_v4  ;;  %v405_v15 = vrot.slane %v2933_v6, 2  ;;  %v406_v57 = vrot.slane %v2936_v7, 2 }
  0x2d   : > { %2251 = vrot.lane.b32.xlu1 %v3153_v44, %s2871_s21  ;;  %v418_v63 = vrot.slane %v2927_v2, 2  ;;  %v3196_v35 = vpack.i.bf16 %v388_v54, %v386_v38  ;;  %v3198_v27 = vpack.i.bf16 %v403_v59, %v401_v13  ;;  %v396_v8 = vsel %vm323_vm0, %v394_v47, %v395_v34 }
  0x2e   : > { %4347 = vst [vmem:[#allocation16_spill] sm:$0xff] %v3189_v5  ;;  %v398_v23 = vsel %vm323_vm0, %v395_v34, %v397_v26  ;;  %v412_v4 = vsel %vm404_vm1, %v410_v33, %v411_v45  ;;  %v414_v28 = vsel %vm404_vm1, %v411_v45, %v413_v19  ;;  %v420_v6 = vrot.slane %v2944_v11, 2 }
  0x2f   : > { %2246 = vrot.lane.b32.xlu0 %v3167_v58, %s2871_s21  ;;  %4348 = vst [vmem:[#allocation17_spill] sm:$0xff] %v3198_v27  ;;  %v407_v2 = vsel %vm404_vm1, %v405_v15, %v406_v57  ;;  %v409_v7 = vsel %vm404_vm1, %v406_v57, %v408_v60  ;;  %v421_v54 = vrot.slane %v2947_v12, 2  ;;  %v423_v59 = vrot.slane %v2953_v16, 2 }
  0x30   : > { %v415_v38 = vrot.slane %v2921_v0, 2  ;;  %v416_v26 = vrot.slane %v2924_v1, 2  ;;  %v430_v13 = vrot.slane %v2970_v24, 2  ;;  %v431_v47 = vrot.slane %v2973_v25, 2 }
  0x31   : > { %2261 = vrot.lane.b32.xlu1 %v3189_v5, %s2871_s21  ;;  %v3217_v34 = vpack.i.bf16 %v398_v23, %v396_v8  ;;  %v433_v33 = vrot.slane %v2980_v30, 2  ;;  %v3222_v57 = vpack.i.bf16 %v414_v28, %v412_v4  ;;  %v2275_v16 = vpack.i.bf16 %v409_v7, %v407_v2 }
  0x32   : > { %v422_v45 = vsel %vm404_vm1, %v420_v6, %v421_v54  ;;  %v424_v19 = vsel %vm404_vm1, %v421_v54, %v423_v59  ;;  %v417_v60 = vsel %vm404_vm1, %v415_v38, %v416_v26  ;;  %v419_v15 = vsel %vm404_vm1, %v416_v26, %v418_v63 }
  0x33   : > { %2256 = vrot.lane.b32.xlu0 %v3196_v35, %s2871_s21  ;;  %v432_v5 = vsel %vm404_vm1, %v430_v13, %v431_v47  ;;  %v425_v8 = vrot.slane %v2983_v31, 2  ;;  %v434_v30 = vsel %vm404_vm1, %v431_v47, %v433_v33  ;;  %v426_v23 = vrot.slane %v2991_v36, 2 }
  0x34   : > { %v428_v4 = vrot.slane %v2994_v37, 2  ;;  %v440_v28 = vrot.slane %v3001_v42, 2  ;;  %v441_v6 = vrot.slane %v3004_v43, 2  ;;  %v443_v2 = vrot.slane %v3013_v48, 2 }
  0x35   : > { %2271 = vrot.lane.b32.xlu1 %v3198_v27, %s2871_s21  ;;  %v435_v63 = vrot.slane %v3016_v49, 2  ;;  %v436_v7 = vrot.slane %v3019_v50, 2  ;;  %v3242_v54 = vpack.i.bf16 %v424_v19, %v422_v45  ;;  %v438_v59 = vrot.slane %v3027_v55, 2 }
  0x36   : > { %v3245_v38 = vpack.i.bf16 %v419_v15, %v417_v60  ;;  %v3248_v37 = vpack.i.bf16 %v434_v30, %v432_v5  ;;  %v427_v48 = vsel %vm404_vm1, %v425_v8, %v426_v23  ;;  %v429_v26 = vsel %vm404_vm1, %v426_v23, %v428_v4 }
  0x37   : > { %2266 = vrot.lane.b32.xlu0 %v3217_v34, %s2871_s21  ;;  %v450_v13 = vrot.slane %v3030_v56, 2  ;;  %v442_v47 = vsel %vm404_vm1, %v440_v28, %v441_v6  ;;  %v444_v33 = vsel %vm404_vm1, %v441_v6, %v443_v2  ;;  %v437_v45 = vsel %vm404_vm1, %v435_v63, %v436_v7  ;;  %s211_s21 = scalar_lea.vmem %s4296_s3, %s4396_s16 }
  0x38   : > { %v451_v55 = vrot.slane %v3040_v61, 2  ;;  %v439_v5 = vsel %vm404_vm1, %v436_v7, %v438_v59  ;;  %v445_v19 = vrot.slane %v3050_v9, 2  ;;  %v446_v60 = vrot.slane %v3053_v10, 2 }
  0x39   : > { %2281 = vrot.lane.b32.xlu1 %v3222_v57, %s2872_s22  ;;  %v448_v15 = vrot.slane %v3063_v21, 2  ;;  %v460_v8 = vrot.slane %v3070_v29, 2  ;;  %v461_v30 = vrot.slane %v3073_v32, 2  ;;  %v463_v23 = vrot.slane %v3083_v39, 2 }
  0x3a   : > { %v3269_v4 = vpack.i.bf16 %v429_v26, %v427_v48  ;;  %v455_v28 = vrot.slane %v3086_v40, 2  ;;  %v458_v6 = vrot.slane %v3095_v52, 2  ;;  %v3274_v2 = vpack.i.bf16 %v444_v33, %v442_v47  ;;  %v4349_v48 = vld [vmem:[#allocation9_spill] sm:$0xff]  ;;  %v4350_v33 = vld [vmem:[#allocation10_spill] sm:$0xff] }
  0x3b   : > { %2276 = vrot.lane.b32.xlu0 %v2275_v16, %s2872_s22  ;;  %v453_v16 = vrot.slane %v3043_v62, 2  ;;  %v456_v62 = vrot.slane %v3089_v41, 2  ;;  %v3276_v21 = vpack.i.bf16 %v439_v5, %v437_v45  ;;  %v452_v63 = vsel %vm404_vm1, %v450_v13, %v451_v55 }
  0x3c   : > { %v447_v7 = vsel %vm404_vm1, %v445_v19, %v446_v60  ;;  %v470_v59 = vrot.slane %v3098_v53, 2  ;;  %v471_v26 = vrot.slane %v4349_v48, 2  ;;  %v449_v27 = vsel %vm404_vm1, %v446_v60, %v448_v15  ;;  %v4351_v60 = vld [vmem:[#allocation12_spill] sm:$0xff] }
  0x3d   : > { %2291 = vrot.lane.b32.xlu1 %v3242_v54, %s2872_s22  ;;  %v454_v39 = vsel %vm404_vm1, %v451_v55, %v453_v16  ;;  %v462_v52 = vsel %vm404_vm1, %v460_v8, %v461_v30  ;;  %v464_v47 = vsel %vm404_vm1, %v461_v30, %v463_v23  ;;  %v473_v45 = vrot.slane %v4350_v33, 2 }
  0x3e   : > { %v457_v13 = vsel %vm404_vm1, %v455_v28, %v456_v62  ;;  %v459_v55 = vsel %vm404_vm1, %v456_v62, %v458_v6  ;;  %v465_v5 = vrot.slane %v3118_v20, 2  ;;  %v466_v16 = vrot.slane %v3121_v22, 2 }
  0x3f   : > { %2286 = vrot.lane.b32.xlu0 %v3245_v38, %s2872_s22  ;;  %v3295_v19 = vpack.i.bf16 %v454_v39, %v452_v63  ;;  %v468_v15 = vrot.slane %v4351_v60, 2  ;;  %v3300_v8 = vpack.i.bf16 %v449_v27, %v447_v7  ;;  %v3302_v30 = vpack.i.bf16 %v464_v47, %v462_v52  ;;  %v4352_v39 = vld [vmem:[#allocation13_spill] sm:$0xff]  ;;  %v4353_v52 = vld [vmem:[#allocation15_spill] sm:$0xff] }
  0x40   : > { %v472_v23 = vsel %vm404_vm1, %v470_v59, %v471_v26  ;;  %v3305_v28 = vpack.i.bf16 %v459_v55, %v457_v13  ;;  %v474_v62 = vsel %vm404_vm1, %v471_v26, %v473_v45  ;;  %v480_v6 = vrot.slane %v3138_v46, 2 }
  0x41   : > { %2301 = vrot.lane.b32.xlu1 %v3248_v37, %s2872_s22  ;;  %v467_v63 = vsel %vm404_vm1, %v465_v5, %v466_v16  ;;  %v481_v33 = vrot.slane %v4352_v39, 2  ;;  %v469_v27 = vsel %vm404_vm1, %v466_v16, %v468_v15  ;;  %v483_v7 = vrot.slane %v3151_v14, 2 }
  0x42   : > { %v475_v59 = vrot.slane %v3157_v51, 2  ;;  %v476_v26 = vrot.slane %v3160_v3, 2  ;;  %v478_v47 = vrot.slane %v4353_v52, 2  ;;  %v3324_v45 = vpack.i.bf16 %v474_v62, %v472_v23 }
  0x43   : > { %2296 = vrot.lane.b32.xlu0 %v3269_v4, %s2872_s22  ;;  %v482_v13 = vsel %vm404_vm1, %v480_v6, %v481_v33  ;;  %v484_v55 = vsel %vm404_vm1, %v481_v33, %v483_v7  ;;  %v3330_v14 = vpack.i.bf16 %v469_v27, %v467_v63  ;;  %v2360_v23 = vpack.i.bf16 %v2924_v1, %v2921_v0  ;;  %v4356_v27 = vld [vmem:[#allocation3_spill] sm:$0xff]  ;;  %v4357_v7 = vld [vmem:[#allocation6_spill] sm:$0xff] }
  0x44   : > { %v477_v5 = vsel %vm404_vm1, %v475_v59, %v476_v26  ;;  %v479_v16 = vsel %vm404_vm1, %v476_v26, %v478_v47  ;;  %v3336_v60 = vpack.i.bf16 %v484_v55, %v482_v13  ;;  %v2355_v62 = vpack.i.bf16 %v2959_v18, %v2956_v17  ;;  %v4354_v18 = vld [vmem:[#allocation4_spill] sm:$0xff] }
  0x45   : > { %2311 = vrot.lane.b32.xlu1 %v3274_v2, %s2872_s22  ;;  %v3340_v15 = vpack.i.bf16 %v479_v16, %v477_v5  ;;  %v2370_v6 = vpack.i.bf16 %v2991_v36, %v2983_v31  ;;  %v2365_v63 = vpack.i.bf16 %v2947_v12, %v2944_v11  ;;  %v2380_v0 = vpack.i.bf16 %v3019_v50, %v3016_v49  ;;  %v270_v11 = vld [vmem:[%s4294_s1] sm:$0xff]  ;;  %v271_v12 = vld [vmem:[%s4294_s1 + $0x8] sm:$0xff]  ;;  %v273_v31 = vld [vmem:[%s4294_s1 + $0x18] sm:$0xff] }
  0x46   : > { %v2375_v1 = vpack.i.bf16 %v2973_v25, %v2970_v24  ;;  %v2385_v17 = vpack.i.bf16 %v3004_v43, %v3001_v42  ;;  %v1559_v24 = vpack.c.bf16 %v271_v12, %v270_v11  ;;  %v272_v25 = vld [vmem:[%s4294_s1 + $0x10] sm:$0xff]  ;;  %v4355_v42 = vld [vmem:[#allocation2_spill] sm:$0xff] }
  0x47   : > { %2306 = vrot.lane.b32.xlu0 %v3276_v21, %s2872_s22  ;;  %v1560_v36 = vpack.c.bf16 %v273_v31, %v272_v25  ;;  %v274_v43 = vld [vmem:[%s4294_s1 + $0x20] sm:$0xf]  ;;  %v4365_v25 = vld [vmem:[#allocation11_spill] sm:$0xff] }
  0x48   : > { %2132 = vmatprep.subr.bf16.mxu0 %v1559_v24  ;;  %2170 = vmatprep.subr.bf16.mxu1 %v1559_v24  ;;  %v1561_v33 = vpack.c.bf16 %v274_v43, %v274_v43 }
  0x49   : > { %2321 = vrot.lane.b32.xlu1 %v3295_v19, %s2872_s22  ;;  %2133 = vmatpush3.bf16.msra.mxu0 %v1559_v24 }
  0x4a   : > { %2173 = vmatpush3.bf16.msra.mxu1 %v1559_v24  ;;  %2134 = vmatprep.subr.bf16.mxu0 %v1560_v36 }
  0x4b   : > { %2316 = vrot.lane.b32.xlu0 %v3300_v8, %s2872_s22  ;;  %2171 = vmatprep.subr.bf16.mxu1 %v1560_v36 }
  0x4d   : > { %2331 = vrot.lane.b32.xlu1 %v3302_v30, %s2872_s22  ;;  %2135 = vmatpush3.bf16.msra.mxu0 %v1560_v36 }
  0x4e   : > { %2174 = vmatpush3.bf16.msra.mxu1 %v1560_v36  ;;  %2176 = vmatprep.subr.msk.bf16.mxu0 %vm1611_vm2, %v1561_v33 }
  0x4f   : > { %2326 = vrot.lane.b32.xlu0 %v3305_v28, %s2872_s22  ;;  %2177 = vmatprep.subr.msk.bf16.mxu1 %vm1611_vm2, %v1561_v33 }
  0x51   : > { %2341 = vrot.lane.b32.xlu1 %v3324_v45, %s2872_s22 }
  0x53   : > { %2336 = vrot.lane.b32.xlu0 %v3330_v14, %s2872_s22 }
  0x55   : > { %2351 = vrot.lane.b32.xlu1 %v3336_v60, %s2872_s22 }
  0x57   : > { %2346 = vrot.lane.b32.xlu0 %v3340_v15, %s2872_s22 }
  0x59   : > { %2361 = vrot.lane.b32.xlu1 %v2360_v23, %s2873_s23 }
  0x5b   : > { %2356 = vrot.lane.b32.xlu0 %v2355_v62, %s2873_s23  ;;  %v4360_v62 = vld [vmem:[#allocation7_spill] sm:$0xff] }
  0x5d   : > { %2371 = vrot.lane.b32.xlu1 %v2370_v6, %s2873_s23 }
  0x5f   : > { %2366 = vrot.lane.b32.xlu0 %v2365_v63, %s2873_s23 }
  0x61   : > { %2381 = vrot.lane.b32.xlu1 %v2380_v0, %s2873_s23 }
  0x63   : > { %2376 = vrot.lane.b32.xlu0 %v2375_v1, %s2873_s23 }
  0x65   : > { %2391 = vrot.lane.b32.xlu1 %v4354_v18, %s2874_s28 }
  0x67   : > { %2386 = vrot.lane.b32.xlu0 %v2385_v17, %s2873_s23 }
  0x69   : > { %2401 = vrot.lane.b32.xlu1 %v3222_v57, %s2875_s7  ;;  %v1613_v57 = vsel %vm1611_vm2, %v1561_v33, 0 }
  0x6a   : > { %2137 = vmatpush3.bf16.msra.mxu0 %v1613_v57  ;;  %2175 = vmatpush3.bf16.msra.mxu1 %v1613_v57 }
  0x6b   : > { %2396 = vrot.lane.b32.xlu0 %v4355_v42, %s2874_s28 }
  0x6d   : > { %2411 = vrot.lane.b32.xlu1 %v2360_v23, %s2876_s10  ;;  %v2540_v23 = vpack.i.bf16 %v3053_v10, %v3050_v9 }
  0x6f   : > { %2406 = vrot.lane.b32.xlu0 %v3245_v38, %s2875_s7 }
  0x71   : > { %2421 = vrot.lane.b32.xlu1 %v4355_v42, %s2877_s11 }
  0x73   : > { %2416 = vrot.lane.b32.xlu0 %v2365_v63, %s2876_s10 }
  0x75   : > { %2431 = vrot.lane.b32.xlu1 %v3245_v38, %s2878_s12  ;;  %v4358_v38 = vld [vmem:[#allocation5_spill] sm:$0xff] }
  0x77   : > { %2426 = vrot.lane.b32.xlu0 %v4356_v27, %s2877_s11 }
  0x79   : > { %2441 = vrot.lane.b32.xlu1 %v4356_v27, %s2874_s28 }
  0x7b   : > { %2436 = vrot.lane.b32.xlu0 %v3242_v54, %s2878_s12 }
  0x7d   : > { %2451 = vrot.lane.b32.xlu1 %v3242_v54, %s2875_s7 }
  0x7f   : > { %2446 = vrot.lane.b32.xlu0 %v4357_v7, %s2874_s28 }
  0x81   : > { %2461 = vrot.lane.b32.xlu1 %v2370_v6, %s2876_s10 }
  0x83   : > { %2456 = vrot.lane.b32.xlu0 %v3269_v4, %s2875_s7 }
  0x85   : > { %2471 = vrot.lane.b32.xlu1 %v4357_v7, %s2877_s11 }
  0x87   : > { %2466 = vrot.lane.b32.xlu0 %v2375_v1, %s2876_s10 }
  0x89   : > { %2481 = vrot.lane.b32.xlu1 %v3269_v4, %s2878_s12  ;;  %v4359_v4 = vld [vmem:[#allocation8_spill] sm:$0xff] }
  0x8b   : > { %2476 = vrot.lane.b32.xlu0 %v4358_v38, %s2877_s11  ;;  %v3416_v54 = vpop.permute.xlu1 %2206 }
  0x8d   : > { %v3418_v59 = vpop.permute.xlu0 %2196  ;;  %2491 = vrot.lane.b32.xlu1 %v4358_v38, %s2874_s28 }
  0x8f   : > { %2486 = vrot.lane.b32.xlu0 %v3248_v37, %s2878_s12  ;;  %v3424_v26 = vpop.permute.xlu1 %2211 }
  0x91   : > { %v3426_v52 = vpop.permute.xlu0 %2201  ;;  %2501 = vrot.lane.b32.xlu1 %v3248_v37, %s2875_s7 }
  0x93   : > { %2496 = vrot.lane.b32.xlu0 %v4359_v4, %s2874_s28  ;;  %v3432_v47 = vpop.permute.xlu1 %2221 }
  0x95   : > { %v3434_v13 = vpop.permute.xlu0 %2216  ;;  %2511 = vrot.lane.b32.xlu1 %v2380_v0, %s2876_s10 }
  0x97   : > { %2506 = vrot.lane.b32.xlu0 %v3276_v21, %s2875_s7  ;;  %v3439_v55 = vpop.permute.xlu1 %2231 }
  0x99   : > { %v3441_v5 = vpop.permute.xlu0 %2226  ;;  %2521 = vrot.lane.b32.xlu1 %v4359_v4, %s2877_s11 }
  0x9b   : > { %2516 = vrot.lane.b32.xlu0 %v2385_v17, %s2876_s10  ;;  %v3446_v37 = vpop.permute.xlu1 %2241  ;;  %v2570_v17 = vpack.i.bf16 %v3040_v61, %v3030_v56 }
  0x9d   : > { %v3448_v16 = vpop.permute.xlu0 %2236  ;;  %2531 = vrot.lane.b32.xlu1 %v3276_v21, %s2878_s12  ;;  %v4364_v21 = vld [vmem:[#allocation14_spill] sm:$0xff] }
  0x9f   : > { %2526 = vrot.lane.b32.xlu0 %v4360_v62, %s2877_s11  ;;  %v3456_v6 = vpop.permute.xlu1 %2251 }
  0xa1   : > { %v3458_v63 = vpop.permute.xlu0 %2246  ;;  %2541 = vrot.lane.b32.xlu1 %v2540_v23, %s2873_s23 }
  0xa2   : > { %4361 = vst [vmem:[#allocation9_spill] sm:$0xff] %v3458_v63 }
  0xa3   : > { %2536 = vrot.lane.b32.xlu0 %v3274_v2, %s2878_s12  ;;  %v3463_v0 = vpop.permute.xlu1 %2261 }
  0xa4   : > { %4362 = vst [vmem:[#allocation10_spill] sm:$0xff] %v3463_v0  ;;  %v4375_v0 = vld [vmem:[#allocation16_spill] sm:$0xff] }
  0xa5   : > { %v3465_v1 = vpop.permute.xlu0 %2256  ;;  %2551 = vrot.lane.b32.xlu1 %v4364_v21, %s2874_s28 }
  0xa6   : > { %4363 = vst [vmem:[#allocation12_spill] sm:$0xff] %v3465_v1 }
  0xa7   : > { %2546 = vrot.lane.b32.xlu0 %v4360_v62, %s2874_s28  ;;  %v2272_v9 = vpop.permute.xlu1 %2271 }
  0xa8   : > { %v2274_v57 = vunpack.i.h.bf16 %v2272_v9  ;;  %v2273_v27 = vunpack.i.l.bf16 %v2272_v9 }
  0xa9   : > { %v2267_v10 = vpop.permute.xlu0 %2266  ;;  %2561 = vrot.lane.b32.xlu1 %v3300_v8, %s2875_s7 }
  0xaa   : > { %v2269_v38 = vunpack.i.h.bf16 %v2267_v10  ;;  %v2268_v4 = vunpack.i.l.bf16 %v2267_v10 }
  0xab   : > { %2556 = vrot.lane.b32.xlu0 %v3274_v2, %s2875_s7  ;;  %v3477_v11 = vpop.permute.xlu1 %2281  ;;  %v2600_v2 = vpack.i.bf16 %v3089_v41, %v3086_v40 }
  0xad   : > { %v3479_v12 = vpop.permute.xlu0 %2276  ;;  %2571 = vrot.lane.b32.xlu1 %v2570_v17, %s2876_s10 }
  0xaf   : > { %2566 = vrot.lane.b32.xlu0 %v2540_v23, %s2876_s10  ;;  %v3483_v18 = vpop.permute.xlu1 %2291 }
  0xb1   : > { %v3485_v24 = vpop.permute.xlu0 %2286  ;;  %2581 = vrot.lane.b32.xlu1 %v4365_v25, %s2877_s11 }
  0xb3   : > { %2576 = vrot.lane.b32.xlu0 %v4364_v21, %s2877_s11  ;;  %v3491_v56 = vpop.permute.xlu1 %2301 }
  0xb5   : > { %v3493_v61 = vpop.permute.xlu0 %2296  ;;  %2591 = vrot.lane.b32.xlu1 %v3295_v19, %s2878_s12 }
  0xb7   : > { %2586 = vrot.lane.b32.xlu0 %v3300_v8, %s2878_s12  ;;  %v3501_v31 = vpop.permute.xlu1 %2311  ;;  %v2630_v8 = vpack.i.bf16 %v3073_v32, %v3070_v29  ;;  %v1311_v29 = vsel %vm1279_vm3, %v4352_v39, %v2274_v57  ;;  %v1310_v32 = vsel %vm1279_vm3, %v3138_v46, %v2273_v27  ;;  %v1308_v57 = vsel %vm1279_vm3, %v3157_v51, %v2268_v4 }
  0xb9   : > { %v3503_v36 = vpop.permute.xlu0 %2306  ;;  %2601 = vrot.lane.b32.xlu1 %v2600_v2, %s2873_s23 }
  0xbb   : > { %2596 = vrot.lane.b32.xlu0 %v2570_v17, %s2873_s23  ;;  %v3507_v42 = vpop.permute.xlu1 %2321 }
  0xbd   : > { %v3509_v43 = vpop.permute.xlu0 %2316  ;;  %2611 = vrot.lane.b32.xlu1 %v3167_v58, %s2874_s28 }
  0xbf   : > { %2606 = vrot.lane.b32.xlu0 %v4365_v25, %s2874_s28  ;;  %v3515_v40 = vpop.permute.xlu1 %2331 }
  0xc0   : > { %4366 = vst [vmem:[#allocation13_spill] sm:$0xff] %v3515_v40 }
  0xc1   : > { %v3517_v41 = vpop.permute.xlu0 %2326  ;;  %2621 = vrot.lane.b32.xlu1 %v3305_v28, %s2875_s7 }
  0xc2   : > { %4367 = vst [vmem:[#allocation15_spill] sm:$0xff] %v3517_v41 }
  0xc3   : > { %2616 = vrot.lane.b32.xlu0 %v3295_v19, %s2875_s7  ;;  %v3525_v33 = vpop.permute.xlu1 %2341 }
  0xc4   : > { %4368 = vst [vmem:[#allocation4_spill] sm:$0xff] %v3525_v33 }
  0xc5   : > { %v3527_v7 = vpop.permute.xlu0 %2336  ;;  %2631 = vrot.lane.b32.xlu1 %v2630_v8, %s2876_s10 }
  0xc6   : > { %4369 = vst [vmem:[#allocation2_spill] sm:$0xff] %v3527_v7  ;;  %v2836_v7 = vld [vmem:[%s2918_s20] sm:$0xff] }
  0xc7   : > { %2626 = vrot.lane.b32.xlu0 %v2600_v2, %s2876_s10  ;;  %v2352_v23 = vpop.permute.xlu1 %2351  ;;  %v1309_v2 = vsel %vm1279_vm3, %v3160_v3, %v2269_v38  ;;  %v2660_v38 = vpack.i.bf16 %v3121_v22, %v3118_v20  ;;  %v2229_v20 = vunpack.i.h.bf16 %v3441_v5  ;;  %v2228_v22 = vunpack.i.l.bf16 %v3441_v5 }
  0xc8   : > { %v2354_v62 = vunpack.i.h.bf16 %v2352_v23  ;;  %v2353_v21 = vunpack.i.l.bf16 %v2352_v23 }
  0xc9   : > { %v2347_v19 = vpop.permute.xlu0 %2346  ;;  %2641 = vrot.lane.b32.xlu1 %v3153_v44, %s2877_s11 }
  0xca   : > { %v3538_v9 = vsel %vm1312_vm4, %v1311_v29, %v2354_v62  ;;  %v3541_v10 = vsel %vm1312_vm4, %v1310_v32, %v2353_v21  ;;  %v2349_v17 = vunpack.i.h.bf16 %v2347_v19  ;;  %v2348_v25 = vunpack.i.l.bf16 %v2347_v19  ;;  %v3583_v19 = vld [vmem:[%s2918_s20 + $0x188] sm:$0xff] }
  0xcb   : > { %4370 = vst [vmem:[#allocation3_spill] sm:$0xff] %v3538_v9  ;;  %4371 = vst [vmem:[#allocation6_spill] sm:$0xff] %v3541_v10  ;;  %2636 = vrot.lane.b32.xlu0 %v3167_v58, %s2877_s11  ;;  %v3549_v27 = vpop.permute.xlu1 %2361 }
  0xcc   : > { %v3552_v23 = vsel %vm1312_vm4, %v1308_v57, %v2348_v25  ;;  %v3555_v62 = vsel %vm1312_vm4, %v1309_v2, %v2349_v17  ;;  %v2309_v17 = vunpack.i.h.bf16 %v3503_v36  ;;  %v2308_v25 = vunpack.i.l.bf16 %v3503_v36 }
  0xcd   : > { %4372 = vst [vmem:[#allocation5_spill] sm:$0xff] %v3552_v23  ;;  %4373 = vst [vmem:[#allocation8_spill] sm:$0xff] %v3555_v62  ;;  %v3557_v21 = vpop.permute.xlu0 %2356  ;;  %2651 = vrot.lane.b32.xlu1 %v3302_v30, %s2878_s12  ;;  %v3593_v2 = vpack.i.bf16 %v4349_v48, %v3098_v53  ;;  %v3599_v57 = vpack.i.bf16 %v3160_v3, %v3157_v51  ;;  %v1293_v62 = vsel %vm1279_vm3, %v3019_v50, %v2229_v20  ;;  %v3614_v3 = vld [vmem:[%s2918_s20 + $0x190] sm:$0x3] }
  0xce   : > { %v1292_v23 = vsel %vm1279_vm3, %v3016_v49, %v2228_v22  ;;  %v1326_v9 = vsel %vm1312_vm4, %v1293_v62, %v2309_v17  ;;  %v2204_v62 = vunpack.i.h.bf16 %v3426_v52  ;;  %v2284_v17 = vunpack.i.h.bf16 %v3477_v11 }
  0xcf   : > { %2646 = vrot.lane.b32.xlu0 %v3305_v28, %s2878_s12  ;;  %v3565_v58 = vpop.permute.xlu1 %2371  ;;  %v3580_v28 = vld [vmem:[%s2918_s20 + $0x180] sm:$0xff]  ;;  %v1325_v10 = vsel %vm1312_vm4, %v1292_v23, %v2308_v25  ;;  %v2198_v23 = vunpack.i.l.bf16 %v3418_v59  ;;  %v2283_v25 = vunpack.i.l.bf16 %v3477_v11  ;;  %v2359_v1 = vunpack.i.h.bf16 %v3557_v21 }
  0xd0   : > { %v488_v36 = vrot.slane %v3580_v28, 1 }
  0xd1   : > { %v3567_v4 = vpop.permute.xlu0 %2366  ;;  %2661 = vrot.lane.b32.xlu1 %v2660_v38, %s2873_s23  ;;  %v1280_v11 = vsel %vm1279_vm3, %v2836_v7, %v2198_v23 }
  0xd3   : > { %2656 = vrot.lane.b32.xlu0 %v2630_v8, %s2873_s23  ;;  %v3571_v29 = vpop.permute.xlu1 %2381 }
  0xd5   : > { %v3573_v32 = vpop.permute.xlu0 %2376  ;;  %2671 = vrot.lane.b32.xlu1 %v3196_v35, %s2874_s28 }
  0xd7   : > { %2666 = vrot.lane.b32.xlu0 %v3153_v44, %s2874_s28  ;;  %v3589_v8 = vpop.permute.xlu1 %2391  ;;  %v2199_v44 = vunpack.i.h.bf16 %v3418_v59 }
  0xd8   : > { %v2394_v22 = vunpack.i.h.bf16 %v3589_v8  ;;  %v2393_v7 = vunpack.i.l.bf16 %v3589_v8 }
  0xd9   : > { %v2387_v5 = vpop.permute.xlu0 %2386  ;;  %2681 = vrot.lane.b32.xlu1 %v3330_v14, %s2875_s7 }
  0xda   : > { %v2389_v53 = vunpack.i.h.bf16 %v2387_v5  ;;  %v2388_v48 = vunpack.i.l.bf16 %v2387_v5 }
  0xdb   : > { %2676 = vrot.lane.b32.xlu0 %v3302_v30, %s2875_s7  ;;  %v3611_v51 = vpop.permute.xlu1 %2401  ;;  %v2278_v30 = vunpack.i.l.bf16 %v3479_v12 }
  0xdc   : > { %v3618_v50 = vsel %vm1345_vm5, %v1325_v10, %v2388_v48  ;;  %v3621_v49 = vsel %vm1345_vm5, %v1326_v9, %v2389_v53  ;;  %v2203_v10 = vunpack.i.l.bf16 %v3426_v52  ;;  %v4374_v9 = vrot.slane %v3583_v19, 1  ;;  %v2835_v48 = vld [vmem:[%s2918_s20 + $0x8] sm:$0xff] }
  0xdd   : > { %v3625_v20 = vpop.permute.xlu0 %2396  ;;  %2691 = vrot.lane.b32.xlu1 %v3593_v2, %s2876_s10  ;;  %v2358_v52 = vunpack.i.l.bf16 %v3557_v21  ;;  %v2404_v21 = vunpack.i.h.bf16 %v3611_v51 }
  0xde   : > { %v3635_v59 = vsel %vm323_vm0, %v488_v36, %v4374_v9  ;;  %v1281_v36 = vsel %vm1279_vm3, %v2835_v48, %v2199_v44  ;;  %v2279_v9 = vunpack.i.h.bf16 %v3479_v12  ;;  %v2838_v44 = vld [vmem:[%s2918_s20 + $0x18] sm:$0xff]  ;;  %v2363_v12 = vunpack.i.l.bf16 %v3549_v27 }
  0xdf   : > { %2686 = vrot.lane.b32.xlu0 %v2660_v38, %s2876_s10  ;;  %v2412_v5 = vpop.permute.xlu1 %2411  ;;  %v2837_v38 = vld [vmem:[%s2918_s20 + $0x20] sm:$0xff]  ;;  %v1282_v48 = vsel %vm1279_vm3, %v2838_v44, %v2203_v10  ;;  %v1313_v10 = vsel %vm1312_vm4, %v1280_v11, %v2278_v30 }
  0xe0   : > { %v1283_v33 = vsel %vm1279_vm3, %v2837_v38, %v2204_v62  ;;  %v1315_v23 = vsel %vm1312_vm4, %v1282_v48, %v2283_v25  ;;  %v2403_v38 = vunpack.i.l.bf16 %v3611_v51  ;;  %v1314_v44 = vsel %vm1312_vm4, %v1281_v36, %v2279_v9 }
  0xe1   : > { %v2407_v53 = vpop.permute.xlu0 %2406  ;;  %2701 = vrot.lane.b32.xlu1 %v4375_v0, %s2877_s11  ;;  %v1316_v62 = vsel %vm1312_vm4, %v1283_v33, %v2284_v17  ;;  %v2414_v40 = vunpack.i.h.bf16 %v2412_v5  ;;  %v2413_v63 = vunpack.i.l.bf16 %v2412_v5  ;;  %v1346_v8 = vsel %vm1345_vm5, %v1313_v10, %v2358_v52 }
  0xe2   : > { %v1347_v25 = vsel %vm1345_vm5, %v1314_v44, %v2359_v1  ;;  %v2364_v51 = vunpack.i.h.bf16 %v3549_v27  ;;  %v1379_v30 = vsel %vm1378_vm6, %v1346_v8, %v2393_v7  ;;  %v2399_v1 = vunpack.i.h.bf16 %v3625_v20 }
  0xe3   : > { %2696 = vrot.lane.b32.xlu0 %v3196_v35, %s2877_s11  ;;  %v2422_v41 = vpop.permute.xlu1 %2421  ;;  %v1348_v35 = vsel %vm1345_vm5, %v1315_v23, %v2363_v12  ;;  %v1380_v36 = vsel %vm1378_vm6, %v1347_v25, %v2394_v22  ;;  %v1412_v5 = vsel %vm1411_vm7, %v1379_v30, %v2403_v38  ;;  %v2409_v23 = vunpack.i.h.bf16 %v2407_v53 }
  0xe4   : > { %v2424_v48 = vunpack.i.h.bf16 %v2422_v41  ;;  %v2423_v33 = vunpack.i.l.bf16 %v2422_v41  ;;  %v1413_v52 = vsel %vm1411_vm7, %v1380_v36, %v2404_v21  ;;  %v2398_v41 = vunpack.i.l.bf16 %v3625_v20 }
  0xe5   : > { %v2417_v17 = vpop.permute.xlu0 %2416  ;;  %2711 = vrot.lane.b32.xlu1 %v3324_v45, %s2878_s12  ;;  %v1445_v27 = vsel %vm1444_vm8, %v1412_v5, %v2413_v63  ;;  %v1446_v11 = vsel %vm1444_vm8, %v1413_v52, %v2414_v40  ;;  %v2408_v22 = vunpack.i.l.bf16 %v2407_v53  ;;  %v1349_v40 = vsel %vm1345_vm5, %v1316_v62, %v2364_v51 }
  0xe6   : > { %v1478_v21 = vsel %vm1477_vm9, %v1445_v27, %v2423_v33  ;;  %v1479_v20 = vsel %vm1477_vm9, %v1446_v11, %v2424_v48  ;;  %v2419_v38 = vunpack.i.h.bf16 %v2417_v17  ;;  %v2418_v44 = vunpack.i.l.bf16 %v2417_v17 }
  0xe7   : > { %2706 = vrot.lane.b32.xlu0 %v3330_v14, %s2878_s12  ;;  %v2432_v9 = vpop.permute.xlu1 %2431  ;;  %v1381_v33 = vsel %vm1378_vm6, %v1348_v35, %v2398_v41  ;;  %v1382_v48 = vsel %vm1378_vm6, %v1349_v40, %v2399_v1  ;;  %v4376_v17 = vrot.slane %v3614_v3, 1  ;;  %v4377_v36 = vrot.slane %v3583_v19, 1  ;;  %v3740_v40 = vld [vmem:[%s2918_s20 + $0x168] sm:$0xff] }
  0xe8   : > { %v2434_v12 = vunpack.i.h.bf16 %v2432_v9  ;;  %v2433_v7 = vunpack.i.l.bf16 %v2432_v9  ;;  %v4378_v62 = vrot.slane %v3583_v19, 2  ;;  %v4379_v51 = vrot.slane %v3580_v28, 2 }
  0xe9   : > { %v2427_v10 = vpop.permute.xlu0 %2426  ;;  %2721 = vrot.lane.b32.xlu1 %v3599_v57, %s2873_s23  ;;  %v492_v5 = vsel %vm323_vm0, %v4377_v36, %v4376_v17  ;;  %v1415_v9 = vsel %vm1411_vm7, %v1382_v48, %v2409_v23  ;;  %v4380_v35 = vrot.slane %v3614_v3, 2  ;;  %v2213_v48 = vunpack.i.l.bf16 %v3424_v26 }
  0xea   : > { %v1511_v14 = vsel %vm1510_vm10, %v1478_v21, %v2433_v7  ;;  %v1512_v63 = vsel %vm1510_vm10, %v1479_v20, %v2434_v12  ;;  %v2429_v8 = vunpack.i.h.bf16 %v2427_v10  ;;  %v2428_v25 = vunpack.i.l.bf16 %v2427_v10 }
  0xeb   : > { %2716 = vrot.lane.b32.xlu0 %v3593_v2, %s2873_s23  ;;  %v3694_v53 = vpop.permute.xlu1 %2441  ;;  %v1543_v30 = vpack.c.bf16 %v1512_v63, %v1511_v14  ;;  %v495_v52 = vsel %vm404_vm1, %v4379_v51, %v4378_v62  ;;  %v1414_v2 = vsel %vm1411_vm7, %v1381_v33, %v2408_v22  ;;  %v4381_v1 = vmov %v4378_v62  ;;  %v3751_v33 = vld [vmem:[%s2918_s20 + $0x1a0] sm:$0xff]  ;;  %v2842_v51 = vld [vmem:[%s2918_s20 + $0x30] sm:$0xff] }
  0xec   : > { %v497_v41 = vsel %vm404_vm1, %v4381_v1, %v4380_v35  ;;  %v1447_v11 = vsel %vm1444_vm8, %v1414_v2, %v2418_v44  ;;  %v1448_v12 = vsel %vm1444_vm8, %v1415_v9, %v2419_v38  ;;  %v2209_v22 = vunpack.i.h.bf16 %v3416_v54  ;;  %v2843_v1 = vld [vmem:[%s2918_s20 + $0x50] sm:$0xff] }
  0xed   : > { %v2437_v27 = vpop.permute.xlu0 %2436  ;;  %2731 = vrot.lane.b32.xlu1 %v3217_v34, %s2874_s28  ;;  %2138 = vmatprep.mubr.msk.bf16.mxu0 %vm1562_vm11, %v1543_v30  ;;  %v2208_v10 = vunpack.i.l.bf16 %v3416_v54  ;;  %v1480_v3 = vsel %vm1477_vm9, %v1447_v11, %v2428_v25  ;;  %v1481_v21 = vsel %vm1477_vm9, %v1448_v12, %v2429_v8  ;;  %v2214_v14 = vunpack.i.h.bf16 %v3424_v26  ;;  %v3743_v8 = vld [vmem:[%s2918_s20 + $0x170] sm:$0xff]  ;;  %v3748_v30 = vld [vmem:[%s2918_s20 + $0x198] sm:$0xff] }
  0xee   : > { %v2439_v7 = vunpack.i.h.bf16 %v2437_v27  ;;  %v2438_v23 = vunpack.i.l.bf16 %v2437_v27  ;;  %v2775_v25 = vpack.i.bf16 %v3743_v8, %v3740_v40  ;;  %v3755_v17 = vpack.i.bf16 %v492_v5, %v3635_v59 }
  0xef   : > { %2726 = vrot.lane.b32.xlu0 %v4375_v0, %s2874_s28  ;;  %v3726_v20 = vpop.permute.xlu1 %2451  ;;  %v3737_v0 = vpack.i.bf16 %v3583_v19, %v3580_v28  ;;  %v3757_v36 = vpack.i.bf16 %v497_v41, %v495_v52  ;;  %v3760_v28 = vld [vmem:[%s2918_s20 + $0x1a8] sm:$0x3]  ;;  %v2841_v19 = vld [vmem:[%s2918_s20 + $0x38] sm:$0xff]  ;;  %v1284_v2 = vsel %vm1279_vm3, %v2842_v51, %v2208_v10  ;;  %v2294_v9 = vunpack.i.h.bf16 %v3483_v18 }
  0xf0   : > { %v1513_v38 = vsel %vm1510_vm10, %v1480_v3, %v2438_v23  ;;  %v1514_v44 = vsel %vm1510_vm10, %v1481_v21, %v2439_v7  ;;  %v1285_v62 = vsel %vm1279_vm3, %v2841_v19, %v2209_v22  ;;  %v2293_v27 = vunpack.i.l.bf16 %v3483_v18 }
  0xf1   : > { %v1544_v54 = vpack.c.bf16 %v1514_v44, %v1513_v38  ;;  %v3731_v63 = vpop.permute.xlu0 %2446  ;;  %2741 = vrot.lane.b32.xlu1 %v3340_v15, %s2875_s7  ;;  %v2289_v59 = vunpack.i.h.bf16 %v3485_v24  ;;  %v2288_v5 = vunpack.i.l.bf16 %v3485_v24  ;;  %v502_v52 = vrot.slane %v3751_v33, 1  ;;  %v2844_v24 = vld [vmem:[%s2918_s20 + $0x48] sm:$0xff] }
  0xf2   : > { %v501_v35 = vrot.slane %v3748_v30, 1  ;;  %v1287_v41 = vsel %vm1279_vm3, %v2843_v1, %v2214_v14  ;;  %v2369_v11 = vunpack.i.h.bf16 %v3567_v4  ;;  %v2368_v18 = vunpack.i.l.bf16 %v3567_v4  ;;  %v4383_v1 = vld [vmem:[#allocation17_spill] sm:$0xff] }
  0xf3   : > { %2736 = vrot.lane.b32.xlu0 %v3324_v45, %s2875_s7  ;;  %2139 = vmatmul.mubr.msk.bf16.vlgmr.msra.gmra.mrb[0].mxu0 %vm1562_vm11, %v1544_v54  ;;  %v2462_v26 = vpop.permute.xlu1 %2461  ;;  %v4382_v45 = vpack.i.bf16 %v4352_v39, %v3138_v46  ;;  %v504_v7 = vrot.slane %v3760_v28, 1  ;;  %v1286_v23 = vsel %vm1279_vm3, %v2844_v24, %v2213_v48  ;;  %v2373_v22 = vunpack.i.l.bf16 %v3565_v58 }
  0xf4   : > { %v2444_v10 = vunpack.i.h.bf16 %v3694_v53  ;;  %v2443_v3 = vunpack.i.l.bf16 %v3694_v53  ;;  %v1320_v21 = vsel %vm1312_vm4, %v1287_v41, %v2294_v9  ;;  %v1319_v4 = vsel %vm1312_vm4, %v1286_v23, %v2293_v27 }
  0xf5   : > { %v2457_v12 = vpop.permute.xlu0 %2456  ;;  %2751 = vrot.lane.b32.xlu1 %v4382_v45, %s2876_s10  ;;  %v2454_v38 = vunpack.i.h.bf16 %v3726_v20  ;;  %v2453_v46 = vunpack.i.l.bf16 %v3726_v20  ;;  %v1318_v44 = vsel %vm1312_vm4, %v1285_v62, %v2289_v59  ;;  %v1317_v14 = vsel %vm1312_vm4, %v1284_v2, %v2288_v5 }
  0xf6   : > { %v2464_v54 = vunpack.i.h.bf16 %v2462_v26  ;;  %v2463_v48 = vunpack.i.l.bf16 %v2462_v26  ;;  %v1350_v53 = vsel %vm1345_vm5, %v1317_v14, %v2368_v18  ;;  %v1351_v19 = vsel %vm1345_vm5, %v1318_v44, %v2369_v11 }
  0xf7   : > { %2746 = vrot.lane.b32.xlu0 %v3599_v57, %s2876_s10  ;;  %v2472_v39 = vpop.permute.xlu1 %2471  ;;  %v2374_v20 = vunpack.i.h.bf16 %v3565_v58  ;;  %v1352_v57 = vsel %vm1345_vm5, %v1319_v4, %v2373_v22  ;;  %v1383_v62 = vsel %vm1378_vm6, %v1350_v53, %v2443_v3  ;;  %v1384_v2 = vsel %vm1378_vm6, %v1351_v19, %v2444_v10 }
  0xf8   : > { %v2474_v51 = vunpack.i.h.bf16 %v2472_v39  ;;  %v2473_v9 = vunpack.i.l.bf16 %v2472_v39  ;;  %v1416_v26 = vsel %vm1411_vm7, %v1383_v62, %v2453_v46  ;;  %v1417_v59 = vsel %vm1411_vm7, %v1384_v2, %v2454_v38 }
  0xf9   : > { %v2467_v27 = vpop.permute.xlu0 %2466  ;;  %2761 = vrot.lane.b32.xlu1 %v4383_v1, %s2877_s11  ;;  %v2449_v5 = vunpack.i.h.bf16 %v3731_v63  ;;  %v2448_v41 = vunpack.i.l.bf16 %v3731_v63  ;;  %v1449_v58 = vsel %vm1444_vm8, %v1416_v26, %v2463_v48  ;;  %v1450_v18 = vsel %vm1444_vm8, %v1417_v59, %v2464_v54 }
  0xfa   : > { %v2459_v23 = vunpack.i.h.bf16 %v2457_v12  ;;  %v2458_v22 = vunpack.i.l.bf16 %v2457_v12  ;;  %v1482_v10 = vsel %vm1477_vm9, %v1449_v58, %v2473_v9  ;;  %v1483_v3 = vsel %vm1477_vm9, %v1450_v18, %v2474_v51 }
  0xfb   : > { %2756 = vrot.lane.b32.xlu0 %v3217_v34, %s2877_s11  ;;  %v2482_v11 = vpop.permute.xlu1 %2481  ;;  %v2469_v63 = vunpack.i.h.bf16 %v2467_v27  ;;  %v2468_v38 = vunpack.i.l.bf16 %v2467_v27  ;;  %v1353_v39 = vsel %vm1345_vm5, %v1320_v21, %v2374_v20  ;;  %v1385_v53 = vsel %vm1378_vm6, %v1352_v57, %v2448_v41 }
  0xfc   : > { %v2484_v45 = vunpack.i.h.bf16 %v2482_v11  ;;  %v2483_v24 = vunpack.i.l.bf16 %v2482_v11  ;;  %v1386_v48 = vsel %vm1378_vm6, %v1353_v39, %v2449_v5  ;;  %v507_v19 = vrot.slane %v3751_v33, 2 }
  0xfd   : > { %v2477_v4 = vpop.permute.xlu0 %2476  ;;  %2771 = vrot.lane.b32.xlu1 %v3336_v60, %s2878_s12  ;;  %v1418_v51 = vsel %vm1411_vm7, %v1385_v53, %v2458_v22  ;;  %v1419_v9 = vsel %vm1411_vm7, %v1386_v48, %v2459_v23  ;;  %v509_v21 = vrot.slane %v3760_v28, 2  ;;  %v3847_v41 = vsel %vm323_vm0, %v501_v35, %v502_v52 }
  0xfe   : > { %v1515_v34 = vsel %vm1510_vm10, %v1482_v10, %v2483_v24  ;;  %v1516_v46 = vsel %vm1510_vm10, %v1483_v3, %v2484_v45  ;;  %v2479_v14 = vunpack.i.h.bf16 %v2477_v4  ;;  %v2478_v54 = vunpack.i.l.bf16 %v2477_v4  ;;  %v2846_v10 = vld [vmem:[%s2918_s20 + $0x78] sm:$0xff] }
  0xff   : > { %v1545_v44 = vpack.c.bf16 %v1516_v46, %v1515_v34  ;;  %2766 = vrot.lane.b32.xlu0 %v3340_v15, %s2878_s12  ;;  %v3822_v12 = vpop.permute.xlu1 %2491  ;;  %v506_v15 = vrot.slane %v3748_v30, 2  ;;  %v1451_v20 = vsel %vm1444_vm8, %v1418_v51, %v2468_v38  ;;  %v1452_v57 = vsel %vm1444_vm8, %v1419_v9, %v2469_v63  ;;  %v2847_v38 = vld [vmem:[%s2918_s20 + $0x68] sm:$0xff] }
 0x100   : > { %v1484_v26 = vsel %vm1477_vm9, %v1451_v20, %v2478_v54  ;;  %v1485_v59 = vsel %vm1477_vm9, %v1452_v57, %v2479_v14  ;;  %v3854_v11 = vsel %vm323_vm0, %v502_v52, %v504_v7  ;;  %v2224_v58 = vunpack.i.h.bf16 %v3432_v47 }
 0x101   : > { %v2487_v27 = vpop.permute.xlu0 %2486  ;;  %2781 = vrot.lane.b32.xlu1 %v3737_v0, %s2873_s23  ;;  %2142 = vmatprep.mubr.msk.bf16.mxu0 %vm1562_vm11, %v1545_v44  ;;  %v2223_v40 = vunpack.i.l.bf16 %v3432_v47  ;;  %v2219_v18 = vunpack.i.h.bf16 %v3434_v13  ;;  %v2810_v28 = vpack.i.bf16 %v3751_v33, %v3748_v30  ;;  %v2218_v47 = vunpack.i.l.bf16 %v3434_v13  ;;  %v2845_v30 = vld [vmem:[%s2918_s20 + $0x80] sm:$0xff] }
 0x102   : > { %v2489_v62 = vunpack.i.h.bf16 %v2487_v27  ;;  %v2488_v2 = vunpack.i.l.bf16 %v2487_v27  ;;  %v2820_v52 = vpack.i.bf16 %v3854_v11, %v3847_v41  ;;  %v3871_v7 = vsel %vm404_vm1, %v506_v15, %v507_v19  ;;  %v2848_v44 = vld [vmem:[%s2918_s20 + $0x60] sm:$0xff] }
 0x103   : > { %2776 = vrot.lane.b32.xlu0 %v2775_v25, %s2873_s23  ;;  %v2502_v5 = vpop.permute.xlu1 %2501  ;;  %v3874_v24 = vsel %vm404_vm1, %v507_v19, %v509_v21  ;;  %v2304_v23 = vunpack.i.h.bf16 %v3491_v56  ;;  %v2303_v22 = vunpack.i.l.bf16 %v3491_v56  ;;  %v1291_v33 = vsel %vm1279_vm3, %v2845_v30, %v2224_v58 }
 0x104   : > { %v1517_v8 = vsel %vm1510_vm10, %v1484_v26, %v2488_v2  ;;  %v1518_v25 = vsel %vm1510_vm10, %v1485_v59, %v2489_v62  ;;  %v1290_v3 = vsel %vm1279_vm3, %v2846_v10, %v2223_v40  ;;  %v2299_v4 = vunpack.i.h.bf16 %v3493_v61 }
 0x105   : > { %v1546_v35 = vpack.c.bf16 %v1518_v25, %v1517_v8  ;;  %v3861_v45 = vpop.permute.xlu0 %2496  ;;  %2791 = vrot.lane.b32.xlu1 %v3755_v17, %s2874_s28  ;;  %v2298_v63 = vunpack.i.l.bf16 %v3493_v61  ;;  %v1289_v56 = vsel %vm1279_vm3, %v2847_v38, %v2219_v18  ;;  %v2379_v34 = vunpack.i.h.bf16 %v3573_v32 }
 0x106   : > { %v2830_v39 = vpack.i.bf16 %v3874_v24, %v3871_v7  ;;  %v1288_v14 = vsel %vm1279_vm3, %v2848_v44, %v2218_v47  ;;  %v2383_v54 = vunpack.i.l.bf16 %v3571_v29  ;;  %v2494_v61 = vunpack.i.h.bf16 %v3822_v12 }
 0x107   : > { %2786 = vrot.lane.b32.xlu0 %v4383_v1, %s2874_s28  ;;  %2143 = vmatmul.mubr.msk.bf16.gmra.mrb[4].mxu0 %vm1562_vm11, %v1546_v35  ;;  %v2512_v13 = vpop.permute.xlu1 %2511  ;;  %v2378_v1 = vunpack.i.l.bf16 %v3573_v32  ;;  %v2493_v48 = vunpack.i.l.bf16 %v3822_v12  ;;  %v1324_v53 = vsel %vm1312_vm4, %v1291_v33, %v2304_v23  ;;  %v1323_v32 = vsel %vm1312_vm4, %v1290_v3, %v2303_v22 }
 0x108   : > { %v2504_v19 = vunpack.i.h.bf16 %v2502_v5  ;;  %v2503_v51 = vunpack.i.l.bf16 %v2502_v5  ;;  %v1321_v27 = vsel %vm1312_vm4, %v1288_v14, %v2298_v63  ;;  %v1322_v15 = vsel %vm1312_vm4, %v1289_v56, %v2299_v4 }
 0x109   : > { %v2507_v46 = vpop.permute.xlu0 %2506  ;;  %2801 = vrot.lane.b32.xlu1 %v3757_v36, %s2875_s7  ;;  %v2514_v21 = vunpack.i.h.bf16 %v2512_v13  ;;  %v2513_v20 = vunpack.i.l.bf16 %v2512_v13  ;;  %v1354_v57 = vsel %vm1345_vm5, %v1321_v27, %v2378_v1  ;;  %v1355_v12 = vsel %vm1345_vm5, %v1322_v15, %v2379_v34 }
 0x10a   : > { %v2384_v59 = vunpack.i.h.bf16 %v3571_v29  ;;  %v1387_v5 = vsel %vm1378_vm6, %v1354_v57, %v2493_v48  ;;  %v1388_v41 = vsel %vm1378_vm6, %v1355_v12, %v2494_v61  ;;  %v2499_v40 = vunpack.i.h.bf16 %v3861_v45 }
 0x10b   : > { %2796 = vrot.lane.b32.xlu0 %v3336_v60, %s2875_s7  ;;  %v2522_v9 = vpop.permute.xlu1 %2521  ;;  %v1356_v60 = vsel %vm1345_vm5, %v1323_v32, %v2383_v54  ;;  %v1420_v11 = vsel %vm1411_vm7, %v1387_v5, %v2503_v51  ;;  %v1421_v58 = vsel %vm1411_vm7, %v1388_v41, %v2504_v19  ;;  %v2498_v8 = vunpack.i.l.bf16 %v3861_v45 }
 0x10c   : > { %v2524_v62 = vunpack.i.h.bf16 %v2522_v9  ;;  %v2523_v2 = vunpack.i.l.bf16 %v2522_v9  ;;  %v1453_v29 = vsel %vm1444_vm8, %v1420_v11, %v2513_v20  ;;  %v1454_v18 = vsel %vm1444_vm8, %v1421_v58, %v2514_v21 }
 0x10d   : > { %v2517_v26 = vpop.permute.xlu0 %2516  ;;  %2811 = vrot.lane.b32.xlu1 %v2810_v28, %s2876_s10  ;;  %v2509_v47 = vunpack.i.h.bf16 %v2507_v46  ;;  %v2508_v7 = vunpack.i.l.bf16 %v2507_v46  ;;  %v1357_v33 = vsel %vm1345_vm5, %v1324_v53, %v2384_v59  ;;  %v1389_v56 = vsel %vm1378_vm6, %v1356_v60, %v2498_v8 }
 0x10e   : > { %v1486_v24 = vsel %vm1477_vm9, %v1453_v29, %v2523_v2  ;;  %v1487_v23 = vsel %vm1477_vm9, %v1454_v18, %v2524_v62  ;;  %v2519_v45 = vunpack.i.h.bf16 %v2517_v26  ;;  %v2518_v13 = vunpack.i.l.bf16 %v2517_v26  ;;  %v2849_v62 = vld [vmem:[%s2918_s20 + $0xb0] sm:$0xff]  ;;  %v2850_v26 = vld [vmem:[%s2918_s20 + $0xa8] sm:$0xff] }
 0x10f   : > { %2806 = vrot.lane.b32.xlu0 %v3737_v0, %s2876_s10  ;;  %v2532_v25 = vpop.permute.xlu1 %2531  ;;  %v1390_v38 = vsel %vm1378_vm6, %v1357_v33, %v2499_v40  ;;  %v2234_v9 = vunpack.i.h.bf16 %v3439_v55  ;;  %v2233_v27 = vunpack.i.l.bf16 %v3439_v55  ;;  %v2314_v15 = vunpack.i.h.bf16 %v3501_v31 }
 0x110   : > { %v2534_v35 = vunpack.i.h.bf16 %v2532_v25  ;;  %v2533_v28 = vunpack.i.l.bf16 %v2532_v25  ;;  %v1423_v34 = vsel %vm1411_vm7, %v1390_v38, %v2509_v47 }
 0x111   : > { %v2527_v22 = vpop.permute.xlu0 %2526  ;;  %2821 = vrot.lane.b32.xlu1 %v2820_v52, %s2877_s11  ;;  %v1422_v52 = vsel %vm1411_vm7, %v1389_v56, %v2508_v7  ;;  %v1456_v44 = vsel %vm1444_vm8, %v1423_v34, %v2519_v45  ;;  %v1295_v2 = vsel %vm1279_vm3, %v2849_v62, %v2234_v9  ;;  %v1294_v59 = vsel %vm1279_vm3, %v2850_v26, %v2233_v27 }
 0x112   : > { %v1519_v0 = vsel %vm1510_vm10, %v1486_v24, %v2533_v28  ;;  %v1520_v30 = vsel %vm1510_vm10, %v1487_v23, %v2534_v35  ;;  %v2529_v3 = vunpack.i.h.bf16 %v2527_v22  ;;  %v2528_v4 = vunpack.i.l.bf16 %v2527_v22 }
 0x113   : > { %v1547_v10 = vpack.c.bf16 %v1520_v30, %v1519_v0  ;;  %2816 = vrot.lane.b32.xlu0 %v3755_v17, %s2877_s11  ;;  %v2542_v63 = vpop.permute.xlu1 %2541  ;;  %v1455_v46 = vsel %vm1444_vm8, %v1422_v52, %v2518_v13  ;;  %v1328_v41 = vsel %vm1312_vm4, %v1295_v2, %v2314_v15  ;;  %v2244_v62 = vunpack.i.h.bf16 %v3446_v37 }
 0x114   : > { %v1488_v54 = vsel %vm1477_vm9, %v1455_v46, %v2528_v4  ;;  %v1489_v61 = vsel %vm1477_vm9, %v1456_v44, %v2529_v3  ;;  %v2544_v20 = vunpack.i.h.bf16 %v2542_v63  ;;  %v2543_v57 = vunpack.i.l.bf16 %v2542_v63 }
 0x115   : > { %v2537_v1 = vpop.permute.xlu0 %2536  ;;  %2831 = vrot.lane.b32.xlu1 %v2830_v39, %s2878_s12  ;;  %2146 = vmatprep.mubr.msk.bf16.mxu0 %vm1562_vm11, %v1547_v10  ;;  %v2243_v2 = vunpack.i.l.bf16 %v3446_v37  ;;  %v2239_v26 = vunpack.i.h.bf16 %v3448_v16 }
 0x116   : > { %v2539_v14 = vunpack.i.h.bf16 %v2537_v1  ;;  %v2538_v17 = vunpack.i.l.bf16 %v2537_v1  ;;  %v1361_v25 = vsel %vm1345_vm5, %v1328_v41, %v2544_v20  ;;  %v2323_v41 = vunpack.i.l.bf16 %v3507_v42 }
 0x117   : > { %2826 = vrot.lane.b32.xlu0 %v3757_v36, %s2878_s12  ;;  %v2552_v48 = vpop.permute.xlu1 %2551  ;;  %v2313_v36 = vunpack.i.l.bf16 %v3501_v31 }
 0x118   : > { %v1521_v53 = vsel %vm1510_vm10, %v1488_v54, %v2538_v17  ;;  %v1522_v39 = vsel %vm1510_vm10, %v1489_v61, %v2539_v14  ;;  %v2554_v60 = vunpack.i.h.bf16 %v2552_v48  ;;  %v2553_v5 = vunpack.i.l.bf16 %v2552_v48 }
 0x119   : > { %v1548_v32 = vpack.c.bf16 %v1522_v39, %v1521_v53  ;;  %v2547_v19 = vpop.permute.xlu0 %2546  ;;  %v1327_v55 = vsel %vm1312_vm4, %v1294_v59, %v2313_v36  ;;  %v2238_v59 = vunpack.i.l.bf16 %v3448_v16 }
 0x11a   : > { %v2549_v58 = vunpack.i.h.bf16 %v2547_v19  ;;  %v2548_v40 = vunpack.i.l.bf16 %v2547_v19  ;;  %v1360_v29 = vsel %vm1345_vm5, %v1327_v55, %v2543_v57  ;;  %v1394_v7 = vsel %vm1378_vm6, %v1361_v25, %v2554_v60  ;;  %v2852_v25 = vld [vmem:[%s2918_s20 + $0xd8] sm:$0xff] }
 0x11b   : > { %2147 = vmatmul.mubr.msk.bf16.gmra.mrb[8].mxu0 %vm1562_vm11, %v1548_v32  ;;  %v2562_v51 = vpop.permute.xlu1 %2561  ;;  %v1393_v47 = vsel %vm1378_vm6, %v1360_v29, %v2553_v5  ;;  %v2324_v5 = vunpack.i.h.bf16 %v3507_v42  ;;  %v2319_v55 = vunpack.i.h.bf16 %v3509_v43  ;;  %v1298_v29 = vsel %vm1279_vm3, %v2852_v25, %v2243_v2 }
 0x11c   : > { %v2564_v31 = vunpack.i.h.bf16 %v2562_v51  ;;  %v2563_v8 = vunpack.i.l.bf16 %v2562_v51  ;;  %v1391_v33 = vsel %vm1378_vm6, %v3618_v50, %v2548_v40  ;;  %v1392_v10 = vsel %vm1378_vm6, %v3621_v49, %v2549_v58 }
 0x11d   : > { %v2557_v21 = vpop.permute.xlu0 %2556 }
 0x11e   : > { %v2559_v18 = vunpack.i.h.bf16 %v2557_v21  ;;  %v2558_v35 = vunpack.i.l.bf16 %v2557_v21  ;;  %v1426_v3 = vsel %vm1411_vm7, %v1393_v47, %v2563_v8  ;;  %v1427_v4 = vsel %vm1411_vm7, %v1394_v7, %v2564_v31  ;;  %v2851_v8 = vld [vmem:[%s2918_s20 + $0xe0] sm:$0xff] }
 0x11f   : > { %v2572_v12 = vpop.permute.xlu1 %2571  ;;  %v1299_v37 = vsel %vm1279_vm3, %v2851_v8, %v2244_v62 }
 0x120   : > { %v2574_v24 = vunpack.i.h.bf16 %v2572_v12  ;;  %v2573_v23 = vunpack.i.l.bf16 %v2572_v12  ;;  %v1424_v63 = vsel %vm1411_vm7, %v1391_v33, %v2558_v35  ;;  %v1425_v38 = vsel %vm1411_vm7, %v1392_v10, %v2559_v18  ;;  %v2853_v18 = vld [vmem:[%s2918_s20 + $0xc8] sm:$0xff]  ;;  %v2854_v35 = vld [vmem:[%s2918_s20 + $0xc0] sm:$0xff] }
 0x121   : > { %v2567_v11 = vpop.permute.xlu0 %2566  ;;  %v1297_v16 = vsel %vm1279_vm3, %v2853_v18, %v2239_v26 }
 0x122   : > { %v2569_v22 = vunpack.i.h.bf16 %v2567_v11  ;;  %v2568_v45 = vunpack.i.l.bf16 %v2567_v11  ;;  %v1459_v1 = vsel %vm1444_vm8, %v1426_v3, %v2573_v23  ;;  %v1460_v46 = vsel %vm1444_vm8, %v1427_v4, %v2574_v24 }
 0x123   : > { %v2582_v28 = vpop.permute.xlu1 %2581  ;;  %v2318_v11 = vunpack.i.l.bf16 %v3509_v43  ;;  %v1332_v43 = vsel %vm1312_vm4, %v1299_v37, %v2324_v5  ;;  %v1331_v24 = vsel %vm1312_vm4, %v1298_v29, %v2323_v41 }
 0x124   : > { %v2584_v13 = vunpack.i.h.bf16 %v2582_v28  ;;  %v2583_v0 = vunpack.i.l.bf16 %v2582_v28  ;;  %v1457_v14 = vsel %vm1444_vm8, %v1424_v63, %v2568_v45  ;;  %v1458_v49 = vsel %vm1444_vm8, %v1425_v38, %v2569_v22 }
 0x125   : > { %v2577_v30 = vpop.permute.xlu0 %2576  ;;  %v1296_v28 = vsel %vm1279_vm3, %v2854_v35, %v2238_v59 }
 0x126   : > { %v2579_v56 = vunpack.i.h.bf16 %v2577_v30  ;;  %v2578_v52 = vunpack.i.l.bf16 %v2577_v30  ;;  %v1492_v17 = vsel %vm1477_vm9, %v1459_v1, %v2583_v0  ;;  %v1493_v54 = vsel %vm1477_vm9, %v1460_v46, %v2584_v13 }
 0x127   : > { %v2592_v34 = vpop.permute.xlu1 %2591  ;;  %v1329_v45 = vsel %vm1312_vm4, %v1296_v28, %v2318_v11  ;;  %v1330_v13 = vsel %vm1312_vm4, %v1297_v16, %v2319_v55  ;;  %v2254_v28 = vunpack.i.h.bf16 %v3456_v6 }
 0x128   : > { %v2594_v44 = vunpack.i.h.bf16 %v2592_v34  ;;  %v2593_v50 = vunpack.i.l.bf16 %v2592_v34  ;;  %v1490_v19 = vsel %vm1477_vm9, %v1457_v14, %v2578_v52  ;;  %v1491_v51 = vsel %vm1477_vm9, %v1458_v49, %v2579_v56 }
 0x129   : > { %v2587_v61 = vpop.permute.xlu0 %2586 }
 0x12a   : > { %v1525_v48 = vsel %vm1510_vm10, %v1492_v17, %v2593_v50  ;;  %v1526_v53 = vsel %vm1510_vm10, %v1493_v54, %v2594_v44  ;;  %v2589_v39 = vunpack.i.h.bf16 %v2587_v61  ;;  %v2588_v32 = vunpack.i.l.bf16 %v2587_v61 }
 0x12b   : > { %v2602_v9 = vpop.permute.xlu1 %2601  ;;  %v1550_v27 = vpack.c.bf16 %v1526_v53, %v1525_v48 }
 0x12c   : > { %v1523_v15 = vsel %vm1510_vm10, %v1490_v19, %v2588_v32  ;;  %v1524_v36 = vsel %vm1510_vm10, %v1491_v51, %v2589_v39  ;;  %v2604_v58 = vunpack.i.h.bf16 %v2602_v9  ;;  %v2603_v40 = vunpack.i.l.bf16 %v2602_v9 }
 0x12d   : > { %v1549_v21 = vpack.c.bf16 %v1524_v36, %v1523_v15  ;;  %v2597_v20 = vpop.permute.xlu0 %2596 }
 0x12e   : > { %v2599_v42 = vunpack.i.h.bf16 %v2597_v20  ;;  %v2598_v47 = vunpack.i.l.bf16 %v2597_v20  ;;  %v1365_v0 = vsel %vm1345_vm5, %v1332_v43, %v2604_v58  ;;  %v1364_v30 = vsel %vm1345_vm5, %v1331_v24, %v2603_v40 }
 0x12f   : > { %2150 = vmatprep.mubr.msk.bf16.mxu0 %vm1562_vm11, %v1549_v21  ;;  %v2612_v57 = vpop.permute.xlu1 %2611 }
 0x130   : > { %2151 = vmatmul.mubr.msk.bf16.gmra.mrb[12].mxu0 %vm1562_vm11, %v1550_v27  ;;  %v2614_v23 = vunpack.i.h.bf16 %v2612_v57  ;;  %v2613_v22 = vunpack.i.l.bf16 %v2612_v57  ;;  %v1362_v38 = vsel %vm1345_vm5, %v1329_v45, %v2598_v47  ;;  %v1363_v56 = vsel %vm1345_vm5, %v1330_v13, %v2599_v42  ;;  %v4384_v47 = vld [vmem:[#allocation9_spill] sm:$0xff]  ;;  %v4386_v13 = vld [vmem:[#allocation15_spill] sm:$0xff] }
 0x131   : > { %v2607_v12 = vpop.permute.xlu0 %2606  ;;  %v2253_v42 = vunpack.i.l.bf16 %v3456_v6  ;;  %v2248_v43 = vunpack.i.l.bf16 %v4384_v47 }
 0x132   : > { %v2609_v10 = vunpack.i.h.bf16 %v2607_v12  ;;  %v2608_v3 = vunpack.i.l.bf16 %v2607_v12  ;;  %v1397_v46 = vsel %vm1378_vm6, %v1364_v30, %v2613_v22  ;;  %v1398_v44 = vsel %vm1378_vm6, %v1365_v0, %v2614_v23  ;;  %v4385_v23 = vld [vmem:[#allocation13_spill] sm:$0xff] }
 0x133   : > { %v2622_v60 = vpop.permute.xlu1 %2621  ;;  %v2334_v22 = vunpack.i.h.bf16 %v4385_v23  ;;  %v2333_v45 = vunpack.i.l.bf16 %v4385_v23  ;;  %v2329_v0 = vunpack.i.h.bf16 %v4386_v13  ;;  %v2328_v30 = vunpack.i.l.bf16 %v4386_v13 }
 0x134   : > { %v2624_v4 = vunpack.i.h.bf16 %v2622_v60  ;;  %v2623_v63 = vunpack.i.l.bf16 %v2622_v60  ;;  %v1395_v53 = vsel %vm1378_vm6, %v1362_v38, %v2608_v3  ;;  %v1396_v39 = vsel %vm1378_vm6, %v1363_v56, %v2609_v10  ;;  %v2857_v56 = vld [vmem:[%s2918_s20 + $0xf8] sm:$0xff] }
 0x135   : > { %v2617_v31 = vpop.permute.xlu0 %2616 }
 0x136   : > { %v2619_v52 = vunpack.i.h.bf16 %v2617_v31  ;;  %v2618_v34 = vunpack.i.l.bf16 %v2617_v31  ;;  %v1430_v32 = vsel %vm1411_vm7, %v1397_v46, %v2623_v63  ;;  %v1431_v19 = vsel %vm1411_vm7, %v1398_v44, %v2624_v4  ;;  %v2855_v4 = vld [vmem:[%s2918_s20 + $0x110] sm:$0xff]  ;;  %v2856_v63 = vld [vmem:[%s2918_s20 + $0x108] sm:$0xff] }
 0x137   : > { %v2632_v7 = vpop.permute.xlu1 %2631  ;;  %v1303_v6 = vsel %vm1279_vm3, %v2855_v4, %v2254_v28  ;;  %v1302_v38 = vsel %vm1279_vm3, %v2856_v63, %v2253_v42 }
 0x138   : > { %v2634_v50 = vunpack.i.h.bf16 %v2632_v7  ;;  %v2633_v14 = vunpack.i.l.bf16 %v2632_v7  ;;  %v1428_v51 = vsel %vm1411_vm7, %v1395_v53, %v2618_v34  ;;  %v1429_v9 = vsel %vm1411_vm7, %v1396_v39, %v2619_v52  ;;  %v2858_v34 = vld [vmem:[%s2918_s20 + $0xf0] sm:$0xff] }
 0x139   : > { %v2627_v33 = vpop.permute.xlu0 %2626  ;;  %v2249_v7 = vunpack.i.h.bf16 %v4384_v47 }
 0x13a   : > { %v2629_v49 = vunpack.i.h.bf16 %v2627_v33  ;;  %v2628_v17 = vunpack.i.l.bf16 %v2627_v33  ;;  %v1463_v21 = vsel %vm1444_vm8, %v1430_v32, %v2633_v14  ;;  %v1464_v20 = vsel %vm1444_vm8, %v1431_v19, %v2634_v50 }
 0x13b   : > { %v2642_v1 = vpop.permute.xlu1 %2641  ;;  %v1301_v52 = vsel %vm1279_vm3, %v2857_v56, %v2249_v7  ;;  %v1336_v14 = vsel %vm1312_vm4, %v1303_v6, %v2334_v22 }
 0x13c   : > { %v2644_v54 = vunpack.i.h.bf16 %v2642_v1  ;;  %v2643_v61 = vunpack.i.l.bf16 %v2642_v1  ;;  %v1461_v62 = vsel %vm1444_vm8, %v1428_v51, %v2628_v17  ;;  %v1462_v2 = vsel %vm1444_vm8, %v1429_v9, %v2629_v49 }
 0x13d   : > { %v2637_v48 = vpop.permute.xlu0 %2636  ;;  %v1300_v1 = vsel %vm1279_vm3, %v2858_v34, %v2248_v43  ;;  %v1335_v49 = vsel %vm1312_vm4, %v1302_v38, %v2333_v45  ;;  %v4387_v34 = vld [vmem:[#allocation10_spill] sm:$0xff] }
 0x13e   : > { %v2639_v27 = vunpack.i.h.bf16 %v2637_v48  ;;  %v2638_v15 = vunpack.i.l.bf16 %v2637_v48  ;;  %v1496_v26 = vsel %vm1477_vm9, %v1463_v21, %v2643_v61  ;;  %v1497_v59 = vsel %vm1477_vm9, %v1464_v20, %v2644_v54 }
 0x13f   : > { %v2652_v36 = vpop.permute.xlu1 %2651  ;;  %v1333_v61 = vsel %vm1312_vm4, %v1300_v1, %v2328_v30  ;;  %v1334_v48 = vsel %vm1312_vm4, %v1301_v52, %v2329_v0  ;;  %v2264_v1 = vunpack.i.h.bf16 %v4387_v34 }
 0x140   : > { %v2654_v57 = vunpack.i.h.bf16 %v2652_v36  ;;  %v2653_v12 = vunpack.i.l.bf16 %v2652_v36  ;;  %v1494_v40 = vsel %vm1477_vm9, %v1461_v62, %v2638_v15  ;;  %v1495_v31 = vsel %vm1477_vm9, %v1462_v2, %v2639_v27 }
 0x141   : > { %v2647_v60 = vpop.permute.xlu0 %2646 }
 0x142   : > { %v1529_v5 = vsel %vm1510_vm10, %v1496_v26, %v2653_v12  ;;  %v1530_v41 = vsel %vm1510_vm10, %v1497_v59, %v2654_v57  ;;  %v2649_v55 = vunpack.i.h.bf16 %v2647_v60  ;;  %v2648_v11 = vunpack.i.l.bf16 %v2647_v60 }
 0x143   : > { %v2662_v58 = vpop.permute.xlu1 %2661  ;;  %v1552_v8 = vpack.c.bf16 %v1530_v41, %v1529_v5 }
 0x144   : > { %v1527_v37 = vsel %vm1510_vm10, %v1494_v40, %v2648_v11  ;;  %v1528_v25 = vsel %vm1510_vm10, %v1495_v31, %v2649_v55  ;;  %v2664_v33 = vunpack.i.h.bf16 %v2662_v58  ;;  %v2663_v10 = vunpack.i.l.bf16 %v2662_v58 }
 0x145   : > { %v2657_v29 = vpop.permute.xlu0 %2656  ;;  %v1551_v18 = vpack.c.bf16 %v1528_v25, %v1527_v37 }
 0x146   : > { %v2659_v46 = vunpack.i.h.bf16 %v2657_v29  ;;  %v2658_v44 = vunpack.i.l.bf16 %v2657_v29  ;;  %v1369_v53 = vsel %vm1345_vm5, %v1336_v14, %v2664_v33  ;;  %v1368_v39 = vsel %vm1345_vm5, %v1335_v49, %v2663_v10 }
 0x147   : > { %2154 = vmatprep.mubr.msk.bf16.mxu1 %vm1562_vm11, %v1551_v18  ;;  %v2672_v16 = vpop.permute.xlu1 %2671 }
 0x148   : > { %2155 = vmatmul.mubr.msk.bf16.vlgmr.msra.gmra.mrb[0].mxu1 %vm1562_vm11, %v1552_v8  ;;  %v2674_v17 = vunpack.i.h.bf16 %v2672_v16  ;;  %v2673_v54 = vunpack.i.l.bf16 %v2672_v16  ;;  %v1366_v15 = vsel %vm1345_vm5, %v1333_v61, %v2658_v44  ;;  %v1367_v36 = vsel %vm1345_vm5, %v1334_v48, %v2659_v46  ;;  %v4388_v44 = vld [vmem:[#allocation12_spill] sm:$0xff]  ;;  %v4390_v48 = vld [vmem:[#allocation2_spill] sm:$0xff] }
 0x149   : > { %v2667_v35 = vpop.permute.xlu0 %2666  ;;  %v2263_v46 = vunpack.i.l.bf16 %v4387_v34  ;;  %v2258_v14 = vunpack.i.l.bf16 %v4388_v44 }
 0x14a   : > { %v2669_v19 = vunpack.i.h.bf16 %v2667_v35  ;;  %v2668_v51 = vunpack.i.l.bf16 %v2667_v35  ;;  %v1401_v12 = vsel %vm1378_vm6, %v1368_v39, %v2673_v54  ;;  %v1402_v62 = vsel %vm1378_vm6, %v1369_v53, %v2674_v17  ;;  %v4389_v17 = vld [vmem:[#allocation4_spill] sm:$0xff] }
 0x14b   : > { %v2682_v24 = vpop.permute.xlu1 %2681  ;;  %v2344_v54 = vunpack.i.h.bf16 %v4389_v17  ;;  %v2343_v61 = vunpack.i.l.bf16 %v4389_v17  ;;  %v2339_v53 = vunpack.i.h.bf16 %v4390_v48  ;;  %v2338_v39 = vunpack.i.l.bf16 %v4390_v48 }
 0x14c   : > { %v2684_v9 = vunpack.i.h.bf16 %v2682_v24  ;;  %v2683_v27 = vunpack.i.l.bf16 %v2682_v24  ;;  %v1399_v11 = vsel %vm1378_vm6, %v1366_v15, %v2668_v51  ;;  %v1400_v58 = vsel %vm1378_vm6, %v1367_v36, %v2669_v19  ;;  %v2860_v15 = vld [vmem:[%s2918_s20 + $0x138] sm:$0xff] }
 0x14d   : > { %v2677_v3 = vpop.permute.xlu0 %2676  ;;  %v1306_v36 = vsel %vm1279_vm3, %v2860_v15, %v2263_v46 }
 0x14e   : > { %v2679_v21 = vunpack.i.h.bf16 %v2677_v3  ;;  %v2678_v20 = vunpack.i.l.bf16 %v2677_v3  ;;  %v1434_v40 = vsel %vm1411_vm7, %v1401_v12, %v2683_v27  ;;  %v1435_v31 = vsel %vm1411_vm7, %v1402_v62, %v2684_v9  ;;  %v2859_v9 = vld [vmem:[%s2918_s20 + $0x140] sm:$0xff] }
 0x14f   : > { %v2692_v50 = vpop.permute.xlu1 %2691  ;;  %v1307_v27 = vsel %vm1279_vm3, %v2859_v9, %v2264_v1 }
 0x150   : > { %v2694_v2 = vunpack.i.h.bf16 %v2692_v50  ;;  %v2693_v26 = vunpack.i.l.bf16 %v2692_v50  ;;  %v1432_v8 = vsel %vm1411_vm7, %v1399_v11, %v2678_v20  ;;  %v1433_v37 = vsel %vm1411_vm7, %v1400_v58, %v2679_v21  ;;  %v2861_v21 = vld [vmem:[%s2918_s20 + $0x128] sm:$0xff] }
 0x151   : > { %v2687_v32 = vpop.permute.xlu0 %2686  ;;  %v2259_v50 = vunpack.i.h.bf16 %v4388_v44 }
 0x152   : > { %v2689_v59 = vunpack.i.h.bf16 %v2687_v32  ;;  %v2688_v60 = vunpack.i.l.bf16 %v2687_v32  ;;  %v1467_v16 = vsel %vm1444_vm8, %v1434_v40, %v2693_v26  ;;  %v1468_v35 = vsel %vm1444_vm8, %v1435_v31, %v2694_v2 }
 0x153   : > { %v2702_v57 = vpop.permute.xlu1 %2701  ;;  %v1305_v20 = vsel %vm1279_vm3, %v2861_v21, %v2259_v50 }
 0x154   : > { %v2704_v5 = vunpack.i.h.bf16 %v2702_v57  ;;  %v2703_v41 = vunpack.i.l.bf16 %v2702_v57  ;;  %v1465_v47 = vsel %vm1444_vm8, %v1432_v8, %v2688_v60  ;;  %v1466_v7 = vsel %vm1444_vm8, %v1433_v37, %v2689_v59  ;;  %v2862_v57 = vld [vmem:[%s2918_s20 + $0x120] sm:$0xff] }
 0x155   : > { %v2697_v55 = vpop.permute.xlu0 %2696  ;;  %v1304_v12 = vsel %vm1279_vm3, %v2862_v57, %v2258_v14  ;;  %v1340_v59 = vsel %vm1312_vm4, %v1307_v27, %v2344_v54  ;;  %v1339_v60 = vsel %vm1312_vm4, %v1306_v36, %v2343_v61  ;;  %v1338_v11 = vsel %vm1312_vm4, %v1305_v20, %v2339_v53 }
 0x156   : > { %v2699_v25 = vunpack.i.h.bf16 %v2697_v55  ;;  %v2698_v29 = vunpack.i.l.bf16 %v2697_v55  ;;  %v1500_v43 = vsel %vm1477_vm9, %v1467_v16, %v2703_v41  ;;  %v1501_v24 = vsel %vm1477_vm9, %v1468_v35, %v2704_v5 }
 0x157   : > { %v2712_v18 = vpop.permute.xlu1 %2711  ;;  %v1337_v55 = vsel %vm1312_vm4, %v1304_v12, %v2338_v39 }
 0x158   : > { %v2714_v28 = vunpack.i.h.bf16 %v2712_v18  ;;  %v2713_v42 = vunpack.i.l.bf16 %v2712_v18  ;;  %v1498_v30 = vsel %vm1477_vm9, %v1465_v47, %v2698_v29  ;;  %v1499_v33 = vsel %vm1477_vm9, %v1466_v7, %v2699_v25 }
 0x159   : > { %v2707_v23 = vpop.permute.xlu0 %2706 }
 0x15a   : > { %v1533_v22 = vsel %vm1510_vm10, %v1500_v43, %v2713_v42  ;;  %v1534_v45 = vsel %vm1510_vm10, %v1501_v24, %v2714_v28  ;;  %v2709_v13 = vunpack.i.h.bf16 %v2707_v23  ;;  %v2708_v0 = vunpack.i.l.bf16 %v2707_v23 }
 0x15b   : > { %v2722_v10 = vpop.permute.xlu1 %2721  ;;  %v1554_v3 = vpack.c.bf16 %v1534_v45, %v1533_v22 }
 0x15c   : > { %v1531_v4 = vsel %vm1510_vm10, %v1498_v30, %v2708_v0  ;;  %v1532_v6 = vsel %vm1510_vm10, %v1499_v33, %v2709_v13  ;;  %v2724_v32 = vunpack.i.h.bf16 %v2722_v10  ;;  %v2723_v19 = vunpack.i.l.bf16 %v2722_v10 }
 0x15d   : > { %v1553_v63 = vpack.c.bf16 %v1532_v6, %v1531_v4  ;;  %v2717_v38 = vpop.permute.xlu0 %2716 }
 0x15e   : > { %v2719_v62 = vunpack.i.h.bf16 %v2717_v38  ;;  %v2718_v2 = vunpack.i.l.bf16 %v2717_v38  ;;  %v1373_v58 = vsel %vm1345_vm5, %v1340_v59, %v2724_v32  ;;  %v1372_v40 = vsel %vm1345_vm5, %v1339_v60, %v2723_v19 }
 0x15f   : > { %2158 = vmatprep.mubr.msk.bf16.mxu1 %vm1562_vm11, %v1553_v63  ;;  %v2732_v56 = vpop.permute.xlu1 %2731 }
 0x160   : > { %2159 = vmatmul.mubr.msk.bf16.gmra.mrb[4].mxu1 %vm1562_vm11, %v1554_v3  ;;  %v2734_v5 = vunpack.i.h.bf16 %v2732_v56  ;;  %v2733_v41 = vunpack.i.l.bf16 %v2732_v56  ;;  %v1370_v18 = vsel %vm1345_vm5, %v1337_v55, %v2718_v2  ;;  %v1371_v16 = vsel %vm1345_vm5, %v1338_v11, %v2719_v62  ;;  %v4391_v55 = vld [vmem:[#allocation3_spill] sm:$0xff] }
 0x161   : > { %v2727_v52 = vpop.permute.xlu0 %2726 }
 0x162   : > { %v2729_v8 = vunpack.i.h.bf16 %v2727_v52  ;;  %v2728_v37 = vunpack.i.l.bf16 %v2727_v52  ;;  %v1405_v47 = vsel %vm1378_vm6, %v1372_v40, %v2733_v41  ;;  %v1406_v7 = vsel %vm1378_vm6, %v1373_v58, %v2734_v5  ;;  %v4392_v58 = vld [vmem:[#allocation6_spill] sm:$0xff] }
 0x163   : > { %v2742_v49 = vpop.permute.xlu1 %2741 }
 0x164   : > { %v2744_v25 = vunpack.i.h.bf16 %v2742_v49  ;;  %v2743_v29 = vunpack.i.l.bf16 %v2742_v49  ;;  %v1403_v30 = vsel %vm1378_vm6, %v1370_v18, %v2728_v37  ;;  %v1404_v33 = vsel %vm1378_vm6, %v1371_v16, %v2729_v8  ;;  %v4393_v18 = vld [vmem:[#allocation5_spill] sm:$0xff] }
 0x165   : > { %v2737_v51 = vpop.permute.xlu0 %2736 }
 0x166   : > { %v2739_v35 = vunpack.i.h.bf16 %v2737_v51  ;;  %v2738_v28 = vunpack.i.l.bf16 %v2737_v51  ;;  %v1438_v10 = vsel %vm1411_vm7, %v1405_v47, %v2743_v29  ;;  %v1439_v3 = vsel %vm1411_vm7, %v1406_v7, %v2744_v25 }
 0x167   : > { %v2752_v26 = vpop.permute.xlu1 %2751 }
 0x168   : > { %v2754_v43 = vunpack.i.h.bf16 %v2752_v26  ;;  %v2753_v24 = vunpack.i.l.bf16 %v2752_v26  ;;  %v1436_v4 = vsel %vm1411_vm7, %v1403_v30, %v2738_v28  ;;  %v1437_v6 = vsel %vm1411_vm7, %v1404_v33, %v2739_v35  ;;  %v4394_v35 = vld [vmem:[#allocation8_spill] sm:$0xff] }
 0x169   : > { %v2747_v31 = vpop.permute.xlu0 %2746 }
 0x16a   : > { %v2749_v23 = vunpack.i.h.bf16 %v2747_v31  ;;  %v2748_v22 = vunpack.i.l.bf16 %v2747_v31  ;;  %v1471_v52 = vsel %vm1444_vm8, %v1438_v10, %v2753_v24  ;;  %v1472_v34 = vsel %vm1444_vm8, %v1439_v3, %v2754_v43 }
 0x16b   : > { %v2762_v42 = vpop.permute.xlu1 %2761 }
 0x16c   : > { %v2764_v45 = vunpack.i.h.bf16 %v2762_v42  ;;  %v2763_v13 = vunpack.i.l.bf16 %v2762_v42  ;;  %v1469_v44 = vsel %vm1444_vm8, %v1436_v4, %v2748_v22  ;;  %v1470_v50 = vsel %vm1444_vm8, %v1437_v6, %v2749_v23 }
 0x16d   : > { %v2757_v0 = vpop.permute.xlu0 %2756 }
 0x16e   : > { %v2759_v63 = vunpack.i.h.bf16 %v2757_v0  ;;  %v2758_v38 = vunpack.i.l.bf16 %v2757_v0  ;;  %v1504_v14 = vsel %vm1477_vm9, %v1471_v52, %v2763_v13  ;;  %v1505_v49 = vsel %vm1477_vm9, %v1472_v34, %v2764_v45 }
 0x16f   : > { %v2772_v56 = vpop.permute.xlu1 %2771 }
 0x170   : > { %v2774_v1 = vunpack.i.h.bf16 %v2772_v56  ;;  %v2773_v46 = vunpack.i.l.bf16 %v2772_v56  ;;  %v1502_v39 = vsel %vm1477_vm9, %v1469_v44, %v2758_v38  ;;  %v1503_v32 = vsel %vm1477_vm9, %v1470_v50, %v2759_v63 }
 0x171   : > { %v2767_v17 = vpop.permute.xlu0 %2766 }
 0x172   : > { %v1537_v54 = vsel %vm1510_vm10, %v1504_v14, %v2773_v46  ;;  %v1538_v61 = vsel %vm1510_vm10, %v1505_v49, %v2774_v1  ;;  %v2769_v48 = vunpack.i.h.bf16 %v2767_v17  ;;  %v2768_v53 = vunpack.i.l.bf16 %v2767_v17 }
 0x173   : > { %v2782_v19 = vpop.permute.xlu1 %2781  ;;  %v1556_v51 = vpack.c.bf16 %v1538_v61, %v1537_v54 }
 0x174   : > { %v1535_v9 = vsel %vm1510_vm10, %v1502_v39, %v2768_v53  ;;  %v1536_v27 = vsel %vm1510_vm10, %v1503_v32, %v2769_v48  ;;  %v2784_v12 = vunpack.i.h.bf16 %v2782_v19  ;;  %v2783_v62 = vunpack.i.l.bf16 %v2782_v19 }
 0x175   : > { %v1555_v15 = vpack.c.bf16 %v1536_v27, %v1535_v9  ;;  %v2777_v36 = vpop.permute.xlu0 %2776 }
 0x176   : > { %v2779_v26 = vunpack.i.h.bf16 %v2777_v36  ;;  %v2778_v59 = vunpack.i.l.bf16 %v2777_v36  ;;  %v1377_v11 = vsel %vm1345_vm5, %v4391_v55, %v2784_v12  ;;  %v1376_v40 = vsel %vm1345_vm5, %v4392_v58, %v2783_v62 }
 0x177   : > { %2162 = vmatprep.mubr.msk.bf16.mxu1 %vm1562_vm11, %v1555_v15  ;;  %v2792_v21 = vpop.permute.xlu1 %2791 }
 0x178   : > { %2163 = vmatmul.mubr.msk.bf16.gmra.mrb[8].mxu1 %vm1562_vm11, %v1556_v51  ;;  %v2794_v5 = vunpack.i.h.bf16 %v2792_v21  ;;  %v2793_v41 = vunpack.i.l.bf16 %v2792_v21  ;;  %v1374_v16 = vsel %vm1345_vm5, %v4393_v18, %v2778_v59  ;;  %v1375_v28 = vsel %vm1345_vm5, %v4394_v35, %v2779_v26 }
 0x179   : > { %v2787_v20 = vpop.permute.xlu0 %2786 }
 0x17a   : > { %v2789_v8 = vunpack.i.h.bf16 %v2787_v20  ;;  %v2788_v37 = vunpack.i.l.bf16 %v2787_v20  ;;  %v1409_v43 = vsel %vm1378_vm6, %v1376_v40, %v2793_v41  ;;  %v1410_v24 = vsel %vm1378_vm6, %v1377_v11, %v2794_v5 }
 0x17b   : > { %v2802_v57 = vpop.permute.xlu1 %2801 }
 0x17c   : > { %v2804_v25 = vunpack.i.h.bf16 %v2802_v57  ;;  %v2803_v29 = vunpack.i.l.bf16 %v2802_v57  ;;  %v1407_v10 = vsel %vm1378_vm6, %v1374_v16, %v2788_v37  ;;  %v1408_v3 = vsel %vm1378_vm6, %v1375_v28, %v2789_v8 }
 0x17d   : > { %v2797_v2 = vpop.permute.xlu0 %2796 }
 0x17e   : > { %v2799_v42 = vunpack.i.h.bf16 %v2797_v2  ;;  %v2798_v47 = vunpack.i.l.bf16 %v2797_v2  ;;  %v1442_v4 = vsel %vm1411_vm7, %v1409_v43, %v2803_v29  ;;  %v1443_v6 = vsel %vm1411_vm7, %v1410_v24, %v2804_v25 }
 0x17f   : > { %v2812_v60 = vpop.permute.xlu1 %2811 }
 0x180   : > { %v2814_v23 = vunpack.i.h.bf16 %v2812_v60  ;;  %v2813_v22 = vunpack.i.l.bf16 %v2812_v60  ;;  %v1440_v63 = vsel %vm1411_vm7, %v1407_v10, %v2798_v47  ;;  %v1441_v38 = vsel %vm1411_vm7, %v1408_v3, %v2799_v42 }
 0x181   : > { %v2807_v31 = vpop.permute.xlu0 %2806 }
 0x182   : > { %v2809_v45 = vunpack.i.h.bf16 %v2807_v31  ;;  %v2808_v13 = vunpack.i.l.bf16 %v2807_v31  ;;  %v1475_v1 = vsel %vm1444_vm8, %v1442_v4, %v2813_v22  ;;  %v1476_v46 = vsel %vm1444_vm8, %v1443_v6, %v2814_v23 }
 0x183   : > { %v2822_v7 = vpop.permute.xlu1 %2821 }
 0x184   : > { %v2824_v0 = vunpack.i.h.bf16 %v2822_v7  ;;  %v2823_v30 = vunpack.i.l.bf16 %v2822_v7  ;;  %v1473_v14 = vsel %vm1444_vm8, %v1440_v63, %v2808_v13  ;;  %v1474_v49 = vsel %vm1444_vm8, %v1441_v38, %v2809_v45 }
 0x185   : > { %v2817_v33 = vpop.permute.xlu0 %2816 }
 0x186   : > { %v2819_v56 = vunpack.i.h.bf16 %v2817_v33  ;;  %v2818_v52 = vunpack.i.l.bf16 %v2817_v33  ;;  %v1508_v17 = vsel %vm1477_vm9, %v1475_v1, %v2823_v30  ;;  %v1509_v54 = vsel %vm1477_vm9, %v1476_v46, %v2824_v0 }
 0x187   : > { %v2832_v34 = vpop.permute.xlu1 %2831 }
 0x188   : > { %v2834_v44 = vunpack.i.h.bf16 %v2832_v34  ;;  %v2833_v50 = vunpack.i.l.bf16 %v2832_v34  ;;  %v1506_v19 = vsel %vm1477_vm9, %v1473_v14, %v2818_v52  ;;  %v1507_v51 = vsel %vm1477_vm9, %v1474_v49, %v2819_v56 }
 0x189   : > { %v2827_v61 = vpop.permute.xlu0 %2826 }
 0x18a   : > { %v1541_v48 = vsel %vm1510_vm10, %v1508_v17, %v2833_v50  ;;  %v1542_v53 = vsel %vm1510_vm10, %v1509_v54, %v2834_v44  ;;  %v2829_v39 = vunpack.i.h.bf16 %v2827_v61  ;;  %v2828_v32 = vunpack.i.l.bf16 %v2827_v61 }
 0x18b   : > { %v1558_v9 = vpack.c.bf16 %v1542_v53, %v1541_v48 }
 0x18c   : > { %v1539_v27 = vsel %vm1510_vm10, %v1506_v19, %v2828_v32  ;;  %v1540_v15 = vsel %vm1510_vm10, %v1507_v51, %v2829_v39 }
 0x18d   : > { %v1557_v36 = vpack.c.bf16 %v1540_v15, %v1539_v27 }
 0x18f   : > { %2166 = vmatprep.mubr.msk.bf16.mxu1 %vm1562_vm11, %v1557_v36 }
 0x190   : > { %2167 = vmatmul.mubr.msk.bf16.gmra.mrb[12].mxu1 %vm1562_vm11, %v1558_v9 }
 0x1c6   : > { %v2140_v21 = vpop.f32.mrb[0].mxu0 }
 0x1c7   : > { %1778 = vst.msk [vmem:[%s4152_s18 + $0x10] sm:$0xff] %vm1279_vm3, %v2140_v21  ;;  %v1649_v20 = vpop.f32.mrb[1].mxu0  ;;  %v1881_v2 = vmul.f32 %v2140_v21, %v2140_v21  ;;  %v1811_v41 = vsel %vm1279_vm3, %v2140_v21, 0.0 }
 0x1c8   : > { %1776 = vst.msk [vmem:[%s4152_s18] sm:$0xff] %vm1279_vm3, %v1649_v20  ;;  %v1879_v57 = vmul.f32 %v1649_v20, %v1649_v20  ;;  %v2141_v12 = vpop.f32.mrb[2].mxu0  ;;  %v1808_v26 = vsel %vm1279_vm3, %v1649_v20, 0.0 }
 0x1c9   : > { %1779 = vst.msk [vmem:[%s4152_s18 + $0x18] sm:$0xff] %vm1279_vm3, %v2141_v12  ;;  %v1652_v62 = vpop.f32.mrb[3].mxu0  ;;  %v1882_v11 = vmul.f32 %v2141_v12, %v2141_v12  ;;  %v1914_v8 = vsel %vm1279_vm3, %v1881_v2, 0.0  ;;  %v1813_v37 = vsel %vm1279_vm3, %v2141_v12, 0.0 }
 0x1ca   : > { %1777 = vst.msk [vmem:[%s4152_s18 + $0x8] sm:$0xff] %vm1279_vm3, %v1652_v62  ;;  %v1809_v59 = vsel %vm1279_vm3, %v1652_v62, 0.0  ;;  %v1880_v60 = vmul.f32 %v1652_v62, %v1652_v62  ;;  %v1911_v55 = vsel %vm1279_vm3, %v1879_v57, 0.0 }
 0x1cb   : > { %v1810_v5 = vadd.f32 %v1809_v59, %v1808_v26  ;;  %v1916_v18 = vsel %vm1279_vm3, %v1882_v11, 0.0 }
 0x1cc   : > { %v1912_v58 = vsel %vm1279_vm3, %v1880_v60, 0.0 }
 0x1cd   : > { %v1812_v40 = vadd.f32 %v1811_v41, %v1810_v5  ;;  %v1913_v31 = vadd.f32 %v1912_v58, %v1911_v55 }
 0x1cf   : > { %v1915_v25 = vadd.f32 %v1914_v8, %v1913_v31  ;;  %v1814_v29 = vadd.f32 %v1813_v37, %v1812_v40 }
 0x1d1   : > { %v1917_v16 = vadd.f32 %v1916_v18, %v1915_v25 }
 0x1da   : > { %v2144_v35 = vpop.f32.mrb[4].mxu0 }
 0x1db   : > { %1782 = vst.msk [vmem:[%s4152_s18 + $0x30] sm:$0xff] %vm1279_vm3, %v2144_v35  ;;  %v1665_v28 = vpop.f32.mrb[5].mxu0  ;;  %v1885_v23 = vmul.f32 %v2144_v35, %v2144_v35  ;;  %v1819_v33 = vsel %vm1279_vm3, %v2144_v35, 0.0 }
 0x1dc   : > { %1780 = vst.msk [vmem:[%s4152_s18 + $0x20] sm:$0xff] %vm1279_vm3, %v1665_v28  ;;  %v1815_v42 = vsel %vm1279_vm3, %v1665_v28, 0.0  ;;  %v1883_v47 = vmul.f32 %v1665_v28, %v1665_v28  ;;  %v2145_v7 = vpop.f32.mrb[6].mxu0 }
 0x1dd   : > { %v1816_v43 = vadd.f32 %v1815_v42, %v1814_v29  ;;  %1783 = vst.msk [vmem:[%s4152_s18 + $0x38] sm:$0xff] %vm1279_vm3, %v2145_v7  ;;  %v1668_v24 = vpop.f32.mrb[7].mxu0  ;;  %v1886_v10 = vmul.f32 %v2145_v7, %v2145_v7  ;;  %v1922_v63 = vsel %vm1279_vm3, %v1885_v23, 0.0  ;;  %v1821_v38 = vsel %vm1279_vm3, %v2145_v7, 0.0 }
 0x1de   : > { %v1918_v22 = vsel %vm1279_vm3, %v1883_v47, 0.0  ;;  %1781 = vst.msk [vmem:[%s4152_s18 + $0x28] sm:$0xff] %vm1279_vm3, %v1668_v24  ;;  %v1817_v45 = vsel %vm1279_vm3, %v1668_v24, 0.0  ;;  %v1884_v13 = vmul.f32 %v1668_v24, %v1668_v24 }
 0x1df   : > { %v1919_v0 = vadd.f32 %v1918_v22, %v1917_v16  ;;  %v1818_v30 = vadd.f32 %v1817_v45, %v1816_v43  ;;  %v1924_v34 = vsel %vm1279_vm3, %v1886_v10, 0.0 }
 0x1e0   : > { %v1920_v3 = vsel %vm1279_vm3, %v1884_v13, 0.0 }
 0x1e1   : > { %v1820_v4 = vadd.f32 %v1819_v33, %v1818_v30  ;;  %v1921_v6 = vadd.f32 %v1920_v3, %v1919_v0 }
 0x1e3   : > { %v1923_v56 = vadd.f32 %v1922_v63, %v1921_v6  ;;  %v1822_v52 = vadd.f32 %v1821_v38, %v1820_v4 }
 0x1e5   : > { %v1925_v1 = vadd.f32 %v1924_v34, %v1923_v56 }
 0x1ee   : > { %v2148_v46 = vpop.f32.mrb[8].mxu0 }
 0x1ef   : > { %1786 = vst.msk [vmem:[%s4152_s18 + $0x50] sm:$0xff] %vm1279_vm3, %v2148_v46  ;;  %v1681_v44 = vpop.f32.mrb[9].mxu0  ;;  %v1889_v61 = vmul.f32 %v2148_v46, %v2148_v46  ;;  %v1827_v51 = vsel %vm1279_vm3, %v2148_v46, 0.0 }
 0x1f0   : > { %1784 = vst.msk [vmem:[%s4152_s18 + $0x40] sm:$0xff] %vm1279_vm3, %v1681_v44  ;;  %v1823_v50 = vsel %vm1279_vm3, %v1681_v44, 0.0  ;;  %v1887_v14 = vmul.f32 %v1681_v44, %v1681_v44  ;;  %v2149_v49 = vpop.f32.mrb[10].mxu0 }
 0x1f1   : > { %v1824_v17 = vadd.f32 %v1823_v50, %v1822_v52  ;;  %1787 = vst.msk [vmem:[%s4152_s18 + $0x58] sm:$0xff] %vm1279_vm3, %v2149_v49  ;;  %v1684_v54 = vpop.f32.mrb[11].mxu0  ;;  %v1890_v9 = vmul.f32 %v2149_v49, %v2149_v49  ;;  %v1930_v21 = vsel %vm1279_vm3, %v1889_v61, 0.0  ;;  %v1829_v20 = vsel %vm1279_vm3, %v2149_v49, 0.0 }
 0x1f2   : > { %v1926_v48 = vsel %vm1279_vm3, %v1887_v14, 0.0  ;;  %1785 = vst.msk [vmem:[%s4152_s18 + $0x48] sm:$0xff] %vm1279_vm3, %v1684_v54  ;;  %v1825_v53 = vsel %vm1279_vm3, %v1684_v54, 0.0  ;;  %v1888_v39 = vmul.f32 %v1684_v54, %v1684_v54 }
 0x1f3   : > { %v1927_v32 = vadd.f32 %v1926_v48, %v1925_v1  ;;  %v1826_v19 = vadd.f32 %v1825_v53, %v1824_v17  ;;  %v1932_v62 = vsel %vm1279_vm3, %v1890_v9, 0.0 }
 0x1f4   : > { %v1928_v27 = vsel %vm1279_vm3, %v1888_v39, 0.0 }
 0x1f5   : > { %v1828_v15 = vadd.f32 %v1827_v51, %v1826_v19  ;;  %v1929_v36 = vadd.f32 %v1928_v27, %v1927_v32 }
 0x1f7   : > { %v1931_v57 = vadd.f32 %v1930_v21, %v1929_v36  ;;  %v1830_v12 = vadd.f32 %v1829_v20, %v1828_v15 }
 0x1f9   : > { %v1933_v2 = vadd.f32 %v1932_v62, %v1931_v57 }
 0x203   : > { %v2152_v26 = vpop.f32.mrb[12].mxu0 }
 0x204   : > { %1790 = vst.msk [vmem:[%s4152_s18 + $0x70] sm:$0xff] %vm1279_vm3, %v2152_v26  ;;  %v1697_v59 = vpop.f32.mrb[13].mxu0  ;;  %v1893_v58 = vmul.f32 %v2152_v26, %v2152_v26  ;;  %v1835_v29 = vsel %vm1279_vm3, %v2152_v26, 0.0 }
 0x205   : > { %1788 = vst.msk [vmem:[%s4152_s18 + $0x60] sm:$0xff] %vm1279_vm3, %v1697_v59  ;;  %v1831_v60 = vsel %vm1279_vm3, %v1697_v59, 0.0  ;;  %v1891_v5 = vmul.f32 %v1697_v59, %v1697_v59  ;;  %v2153_v41 = vpop.f32.mrb[14].mxu0 }
 0x206   : > { %v1832_v55 = vadd.f32 %v1831_v60, %v1830_v12  ;;  %1791 = vst.msk [vmem:[%s4152_s18 + $0x78] sm:$0xff] %vm1279_vm3, %v2153_v41  ;;  %v1700_v11 = vpop.f32.mrb[15].mxu0  ;;  %v1894_v18 = vmul.f32 %v2153_v41, %v2153_v41  ;;  %v1938_v42 = vsel %vm1279_vm3, %v1893_v58, 0.0  ;;  %v1837_v47 = vsel %vm1279_vm3, %v2153_v41, 0.0 }
 0x207   : > { %v1934_v40 = vsel %vm1279_vm3, %v1891_v5, 0.0  ;;  %1789 = vst.msk [vmem:[%s4152_s18 + $0x68] sm:$0xff] %vm1279_vm3, %v1700_v11  ;;  %v1833_v31 = vsel %vm1279_vm3, %v1700_v11, 0.0  ;;  %v1892_v8 = vmul.f32 %v1700_v11, %v1700_v11 }
 0x208   : > { %v1935_v37 = vadd.f32 %v1934_v40, %v1933_v2  ;;  %v1834_v25 = vadd.f32 %v1833_v31, %v1832_v55  ;;  %v1940_v24 = vsel %vm1279_vm3, %v1894_v18, 0.0 }
 0x209   : > { %v1936_v16 = vsel %vm1279_vm3, %v1892_v8, 0.0 }
 0x20a   : > { %v1836_v35 = vadd.f32 %v1835_v29, %v1834_v25  ;;  %v1937_v28 = vadd.f32 %v1936_v16, %v1935_v37 }
 0x20c   : > { %v1939_v7 = vadd.f32 %v1938_v42, %v1937_v28  ;;  %v1838_v43 = vadd.f32 %v1837_v47, %v1836_v35 }
 0x20e   : > { %v1941_v23 = vadd.f32 %v1940_v24, %v1939_v7 }
 0x21b   : > { %v2156_v22 = vpop.f32.mrb[0].mxu1 }
 0x21c   : > { %1794 = vst.msk [vmem:[%s4152_s18 + $0x90] sm:$0xff] %vm1279_vm3, %v2156_v22  ;;  %v1713_v45 = vpop.f32.mrb[1].mxu1  ;;  %v1897_v3 = vmul.f32 %v2156_v22, %v2156_v22  ;;  %v1843_v52 = vsel %vm1279_vm3, %v2156_v22, 0.0 }
 0x21d   : > { %1792 = vst.msk [vmem:[%s4152_s18 + $0x80] sm:$0xff] %vm1279_vm3, %v1713_v45  ;;  %v1839_v13 = vsel %vm1279_vm3, %v1713_v45, 0.0  ;;  %v1895_v0 = vmul.f32 %v1713_v45, %v1713_v45  ;;  %v2157_v30 = vpop.f32.mrb[2].mxu1 }
 0x21e   : > { %v1840_v33 = vadd.f32 %v1839_v13, %v1838_v43  ;;  %1795 = vst.msk [vmem:[%s4152_s18 + $0x98] sm:$0xff] %vm1279_vm3, %v2157_v30  ;;  %v1716_v10 = vpop.f32.mrb[3].mxu1  ;;  %v1898_v34 = vmul.f32 %v2157_v30, %v2157_v30  ;;  %v1946_v50 = vsel %vm1279_vm3, %v1897_v3, 0.0  ;;  %v1845_v14 = vsel %vm1279_vm3, %v2157_v30, 0.0 }
 0x21f   : > { %v1942_v4 = vsel %vm1279_vm3, %v1895_v0, 0.0  ;;  %1793 = vst.msk [vmem:[%s4152_s18 + $0x88] sm:$0xff] %vm1279_vm3, %v1716_v10  ;;  %v1841_v6 = vsel %vm1279_vm3, %v1716_v10, 0.0  ;;  %v1896_v63 = vmul.f32 %v1716_v10, %v1716_v10 }
 0x220   : > { %v1943_v38 = vadd.f32 %v1942_v4, %v1941_v23  ;;  %v1842_v56 = vadd.f32 %v1841_v6, %v1840_v33  ;;  %v1948_v54 = vsel %vm1279_vm3, %v1898_v34, 0.0 }
 0x221   : > { %v1944_v1 = vsel %vm1279_vm3, %v1896_v63, 0.0 }
 0x222   : > { %v1844_v46 = vadd.f32 %v1843_v52, %v1842_v56  ;;  %v1945_v44 = vadd.f32 %v1944_v1, %v1943_v38 }
 0x224   : > { %v1947_v49 = vadd.f32 %v1946_v50, %v1945_v44  ;;  %v1846_v17 = vadd.f32 %v1845_v14, %v1844_v46 }
 0x226   : > { %v1949_v61 = vadd.f32 %v1948_v54, %v1947_v49 }
 0x233   : > { %v2160_v48 = vpop.f32.mrb[4].mxu1 }
 0x234   : > { %1798 = vst.msk [vmem:[%s4152_s18 + $0xb0] sm:$0xff] %vm1279_vm3, %v2160_v48  ;;  %v1729_v53 = vpop.f32.mrb[5].mxu1  ;;  %v1901_v27 = vmul.f32 %v2160_v48, %v2160_v48  ;;  %v1851_v12 = vsel %vm1279_vm3, %v2160_v48, 0.0 }
 0x235   : > { %1796 = vst.msk [vmem:[%s4152_s18 + $0xa0] sm:$0xff] %vm1279_vm3, %v1729_v53  ;;  %v1847_v39 = vsel %vm1279_vm3, %v1729_v53, 0.0  ;;  %v1899_v32 = vmul.f32 %v1729_v53, %v1729_v53  ;;  %v2161_v19 = vpop.f32.mrb[6].mxu1 }
 0x236   : > { %v1848_v51 = vadd.f32 %v1847_v39, %v1846_v17  ;;  %1799 = vst.msk [vmem:[%s4152_s18 + $0xb8] sm:$0xff] %vm1279_vm3, %v2161_v19  ;;  %v1732_v9 = vpop.f32.mrb[7].mxu1  ;;  %v1902_v62 = vmul.f32 %v2161_v19, %v2161_v19  ;;  %v1954_v60 = vsel %vm1279_vm3, %v1901_v27, 0.0  ;;  %v1853_v5 = vsel %vm1279_vm3, %v2161_v19, 0.0 }
 0x237   : > { %v1950_v15 = vsel %vm1279_vm3, %v1899_v32, 0.0  ;;  %1797 = vst.msk [vmem:[%s4152_s18 + $0xa8] sm:$0xff] %vm1279_vm3, %v1732_v9  ;;  %v1849_v36 = vsel %vm1279_vm3, %v1732_v9, 0.0  ;;  %v1900_v21 = vmul.f32 %v1732_v9, %v1732_v9 }
 0x238   : > { %v1951_v20 = vadd.f32 %v1950_v15, %v1949_v61  ;;  %v1850_v57 = vadd.f32 %v1849_v36, %v1848_v51  ;;  %v1956_v11 = vsel %vm1279_vm3, %v1902_v62, 0.0 }
 0x239   : > { %v1952_v2 = vsel %vm1279_vm3, %v1900_v21, 0.0 }
 0x23a   : > { %v1852_v26 = vadd.f32 %v1851_v12, %v1850_v57  ;;  %v1953_v59 = vadd.f32 %v1952_v2, %v1951_v20 }
 0x23c   : > { %v1955_v41 = vadd.f32 %v1954_v60, %v1953_v59  ;;  %v1854_v55 = vadd.f32 %v1853_v5, %v1852_v26 }
 0x23e   : > { %v1957_v58 = vadd.f32 %v1956_v11, %v1955_v41 }
 0x24b   : > { %v2164_v40 = vpop.f32.mrb[8].mxu1 }
 0x24c   : > { %1802 = vst.msk [vmem:[%s4152_s18 + $0xd0] sm:$0xff] %vm1279_vm3, %v2164_v40  ;;  %v1745_v31 = vpop.f32.mrb[9].mxu1  ;;  %v1905_v16 = vmul.f32 %v2164_v40, %v2164_v40  ;;  %v1859_v43 = vsel %vm1279_vm3, %v2164_v40, 0.0 }
 0x24d   : > { %1800 = vst.msk [vmem:[%s4152_s18 + $0xc0] sm:$0xff] %vm1279_vm3, %v1745_v31  ;;  %v1855_v8 = vsel %vm1279_vm3, %v1745_v31, 0.0  ;;  %v1903_v37 = vmul.f32 %v1745_v31, %v1745_v31  ;;  %v2165_v25 = vpop.f32.mrb[10].mxu1 }
 0x24e   : > { %v1856_v29 = vadd.f32 %v1855_v8, %v1854_v55  ;;  %1803 = vst.msk [vmem:[%s4152_s18 + $0xd8] sm:$0xff] %vm1279_vm3, %v2165_v25  ;;  %v1748_v18 = vpop.f32.mrb[11].mxu1  ;;  %v1906_v24 = vmul.f32 %v2165_v25, %v2165_v25  ;;  %v1962_v13 = vsel %vm1279_vm3, %v1905_v16, 0.0  ;;  %v1861_v0 = vsel %vm1279_vm3, %v2165_v25, 0.0 }
 0x24f   : > { %v1958_v35 = vsel %vm1279_vm3, %v1903_v37, 0.0  ;;  %1801 = vst.msk [vmem:[%s4152_s18 + $0xc8] sm:$0xff] %vm1279_vm3, %v1748_v18  ;;  %v1857_v28 = vsel %vm1279_vm3, %v1748_v18, 0.0  ;;  %v1904_v42 = vmul.f32 %v1748_v18, %v1748_v18 }
 0x250   : > { %v1959_v47 = vadd.f32 %v1958_v35, %v1957_v58  ;;  %v1858_v7 = vadd.f32 %v1857_v28, %v1856_v29  ;;  %v1964_v10 = vsel %vm1279_vm3, %v1906_v24, 0.0 }
 0x251   : > { %v1960_v23 = vsel %vm1279_vm3, %v1904_v42, 0.0 }
 0x252   : > { %v1860_v22 = vadd.f32 %v1859_v43, %v1858_v7  ;;  %v1961_v45 = vadd.f32 %v1960_v23, %v1959_v47 }
 0x254   : > { %v1963_v30 = vadd.f32 %v1962_v13, %v1961_v45  ;;  %v1862_v33 = vadd.f32 %v1861_v0, %v1860_v22 }
 0x256   : > { %v1965_v3 = vadd.f32 %v1964_v10, %v1963_v30 }
 0x263   : > { %v2168_v4 = vpop.f32.mrb[12].mxu1 }
 0x264   : > { %1806 = vst.msk [vmem:[%s4152_s18 + $0xf0] sm:$0xff] %vm1279_vm3, %v2168_v4  ;;  %v1761_v6 = vpop.f32.mrb[13].mxu1  ;;  %v1909_v1 = vmul.f32 %v2168_v4, %v2168_v4  ;;  %v1867_v17 = vsel %vm1279_vm3, %v2168_v4, 0.0 }
 0x265   : > { %1804 = vst.msk [vmem:[%s4152_s18 + $0xe0] sm:$0xff] %vm1279_vm3, %v1761_v6  ;;  %v1863_v63 = vsel %vm1279_vm3, %v1761_v6, 0.0  ;;  %v1907_v38 = vmul.f32 %v1761_v6, %v1761_v6  ;;  %v2169_v56 = vpop.f32.mrb[14].mxu1 }
 0x266   : > { %v1864_v52 = vadd.f32 %v1863_v63, %v1862_v33  ;;  %1807 = vst.msk [vmem:[%s4152_s18 + $0xf8] sm:$0xff] %vm1279_vm3, %v2169_v56  ;;  %v1764_v34 = vpop.f32.mrb[15].mxu1  ;;  %v1910_v54 = vmul.f32 %v2169_v56, %v2169_v56  ;;  %v1970_v39 = vsel %vm1279_vm3, %v1909_v1, 0.0  ;;  %v1869_v32 = vsel %vm1279_vm3, %v2169_v56, 0.0 }
 0x267   : > { %v1966_v46 = vsel %vm1279_vm3, %v1907_v38, 0.0  ;;  %1805 = vst.msk [vmem:[%s4152_s18 + $0xe8] sm:$0xff] %vm1279_vm3, %v1764_v34  ;;  %v1865_v44 = vsel %vm1279_vm3, %v1764_v34, 0.0  ;;  %v1908_v50 = vmul.f32 %v1764_v34, %v1764_v34 }
 0x268   : > { %v1967_v14 = vadd.f32 %v1966_v46, %v1965_v3  ;;  %v1866_v49 = vadd.f32 %v1865_v44, %v1864_v52  ;;  %v1972_v9 = vsel %vm1279_vm3, %v1910_v54, 0.0 }
 0x269   : > { %v1968_v61 = vsel %vm1279_vm3, %v1908_v50, 0.0 }
 0x26a   : > { %v1868_v48 = vadd.f32 %v1867_v17, %v1866_v49  ;;  %v1969_v53 = vadd.f32 %v1968_v61, %v1967_v14 }
 0x26c   : > { %v1870_v19 = vadd.f32 %v1869_v32, %v1868_v48  ;;  %v1971_v51 = vadd.f32 %v1970_v39, %v1969_v53 }
 0x26e   : > { %v1871_v27 = vrot.slane %v1870_v19, 4  ;;  %v1973_v15 = vadd.f32 %v1972_v9, %v1971_v51 }
 0x270   : > { %v1872_v36 = vadd.f32 %v1871_v27, %v1870_v19  ;;  %v1974_v21 = vrot.slane %v1973_v15, 4 }
 0x272   : > { %v1873_v20 = vrot.slane %v1872_v36, 2  ;;  %v1975_v57 = vadd.f32 %v1974_v21, %v1973_v15 }
 0x274   : > { %v1874_v12 = vadd.f32 %v1873_v20, %v1872_v36  ;;  %v1976_v62 = vrot.slane %v1975_v57, 2 }
 0x276   : > { %v1875_v2 = vrot.slane %v1874_v12, 1  ;;  %v1977_v26 = vadd.f32 %v1976_v62, %v1975_v57 }
 0x278   : > { %v1876_v59 = vadd.f32 %v1875_v2, %v1874_v12  ;;  %v1978_v60 = vrot.slane %v1977_v26, 1 }
 0x27a   : > { %1878 = vst.msk [vmem:[%s211_s21] sm:$0x1] %vm1877_vm12, %v1876_v59  ;;  %v1979_v5 = vadd.f32 %v1978_v60, %v1977_v26 }
 0x27c   : > { %1980 = vst.msk [vmem:[%s214_s24] sm:$0x1] %vm1877_vm12, %v1979_v5 }
 0x27d PF: > { %s15_s15 = sadd.s32 1, %s2869_s15  }
 0x27e   : > { %p12_p4 = scmp.ge.s32.totalorder %s15_s15, 4  }
 0x280   :  { %14 = sbr.rel (!%p12_p4) target bundleno = 1 (0x1), region = 82 }

// kernel: resblock_forward.4
= control target key start
LH: loop header
LB: loop body
LE: loop exit
PB: predicated region body
PF: predicated region fallthrough
CT: control target
= control target key end

     0   :  { %s3190_s21 = smov 0   ;;  %s4684_s0 = inlined_call_operand.vmem [shape: f32[2,16,16,4], index: 0, kind: input, shape index: {}]   ;;  %s4685_s1 = inlined_call_operand.vmem [shape: f32[1,4], index: 1, kind: input, shape index: {}]   ;;  %s4686_s2 = inlined_call_operand.vmem [shape: f32[1,4], index: 2, kind: input, shape index: {}]   ;;  %s4687_s3 = inlined_call_operand.vmem [shape: f32[36,4], index: 3, kind: input, shape index: {}]   ;;  %s4688_s4 = inlined_call_operand.vmem [shape: f32[2,16,16,4], index: 4, kind: output, shape index: {0}]   ;;  %s4689_s5 = inlined_call_operand.vmem [shape: f32[2,1,4], index: 5, kind: output, shape index: {1}]   ;;  %s4690_s6 = inlined_call_operand.vmem [shape: f32[2,1,4], index: 6, kind: output, shape index: {2}]  }
   0x1 LB: > { %s2355_s22 = sadd.s32 4294967295, %s3144_s21   ;;  %p2359_p0 = scmp.ge.s32.totalorder %s3144_s21, 1  ;;  %s3144_s21 = sphi %s3190_s21, %s17_s21  }
   0x2   : > { %p217_p1 = scmp.lt.s32.totalorder %s3144_s21, 3 }
   0x4   : > { %p218_p2 = pnand %p2359_p0, %p217_p1 }
   0x6   : > { %221 = sbr.rel (%p218_p2) target bundleno = 661 (0x295), region = 36 }
   0xd   : > { %vm412_vm0 = vcmask 31744   ;;  %vm415_vm1 = vcmask 25600   ;;  %p253_p3 = scmp.lt.s32.totalorder %s2355_s22, 1  ;;  %v3146_v0 = vmov 0.0   ;;  %vm422_vm2 = vcmask 24576   ;;  %s3147_s7 = smov 4  }
   0xe   : > { %413 = vst.msk [vmem:[#allocation2] sm:$0xff] %vm412_vm0, %v3146_v0  ;;  %414 = vst.msk [vmem:[#allocation2 + $0x8] sm:$0xff] %vm412_vm0, %v3146_v0  ;;  %v3240_v1 = vld [vmem:[%s4685_s1] ss:$0 sm:$0xff]  ;;  %vm594_vm3 = vcmask 1046528   ;;  %vm675_vm4 = vcmask 1045504  }
   0xf   : > { %416 = vst.msk [vmem:[#allocation2 + $0x10] sm:$0x3] %vm415_vm1, %v3146_v0  ;;  %420 = vst.msk [vmem:[#allocation2 + $0x1a8] sm:$0x3] %vm415_vm1, %v3146_v0  ;;  %s4786_s22 = smov (!%p253_p3, %s2355_s22), 1  ;;  %s3148_s8 = smov 8  }
  0x10   : > { %418 = vst.msk [vmem:[#allocation2 + $0x198] sm:$0xff] %vm412_vm0, %v3146_v0  ;;  %419 = vst.msk [vmem:[#allocation2 + $0x1a0] sm:$0xff] %vm412_vm0, %v3146_v0  ;;  %s2384_s23 = sshll.u32 %s4786_s22, 8  ;;  %v3252_v2 = vld [vmem:[%s4686_s2] ss:$0 sm:$0xff]  ;;  %s3149_s9 = smov 12  }
  0x11   : > { %424 = vst.msk [vmem:[#allocation2 + $0x30] sm:$0x1] %vm422_vm2, %v3146_v0  ;;  %440 = vst.msk [vmem:[#allocation2 + $0x41] sm:$0x1] %vm422_vm2, %v3146_v0  ;;  %s3247_s28 = scalar_lea.vmem %s4684_s0, %s2384_s23  ;;  %s3150_s14 = smov 16   ;;  %vm1881_vm5 = vcmask 1041408  }
  0x12   : > { %423 = vst.msk [vmem:[#allocation2 + $0x18] sm:$0x1] %vm422_vm2, %v3146_v0  ;;  %425 = vst.msk [vmem:[#allocation2 + $0x48] sm:$0x1] %vm422_vm2, %v3146_v0  ;;  %v272_v3 = vld [vmem:[%s3247_s28 + $0x10] sm:$0xff]  ;;  %v273_v4 = vld [vmem:[%s3247_s28 + $0x18] sm:$0xff]  ;;  %s4541_s10 = scalar_lea.vmem %s4688_s4, %s2384_s23  ;;  %s265_s12 = scalar_lea.vmem %s4689_s5, %s4786_s22 }
  0x13   : > { %426 = vst.msk [vmem:[#allocation2 + $0x60] sm:$0x1] %vm422_vm2, %v3146_v0  ;;  %427 = vst.msk [vmem:[#allocation2 + $0x78] sm:$0x1] %vm422_vm2, %v3146_v0  ;;  %v270_v5 = vld [vmem:[%s3247_s28] sm:$0xff]  ;;  %v311_v6 = vmul.f32 %v3240_v1, %v272_v3  ;;  %v312_v7 = vmul.f32 %v3240_v1, %v273_v4  ;;  %v271_v8 = vld [vmem:[%s3247_s28 + $0x8] sm:$0xff]  ;;  %s268_s15 = scalar_lea.vmem %s4690_s6, %s4786_s22 }
  0x14   : > { %428 = vst.msk [vmem:[#allocation2 + $0x90] sm:$0x1] %vm422_vm2, %v3146_v0  ;;  %429 = vst.msk [vmem:[#allocation2 + $0xa8] sm:$0x1] %vm422_vm2, %v3146_v0  ;;  %v309_v9 = vmul.f32 %v3240_v1, %v270_v5  ;;  %v274_v10 = vld [vmem:[%s3247_s28 + $0x20] sm:$0xff]  ;;  %v275_v11 = vld [vmem:[%s3247_s28 + $0x28] sm:$0xff]  ;;  %v310_v15 = vmul.f32 %v3240_v1, %v271_v8 }
  0x15   : > { %430 = vst.msk [vmem:[#allocation2 + $0xc0] sm:$0x1] %vm422_vm2, %v3146_v0  ;;  %431 = vst.msk [vmem:[#allocation2 + $0xd8] sm:$0x1] %vm422_vm2, %v3146_v0  ;;  %v3263_v12 = vld [vmem:[#allocation2] sm:$0xff]  ;;  %v3265_v13 = vld [vmem:[#allocation2 + $0x8] sm:$0xff]  ;;  %v313_v16 = vmul.f32 %v3240_v1, %v274_v10  ;;  %v314_v17 = vmul.f32 %v3240_v1, %v275_v11  ;;  %v350_v21 = vadd.f32 %v3252_v2, %v311_v6 }
  0x16   : > { %432 = vst.msk [vmem:[#allocation2 + $0xf0] sm:$0x1] %vm422_vm2, %v3146_v0  ;;  %433 = vst.msk [vmem:[#allocation2 + $0x108] sm:$0x1] %vm422_vm2, %v3146_v0  ;;  %v3267_v14 = vld [vmem:[#allocation2 + $0x10] sm:$0x3]  ;;  %v351_v22 = vadd.f32 %v3252_v2, %v312_v7  ;;  %v348_v23 = vadd.f32 %v3252_v2, %v309_v9  ;;  %v349_v24 = vadd.f32 %v3252_v2, %v310_v15 }
  0x17   : > { %434 = vst.msk [vmem:[#allocation2 + $0x120] sm:$0x1] %vm422_vm2, %v3146_v0  ;;  %435 = vst.msk [vmem:[#allocation2 + $0x138] sm:$0x1] %vm422_vm2, %v3146_v0  ;;  %v595_v18 = vrot.slane %v3263_v12, 1  ;;  %v596_v19 = vrot.slane %v3265_v13, 1  ;;  %v352_v29 = vadd.f32 %v3252_v2, %v313_v16  ;;  %v353_v30 = vadd.f32 %v3252_v2, %v314_v17 }
  0x18   : > { %436 = vst.msk [vmem:[#allocation2 + $0x150] sm:$0x1] %vm422_vm2, %v3146_v0  ;;  %437 = vst.msk [vmem:[#allocation2 + $0x168] sm:$0x1] %vm422_vm2, %v3146_v0  ;;  %v598_v20 = vrot.slane %v3267_v14, 1  ;;  %v276_v25 = vld [vmem:[%s3247_s28 + $0x30] sm:$0xff] }
  0x19   : > { %438 = vst.msk [vmem:[#allocation2 + $0x180] sm:$0x1] %vm422_vm2, %v3146_v0  ;;  %439 = vst.msk [vmem:[#allocation2 + $0x29] sm:$0x1] %vm422_vm2, %v3146_v0  ;;  %v277_v26 = vld [vmem:[%s3247_s28 + $0x38] sm:$0xff]  ;;  %v597_v27 = vsel %vm594_vm3, %v595_v18, %v596_v19  ;;  %v278_v31 = vld [vmem:[%s3247_s28 + $0x40] sm:$0xff]  ;;  %v315_v44 = vmul.f32 %v3240_v1, %v276_v25 }
  0x1a   : > { %441 = vst.msk [vmem:[#allocation2 + $0x59] sm:$0x1] %vm422_vm2, %v3146_v0  ;;  %442 = vst.msk [vmem:[#allocation2 + $0x71] sm:$0x1] %vm422_vm2, %v3146_v0  ;;  %v599_v28 = vsel %vm594_vm3, %v596_v19, %v598_v20  ;;  %v279_v32 = vld [vmem:[%s3247_s28 + $0x48] sm:$0xff]  ;;  %v280_v33 = vld [vmem:[%s3247_s28 + $0x50] sm:$0xff]  ;;  %v316_v45 = vmul.f32 %v3240_v1, %v277_v26  ;;  %v317_v46 = vmul.f32 %v3240_v1, %v278_v31 }
  0x1b   : > { %443 = vst.msk [vmem:[#allocation2 + $0x89] sm:$0x1] %vm422_vm2, %v3146_v0  ;;  %444 = vst.msk [vmem:[#allocation2 + $0xa1] sm:$0x1] %vm422_vm2, %v3146_v0  ;;  %v2468_v34 = vpack.i.bf16 %v599_v28, %v597_v27  ;;  %v382_v35 = vmax.f32 %v350_v21, 0.0  ;;  %v383_v36 = vmax.f32 %v351_v22, 0.0  ;;  %v318_v47 = vmul.f32 %v3240_v1, %v279_v32 }
  0x1c   : > { %445 = vst.msk [vmem:[#allocation2 + $0xb9] sm:$0x1] %vm422_vm2, %v3146_v0  ;;  %446 = vst.msk [vmem:[#allocation2 + $0xd1] sm:$0x1] %vm422_vm2, %v3146_v0  ;;  %v380_v37 = vmax.f32 %v348_v23, 0.0  ;;  %v281_v38 = vld [vmem:[%s3247_s28 + $0x58] sm:$0xff]  ;;  %v319_v48 = vmul.f32 %v3240_v1, %v280_v33  ;;  %v354_v49 = vadd.f32 %v3252_v2, %v315_v44  ;;  %v355_v53 = vadd.f32 %v3252_v2, %v316_v45 }
  0x1d   : > { %447 = vst.msk [vmem:[#allocation2 + $0xe9] sm:$0x1] %vm422_vm2, %v3146_v0  ;;  %448 = vst.msk [vmem:[#allocation2 + $0x101] sm:$0x1] %vm422_vm2, %v3146_v0  ;;  %v282_v39 = vld [vmem:[%s3247_s28 + $0x60] sm:$0xff]  ;;  %v283_v40 = vld [vmem:[%s3247_s28 + $0x68] sm:$0xff]  ;;  %2469 = vrot.lane.b32.xlu0 %v2468_v34, %s3147_s7  ;;  %v320_v50 = vmul.f32 %v3240_v1, %v281_v38  ;;  %v356_v54 = vadd.f32 %v3252_v2, %v317_v46  ;;  %v357_v55 = vadd.f32 %v3252_v2, %v318_v47 }
  0x1e   : > { %449 = vst.msk [vmem:[#allocation2 + $0x119] sm:$0x1] %vm422_vm2, %v3146_v0  ;;  %450 = vst.msk [vmem:[#allocation2 + $0x131] sm:$0x1] %vm422_vm2, %v3146_v0  ;;  %v381_v41 = vmax.f32 %v349_v24, 0.0  ;;  %v384_v42 = vmax.f32 %v352_v29, 0.0  ;;  %v321_v51 = vmul.f32 %v3240_v1, %v282_v39  ;;  %v322_v52 = vmul.f32 %v3240_v1, %v283_v40 }
  0x1f   : > { %451 = vst.msk [vmem:[#allocation2 + $0x149] sm:$0x1] %vm422_vm2, %v3146_v0  ;;  %452 = vst.msk [vmem:[#allocation2 + $0x161] sm:$0x1] %vm422_vm2, %v3146_v0  ;;  %v385_v43 = vmax.f32 %v353_v30, 0.0  ;;  %v358_v56 = vadd.f32 %v3252_v2, %v319_v48  ;;  %v284_v57 = vld [vmem:[%s3247_s28 + $0x70] sm:$0xff]  ;;  %v359_v60 = vadd.f32 %v3252_v2, %v320_v50 }
  0x20   : > { %453 = vst.msk [vmem:[#allocation2 + $0x179] sm:$0x1] %vm422_vm2, %v3146_v0  ;;  %454 = vst.msk [vmem:[#allocation2 + $0x191] sm:$0x1] %vm422_vm2, %v3146_v0  ;;  %v285_v58 = vld [vmem:[%s3247_s28 + $0x78] sm:$0xff]  ;;  %v386_v59 = vmax.f32 %v354_v49, 0.0  ;;  %v360_v61 = vadd.f32 %v3252_v2, %v321_v51  ;;  %v361_v62 = vadd.f32 %v3252_v2, %v322_v52  ;;  %v323_v16 = vmul.f32 %v3240_v1, %v284_v57 }
  0x21   : > { %457 = vst.msk [vmem:[#allocation2 + $0x31] sm:$0xff] %vm412_vm0, %v382_v35  ;;  %458 = vst.msk [vmem:[#allocation2 + $0x39] sm:$0xff] %vm412_vm0, %v383_v36  ;;  %v286_v63 = vld [vmem:[%s3247_s28 + $0x80] sm:$0xff]  ;;  %v287_v0 = vld [vmem:[%s3247_s28 + $0x88] sm:$0xff]  ;;  %v387_v4 = vmax.f32 %v355_v53, 0.0  ;;  %v388_v5 = vmax.f32 %v356_v54, 0.0  ;;  %v324_v19 = vmul.f32 %v3240_v1, %v285_v58 }
  0x22   : > { %455 = vst.msk [vmem:[#allocation2 + $0x19] sm:$0xff] %vm412_vm0, %v380_v37  ;;  %456 = vst.msk [vmem:[#allocation2 + $0x21] sm:$0xff] %vm412_vm0, %v381_v41  ;;  %v288_v3 = vld [vmem:[%s3247_s28 + $0x90] sm:$0xff]  ;;  %v389_v6 = vmax.f32 %v357_v55, 0.0  ;;  %v390_v7 = vmax.f32 %v358_v56, 0.0  ;;  %v289_v8 = vld [vmem:[%s3247_s28 + $0x98] sm:$0xff]  ;;  %v325_v20 = vmul.f32 %v3240_v1, %v286_v63  ;;  %v326_v21 = vmul.f32 %v3240_v1, %v287_v0 }
  0x23   : > { %459 = vst.msk [vmem:[#allocation2 + $0x49] sm:$0xff] %vm412_vm0, %v384_v42  ;;  %460 = vst.msk [vmem:[#allocation2 + $0x51] sm:$0xff] %vm412_vm0, %v385_v43  ;;  %v290_v9 = vld [vmem:[%s3247_s28 + $0xa0] sm:$0xff]  ;;  %v391_v10 = vmax.f32 %v359_v60, 0.0  ;;  %v392_v11 = vmax.f32 %v360_v61, 0.0  ;;  %v393_v15 = vmax.f32 %v361_v62, 0.0  ;;  %v362_v25 = vadd.f32 %v3252_v2, %v323_v16 }
  0x24   : > { %461 = vst.msk [vmem:[#allocation2 + $0x61] sm:$0xff] %vm412_vm0, %v386_v59  ;;  %v291_v17 = vld [vmem:[%s3247_s28 + $0xa8] sm:$0xff]  ;;  %v679_v18 = vrot.slane %v3267_v14, 2  ;;  %462 = vst.msk [vmem:[#allocation2 + $0x69] sm:$0xff] %vm412_vm0, %v387_v4  ;;  %v327_v26 = vmul.f32 %v3240_v1, %v288_v3  ;;  %v328_v27 = vmul.f32 %v3240_v1, %v289_v8  ;;  %v3345_v28 = vmul.f32 %v3240_v1, %v290_v9  ;;  %s3151_s19 = smov 20   ;;  %s3152_s25 = smov 24  }
  0x25   : > { %463 = vst.msk [vmem:[#allocation2 + $0x79] sm:$0xff] %vm412_vm0, %v388_v5  ;;  %464 = vst.msk [vmem:[#allocation2 + $0x81] sm:$0xff] %vm412_vm0, %v389_v6  ;;  %v3355_v34 = vmul.f32 %v3240_v1, %v291_v17  ;;  %v363_v40 = vadd.f32 %v3252_v2, %v324_v19  ;;  %v3367_v41 = vadd.f32 %v3252_v2, %v325_v20  ;;  %v394_v53 = vmax.f32 %v362_v25, 0.0  ;;  %s3153_s26 = smov 28   ;;  %s3154_s30 = smov 32  }
  0x26   : > { %465 = vst.msk [vmem:[#allocation2 + $0x91] sm:$0xff] %vm412_vm0, %v390_v7  ;;  %466 = vst.msk [vmem:[#allocation2 + $0x99] sm:$0xff] %vm412_vm0, %v391_v10  ;;  %v365_v55 = vadd.f32 %v3252_v2, %v326_v21  ;;  %v367_v16 = vadd.f32 %v3252_v2, %v328_v27  ;;  %vm1582_vm6 = vcmask 64512   ;;  %vm1615_vm7 = vcmask 97280  }
  0x27   : > { %467 = vst.msk [vmem:[#allocation2 + $0xa9] sm:$0xff] %vm412_vm0, %v392_v11  ;;  %468 = vst.msk [vmem:[#allocation2 + $0xb1] sm:$0xff] %vm412_vm0, %v393_v15  ;;  %v395_v54 = vmax.f32 %v363_v40, 0.0  ;;  %v366_v15 = vadd.f32 %v3252_v2, %v327_v26  ;;  %vm1648_vm8 = vcmask 130048   ;;  %vm1681_vm9 = vcmask 162816  }
  0x28   : > { %v3332_v22 = vld [vmem:[#allocation2 + $0x30] sm:$0xff]  ;;  %v3334_v23 = vld [vmem:[#allocation2 + $0x38] sm:$0xff]  ;;  %v3336_v24 = vld [vmem:[#allocation2 + $0x40] sm:$0x3]  ;;  %469 = vst.msk [vmem:[#allocation2 + $0xc1] sm:$0xff] %vm412_vm0, %v394_v53  ;;  %vm1714_vm10 = vcmask 195584  }
  0x29   : > { %4725 = vst [vmem:[#allocation3_spill] sm:$0xff] %v3332_v22  ;;  %4726 = vst [vmem:[#allocation4_spill] sm:$0xff] %v3334_v23  ;;  %v605_v29 = vrot.slane %v3332_v22, 1  ;;  %v606_v30 = vrot.slane %v3334_v23, 1  ;;  %v608_v31 = vrot.slane %v3336_v24, 1  ;;  %v3350_v32 = vld [vmem:[#allocation2 + $0x18] sm:$0xff] }
  0x2a   : > { %v3352_v33 = vld [vmem:[#allocation2 + $0x20] sm:$0xff]  ;;  %v3357_v35 = vld [vmem:[#allocation2 + $0x28] sm:$0x3]  ;;  %v600_v36 = vrot.slane %v3350_v32, 1  ;;  %v3363_v39 = vld [vmem:[#allocation2 + $0x50] sm:$0xff]  ;;  %470 = vst.msk [vmem:[#allocation2 + $0xc9] sm:$0xff] %vm412_vm0, %v395_v54 }
  0x2b   : > { %4727 = vst [vmem:[#allocation5_spill] sm:$0xff] %v3352_v33  ;;  %v601_v37 = vrot.slane %v3352_v33, 1  ;;  %v3361_v38 = vld [vmem:[#allocation2 + $0x48] sm:$0xff]  ;;  %v607_v42 = vsel %vm594_vm3, %v605_v29, %v606_v30  ;;  %v609_v43 = vsel %vm594_vm3, %v606_v30, %v608_v31  ;;  %v603_v44 = vrot.slane %v3357_v35, 1  ;;  %v3372_v45 = vld [vmem:[#allocation2 + $0x58] sm:$0x3] }
  0x2c   : > { %v610_v46 = vrot.slane %v3361_v38, 1  ;;  %v3375_v47 = vpack.i.bf16 %v609_v43, %v607_v42  ;;  %v611_v49 = vrot.slane %v3363_v39, 1  ;;  %v613_v50 = vrot.slane %v3372_v45, 1  ;;  %v3381_v52 = vld [vmem:[#allocation2 + $0x60] sm:$0xff]  ;;  %v3390_v59 = vld [vmem:[#allocation2 + $0x68] sm:$0xff]  ;;  %v3395_v62 = vld [vmem:[#allocation2 + $0x78] sm:$0xff] }
  0x2d   : > { %v602_v48 = vsel %vm594_vm3, %v600_v36, %v601_v37  ;;  %v604_v51 = vsel %vm594_vm3, %v601_v37, %v603_v44  ;;  %v3392_v60 = vld [vmem:[#allocation2 + $0x70] sm:$0x3]  ;;  %v615_v61 = vrot.slane %v3381_v52, 1  ;;  %v616_v0 = vrot.slane %v3390_v59, 1  ;;  %v3401_v4 = vld [vmem:[#allocation2 + $0x80] sm:$0xff]  ;;  %v3414_v10 = vld [vmem:[#allocation2 + $0x98] sm:$0xff] }
  0x2e   : > { %4728 = vst [vmem:[#allocation6_spill] sm:$0xff] %v3375_v47  ;;  %2479 = vrot.lane.b32.xlu1 %v3375_v47, %s3147_s7  ;;  %v3386_v56 = vpack.i.bf16 %v604_v51, %v602_v48  ;;  %v612_v57 = vsel %vm594_vm3, %v610_v46, %v611_v49  ;;  %v614_v58 = vsel %vm594_vm3, %v611_v49, %v613_v50  ;;  %v618_v3 = vrot.slane %v3392_v60, 1  ;;  %v3403_v5 = vld [vmem:[#allocation2 + $0x88] sm:$0x3]  ;;  %v3412_v9 = vld [vmem:[#allocation2 + $0x90] sm:$0xff] }
  0x2f   : > { %v3397_v63 = vpack.i.bf16 %v614_v58, %v612_v57  ;;  %v620_v6 = vrot.slane %v3395_v62, 1  ;;  %v621_v7 = vrot.slane %v3401_v4, 1  ;;  %v623_v8 = vrot.slane %v3403_v5, 1  ;;  %v3416_v11 = vld [vmem:[#allocation2 + $0xa0] sm:$0x3]  ;;  %v3424_v25 = vld [vmem:[#allocation2 + $0xa8] sm:$0xff] }
  0x30   : > { %4729 = vst [vmem:[#allocation7_spill] sm:$0xff] %v3386_v56  ;;  %2474 = vrot.lane.b32.xlu0 %v3386_v56, %s3147_s7  ;;  %v617_v17 = vsel %vm594_vm3, %v615_v61, %v616_v0  ;;  %v619_v19 = vsel %vm594_vm3, %v616_v0, %v618_v3  ;;  %v625_v20 = vrot.slane %v3412_v9, 1  ;;  %v626_v21 = vrot.slane %v3414_v10, 1  ;;  %v3426_v29 = vld [vmem:[#allocation2 + $0xb0] sm:$0xff]  ;;  %v3428_v30 = vld [vmem:[#allocation2 + $0xb8] sm:$0x3] }
  0x31   : > { %4730 = vst [vmem:[#allocation8_spill] sm:$0xff] %v3397_v63  ;;  %v3432_v26 = vpack.i.bf16 %v619_v19, %v617_v17  ;;  %v622_v27 = vsel %vm594_vm3, %v620_v6, %v621_v7  ;;  %v624_v31 = vsel %vm594_vm3, %v621_v7, %v623_v8  ;;  %v628_v36 = vrot.slane %v3416_v11, 1  ;;  %v292_v44 = vld [vmem:[%s3247_s28 + $0xb0] sm:$0xff]  ;;  %v293_v58 = vld [vmem:[%s3247_s28 + $0xb8] sm:$0xff]  ;;  %v294_v61 = vld [vmem:[%s3247_s28 + $0xc0] sm:$0xff] }
  0x32   : > { %2484 = vrot.lane.b32.xlu1 %v3397_v63, %s3147_s7  ;;  %v3437_v37 = vpack.i.bf16 %v624_v31, %v622_v27  ;;  %v627_v40 = vsel %vm594_vm3, %v625_v20, %v626_v21  ;;  %v630_v42 = vrot.slane %v3424_v25, 1  ;;  %v631_v43 = vrot.slane %v3426_v29, 1  ;;  %v295_v0 = vld [vmem:[%s3247_s28 + $0xc8] sm:$0xff]  ;;  %v3457_v6 = vld [vmem:[#allocation2 + $0xc0] sm:$0xff] }
  0x33   : > { %4731 = vst [vmem:[#allocation9_spill] sm:$0xff] %v3432_v26  ;;  %v629_v46 = vsel %vm594_vm3, %v626_v21, %v628_v36  ;;  %v633_v48 = vrot.slane %v3428_v30, 1  ;;  %v396_v49 = vmax.f32 %v3367_v41, 0.0  ;;  %v397_v50 = vmax.f32 %v365_v55, 0.0  ;;  %v3459_v7 = vld [vmem:[#allocation2 + $0xc8] sm:$0xff]  ;;  %v297_v36 = vld [vmem:[%s3247_s28 + $0xd8] sm:$0xff] }
  0x34   : > { %4732 = vst [vmem:[#allocation10_spill] sm:$0xff] %v3437_v37  ;;  %2489 = vrot.lane.b32.xlu0 %v3432_v26, %s3147_s7  ;;  %v3448_v51 = vpack.i.bf16 %v629_v46, %v627_v40  ;;  %v632_v53 = vsel %vm594_vm3, %v630_v42, %v631_v43  ;;  %v398_v54 = vmax.f32 %v366_v15, 0.0  ;;  %v399_v57 = vmax.f32 %v367_v16, 0.0  ;;  %v3461_v41 = vld [vmem:[#allocation2 + $0xd0] sm:$0x3]  ;;  %v298_v40 = vld [vmem:[%s3247_s28 + $0xe0] sm:$0xff] }
  0x35   : > { %v634_v3 = vsel %vm594_vm3, %v631_v43, %v633_v48  ;;  %471 = vst.msk [vmem:[#allocation2 + $0xd9] sm:$0xff] %vm412_vm0, %v396_v49  ;;  %472 = vst.msk [vmem:[#allocation2 + $0xe1] sm:$0xff] %vm412_vm0, %v397_v50  ;;  %v368_v55 = vadd.f32 %v3252_v2, %v3345_v28  ;;  %v369_v8 = vadd.f32 %v3252_v2, %v3355_v34  ;;  %v635_v17 = vrot.slane %v3457_v6, 1  ;;  %v296_v28 = vld [vmem:[%s3247_s28 + $0xd0] sm:$0xff]  ;;  %v299_v48 = vld [vmem:[%s3247_s28 + $0xe8] sm:$0xff] }
  0x36   : > { %4733 = vst [vmem:[#allocation11_spill] sm:$0xff] %v3448_v51  ;;  %2494 = vrot.lane.b32.xlu1 %v3437_v37, %s3147_s7  ;;  %v331_v15 = vmul.f32 %v3240_v1, %v292_v44  ;;  %v3470_v16 = vpack.i.bf16 %v634_v3, %v632_v53  ;;  %v636_v19 = vrot.slane %v3459_v7, 1  ;;  %v638_v20 = vrot.slane %v3461_v41, 1  ;;  %473 = vst.msk [vmem:[#allocation2 + $0xf1] sm:$0xff] %vm412_vm0, %v398_v54 }
  0x37   : > { %474 = vst.msk [vmem:[#allocation2 + $0xf9] sm:$0xff] %vm412_vm0, %v399_v57  ;;  %v400_v34 = vmax.f32 %v368_v55, 0.0  ;;  %v401_v21 = vmax.f32 %v369_v8, 0.0  ;;  %v332_v27 = vmul.f32 %v3240_v1, %v293_v58  ;;  %v333_v44 = vmul.f32 %v3240_v1, %v294_v61 }
  0x38   : > { %4734 = vst [vmem:[#allocation12_spill] sm:$0xff] %v3470_v16  ;;  %2499 = vrot.lane.b32.xlu0 %v3448_v51, %s3147_s7  ;;  %v370_v31 = vadd.f32 %v3252_v2, %v331_v15  ;;  %v637_v42 = vsel %vm594_vm3, %v635_v17, %v636_v19  ;;  %v639_v43 = vsel %vm594_vm3, %v636_v19, %v638_v20  ;;  %v676_v15 = vrot.slane %v3263_v12, 2 }
  0x39   : > { %v334_v46 = vmul.f32 %v3240_v1, %v295_v0  ;;  %v3491_v49 = vpack.i.bf16 %v639_v43, %v637_v42  ;;  %475 = vst.msk [vmem:[#allocation2 + $0x109] sm:$0xff] %vm412_vm0, %v400_v34  ;;  %476 = vst.msk [vmem:[#allocation2 + $0x111] sm:$0xff] %vm412_vm0, %v401_v21  ;;  %v371_v50 = vadd.f32 %v3252_v2, %v332_v27  ;;  %v692_v56 = vrot.slane %v3363_v39, 2 }
  0x3a   : > { %2504 = vrot.lane.b32.xlu1 %v3470_v16, %s3147_s7  ;;  %v402_v53 = vmax.f32 %v370_v31, 0.0  ;;  %v335_v54 = vmul.f32 %v3240_v1, %v296_v28  ;;  %v372_v57 = vadd.f32 %v3252_v2, %v333_v44  ;;  %v336_v61 = vmul.f32 %v3240_v1, %v297_v36 }
  0x3b   : > { %4735 = vst [vmem:[#allocation13_spill] sm:$0xff] %v3491_v49  ;;  %v373_v58 = vadd.f32 %v3252_v2, %v334_v46  ;;  %v337_v0 = vmul.f32 %v3240_v1, %v298_v40  ;;  %v403_v3 = vmax.f32 %v371_v50, 0.0  ;;  %v338_v8 = vmul.f32 %v3240_v1, %v299_v48 }
  0x3c   : > { %2509 = vrot.lane.b32.xlu0 %v3491_v49, %s3147_s7  ;;  %477 = vst.msk [vmem:[#allocation2 + $0x121] sm:$0xff] %vm412_vm0, %v402_v53  ;;  %v374_v55 = vadd.f32 %v3252_v2, %v335_v54  ;;  %v3507_v17 = vld [vmem:[#allocation2 + $0xd8] sm:$0xff]  ;;  %v3509_v19 = vld [vmem:[#allocation2 + $0xe0] sm:$0xff]  ;;  %v3511_v20 = vld [vmem:[#allocation2 + $0xe8] sm:$0x3]  ;;  %v404_v28 = vmax.f32 %v372_v57, 0.0  ;;  %v375_v21 = vadd.f32 %v3252_v2, %v336_v61 }
  0x3d   : > { %v405_v34 = vmax.f32 %v373_v58, 0.0  ;;  %v376_v27 = vadd.f32 %v3252_v2, %v337_v0  ;;  %v640_v31 = vrot.slane %v3507_v17, 1  ;;  %v641_v36 = vrot.slane %v3509_v19, 1  ;;  %v3518_v40 = vld [vmem:[#allocation2 + $0xf0] sm:$0xff]  ;;  %478 = vst.msk [vmem:[#allocation2 + $0x129] sm:$0xff] %vm412_vm0, %v403_v3 }
  0x3e   : > { %v643_v1 = vrot.slane %v3511_v20, 1  ;;  %v3520_v12 = vld [vmem:[#allocation2 + $0xf8] sm:$0xff]  ;;  %v406_v42 = vmax.f32 %v374_v55, 0.0  ;;  %v3523_v43 = vld [vmem:[#allocation2 + $0x100] sm:$0x3]  ;;  %v645_v44 = vrot.slane %v3518_v40, 1  ;;  %v377_v50 = vadd.f32 %v3252_v2, %v338_v8 }
  0x3f   : > { %v646_v46 = vrot.slane %v3520_v12, 1  ;;  %479 = vst.msk [vmem:[#allocation2 + $0x139] sm:$0xff] %vm412_vm0, %v404_v28  ;;  %480 = vst.msk [vmem:[#allocation2 + $0x141] sm:$0xff] %vm412_vm0, %v405_v34  ;;  %v407_v48 = vmax.f32 %v375_v21, 0.0  ;;  %v642_v53 = vsel %vm594_vm3, %v640_v31, %v641_v36  ;;  %v648_v57 = vrot.slane %v3523_v43, 1 }
  0x40   : > { %v644_v54 = vsel %vm594_vm3, %v641_v36, %v643_v1  ;;  %481 = vst.msk [vmem:[#allocation2 + $0x151] sm:$0xff] %vm412_vm0, %v406_v42  ;;  %v408_v58 = vmax.f32 %v376_v27, 0.0  ;;  %v3537_v3 = vld [vmem:[#allocation2 + $0x108] sm:$0xff]  ;;  %v3539_v55 = vld [vmem:[#allocation2 + $0x110] sm:$0xff]  ;;  %v3541_v28 = vld [vmem:[#allocation2 + $0x118] sm:$0x3] }
  0x41   : > { %v3534_v61 = vpack.i.bf16 %v644_v54, %v642_v53  ;;  %v647_v0 = vsel %vm594_vm3, %v645_v44, %v646_v46  ;;  %482 = vst.msk [vmem:[#allocation2 + $0x159] sm:$0xff] %vm412_vm0, %v407_v48  ;;  %v409_v2 = vmax.f32 %v377_v50, 0.0  ;;  %v677_v8 = vrot.slane %v3265_v13, 2 }
  0x42   : > { %v649_v34 = vsel %vm594_vm3, %v646_v46, %v648_v57  ;;  %v650_v21 = vrot.slane %v3537_v3, 1  ;;  %v651_v27 = vrot.slane %v3539_v55, 1  ;;  %v653_v31 = vrot.slane %v3541_v28, 1  ;;  %483 = vst.msk [vmem:[#allocation2 + $0x169] sm:$0xff] %vm412_vm0, %v408_v58 }
  0x43   : > { %4736 = vst [vmem:[#allocation14_spill] sm:$0xff] %v3534_v61  ;;  %2514 = vrot.lane.b32.xlu1 %v3534_v61, %s3147_s7  ;;  %v3552_v36 = vpack.i.bf16 %v649_v34, %v647_v0  ;;  %v3554_v1 = vld [vmem:[#allocation2 + $0x120] sm:$0xff]  ;;  %484 = vst.msk [vmem:[#allocation2 + $0x171] sm:$0xff] %vm412_vm0, %v409_v2  ;;  %v689_v46 = vrot.slane %v3336_v24, 2  ;;  %v681_v54 = vrot.slane %v3350_v32, 2  ;;  %v682_v57 = vrot.slane %v3352_v33, 2 }
  0x44   : > { %v652_v13 = vsel %vm594_vm3, %v650_v21, %v651_v27  ;;  %v654_v42 = vsel %vm594_vm3, %v651_v27, %v653_v31  ;;  %v655_v44 = vrot.slane %v3554_v1, 1  ;;  %v3565_v50 = vld [vmem:[#allocation2 + $0x128] sm:$0xff]  ;;  %v3567_v53 = vld [vmem:[#allocation2 + $0x130] sm:$0x3]  ;;  %v678_v21 = vsel %vm675_vm4, %v676_v15, %v677_v8 }
  0x45   : > { %4737 = vst [vmem:[#allocation15_spill] sm:$0xff] %v3552_v36  ;;  %2519 = vrot.lane.b32.xlu0 %v3552_v36, %s3147_s7  ;;  %v3563_v48 = vpack.i.bf16 %v654_v42, %v652_v13  ;;  %v656_v58 = vrot.slane %v3565_v50, 1  ;;  %v658_v0 = vrot.slane %v3567_v53, 1  ;;  %v680_v27 = vsel %vm675_vm4, %v677_v8, %v679_v18 }
  0x46   : > { %v3573_v2 = vld [vmem:[#allocation2 + $0x138] sm:$0xff]  ;;  %v3575_v24 = vld [vmem:[#allocation2 + $0x140] sm:$0xff]  ;;  %v3577_v34 = vld [vmem:[#allocation2 + $0x148] sm:$0x3]  ;;  %v684_v61 = vrot.slane %v3357_v35, 2  ;;  %v694_v33 = vrot.slane %v3372_v45, 2 }
  0x47   : > { %4738 = vst [vmem:[#allocation16_spill] sm:$0xff] %v3563_v48  ;;  %2524 = vrot.lane.b32.xlu1 %v3563_v48, %s3147_s7  ;;  %v660_v31 = vrot.slane %v3573_v2, 1  ;;  %v661_v13 = vrot.slane %v3575_v24, 1  ;;  %v663_v42 = vrot.slane %v3577_v34, 1  ;;  %v3588_v36 = vld [vmem:[#allocation2 + $0x150] sm:$0xff]  ;;  %v657_v49 = vsel %vm594_vm3, %v655_v44, %v656_v58 }
  0x48   : > { %v659_v15 = vsel %vm594_vm3, %v656_v58, %v658_v0  ;;  %v3593_v14 = vld [vmem:[#allocation2 + $0x158] sm:$0xff]  ;;  %v3595_v18 = vld [vmem:[#allocation2 + $0x160] sm:$0x3]  ;;  %v665_v8 = vrot.slane %v3588_v36, 1  ;;  %v686_v48 = vrot.slane %v3332_v22, 2  ;;  %v701_v45 = vrot.slane %v3395_v62, 2 }
  0x49   : > { %v3599_v16 = vpack.i.bf16 %v659_v15, %v657_v49  ;;  %v662_v51 = vsel %vm594_vm3, %v660_v31, %v661_v13  ;;  %v664_v37 = vsel %vm594_vm3, %v661_v13, %v663_v42  ;;  %v666_v35 = vrot.slane %v3593_v14, 1  ;;  %v3604_v26 = vld [vmem:[#allocation2 + $0x168] sm:$0xff] }
  0x4a   : > { %v3606_v44 = vpack.i.bf16 %v664_v37, %v662_v51  ;;  %v668_v58 = vrot.slane %v3595_v18, 1  ;;  %v3609_v0 = vld [vmem:[#allocation2 + $0x170] sm:$0xff]  ;;  %v3611_v63 = vld [vmem:[#allocation2 + $0x178] sm:$0x3]  ;;  %v670_v47 = vrot.slane %v3604_v26, 1  ;;  %v683_v49 = vsel %vm675_vm4, %v681_v54, %v682_v57 }
  0x4b   : > { %4739 = vst [vmem:[#allocation17_spill] sm:$0xff] %v3599_v16  ;;  %2529 = vrot.lane.b32.xlu0 %v3599_v16, %s3147_s7  ;;  %v667_v31 = vsel %vm594_vm3, %v665_v8, %v666_v35  ;;  %v671_v13 = vrot.slane %v3609_v0, 1  ;;  %v673_v37 = vrot.slane %v3611_v63, 1  ;;  %v687_v51 = vrot.slane %v3334_v23, 2 }
  0x4c   : > { %4740 = vst [vmem:[#allocation18_spill] sm:$0xff] %v3606_v44  ;;  %2534 = vrot.lane.b32.xlu1 %v3606_v44, %s3147_s7  ;;  %v669_v42 = vsel %vm594_vm3, %v666_v35, %v668_v58  ;;  %v685_v15 = vsel %vm675_vm4, %v682_v57, %v684_v61  ;;  %v691_v54 = vrot.slane %v3361_v38, 2  ;;  %v2548_v61 = vpack.i.bf16 %v680_v27, %v678_v21 }
  0x4d   : > { %v3627_v16 = vpack.i.bf16 %v669_v42, %v667_v31  ;;  %v672_v8 = vsel %vm594_vm3, %v670_v47, %v671_v13  ;;  %v674_v22 = vsel %vm594_vm3, %v671_v13, %v673_v37  ;;  %v688_v44 = vsel %vm675_vm4, %v686_v48, %v687_v51 }
  0x4e   : > { %v3632_v23 = vpack.i.bf16 %v674_v22, %v672_v8  ;;  %v690_v35 = vsel %vm675_vm4, %v687_v51, %v689_v46  ;;  %v3638_v57 = vpack.i.bf16 %v685_v15, %v683_v49  ;;  %v696_v58 = vrot.slane %v3381_v52, 2 }
  0x4f   : > { %2539 = vrot.lane.b32.xlu0 %v3627_v16, %s3147_s7  ;;  %v697_v47 = vrot.slane %v3390_v59, 2  ;;  %v699_v22 = vrot.slane %v3392_v60, 2  ;;  %v702_v48 = vrot.slane %v3401_v4, 2  ;;  %v704_v46 = vrot.slane %v3403_v5, 2 }
  0x50   : > { %2544 = vrot.lane.b32.xlu1 %v3632_v23, %s3147_s7  ;;  %v3648_v31 = vpack.i.bf16 %v690_v35, %v688_v44  ;;  %v693_v21 = vsel %vm675_vm4, %v691_v54, %v692_v56  ;;  %v695_v27 = vsel %vm675_vm4, %v692_v56, %v694_v33  ;;  %v706_v13 = vrot.slane %v3412_v9, 2 }
  0x51   : > { %v698_v49 = vsel %vm675_vm4, %v696_v58, %v697_v47  ;;  %v707_v37 = vrot.slane %v3414_v10, 2  ;;  %v709_v60 = vrot.slane %v3416_v11, 2  ;;  %v700_v51 = vsel %vm675_vm4, %v697_v47, %v699_v22 }
  0x52   : > { %v703_v5 = vsel %vm675_vm4, %v701_v45, %v702_v48  ;;  %v705_v44 = vsel %vm675_vm4, %v702_v48, %v704_v46  ;;  %v711_v42 = vrot.slane %v3424_v25, 2  ;;  %v3663_v33 = vpack.i.bf16 %v695_v27, %v693_v21 }
  0x53   : > { %2549 = vrot.lane.b32.xlu0 %v2548_v61, %s3148_s8  ;;  %v712_v56 = vrot.slane %v3426_v29, 2  ;;  %v714_v11 = vrot.slane %v3428_v30, 2  ;;  %v716_v15 = vrot.slane %v3457_v6, 2  ;;  %v717_v54 = vrot.slane %v3459_v7, 2 }
  0x54   : > { %2554 = vrot.lane.b32.xlu1 %v3638_v57, %s3148_s8  ;;  %v719_v8 = vrot.slane %v3461_v41, 2  ;;  %v3670_v35 = vpack.i.bf16 %v700_v51, %v698_v49  ;;  %v3672_v61 = vpack.i.bf16 %v705_v44, %v703_v5  ;;  %v708_v58 = vsel %vm675_vm4, %v706_v13, %v707_v37 }
  0x55   : > { %v710_v47 = vsel %vm675_vm4, %v707_v37, %v709_v60  ;;  %v713_v22 = vsel %vm675_vm4, %v711_v42, %v712_v56  ;;  %v721_v30 = vrot.slane %v3507_v17, 2  ;;  %v722_v45 = vrot.slane %v3509_v19, 2 }
  0x56   : > { %v715_v41 = vsel %vm675_vm4, %v712_v56, %v714_v11  ;;  %v718_v48 = vsel %vm675_vm4, %v716_v15, %v717_v54  ;;  %v724_v46 = vrot.slane %v3511_v20, 2  ;;  %v726_v21 = vrot.slane %v3518_v40, 2 }
  0x57   : > { %2559 = vrot.lane.b32.xlu0 %v3648_v31, %s3148_s8  ;;  %v720_v27 = vsel %vm675_vm4, %v717_v54, %v719_v8  ;;  %v727_v49 = vrot.slane %v3520_v12, 2  ;;  %v729_v13 = vrot.slane %v3523_v43, 2  ;;  %v731_v37 = vrot.slane %v3537_v3, 2 }
  0x58   : > { %2564 = vrot.lane.b32.xlu1 %v3663_v33, %s3148_s8  ;;  %v732_v60 = vrot.slane %v3539_v55, 2  ;;  %v734_v51 = vrot.slane %v3541_v28, 2  ;;  %v736_v5 = vrot.slane %v3554_v1, 2  ;;  %v737_v44 = vrot.slane %v3565_v50, 2 }
  0x59   : > { %v3697_v20 = vpack.i.bf16 %v710_v47, %v708_v58  ;;  %v739_v42 = vrot.slane %v3567_v53, 2  ;;  %v3702_v43 = vpack.i.bf16 %v715_v41, %v713_v22  ;;  %v3704_v56 = vpack.i.bf16 %v720_v27, %v718_v48 }
  0x5a   : > { %v723_v28 = vsel %vm675_vm4, %v721_v30, %v722_v45  ;;  %v725_v11 = vsel %vm675_vm4, %v722_v45, %v724_v46  ;;  %v728_v15 = vsel %vm675_vm4, %v726_v21, %v727_v49  ;;  %v730_v54 = vsel %vm675_vm4, %v727_v49, %v729_v13 }
  0x5b   : > { %2569 = vrot.lane.b32.xlu0 %v3670_v35, %s3148_s8  ;;  %v733_v8 = vsel %vm675_vm4, %v731_v37, %v732_v60  ;;  %v735_v58 = vsel %vm675_vm4, %v732_v60, %v734_v51  ;;  %v738_v53 = vsel %vm675_vm4, %v736_v5, %v737_v44  ;;  %v740_v47 = vsel %vm675_vm4, %v737_v44, %v739_v42 }
  0x5c   : > { %2574 = vrot.lane.b32.xlu1 %v3672_v61, %s3148_s8  ;;  %v741_v22 = vrot.slane %v3573_v2, 2  ;;  %v742_v30 = vrot.slane %v3575_v24, 2  ;;  %v744_v45 = vrot.slane %v3577_v34, 2  ;;  %v3721_v41 = vpack.i.bf16 %v725_v11, %v723_v28 }
  0x5d   : > { %v746_v48 = vrot.slane %v3588_v36, 2  ;;  %v747_v46 = vrot.slane %v3593_v14, 2  ;;  %v3725_v21 = vpack.i.bf16 %v730_v54, %v728_v15  ;;  %v3727_v27 = vpack.i.bf16 %v735_v58, %v733_v8  ;;  %v4741_v54 = vld [vmem:[#allocation5_spill] sm:$0xff]  ;;  %v4742_v58 = vld [vmem:[#allocation3_spill] sm:$0xff] }
  0x5e   : > { %v3729_v49 = vpack.i.bf16 %v740_v47, %v738_v53  ;;  %v749_v13 = vrot.slane %v3595_v18, 2  ;;  %v743_v34 = vsel %vm675_vm4, %v741_v22, %v742_v30  ;;  %v745_v37 = vsel %vm675_vm4, %v742_v30, %v744_v45  ;;  %v4743_v53 = vld [vmem:[#allocation4_spill] sm:$0xff] }
  0x5f   : > { %2579 = vrot.lane.b32.xlu0 %v3697_v20, %s3148_s8  ;;  %v751_v60 = vrot.slane %v3604_v26, 2  ;;  %v748_v51 = vsel %vm675_vm4, %v746_v48, %v747_v46  ;;  %v752_v5 = vrot.slane %v3609_v0, 2  ;;  %v754_v44 = vrot.slane %v3611_v63, 2 }
  0x60   : > { %2584 = vrot.lane.b32.xlu1 %v3702_v43, %s3148_s8  ;;  %v3742_v42 = vpack.i.bf16 %v745_v37, %v743_v34  ;;  %v750_v18 = vsel %vm675_vm4, %v747_v46, %v749_v13  ;;  %v2628_v8 = vpack.i.bf16 %v4741_v54, %v3350_v32  ;;  %v2633_v47 = vpack.i.bf16 %v4743_v53, %v4742_v58  ;;  %v300_v46 = vld [vmem:[%s3247_s28 + $0xf0] sm:$0xff]  ;;  %v301_v13 = vld [vmem:[%s3247_s28 + $0xf8] sm:$0xff]  ;;  %v3108_v37 = vld [vmem:[%s4685_s1] ss:$0 sm:$0xff] }
  0x61   : > { %v753_v28 = vsel %vm675_vm4, %v751_v60, %v752_v5  ;;  %v755_v11 = vsel %vm675_vm4, %v752_v5, %v754_v44  ;;  %v3753_v15 = vpack.i.bf16 %v750_v18, %v748_v51  ;;  %v2638_v22 = vpack.i.bf16 %v3363_v39, %v3361_v38  ;;  %v541_v39 = vld [vmem:[%s4687_s3] sm:$0xff]  ;;  %v4746_v34 = vld [vmem:[#allocation8_spill] sm:$0xff]  ;;  %v4748_v53 = vld [vmem:[#allocation10_spill] sm:$0xff] }
  0x62   : > { %v3757_v63 = vpack.i.bf16 %v755_v11, %v753_v28  ;;  %v2643_v30 = vpack.i.bf16 %v3390_v59, %v3381_v52  ;;  %v2648_v32 = vpack.i.bf16 %v3401_v4, %v3395_v62  ;;  %v3779_v45 = vpack.i.bf16 %v3414_v10, %v3412_v9  ;;  %v542_v52 = vld [vmem:[%s4687_s3 + $0x8] sm:$0xff]  ;;  %v4744_v62 = vld [vmem:[#allocation7_spill] sm:$0xff]  ;;  %v544_v9 = vld [vmem:[%s4687_s3 + $0x18] sm:$0xff] }
  0x63   : > { %2589 = vrot.lane.b32.xlu0 %v3704_v56, %s3148_s8  ;;  %v3784_v38 = vpack.i.bf16 %v3426_v29, %v3424_v25  ;;  %v1829_v59 = vpack.c.bf16 %v542_v52, %v541_v39  ;;  %v543_v4 = vld [vmem:[%s4687_s3 + $0x10] sm:$0xff]  ;;  %v4745_v25 = vld [vmem:[#allocation6_spill] sm:$0xff]  ;;  %v545_v29 = vld [vmem:[%s4687_s3 + $0x20] sm:$0xf]  ;;  %v339_v60 = vmul.f32 %v3108_v37, %v300_v46  ;;  %v340_v51 = vmul.f32 %v3108_v37, %v301_v13 }
  0x64   : > { %2594 = vrot.lane.b32.xlu1 %v3721_v41, %s3148_s8  ;;  %v1830_v10 = vpack.c.bf16 %v544_v9, %v543_v4  ;;  %v1831_v48 = vpack.c.bf16 %v545_v29, %v545_v29  ;;  %v3109_v5 = vld [vmem:[%s4686_s2] ss:$0 sm:$0xff]  ;;  %vm1747_vm11 = vcmask 228352   ;;  %vm1780_vm12 = vcmask 261120  }
  0x65   : > { %2405 = vmatprep.subr.bf16.mxu0 %v1829_v59  ;;  %2443 = vmatprep.subr.bf16.mxu1 %v1829_v59  ;;  %v378_v44 = vadd.f32 %v3109_v5, %v339_v60  ;;  %v379_v18 = vadd.f32 %v3109_v5, %v340_v51  ;;  %v4753_v9 = vld [vmem:[#allocation13_spill] sm:$0xff]  ;;  %vm1832_vm13 = vcmask 293888  }
  0x66   : > { %2406 = vmatpush3.bf16.msra.mxu0 %v1829_v59  ;;  %2446 = vmatpush3.bf16.msra.mxu1 %v1829_v59 }
  0x67   : > { %2599 = vrot.lane.b32.xlu0 %v3725_v21, %s3148_s8  ;;  %2407 = vmatprep.subr.bf16.mxu0 %v1830_v10  ;;  %v410_v28 = vmax.f32 %v378_v44, 0.0  ;;  %v411_v11 = vmax.f32 %v379_v18, 0.0 }
  0x68   : > { %2604 = vrot.lane.b32.xlu1 %v3727_v27, %s3148_s8  ;;  %2444 = vmatprep.subr.bf16.mxu1 %v1830_v10 }
  0x69   : > { %485 = vst.msk [vmem:[#allocation2 + $0x181] sm:$0xff] %vm412_vm0, %v410_v28  ;;  %486 = vst.msk [vmem:[#allocation2 + $0x189] sm:$0xff] %vm412_vm0, %v411_v11 }
  0x6a   : > { %2408 = vmatpush3.bf16.msra.mxu0 %v1830_v10  ;;  %2447 = vmatpush3.bf16.msra.mxu1 %v1830_v10 }
  0x6b   : > { %2609 = vrot.lane.b32.xlu0 %v3729_v49, %s3148_s8  ;;  %2449 = vmatprep.subr.msk.bf16.mxu0 %vm1881_vm5, %v1831_v48 }
  0x6c   : > { %2614 = vrot.lane.b32.xlu1 %v3742_v42, %s3148_s8  ;;  %2450 = vmatprep.subr.msk.bf16.mxu1 %vm1881_vm5, %v1831_v48 }
  0x6f   : > { %2619 = vrot.lane.b32.xlu0 %v3753_v15, %s3148_s8 }
  0x70   : > { %2624 = vrot.lane.b32.xlu1 %v3757_v63, %s3148_s8 }
  0x73   : > { %2629 = vrot.lane.b32.xlu0 %v2628_v8, %s3149_s9 }
  0x74   : > { %2634 = vrot.lane.b32.xlu1 %v2633_v47, %s3149_s9 }
  0x77   : > { %2639 = vrot.lane.b32.xlu0 %v2638_v22, %s3149_s9 }
  0x78   : > { %2644 = vrot.lane.b32.xlu1 %v2643_v30, %s3149_s9 }
  0x7b   : > { %2649 = vrot.lane.b32.xlu0 %v2648_v32, %s3149_s9 }
  0x7c   : > { %2654 = vrot.lane.b32.xlu1 %v3779_v45, %s3149_s9 }
  0x7f   : > { %2659 = vrot.lane.b32.xlu0 %v3784_v38, %s3149_s9 }
  0x80   : > { %2664 = vrot.lane.b32.xlu1 %v4744_v62, %s3150_s14 }
  0x83   : > { %2669 = vrot.lane.b32.xlu0 %v4745_v25, %s3150_s14 }
  0x84   : > { %2674 = vrot.lane.b32.xlu1 %v3638_v57, %s3151_s19  ;;  %v1883_v57 = vsel %vm1881_vm5, %v1831_v48, 0 }
  0x85   : > { %2410 = vmatpush3.bf16.msra.mxu0 %v1883_v57  ;;  %2448 = vmatpush3.bf16.msra.mxu1 %v1883_v57 }
  0x87   : > { %2679 = vrot.lane.b32.xlu0 %v3648_v31, %s3151_s19 }
  0x88   : > { %2684 = vrot.lane.b32.xlu1 %v2633_v47, %s3152_s25 }
  0x8b   : > { %2689 = vrot.lane.b32.xlu0 %v2638_v22, %s3152_s25 }
  0x8c   : > { %2694 = vrot.lane.b32.xlu1 %v4745_v25, %s3153_s26 }
  0x8f   : > { %2699 = vrot.lane.b32.xlu0 %v4746_v34, %s3153_s26  ;;  %v3842_v54 = vpop.permute.xlu0 %2469 }
  0x90   : > { %2704 = vrot.lane.b32.xlu1 %v3648_v31, %s3154_s30  ;;  %v4747_v31 = vld [vmem:[#allocation9_spill] sm:$0xff] }
  0x93   : > { %2709 = vrot.lane.b32.xlu0 %v3663_v33, %s3154_s30 }
  0x94   : > { %2714 = vrot.lane.b32.xlu1 %v4746_v34, %s3150_s14 }
  0x97   : > { %2719 = vrot.lane.b32.xlu0 %v4747_v31, %s3150_s14 }
  0x98   : > { %2724 = vrot.lane.b32.xlu1 %v3663_v33, %s3151_s19 }
  0x9b   : > { %2729 = vrot.lane.b32.xlu0 %v3670_v35, %s3151_s19 }
  0x9c   : > { %2734 = vrot.lane.b32.xlu1 %v2643_v30, %s3152_s25  ;;  %v4749_v30 = vld [vmem:[#allocation11_spill] sm:$0xff] }
  0x9f   : > { %2739 = vrot.lane.b32.xlu0 %v2648_v32, %s3152_s25 }
  0xa0   : > { %2744 = vrot.lane.b32.xlu1 %v4747_v31, %s3153_s26  ;;  %v3847_v8 = vpop.permute.xlu1 %2479 }
  0xa2   : > { %v3849_v58 = vpop.permute.xlu0 %2474 }
  0xa3   : > { %2749 = vrot.lane.b32.xlu0 %v4748_v53, %s3153_s26 }
  0xa4   : > { %2754 = vrot.lane.b32.xlu1 %v3670_v35, %s3154_s30  ;;  %v3855_v33 = vpop.permute.xlu1 %2484 }
  0xa6   : > { %v3857_v47 = vpop.permute.xlu0 %2489 }
  0xa7   : > { %2759 = vrot.lane.b32.xlu0 %v3672_v61, %s3154_s30 }
  0xa8   : > { %2764 = vrot.lane.b32.xlu1 %v4748_v53, %s3150_s14  ;;  %v3863_v22 = vpop.permute.xlu1 %2494 }
  0xaa   : > { %v3867_v32 = vpop.permute.xlu0 %2499 }
  0xab   : > { %2769 = vrot.lane.b32.xlu0 %v4749_v30, %s3150_s14 }
  0xac   : > { %2774 = vrot.lane.b32.xlu1 %v3672_v61, %s3151_s19  ;;  %v3873_v35 = vpop.permute.xlu1 %2504  ;;  %v4750_v61 = vld [vmem:[#allocation12_spill] sm:$0xff] }
  0xae   : > { %v3877_v39 = vpop.permute.xlu0 %2509 }
  0xaf   : > { %2779 = vrot.lane.b32.xlu0 %v3697_v20, %s3151_s19 }
  0xb0   : > { %2784 = vrot.lane.b32.xlu1 %v3779_v45, %s3152_s25  ;;  %v2813_v45 = vpack.i.bf16 %v3459_v7, %v3457_v6  ;;  %v2843_v6 = vpack.i.bf16 %v3509_v19, %v3507_v17  ;;  %v2873_v19 = vpack.i.bf16 %v3520_v12, %v3518_v40  ;;  %v2903_v12 = vpack.i.bf16 %v3539_v55, %v3537_v3 }
  0xb3   : > { %2789 = vrot.lane.b32.xlu0 %v3784_v38, %s3152_s25 }
  0xb4   : > { %2794 = vrot.lane.b32.xlu1 %v4749_v30, %s3153_s26 }
  0xb5   : > { %v3883_v52 = vpop.permute.xlu1 %2514 }
  0xb7   : > { %2799 = vrot.lane.b32.xlu0 %v4750_v61, %s3153_s26  ;;  %v3887_v59 = vpop.permute.xlu0 %2519 }
  0xb8   : > { %2804 = vrot.lane.b32.xlu1 %v3697_v20, %s3154_s30 }
  0xb9   : > { %v3893_v62 = vpop.permute.xlu1 %2524 }
  0xbb   : > { %2809 = vrot.lane.b32.xlu0 %v3702_v43, %s3154_s30 }
  0xbc   : > { %2814 = vrot.lane.b32.xlu1 %v2813_v45, %s3149_s9 }
  0xbd   : > { %v3898_v38 = vpop.permute.xlu0 %2529 }
  0xbe   : > { %4751 = vst [vmem:[#allocation5_spill] sm:$0xff] %v3898_v38  ;;  %v3900_v4 = vpop.permute.xlu1 %2534 }
  0xbf   : > { %4752 = vst [vmem:[#allocation3_spill] sm:$0xff] %v3900_v4  ;;  %2819 = vrot.lane.b32.xlu0 %v4750_v61, %s3150_s14 }
  0xc0   : > { %2824 = vrot.lane.b32.xlu1 %v4753_v9, %s3150_s14 }
  0xc1   : > { %v2540_v20 = vpop.permute.xlu0 %2539 }
  0xc2   : > { %v2545_v10 = vpop.permute.xlu1 %2544  ;;  %v2542_v44 = vunpack.i.h.bf16 %v2540_v20  ;;  %v2541_v18 = vunpack.i.l.bf16 %v2540_v20 }
  0xc3   : > { %2829 = vrot.lane.b32.xlu0 %v3702_v43, %s3151_s19  ;;  %v4754_v43 = vld [vmem:[#allocation14_spill] sm:$0xff]  ;;  %v2547_v28 = vunpack.i.h.bf16 %v2545_v10  ;;  %v2546_v11 = vunpack.i.l.bf16 %v2545_v10 }
  0xc4   : > { %2834 = vrot.lane.b32.xlu1 %v3704_v56, %s3151_s19  ;;  %v1579_v3 = vsel %vm412_vm0, %v3593_v14, %v2542_v44  ;;  %v1578_v55 = vsel %vm412_vm0, %v3588_v36, %v2541_v18 }
  0xc5   : > { %v3912_v7 = vpop.permute.xlu0 %2549  ;;  %v1580_v20 = vsel %vm412_vm0, %v3604_v26, %v2546_v11 }
  0xc6   : > { %v3914_v25 = vpop.permute.xlu1 %2554 }
  0xc7   : > { %2839 = vrot.lane.b32.xlu0 %v2813_v45, %s3152_s25 }
  0xc8   : > { %2844 = vrot.lane.b32.xlu1 %v2843_v6, %s3152_s25 }
  0xc9   : > { %v3918_v29 = vpop.permute.xlu0 %2559 }
  0xca   : > { %v3920_v48 = vpop.permute.xlu1 %2564 }
  0xcb   : > { %2849 = vrot.lane.b32.xlu0 %v4753_v9, %s3153_s26  ;;  %v1581_v9 = vsel %vm412_vm0, %v3609_v0, %v2547_v28  ;;  %v2933_v28 = vpack.i.bf16 %v3565_v50, %v3554_v1  ;;  %v2472_v50 = vunpack.i.h.bf16 %v3842_v54 }
  0xcc   : > { %2854 = vrot.lane.b32.xlu1 %v4754_v43, %s3153_s26 }
  0xcd   : > { %v3926_v57 = vpop.permute.xlu0 %2569 }
  0xce   : > { %v3928_v17 = vpop.permute.xlu1 %2574 }
  0xcf   : > { %2859 = vrot.lane.b32.xlu0 %v3704_v56, %s3154_s30  ;;  %v4755_v56 = vld [vmem:[#allocation15_spill] sm:$0xff] }
  0xd0   : > { %2864 = vrot.lane.b32.xlu1 %v3721_v41, %s3154_s30 }
  0xd1   : > { %v3936_v46 = vpop.permute.xlu0 %2579 }
  0xd2   : > { %v3938_v13 = vpop.permute.xlu1 %2584 }
  0xd3   : > { %2869 = vrot.lane.b32.xlu0 %v2843_v6, %s3149_s9 }
  0xd4   : > { %2874 = vrot.lane.b32.xlu1 %v2873_v19, %s3149_s9 }
  0xd5   : > { %v3942_v34 = vpop.permute.xlu0 %2589 }
  0xd6   : > { %v3944_v37 = vpop.permute.xlu1 %2594 }
  0xd7   : > { %2879 = vrot.lane.b32.xlu0 %v4754_v43, %s3150_s14  ;;  %v4762_v43 = vld [vmem:[#allocation16_spill] sm:$0xff] }
  0xd8   : > { %2884 = vrot.lane.b32.xlu1 %v4755_v56, %s3150_s14 }
  0xd9   : > { %v3950_v60 = vpop.permute.xlu0 %2599 }
  0xda   : > { %4756 = vst [vmem:[#allocation4_spill] sm:$0xff] %v3950_v60  ;;  %v3952_v40 = vpop.permute.xlu1 %2604 }
  0xdb   : > { %4757 = vst [vmem:[#allocation7_spill] sm:$0xff] %v3952_v40  ;;  %2889 = vrot.lane.b32.xlu0 %v3721_v41, %s3151_s19 }
  0xdc   : > { %2894 = vrot.lane.b32.xlu1 %v3725_v21, %s3151_s19 }
  0xdd   : > { %v3960_v51 = vpop.permute.xlu0 %2609 }
  0xde   : > { %4758 = vst [vmem:[#allocation6_spill] sm:$0xff] %v3960_v51  ;;  %v3962_v5 = vpop.permute.xlu1 %2614 }
  0xdf   : > { %4759 = vst [vmem:[#allocation8_spill] sm:$0xff] %v3962_v5  ;;  %2899 = vrot.lane.b32.xlu0 %v2873_v19, %s3152_s25  ;;  %v4766_v5 = vld [vmem:[#allocation18_spill] sm:$0xff] }
  0xe0   : > { %2904 = vrot.lane.b32.xlu1 %v2903_v12, %s3152_s25 }
  0xe1   : > { %v2620_v31 = vpop.permute.xlu0 %2619 }
  0xe2   : > { %v2622_v41 = vunpack.i.h.bf16 %v2620_v31  ;;  %v2621_v53 = vunpack.i.l.bf16 %v2620_v31  ;;  %v2625_v30 = vpop.permute.xlu1 %2624 }
  0xe3   : > { %2909 = vrot.lane.b32.xlu0 %v4755_v56, %s3153_s26  ;;  %v2627_v61 = vunpack.i.h.bf16 %v2625_v30  ;;  %v2626_v45 = vunpack.i.l.bf16 %v2625_v30 }
  0xe4   : > { %v3977_v10 = vsel %vm1582_vm6, %v1578_v55, %v2621_v53  ;;  %v3980_v6 = vsel %vm1582_vm6, %v1579_v3, %v2622_v41  ;;  %2914 = vrot.lane.b32.xlu1 %v4762_v43, %s3153_s26  ;;  %v4026_v3 = vpack.i.bf16 %v3575_v24, %v3573_v2  ;;  %v4028_v55 = vld [vmem:[#allocation2 + $0x180] sm:$0xff]  ;;  %v4043_v2 = vpack.i.bf16 %v3609_v0, %v3604_v26  ;;  %v4045_v24 = vld [vmem:[#allocation2 + $0x190] sm:$0x3] }
  0xe5   : > { %4760 = vst [vmem:[#allocation9_spill] sm:$0xff] %v3977_v10  ;;  %4761 = vst [vmem:[#allocation10_spill] sm:$0xff] %v3980_v6  ;;  %v3985_v19 = vsel %vm1582_vm6, %v1581_v9, %v2627_v61  ;;  %v3988_v56 = vsel %vm1582_vm6, %v1580_v20, %v2626_v45  ;;  %v3990_v44 = vpop.permute.xlu0 %2629  ;;  %v4030_v61 = vld [vmem:[#allocation2 + $0x188] sm:$0xff]  ;;  %v2477_v6 = vunpack.i.h.bf16 %v3849_v58  ;;  %v2552_v26 = vunpack.i.h.bf16 %v3912_v7 }
  0xe6   : > { %4763 = vst [vmem:[#allocation11_spill] sm:$0xff] %v3985_v19  ;;  %4764 = vst [vmem:[#allocation12_spill] sm:$0xff] %v3988_v56  ;;  %v3992_v18 = vpop.permute.xlu1 %2634  ;;  %v3110_v20 = vld [vmem:[#allocation2 + $0x8] sm:$0xff]  ;;  %v3111_v56 = vld [vmem:[#allocation2] sm:$0xff]  ;;  %v2551_v0 = vunpack.i.l.bf16 %v3912_v7  ;;  %v2556_v10 = vunpack.i.l.bf16 %v3914_v25  ;;  %v2632_v7 = vunpack.i.h.bf16 %v3990_v44 }
  0xe7   : > { %2919 = vrot.lane.b32.xlu0 %v3725_v21, %s3154_s30  ;;  %v4765_v21 = vld [vmem:[#allocation17_spill] sm:$0xff]  ;;  %v2637_v51 = vunpack.i.h.bf16 %v3992_v18  ;;  %v2636_v4 = vunpack.i.l.bf16 %v3992_v18 }
  0xe8   : > { %2924 = vrot.lane.b32.xlu1 %v3727_v27, %s3154_s30 }
  0xe9   : > { %v4000_v11 = vpop.permute.xlu0 %2639 }
  0xea   : > { %v4002_v31 = vpop.permute.xlu1 %2644 }
  0xeb   : > { %2929 = vrot.lane.b32.xlu0 %v2903_v12, %s3149_s9  ;;  %v2471_v12 = vunpack.i.l.bf16 %v3842_v54  ;;  %v4036_v54 = vpack.i.bf16 %v3593_v14, %v3588_v36 }
  0xec   : > { %2934 = vrot.lane.b32.xlu1 %v2933_v28, %s3149_s9 }
  0xed   : > { %v4006_v41 = vpop.permute.xlu0 %2649  ;;  %v1550_v19 = vsel %vm412_vm0, %v3111_v56, %v2471_v12  ;;  %v2557_v56 = vunpack.i.h.bf16 %v3914_v25 }
  0xee   : > { %v4008_v53 = vpop.permute.xlu1 %2654 }
  0xef   : > { %2939 = vrot.lane.b32.xlu0 %v4762_v43, %s3150_s14  ;;  %v1551_v43 = vsel %vm412_vm0, %v3110_v20, %v2472_v50  ;;  %v3112_v20 = vld [vmem:[#allocation2 + $0x18] sm:$0xff] }
  0xf0   : > { %2944 = vrot.lane.b32.xlu1 %v4765_v21, %s3150_s14 }
  0xf1   : > { %v4014_v30 = vpop.permute.xlu0 %2659 }
  0xf2   : > { %v4016_v1 = vpop.permute.xlu1 %2664 }
  0xf3   : > { %2949 = vrot.lane.b32.xlu0 %v3727_v27, %s3151_s19  ;;  %v2476_v27 = vunpack.i.l.bf16 %v3849_v58  ;;  %v2667_v38 = vunpack.i.h.bf16 %v4016_v1  ;;  %v2666_v12 = vunpack.i.l.bf16 %v4016_v1  ;;  %v1583_v58 = vsel %vm1582_vm6, %v1550_v19, %v2551_v0 }
  0xf4   : > { %2954 = vrot.lane.b32.xlu1 %v3729_v49, %s3151_s19 }
  0xf5   : > { %v4032_v45 = vpop.permute.xlu0 %2669  ;;  %v1552_v36 = vsel %vm412_vm0, %v3112_v20, %v2476_v27  ;;  %v3113_v27 = vld [vmem:[#allocation2 + $0x20] sm:$0xff]  ;;  %v1584_v20 = vsel %vm1582_vm6, %v1551_v43, %v2552_v26 }
  0xf6   : > { %v4039_v9 = vpop.permute.xlu1 %2674  ;;  %v1585_v25 = vsel %vm1582_vm6, %v1552_v36, %v2556_v10  ;;  %v2671_v43 = vunpack.i.l.bf16 %v4032_v45 }
  0xf7   : > { %2959 = vrot.lane.b32.xlu0 %v2933_v28, %s3152_s25  ;;  %v2631_v28 = vunpack.i.l.bf16 %v3990_v44  ;;  %v1553_v44 = vsel %vm412_vm0, %v3113_v27, %v2477_v6  ;;  %v2677_v1 = vunpack.i.h.bf16 %v4039_v9  ;;  %v1617_v6 = vsel %vm1615_vm7, %v1584_v20, %v2632_v7 }
  0xf8   : > { %2964 = vrot.lane.b32.xlu1 %v4026_v3, %s3152_s25  ;;  %v1586_v18 = vsel %vm1582_vm6, %v1553_v44, %v2557_v56  ;;  %v1618_v36 = vsel %vm1615_vm7, %v1585_v25, %v2636_v4 }
  0xf9   : > { %v4060_v50 = vpop.permute.xlu0 %2679  ;;  %v1616_v40 = vsel %vm1615_vm7, %v1583_v58, %v2631_v28  ;;  %v1619_v0 = vsel %vm1615_vm7, %v1586_v18, %v2637_v51  ;;  %v1650_v28 = vsel %vm1648_vm8, %v1617_v6, %v2667_v38 }
  0xfa   : > { %v2685_v14 = vpop.permute.xlu1 %2684  ;;  %v1649_v56 = vsel %vm1648_vm8, %v1616_v40, %v2666_v12  ;;  %v2681_v58 = vunpack.i.l.bf16 %v4060_v50  ;;  %v1683_v51 = vsel %vm1681_vm9, %v1650_v28, %v2677_v1  ;;  %v2682_v40 = vunpack.i.h.bf16 %v4060_v50 }
  0xfb   : > { %2969 = vrot.lane.b32.xlu0 %v4765_v21, %s3153_s26  ;;  %v2676_v21 = vunpack.i.l.bf16 %v4039_v9  ;;  %v2687_v19 = vunpack.i.h.bf16 %v2685_v14  ;;  %v2686_v26 = vunpack.i.l.bf16 %v2685_v14  ;;  %v2672_v9 = vunpack.i.h.bf16 %v4032_v45 }
  0xfc   : > { %2974 = vrot.lane.b32.xlu1 %v4766_v5, %s3153_s26  ;;  %v1651_v12 = vsel %vm1648_vm8, %v1618_v36, %v2671_v43 }
  0xfd   : > { %v2690_v60 = vpop.permute.xlu0 %2689  ;;  %v1682_v4 = vsel %vm1681_vm9, %v1649_v56, %v2676_v21  ;;  %v1716_v45 = vsel %vm1714_vm10, %v1683_v51, %v2687_v19  ;;  %v1652_v1 = vsel %vm1648_vm8, %v1619_v0, %v2672_v9  ;;  %v1684_v50 = vsel %vm1681_vm9, %v1651_v12, %v2681_v58 }
  0xfe   : > { %v2695_v10 = vpop.permute.xlu1 %2694  ;;  %v2691_v14 = vunpack.i.l.bf16 %v2690_v60  ;;  %v2692_v25 = vunpack.i.h.bf16 %v2690_v60  ;;  %v1685_v60 = vsel %vm1681_vm9, %v1652_v1, %v2682_v40  ;;  %v4767_v51 = vrot.slane %v4030_v61, 1 }
  0xff   : > { %2979 = vrot.lane.b32.xlu0 %v3729_v49, %s3154_s30  ;;  %v2697_v7 = vunpack.i.h.bf16 %v2695_v10  ;;  %v2696_v27 = vunpack.i.l.bf16 %v2695_v10  ;;  %v1715_v49 = vsel %vm1714_vm10, %v1682_v4, %v2686_v26  ;;  %v4768_v40 = vrot.slane %v4028_v55, 1 }
 0x100   : > { %2984 = vrot.lane.b32.xlu1 %v3742_v42, %s3154_s30  ;;  %v1717_v26 = vsel %vm1714_vm10, %v1684_v50, %v2691_v14  ;;  %v1718_v0 = vsel %vm1714_vm10, %v1685_v60, %v2692_v25  ;;  %v4771_v1 = vrot.slane %v4030_v61, 2  ;;  %v4772_v50 = vrot.slane %v4028_v55, 2 }
 0x101   : > { %v2700_v38 = vpop.permute.xlu0 %2699  ;;  %v1748_v43 = vsel %vm1747_vm11, %v1715_v49, %v2696_v27  ;;  %v1749_v19 = vsel %vm1747_vm11, %v1716_v45, %v2697_v7  ;;  %v2482_v27 = vunpack.i.h.bf16 %v3847_v8  ;;  %v761_v14 = vsel %vm594_vm3, %v4768_v40, %v4767_v51 }
 0x102   : > { %v2705_v44 = vpop.permute.xlu1 %2704  ;;  %v2702_v20 = vunpack.i.h.bf16 %v2700_v38  ;;  %v2701_v18 = vunpack.i.l.bf16 %v2700_v38  ;;  %v2481_v38 = vunpack.i.l.bf16 %v3847_v8  ;;  %v4769_v45 = vrot.slane %v4045_v24, 1 }
 0x103   : > { %2989 = vrot.lane.b32.xlu0 %v4026_v3, %s3149_s9  ;;  %v2707_v21 = vunpack.i.h.bf16 %v2705_v44  ;;  %v2706_v6 = vunpack.i.l.bf16 %v2705_v44  ;;  %v2487_v44 = vunpack.i.h.bf16 %v3855_v33  ;;  %v2486_v8 = vunpack.i.l.bf16 %v3855_v33 }
 0x104   : > { %2994 = vrot.lane.b32.xlu1 %v4036_v54, %s3149_s9  ;;  %v1750_v7 = vsel %vm1747_vm11, %v1717_v26, %v2701_v18  ;;  %v1751_v4 = vsel %vm1747_vm11, %v1718_v0, %v2702_v20  ;;  %v4774_v60 = vmov %v4771_v1  ;;  %v2562_v0 = vunpack.i.h.bf16 %v3918_v29 }
 0x105   : > { %v2710_v10 = vpop.permute.xlu0 %2709  ;;  %v1781_v3 = vsel %vm1780_vm12, %v1748_v43, %v2706_v6  ;;  %v1782_v36 = vsel %vm1780_vm12, %v1749_v19, %v2707_v21  ;;  %v4144_v6 = vpack.i.bf16 %v4030_v61, %v4028_v55  ;;  %v766_v43 = vsel %vm675_vm4, %v4772_v50, %v4771_v1 }
 0x106   : > { %v2712_v56 = vunpack.i.h.bf16 %v2710_v10  ;;  %v2711_v28 = vunpack.i.l.bf16 %v2710_v10  ;;  %v4115_v9 = vpop.permute.xlu1 %2714  ;;  %v1813_v58 = vpack.c.bf16 %v1782_v36, %v1781_v3  ;;  %v4773_v19 = vrot.slane %v4045_v24, 2  ;;  %v3114_v10 = vld [vmem:[#allocation2 + $0x38] sm:$0xff]  ;;  %v3115_v36 = vld [vmem:[#allocation2 + $0x30] sm:$0xff] }
 0x107   : > { %2999 = vrot.lane.b32.xlu0 %v4766_v5, %s3150_s14  ;;  %v4770_v5 = vmov %v4767_v51  ;;  %v1555_v33 = vsel %vm412_vm0, %v3114_v10, %v2482_v27  ;;  %v1554_v55 = vsel %vm412_vm0, %v3115_v36, %v2481_v38  ;;  %v2561_v24 = vunpack.i.l.bf16 %v3918_v29  ;;  %v3117_v51 = vld [vmem:[#allocation2 + $0x48] sm:$0xff] }
 0x108   : > { %v1783_v12 = vsel %vm1780_vm12, %v1750_v7, %v2711_v28  ;;  %v1784_v49 = vsel %vm1780_vm12, %v1751_v4, %v2712_v56  ;;  %3004 = vrot.lane.b32.xlu1 %v3627_v16, %s3150_s14  ;;  %2411 = vmatprep.mubr.msk.bf16.mxu0 %vm1832_vm13, %v1813_v58  ;;  %v763_v25 = vsel %vm594_vm3, %v4770_v5, %v4769_v45  ;;  %v2567_v61 = vunpack.i.h.bf16 %v3920_v48  ;;  %v3116_v56 = vld [vmem:[#allocation2 + $0x50] sm:$0xff]  ;;  %v4175_v4 = vld [vmem:[#allocation2 + $0x1a0] sm:$0xff] }
 0x109   : > { %v1814_v20 = vpack.c.bf16 %v1784_v49, %v1783_v12  ;;  %v4139_v18 = vpop.permute.xlu0 %2719  ;;  %v768_v26 = vsel %vm675_vm4, %v4774_v60, %v4773_v19  ;;  %v4160_v3 = vpack.i.bf16 %v763_v25, %v761_v14  ;;  %v1557_v28 = vsel %vm412_vm0, %v3116_v56, %v2487_v44 }
 0x10a   : > { %v2725_v21 = vpop.permute.xlu1 %2724  ;;  %v2641_v58 = vunpack.i.l.bf16 %v4000_v11  ;;  %v4173_v7 = vpack.i.bf16 %v768_v26, %v766_v43  ;;  %v1556_v29 = vsel %vm412_vm0, %v3117_v51, %v2486_v8  ;;  %v2492_v40 = vunpack.i.h.bf16 %v3857_v47 }
 0x10b   : > { %3009 = vrot.lane.b32.xlu0 %v3742_v42, %s3151_s19  ;;  %2412 = vmatmul.mubr.msk.bf16.vlgmr.msra.gmra.mrb[0].mxu0 %vm1832_vm13, %v1814_v20  ;;  %v2566_v42 = vunpack.i.l.bf16 %v3920_v48  ;;  %v2491_v14 = vunpack.i.l.bf16 %v3857_v47  ;;  %v2642_v38 = vunpack.i.h.bf16 %v4000_v11  ;;  %v2647_v48 = vunpack.i.h.bf16 %v4002_v31 }
 0x10c   : > { %3014 = vrot.lane.b32.xlu1 %v3753_v15, %s3151_s19  ;;  %v2646_v49 = vunpack.i.l.bf16 %v4002_v31  ;;  %v2717_v45 = vunpack.i.h.bf16 %v4115_v9  ;;  %v2716_v5 = vunpack.i.l.bf16 %v4115_v9  ;;  %v1588_v25 = vsel %vm1582_vm6, %v1555_v33, %v2562_v0 }
 0x10d   : > { %v4171_v27 = vpop.permute.xlu0 %2729  ;;  %v1587_v44 = vsel %vm1582_vm6, %v1554_v55, %v2561_v24  ;;  %v1590_v20 = vsel %vm1582_vm6, %v1557_v28, %v2567_v61  ;;  %v773_v11 = vrot.slane %v4175_v4, 1  ;;  %v1589_v31 = vsel %vm1582_vm6, %v1556_v29, %v2566_v42 }
 0x10e   : > { %v2735_v12 = vpop.permute.xlu1 %2734  ;;  %v1620_v8 = vsel %vm1615_vm7, %v1587_v44, %v2641_v58  ;;  %v2727_v1 = vunpack.i.h.bf16 %v2725_v21  ;;  %v2726_v9 = vunpack.i.l.bf16 %v2725_v21  ;;  %v2721_v43 = vunpack.i.l.bf16 %v4139_v18 }
 0x10f   : > { %3019 = vrot.lane.b32.xlu0 %v4036_v54, %s3152_s25  ;;  %v1621_v54 = vsel %vm1615_vm7, %v1588_v25, %v2642_v38  ;;  %v2737_v19 = vunpack.i.h.bf16 %v2735_v12  ;;  %v2736_v60 = vunpack.i.l.bf16 %v2735_v12  ;;  %v1622_v10 = vsel %vm1615_vm7, %v1589_v31, %v2646_v49  ;;  %v4221_v31 = vld [vmem:[#allocation2 + $0x198] sm:$0xff] }
 0x110   : > { %3024 = vrot.lane.b32.xlu1 %v4043_v2, %s3152_s25  ;;  %v1623_v33 = vsel %vm1615_vm7, %v1590_v20, %v2647_v48  ;;  %v1653_v36 = vsel %vm1648_vm8, %v1620_v8, %v2716_v5  ;;  %v1654_v55 = vsel %vm1648_vm8, %v1621_v54, %v2717_v45  ;;  %v2722_v21 = vunpack.i.h.bf16 %v4139_v18  ;;  %v540_v8 = vld [vmem:[#allocation2 + $0x1a8] sm:$0x3] }
 0x111   : > { %v2740_v50 = vpop.permute.xlu0 %2739  ;;  %v2731_v0 = vunpack.i.l.bf16 %v4171_v27  ;;  %v1686_v56 = vsel %vm1681_vm9, %v1653_v36, %v2726_v9  ;;  %v1687_v28 = vsel %vm1681_vm9, %v1654_v55, %v2727_v1  ;;  %v2732_v42 = vunpack.i.h.bf16 %v4171_v27 }
 0x112   : > { %v2745_v26 = vpop.permute.xlu1 %2744  ;;  %v2741_v58 = vunpack.i.l.bf16 %v2740_v50  ;;  %v1655_v29 = vsel %vm1648_vm8, %v1622_v10, %v2721_v43  ;;  %v1720_v18 = vsel %vm1714_vm10, %v1687_v28, %v2737_v19  ;;  %v2742_v38 = vunpack.i.h.bf16 %v2740_v50 }
 0x113   : > { %3029 = vrot.lane.b32.xlu0 %v3627_v16, %s3153_s26  ;;  %v2747_v24 = vunpack.i.h.bf16 %v2745_v26  ;;  %v2746_v61 = vunpack.i.l.bf16 %v2745_v26  ;;  %v1719_v16 = vsel %vm1714_vm10, %v1686_v56, %v2736_v60  ;;  %v1656_v25 = vsel %vm1648_vm8, %v1623_v33, %v2722_v21 }
 0x114   : > { %3034 = vrot.lane.b32.xlu1 %v3632_v23, %s3153_s26  ;;  %v1688_v27 = vsel %vm1681_vm9, %v1655_v29, %v2731_v0  ;;  %v1689_v1 = vsel %vm1681_vm9, %v1656_v25, %v2732_v42  ;;  %v772_v55 = vrot.slane %v4221_v31, 1  ;;  %v775_v21 = vrot.slane %v540_v8, 1 }
 0x115   : > { %v2750_v51 = vpop.permute.xlu0 %2749  ;;  %v1752_v44 = vsel %vm1747_vm11, %v1719_v16, %v2746_v61  ;;  %v1753_v20 = vsel %vm1747_vm11, %v1720_v18, %v2747_v24  ;;  %v1722_v43 = vsel %vm1714_vm10, %v1689_v1, %v2742_v38  ;;  %v2497_v0 = vunpack.i.h.bf16 %v3863_v22  ;;  %v3119_v16 = vld [vmem:[#allocation2 + $0x60] sm:$0xff] }
 0x116   : > { %v2755_v12 = vpop.permute.xlu1 %2754  ;;  %v2752_v48 = vunpack.i.h.bf16 %v2750_v51  ;;  %v2751_v49 = vunpack.i.l.bf16 %v2750_v51  ;;  %v778_v42 = vrot.slane %v4175_v4, 2  ;;  %v3118_v51 = vld [vmem:[#allocation2 + $0x68] sm:$0xff]  ;;  %v1558_v18 = vsel %vm412_vm0, %v3119_v16, %v2491_v14 }
 0x117   : > { %3039 = vrot.lane.b32.xlu0 %v3753_v15, %s3154_s30  ;;  %v2757_v45 = vunpack.i.h.bf16 %v2755_v12  ;;  %v2756_v5 = vunpack.i.l.bf16 %v2755_v12  ;;  %v1721_v15 = vsel %vm1714_vm10, %v1688_v27, %v2741_v58  ;;  %v780_v58 = vrot.slane %v540_v8, 2 }
 0x118   : > { %3044 = vrot.lane.b32.xlu1 %v3757_v63, %s3154_s30  ;;  %v1754_v33 = vsel %vm1747_vm11, %v1721_v15, %v2751_v49  ;;  %v1755_v36 = vsel %vm1747_vm11, %v1722_v43, %v2752_v48  ;;  %v1559_v29 = vsel %vm412_vm0, %v3118_v51, %v2492_v40  ;;  %v2496_v38 = vunpack.i.l.bf16 %v3863_v22  ;;  %v3120_v22 = vld [vmem:[#allocation2 + $0x80] sm:$0xff] }
 0x119   : > { %v1785_v9 = vsel %vm1780_vm12, %v1752_v44, %v2756_v5  ;;  %v1786_v50 = vsel %vm1780_vm12, %v1753_v20, %v2757_v45  ;;  %v2760_v54 = vpop.permute.xlu0 %2759  ;;  %v3083_v48 = vpack.i.bf16 %v4175_v4, %v4221_v31  ;;  %v4260_v40 = vsel %vm594_vm3, %v772_v55, %v773_v11  ;;  %v3121_v44 = vld [vmem:[#allocation2 + $0x78] sm:$0xff] }
 0x11a   : > { %v1815_v19 = vpack.c.bf16 %v1786_v50, %v1785_v9  ;;  %v2762_v60 = vunpack.i.h.bf16 %v2760_v54  ;;  %v2761_v26 = vunpack.i.l.bf16 %v2760_v54  ;;  %v4228_v10 = vpop.permute.xlu1 %2764  ;;  %v4265_v47 = vsel %vm594_vm3, %v773_v11, %v775_v21 }
 0x11b   : > { %3049 = vrot.lane.b32.xlu0 %v4043_v2, %s3149_s9  ;;  %v777_v2 = vrot.slane %v4221_v31, 2  ;;  %v1561_v14 = vsel %vm412_vm0, %v3120_v22, %v2497_v0  ;;  %v2572_v49 = vunpack.i.h.bf16 %v3926_v57  ;;  %v2571_v45 = vunpack.i.l.bf16 %v3926_v57 }
 0x11c   : > { %v1787_v24 = vsel %vm1780_vm12, %v1754_v33, %v2761_v26  ;;  %v1788_v61 = vsel %vm1780_vm12, %v1755_v36, %v2762_v60  ;;  %3054 = vrot.lane.b32.xlu1 %v4144_v6, %s3149_s9  ;;  %2415 = vmatprep.mubr.msk.bf16.mxu0 %vm1832_vm13, %v1815_v19  ;;  %v2576_v5 = vunpack.i.l.bf16 %v3928_v17  ;;  %v2651_v25 = vunpack.i.l.bf16 %v4006_v41 }
 0x11d   : > { %v1816_v56 = vpack.c.bf16 %v1788_v61, %v1787_v24  ;;  %v4241_v28 = vpop.permute.xlu0 %2769  ;;  %v4276_v11 = vsel %vm675_vm4, %v777_v2, %v778_v42  ;;  %v4279_v27 = vsel %vm675_vm4, %v778_v42, %v780_v58  ;;  %v1560_v20 = vsel %vm412_vm0, %v3121_v44, %v2496_v38 }
 0x11e   : > { %v2775_v12 = vpop.permute.xlu1 %2774  ;;  %v2652_v57 = vunpack.i.h.bf16 %v4006_v41  ;;  %v3093_v8 = vpack.i.bf16 %v4265_v47, %v4260_v40  ;;  %v2656_v1 = vunpack.i.l.bf16 %v4008_v53  ;;  %v2767_v15 = vunpack.i.h.bf16 %v4228_v10 }
 0x11f   : > { %3059 = vrot.lane.b32.xlu0 %v3632_v23, %s3150_s14  ;;  %2416 = vmatmul.mubr.msk.bf16.gmra.mrb[4].mxu0 %vm1832_vm13, %v1816_v56  ;;  %v2577_v23 = vunpack.i.h.bf16 %v3928_v17  ;;  %v2657_v17 = vunpack.i.h.bf16 %v4008_v53  ;;  %v2766_v9 = vunpack.i.l.bf16 %v4228_v10  ;;  %v1591_v50 = vsel %vm1582_vm6, %v1558_v18, %v2571_v45 }
 0x120   : > { %3064 = vrot.lane.b32.xlu1 %v4160_v3, %s3150_s14  ;;  %v1592_v54 = vsel %vm1582_vm6, %v1559_v29, %v2572_v49  ;;  %v3103_v43 = vpack.i.bf16 %v4279_v27, %v4276_v11  ;;  %v1593_v53 = vsel %vm1582_vm6, %v1560_v20, %v2576_v5  ;;  %v1624_v19 = vsel %vm1615_vm7, %v1591_v50, %v2651_v25 }
 0x121   : > { %v2780_v4 = vpop.permute.xlu0 %2779  ;;  %v1594_v41 = vsel %vm1582_vm6, %v1561_v14, %v2577_v23  ;;  %v2777_v60 = vunpack.i.h.bf16 %v2775_v12  ;;  %v2776_v26 = vunpack.i.l.bf16 %v2775_v12  ;;  %v2771_v33 = vunpack.i.l.bf16 %v4241_v28 }
 0x122   : > { %v2785_v31 = vpop.permute.xlu1 %2784  ;;  %v1626_v0 = vsel %vm1615_vm7, %v1593_v53, %v2656_v1  ;;  %v1627_v24 = vsel %vm1615_vm7, %v1594_v41, %v2657_v17  ;;  %v1657_v61 = vsel %vm1648_vm8, %v1624_v19, %v2766_v9  ;;  %v2772_v42 = vunpack.i.h.bf16 %v4241_v28 }
 0x123   : > { %3069 = vrot.lane.b32.xlu0 %v3757_v63, %s3151_s19  ;;  %v1625_v63 = vsel %vm1615_vm7, %v1592_v54, %v2652_v57  ;;  %v2787_v36 = vunpack.i.h.bf16 %v2785_v31  ;;  %v2786_v55 = vunpack.i.l.bf16 %v2785_v31  ;;  %v2781_v2 = vunpack.i.l.bf16 %v2780_v4 }
 0x124   : > { %3074 = vrot.lane.b32.xlu1 %v4173_v7, %s3151_s19  ;;  %v1658_v56 = vsel %vm1648_vm8, %v1625_v63, %v2767_v15  ;;  %v1690_v29 = vsel %vm1681_vm9, %v1657_v61, %v2776_v26  ;;  %v2782_v18 = vunpack.i.h.bf16 %v2780_v4  ;;  %v1659_v40 = vsel %vm1648_vm8, %v1626_v0, %v2771_v33  ;;  %v3122_v61 = vld [vmem:[#allocation2 + $0x98] sm:$0xff] }
 0x125   : > { %v2790_v10 = vpop.permute.xlu0 %2789  ;;  %v1691_v16 = vsel %vm1681_vm9, %v1658_v56, %v2777_v60  ;;  %v1723_v47 = vsel %vm1714_vm10, %v1690_v29, %v2786_v55  ;;  %v1660_v23 = vsel %vm1648_vm8, %v1627_v24, %v2772_v42  ;;  %v1692_v5 = vsel %vm1681_vm9, %v1659_v40, %v2781_v2  ;;  %v3123_v56 = vld [vmem:[#allocation2 + $0x90] sm:$0xff] }
 0x126   : > { %v2795_v21 = vpop.permute.xlu1 %2794  ;;  %v2791_v38 = vunpack.i.l.bf16 %v2790_v10  ;;  %v2792_v22 = vunpack.i.h.bf16 %v2790_v10  ;;  %v1693_v11 = vsel %vm1681_vm9, %v1660_v23, %v2782_v18  ;;  %v2502_v60 = vunpack.i.h.bf16 %v3867_v32 }
 0x127   : > { %3079 = vrot.lane.b32.xlu0 %v4144_v6, %s3152_s25  ;;  %v2797_v58 = vunpack.i.h.bf16 %v2795_v21  ;;  %v2796_v51 = vunpack.i.l.bf16 %v2795_v21  ;;  %v1724_v6 = vsel %vm1714_vm10, %v1691_v16, %v2787_v36  ;;  %v2501_v26 = vunpack.i.l.bf16 %v3867_v32 }
 0x128   : > { %3084 = vrot.lane.b32.xlu1 %v3083_v48, %s3152_s25  ;;  %v1725_v27 = vsel %vm1714_vm10, %v1692_v5, %v2791_v38  ;;  %v1726_v57 = vsel %vm1714_vm10, %v1693_v11, %v2792_v22  ;;  %v2507_v10 = vunpack.i.h.bf16 %v3873_v35  ;;  %v2582_v63 = vunpack.i.h.bf16 %v3936_v46 }
 0x129   : > { %v2800_v12 = vpop.permute.xlu0 %2799  ;;  %v1756_v25 = vsel %vm1747_vm11, %v1723_v47, %v2796_v51  ;;  %v1757_v4 = vsel %vm1747_vm11, %v1724_v6, %v2797_v58  ;;  %v2581_v33 = vunpack.i.l.bf16 %v3936_v46  ;;  %v2587_v36 = vunpack.i.h.bf16 %v3938_v13  ;;  %v3124_v58 = vld [vmem:[#allocation2 + $0xb0] sm:$0xff]  ;;  %v3125_v51 = vld [vmem:[#allocation2 + $0xa8] sm:$0xff] }
 0x12a   : > { %v2805_v28 = vpop.permute.xlu1 %2804  ;;  %v2802_v14 = vunpack.i.h.bf16 %v2800_v12  ;;  %v2801_v49 = vunpack.i.l.bf16 %v2800_v12  ;;  %v2586_v55 = vunpack.i.l.bf16 %v3938_v13  ;;  %v2662_v0 = vunpack.i.h.bf16 %v4014_v30 }
 0x12b   : > { %3089 = vrot.lane.b32.xlu0 %v4160_v3, %s3153_s26  ;;  %v2807_v48 = vunpack.i.h.bf16 %v2805_v28  ;;  %v2806_v45 = vunpack.i.l.bf16 %v2805_v28  ;;  %v2661_v24 = vunpack.i.l.bf16 %v4014_v30  ;;  %v1563_v32 = vsel %vm412_vm0, %v3122_v61, %v2502_v60 }
 0x12c   : > { %3094 = vrot.lane.b32.xlu1 %v3093_v8, %s3153_s26  ;;  %v1758_v9 = vsel %vm1747_vm11, %v1725_v27, %v2801_v49  ;;  %v1759_v50 = vsel %vm1747_vm11, %v1726_v57, %v2802_v14  ;;  %v1565_v46 = vsel %vm412_vm0, %v3124_v58, %v2507_v10  ;;  %v1596_v16 = vsel %vm1582_vm6, %v1563_v32, %v2582_v63 }
 0x12d   : > { %v1789_v44 = vsel %vm1780_vm12, %v1756_v25, %v2806_v45  ;;  %v1790_v3 = vsel %vm1780_vm12, %v1757_v4, %v2807_v48  ;;  %v2810_v20 = vpop.permute.xlu0 %2809  ;;  %v1598_v30 = vsel %vm1582_vm6, %v1565_v46, %v2587_v36  ;;  %v1629_v22 = vsel %vm1615_vm7, %v1596_v16, %v2662_v0 }
 0x12e   : > { %v1817_v31 = vpack.c.bf16 %v1790_v3, %v1789_v44  ;;  %v2812_v17 = vunpack.i.h.bf16 %v2810_v20  ;;  %v2811_v1 = vunpack.i.l.bf16 %v2810_v20  ;;  %v2815_v15 = vpop.permute.xlu1 %2814 }
 0x12f   : > { %3099 = vrot.lane.b32.xlu0 %v4173_v7, %s3154_s30  ;;  %v2506_v7 = vunpack.i.l.bf16 %v3873_v35  ;;  %v1562_v35 = vsel %vm412_vm0, %v3123_v56, %v2501_v26  ;;  %v2817_v42 = vunpack.i.h.bf16 %v2815_v15  ;;  %v2816_v2 = vunpack.i.l.bf16 %v2815_v15 }
 0x130   : > { %v1791_v8 = vsel %vm1780_vm12, %v1758_v9, %v2811_v1  ;;  %v1792_v54 = vsel %vm1780_vm12, %v1759_v50, %v2812_v17  ;;  %3104 = vrot.lane.b32.xlu1 %v3103_v43, %s3154_s30  ;;  %2419 = vmatprep.mubr.msk.bf16.mxu0 %vm1832_vm13, %v1817_v31  ;;  %v1595_v13 = vsel %vm1582_vm6, %v1562_v35, %v2581_v33 }
 0x131   : > { %v1818_v41 = vpack.c.bf16 %v1792_v54, %v1791_v8  ;;  %v2820_v53 = vpop.permute.xlu0 %2819  ;;  %v1564_v29 = vsel %vm412_vm0, %v3125_v51, %v2506_v7  ;;  %v1628_v6 = vsel %vm1615_vm7, %v1595_v13, %v2661_v24  ;;  %v1631_v49 = vsel %vm1615_vm7, %v1598_v30, %v2817_v42 }
 0x132   : > { %v2825_v19 = vpop.permute.xlu1 %2824  ;;  %v1597_v38 = vsel %vm1582_vm6, %v1564_v29, %v2586_v55  ;;  %v2822_v12 = vunpack.i.h.bf16 %v2820_v53  ;;  %v2821_v40 = vunpack.i.l.bf16 %v2820_v53  ;;  %v2511_v30 = vunpack.i.l.bf16 %v3877_v39 }
 0x133   : > { %2420 = vmatmul.mubr.msk.bf16.gmra.mrb[8].mxu0 %vm1832_vm13, %v1818_v41  ;;  %v2827_v28 = vunpack.i.h.bf16 %v2825_v19  ;;  %v2826_v14 = vunpack.i.l.bf16 %v2825_v19  ;;  %v1630_v48 = vsel %vm1615_vm7, %v1597_v38, %v2816_v2  ;;  %v2517_v38 = vunpack.i.h.bf16 %v3883_v52 }
 0x134   : > { %v1661_v44 = vsel %vm1648_vm8, %v1628_v6, %v2821_v40  ;;  %v1662_v3 = vsel %vm1648_vm8, %v1629_v22, %v2822_v12  ;;  %v2516_v12 = vunpack.i.l.bf16 %v3883_v52  ;;  %v2592_v40 = vunpack.i.h.bf16 %v3942_v34 }
 0x135   : > { %v2830_v43 = vpop.permute.xlu0 %2829  ;;  %v1663_v17 = vsel %vm1648_vm8, %v1630_v48, %v2826_v14  ;;  %v1664_v1 = vsel %vm1648_vm8, %v1631_v49, %v2827_v28  ;;  %v2597_v22 = vunpack.i.h.bf16 %v3944_v37  ;;  %v2596_v28 = vunpack.i.l.bf16 %v3944_v37 }
 0x136   : > { %v2835_v21 = vpop.permute.xlu1 %2834  ;;  %v2832_v45 = vunpack.i.h.bf16 %v2830_v43  ;;  %v2831_v23 = vunpack.i.l.bf16 %v2830_v43 }
 0x137   : > { %v2837_v5 = vunpack.i.h.bf16 %v2835_v21  ;;  %v2836_v25 = vunpack.i.l.bf16 %v2835_v21 }
 0x138   : > { %v1694_v50 = vsel %vm1681_vm9, %v1661_v44, %v2831_v23  ;;  %v1695_v8 = vsel %vm1681_vm9, %v1662_v3, %v2832_v45  ;;  %v3126_v45 = vld [vmem:[#allocation2 + $0xc8] sm:$0xff] }
 0x139   : > { %v2840_v18 = vpop.permute.xlu0 %2839  ;;  %v1696_v53 = vsel %vm1681_vm9, %v1663_v17, %v2836_v25  ;;  %v1697_v19 = vsel %vm1681_vm9, %v1664_v1, %v2837_v5 }
 0x13a   : > { %v2845_v47 = vpop.permute.xlu1 %2844  ;;  %v2842_v4 = vunpack.i.h.bf16 %v2840_v18  ;;  %v2841_v11 = vunpack.i.l.bf16 %v2840_v18  ;;  %v2512_v18 = vunpack.i.h.bf16 %v3877_v39  ;;  %v3127_v39 = vld [vmem:[#allocation2 + $0xc0] sm:$0xff] }
 0x13b   : > { %v2847_v20 = vunpack.i.h.bf16 %v2845_v47  ;;  %v2846_v57 = vunpack.i.l.bf16 %v2845_v47  ;;  %v2591_v47 = vunpack.i.l.bf16 %v3942_v34  ;;  %v1566_v5 = vsel %vm412_vm0, %v3127_v39, %v2511_v30  ;;  %v3129_v34 = vld [vmem:[#allocation2 + $0xd8] sm:$0xff] }
 0x13c   : > { %v1727_v60 = vsel %vm1714_vm10, %v1694_v50, %v2841_v11  ;;  %v1728_v26 = vsel %vm1714_vm10, %v1695_v8, %v2842_v4  ;;  %v1567_v23 = vsel %vm412_vm0, %v3126_v45, %v2512_v18  ;;  %v3128_v4 = vld [vmem:[#allocation2 + $0xe0] sm:$0xff] }
 0x13d   : > { %v2850_v27 = vpop.permute.xlu0 %2849  ;;  %v1729_v7 = vsel %vm1714_vm10, %v1696_v53, %v2846_v57  ;;  %v1730_v63 = vsel %vm1714_vm10, %v1697_v19, %v2847_v20  ;;  %v1569_v11 = vsel %vm412_vm0, %v3128_v4, %v2517_v38  ;;  %v1599_v44 = vsel %vm1582_vm6, %v1566_v5, %v2591_v47 }
 0x13e   : > { %v2855_v31 = vpop.permute.xlu1 %2854  ;;  %v2852_v15 = vunpack.i.h.bf16 %v2850_v27  ;;  %v2851_v9 = vunpack.i.l.bf16 %v2850_v27  ;;  %v1568_v27 = vsel %vm412_vm0, %v3129_v34, %v2516_v12  ;;  %v1600_v37 = vsel %vm1582_vm6, %v1567_v23, %v2592_v40 }
 0x13f   : > { %v2857_v54 = vunpack.i.h.bf16 %v2855_v31  ;;  %v2856_v41 = vunpack.i.l.bf16 %v2855_v31  ;;  %v1602_v20 = vsel %vm1582_vm6, %v1569_v11, %v2597_v22  ;;  %v1601_v57 = vsel %vm1582_vm6, %v1568_v27, %v2596_v28 }
 0x140   : > { %v1760_v55 = vsel %vm1747_vm11, %v1727_v60, %v2851_v9  ;;  %v1761_v21 = vsel %vm1747_vm11, %v1728_v26, %v2852_v15  ;;  %v2522_v34 = vunpack.i.h.bf16 %v3887_v59  ;;  %v2521_v27 = vunpack.i.l.bf16 %v3887_v59  ;;  %v3131_v59 = vld [vmem:[#allocation2 + $0xf0] sm:$0xff] }
 0x141   : > { %v2860_v10 = vpop.permute.xlu0 %2859  ;;  %v1762_v61 = vsel %vm1747_vm11, %v1729_v7, %v2856_v41  ;;  %v1763_v32 = vsel %vm1747_vm11, %v1730_v63, %v2857_v54 }
 0x142   : > { %v2862_v33 = vunpack.i.h.bf16 %v2860_v10  ;;  %v2861_v43 = vunpack.i.l.bf16 %v2860_v10  ;;  %v2865_v36 = vpop.permute.xlu1 %2864 }
 0x143   : > { %v2867_v0 = vunpack.i.h.bf16 %v2865_v36  ;;  %v2866_v24 = vunpack.i.l.bf16 %v2865_v36 }
 0x144   : > { %v1793_v56 = vsel %vm1780_vm12, %v1760_v55, %v2861_v43  ;;  %v1794_v35 = vsel %vm1780_vm12, %v1761_v21, %v2862_v33 }
 0x145   : > { %v1819_v42 = vpack.c.bf16 %v1794_v35, %v1793_v56  ;;  %v1795_v2 = vsel %vm1780_vm12, %v1762_v61, %v2866_v24  ;;  %v1796_v58 = vsel %vm1780_vm12, %v1763_v32, %v2867_v0  ;;  %v2870_v46 = vpop.permute.xlu0 %2869 }
 0x146   : > { %v1820_v51 = vpack.c.bf16 %v1796_v58, %v1795_v2  ;;  %v2875_v29 = vpop.permute.xlu1 %2874  ;;  %v2872_v49 = vunpack.i.h.bf16 %v2870_v46  ;;  %v2871_v48 = vunpack.i.l.bf16 %v2870_v46 }
 0x147   : > { %2423 = vmatprep.mubr.msk.bf16.mxu0 %vm1832_vm13, %v1819_v42  ;;  %v2877_v25 = vunpack.i.h.bf16 %v2875_v29  ;;  %v2876_v52 = vunpack.i.l.bf16 %v2875_v29 }
 0x148   : > { %2424 = vmatmul.mubr.msk.bf16.gmra.mrb[12].mxu0 %vm1832_vm13, %v1820_v51  ;;  %v1632_v15 = vsel %vm1615_vm7, %v1599_v44, %v2871_v48  ;;  %v1633_v9 = vsel %vm1615_vm7, %v1600_v37, %v2872_v49  ;;  %v2527_v44 = vunpack.i.h.bf16 %v3893_v62  ;;  %v2526_v37 = vunpack.i.l.bf16 %v3893_v62 }
 0x149   : > { %v2880_v13 = vpop.permute.xlu0 %2879  ;;  %v1635_v54 = vsel %vm1615_vm7, %v1602_v20, %v2877_v25  ;;  %v1634_v41 = vsel %vm1615_vm7, %v1601_v57, %v2876_v52 }
 0x14a   : > { %v2885_v16 = vpop.permute.xlu1 %2884  ;;  %v2882_v31 = vunpack.i.h.bf16 %v2880_v13  ;;  %v2881_v17 = vunpack.i.l.bf16 %v2880_v13 }
 0x14b   : > { %v2887_v50 = vunpack.i.h.bf16 %v2885_v16  ;;  %v2886_v8 = vunpack.i.l.bf16 %v2885_v16 }
 0x14c   : > { %v1665_v33 = vsel %vm1648_vm8, %v1632_v15, %v2881_v17  ;;  %v1666_v43 = vsel %vm1648_vm8, %v1633_v9, %v2882_v31  ;;  %v4776_v17 = vld [vmem:[#allocation7_spill] sm:$0xff] }
 0x14d   : > { %v2890_v6 = vpop.permute.xlu0 %2889  ;;  %v1667_v0 = vsel %vm1648_vm8, %v1634_v41, %v2886_v8  ;;  %v1668_v24 = vsel %vm1648_vm8, %v1635_v54, %v2887_v50  ;;  %v2606_v15 = vunpack.i.l.bf16 %v4776_v17  ;;  %v3130_v54 = vld [vmem:[#allocation2 + $0xf8] sm:$0xff] }
 0x14e   : > { %v2895_v14 = vpop.permute.xlu1 %2894  ;;  %v2892_v53 = vunpack.i.h.bf16 %v2890_v6  ;;  %v2891_v19 = vunpack.i.l.bf16 %v2890_v6  ;;  %v1571_v41 = vsel %vm412_vm0, %v3130_v54, %v2522_v34 }
 0x14f   : > { %v2897_v60 = vunpack.i.h.bf16 %v2895_v14  ;;  %v2896_v26 = vunpack.i.l.bf16 %v2895_v14 }
 0x150   : > { %v1698_v56 = vsel %vm1681_vm9, %v1665_v33, %v2891_v19  ;;  %v1699_v35 = vsel %vm1681_vm9, %v1666_v43, %v2892_v53  ;;  %v1570_v53 = vsel %vm412_vm0, %v3131_v59, %v2521_v27 }
 0x151   : > { %v2900_v3 = vpop.permute.xlu0 %2899  ;;  %v1700_v58 = vsel %vm1681_vm9, %v1667_v0, %v2896_v26  ;;  %v1701_v46 = vsel %vm1681_vm9, %v1668_v24, %v2897_v60  ;;  %v3132_v60 = vld [vmem:[#allocation2 + $0x110] sm:$0xff] }
 0x152   : > { %v2905_v1 = vpop.permute.xlu1 %2904  ;;  %v2902_v10 = vunpack.i.h.bf16 %v2900_v3  ;;  %v2901_v7 = vunpack.i.l.bf16 %v2900_v3  ;;  %v4775_v3 = vld [vmem:[#allocation4_spill] sm:$0xff]  ;;  %v1573_v26 = vsel %vm412_vm0, %v3132_v60, %v2527_v44  ;;  %v4777_v60 = vld [vmem:[#allocation5_spill] sm:$0xff] }
 0x153   : > { %v2907_v36 = vunpack.i.h.bf16 %v2905_v1  ;;  %v2906_v55 = vunpack.i.l.bf16 %v2905_v1  ;;  %v2602_v20 = vunpack.i.h.bf16 %v4775_v3  ;;  %v2601_v57 = vunpack.i.l.bf16 %v4775_v3 }
 0x154   : > { %v1731_v51 = vsel %vm1714_vm10, %v1698_v56, %v2901_v7  ;;  %v1732_v29 = vsel %vm1714_vm10, %v1699_v35, %v2902_v10  ;;  %v2607_v1 = vunpack.i.h.bf16 %v4776_v17  ;;  %v3133_v10 = vld [vmem:[#allocation2 + $0x108] sm:$0xff] }
 0x155   : > { %v2910_v63 = vpop.permute.xlu0 %2909  ;;  %v1733_v16 = vsel %vm1714_vm10, %v1700_v58, %v2906_v55  ;;  %v1734_v18 = vsel %vm1714_vm10, %v1701_v46, %v2907_v36  ;;  %v1572_v7 = vsel %vm412_vm0, %v3133_v10, %v2526_v37  ;;  %v1604_v33 = vsel %vm1582_vm6, %v1571_v41, %v2602_v20 }
 0x156   : > { %v2915_v21 = vpop.permute.xlu1 %2914  ;;  %v2912_v61 = vunpack.i.h.bf16 %v2910_v63  ;;  %v2911_v32 = vunpack.i.l.bf16 %v2910_v63  ;;  %v1603_v63 = vsel %vm1582_vm6, %v1570_v53, %v2601_v57  ;;  %v1606_v36 = vsel %vm1582_vm6, %v1573_v26, %v2607_v1 }
 0x157   : > { %v2917_v42 = vunpack.i.h.bf16 %v2915_v21  ;;  %v2916_v2 = vunpack.i.l.bf16 %v2915_v21  ;;  %v1605_v55 = vsel %vm1582_vm6, %v1572_v7, %v2606_v15  ;;  %v2532_v26 = vunpack.i.h.bf16 %v4777_v60  ;;  %v4778_v7 = vld [vmem:[#allocation3_spill] sm:$0xff] }
 0x158   : > { %v1764_v6 = vsel %vm1747_vm11, %v1731_v51, %v2911_v32  ;;  %v1765_v22 = vsel %vm1747_vm11, %v1732_v29, %v2912_v61  ;;  %v2531_v10 = vunpack.i.l.bf16 %v4777_v60 }
 0x159   : > { %v2920_v13 = vpop.permute.xlu0 %2919  ;;  %v1766_v28 = vsel %vm1747_vm11, %v1733_v16, %v2916_v2  ;;  %v1767_v14 = vsel %vm1747_vm11, %v1734_v18, %v2917_v42 }
 0x15a   : > { %v2922_v30 = vunpack.i.h.bf16 %v2920_v13  ;;  %v2921_v38 = vunpack.i.l.bf16 %v2920_v13  ;;  %v2925_v12 = vpop.permute.xlu1 %2924 }
 0x15b   : > { %v2927_v40 = vunpack.i.h.bf16 %v2925_v12  ;;  %v2926_v47 = vunpack.i.l.bf16 %v2925_v12 }
 0x15c   : > { %v1797_v49 = vsel %vm1780_vm12, %v1764_v6, %v2921_v38  ;;  %v1798_v48 = vsel %vm1780_vm12, %v1765_v22, %v2922_v30 }
 0x15d   : > { %v1799_v45 = vsel %vm1780_vm12, %v1766_v28, %v2926_v47  ;;  %v1800_v23 = vsel %vm1780_vm12, %v1767_v14, %v2927_v40  ;;  %v2930_v39 = vpop.permute.xlu0 %2929  ;;  %v1821_v5 = vpack.c.bf16 %v1798_v48, %v1797_v49 }
 0x15e   : > { %v1822_v25 = vpack.c.bf16 %v1800_v23, %v1799_v45  ;;  %v2935_v52 = vpop.permute.xlu1 %2934  ;;  %v2932_v50 = vunpack.i.h.bf16 %v2930_v39  ;;  %v2931_v8 = vunpack.i.l.bf16 %v2930_v39 }
 0x15f   : > { %2427 = vmatprep.mubr.msk.bf16.mxu1 %vm1832_vm13, %v1821_v5  ;;  %v2937_v19 = vunpack.i.h.bf16 %v2935_v52  ;;  %v2936_v62 = vunpack.i.l.bf16 %v2935_v52 }
 0x160   : > { %2428 = vmatmul.mubr.msk.bf16.vlgmr.msra.gmra.mrb[0].mxu1 %vm1832_vm13, %v1822_v25  ;;  %v1636_v61 = vsel %vm1615_vm7, %v1603_v63, %v2931_v8  ;;  %v1637_v32 = vsel %vm1615_vm7, %v1604_v33, %v2932_v50  ;;  %v2537_v63 = vunpack.i.h.bf16 %v4778_v7  ;;  %v2536_v33 = vunpack.i.l.bf16 %v4778_v7 }
 0x161   : > { %v2940_v4 = vpop.permute.xlu0 %2939  ;;  %v1639_v42 = vsel %vm1615_vm7, %v1606_v36, %v2937_v19  ;;  %v1638_v2 = vsel %vm1615_vm7, %v1605_v55, %v2936_v62 }
 0x162   : > { %v2945_v11 = vpop.permute.xlu1 %2944  ;;  %v2942_v21 = vunpack.i.h.bf16 %v2940_v4  ;;  %v2941_v0 = vunpack.i.l.bf16 %v2940_v4 }
 0x163   : > { %v2947_v56 = vunpack.i.h.bf16 %v2945_v11  ;;  %v2946_v35 = vunpack.i.l.bf16 %v2945_v11 }
 0x164   : > { %v1669_v30 = vsel %vm1648_vm8, %v1636_v61, %v2941_v0  ;;  %v1670_v38 = vsel %vm1648_vm8, %v1637_v32, %v2942_v21  ;;  %v4780_v0 = vld [vmem:[#allocation8_spill] sm:$0xff] }
 0x165   : > { %v2950_v31 = vpop.permute.xlu0 %2949  ;;  %v1671_v6 = vsel %vm1648_vm8, %v1638_v2, %v2946_v35  ;;  %v1672_v22 = vsel %vm1648_vm8, %v1639_v42, %v2947_v56  ;;  %v2616_v61 = vunpack.i.l.bf16 %v4780_v0  ;;  %v3134_v42 = vld [vmem:[#allocation2 + $0x128] sm:$0xff] }
 0x166   : > { %v2955_v9 = vpop.permute.xlu1 %2954  ;;  %v2952_v58 = vunpack.i.h.bf16 %v2950_v31  ;;  %v2951_v46 = vunpack.i.l.bf16 %v2950_v31  ;;  %v1575_v2 = vsel %vm412_vm0, %v3134_v42, %v2532_v26 }
 0x167   : > { %v2957_v51 = vunpack.i.h.bf16 %v2955_v9  ;;  %v2956_v29 = vunpack.i.l.bf16 %v2955_v9 }
 0x168   : > { %v1702_v49 = vsel %vm1681_vm9, %v1669_v30, %v2951_v46  ;;  %v1703_v48 = vsel %vm1681_vm9, %v1670_v38, %v2952_v58  ;;  %v3135_v58 = vld [vmem:[#allocation2 + $0x120] sm:$0xff] }
 0x169   : > { %v2960_v43 = vpop.permute.xlu0 %2959  ;;  %v1704_v39 = vsel %vm1681_vm9, %v1671_v6, %v2956_v29  ;;  %v1705_v5 = vsel %vm1681_vm9, %v1672_v22, %v2957_v51  ;;  %v1574_v46 = vsel %vm412_vm0, %v3135_v58, %v2531_v10 }
 0x16a   : > { %v2965_v24 = vpop.permute.xlu1 %2964  ;;  %v2962_v13 = vunpack.i.h.bf16 %v2960_v43  ;;  %v2961_v16 = vunpack.i.l.bf16 %v2960_v43  ;;  %v4779_v43 = vld [vmem:[#allocation6_spill] sm:$0xff] }
 0x16b   : > { %v2967_v12 = vunpack.i.h.bf16 %v2965_v24  ;;  %v2966_v40 = vunpack.i.l.bf16 %v2965_v24  ;;  %v2612_v36 = vunpack.i.h.bf16 %v4779_v43  ;;  %v2611_v55 = vunpack.i.l.bf16 %v4779_v43 }
 0x16c   : > { %v1735_v25 = vsel %vm1714_vm10, %v1702_v49, %v2961_v16  ;;  %v1736_v52 = vsel %vm1714_vm10, %v1703_v48, %v2962_v13  ;;  %v2617_v24 = vunpack.i.h.bf16 %v4780_v0  ;;  %v3136_v13 = vld [vmem:[#allocation2 + $0x140] sm:$0xff] }
 0x16d   : > { %v2970_v18 = vpop.permute.xlu0 %2969  ;;  %v1737_v11 = vsel %vm1714_vm10, %v1704_v39, %v2966_v40  ;;  %v1738_v34 = vsel %vm1714_vm10, %v1705_v5, %v2967_v12  ;;  %v1577_v16 = vsel %vm412_vm0, %v3136_v13, %v2537_v63  ;;  %v1607_v38 = vsel %vm1582_vm6, %v1574_v46, %v2611_v55 }
 0x16e   : > { %v2975_v47 = vpop.permute.xlu1 %2974  ;;  %v2972_v28 = vunpack.i.h.bf16 %v2970_v18  ;;  %v2971_v14 = vunpack.i.l.bf16 %v2970_v18  ;;  %v3137_v18 = vld [vmem:[#allocation2 + $0x138] sm:$0xff]  ;;  %v1608_v12 = vsel %vm1582_vm6, %v1575_v2, %v2612_v36 }
 0x16f   : > { %v2977_v45 = vunpack.i.h.bf16 %v2975_v47  ;;  %v2976_v23 = vunpack.i.l.bf16 %v2975_v47  ;;  %v1576_v30 = vsel %vm412_vm0, %v3137_v18, %v2536_v33  ;;  %v1610_v47 = vsel %vm1582_vm6, %v1577_v16, %v2617_v24 }
 0x170   : > { %v1768_v3 = vsel %vm1747_vm11, %v1735_v25, %v2971_v14  ;;  %v1769_v20 = vsel %vm1747_vm11, %v1736_v52, %v2972_v28  ;;  %v1609_v6 = vsel %vm1582_vm6, %v1576_v30, %v2616_v61 }
 0x171   : > { %v2980_v4 = vpop.permute.xlu0 %2979  ;;  %v1770_v17 = vsel %vm1747_vm11, %v1737_v11, %v2976_v23  ;;  %v1771_v1 = vsel %vm1747_vm11, %v1738_v34, %v2977_v45 }
 0x172   : > { %v2982_v27 = vunpack.i.h.bf16 %v2980_v4  ;;  %v2981_v44 = vunpack.i.l.bf16 %v2980_v4  ;;  %v2985_v37 = vpop.permute.xlu1 %2984 }
 0x173   : > { %v2987_v57 = vunpack.i.h.bf16 %v2985_v37  ;;  %v2986_v31 = vunpack.i.l.bf16 %v2985_v37 }
 0x174   : > { %v1801_v15 = vsel %vm1780_vm12, %v1768_v3, %v2981_v44  ;;  %v1802_v9 = vsel %vm1780_vm12, %v1769_v20, %v2982_v27 }
 0x175   : > { %v1823_v50 = vpack.c.bf16 %v1802_v9, %v1801_v15  ;;  %v1803_v8 = vsel %vm1780_vm12, %v1770_v17, %v2986_v31  ;;  %v1804_v54 = vsel %vm1780_vm12, %v1771_v1, %v2987_v57  ;;  %v2990_v41 = vpop.permute.xlu0 %2989 }
 0x176   : > { %v1824_v59 = vpack.c.bf16 %v1804_v54, %v1803_v8  ;;  %v2995_v53 = vpop.permute.xlu1 %2994  ;;  %v2992_v56 = vunpack.i.h.bf16 %v2990_v41  ;;  %v2991_v35 = vunpack.i.l.bf16 %v2990_v41 }
 0x177   : > { %2431 = vmatprep.mubr.msk.bf16.mxu1 %vm1832_vm13, %v1823_v50  ;;  %v2997_v51 = vunpack.i.h.bf16 %v2995_v53  ;;  %v2996_v29 = vunpack.i.l.bf16 %v2995_v53 }
 0x178   : > { %2432 = vmatmul.mubr.msk.bf16.gmra.mrb[4].mxu1 %vm1832_vm13, %v1824_v59  ;;  %v1640_v49 = vsel %vm1615_vm7, %v1607_v38, %v2991_v35  ;;  %v1641_v48 = vsel %vm1615_vm7, %v1608_v12, %v2992_v56 }
 0x179   : > { %v3000_v19 = vpop.permute.xlu0 %2999  ;;  %v1643_v39 = vsel %vm1615_vm7, %v1610_v47, %v2997_v51  ;;  %v1642_v5 = vsel %vm1615_vm7, %v1609_v6, %v2996_v29 }
 0x17a   : > { %v3005_v62 = vpop.permute.xlu1 %3004  ;;  %v3002_v22 = vunpack.i.h.bf16 %v3000_v19  ;;  %v3001_v28 = vunpack.i.l.bf16 %v3000_v19 }
 0x17b   : > { %v3007_v45 = vunpack.i.h.bf16 %v3005_v62  ;;  %v3006_v23 = vunpack.i.l.bf16 %v3005_v62 }
 0x17c   : > { %v1673_v37 = vsel %vm1648_vm8, %v1640_v49, %v3001_v28  ;;  %v1674_v3 = vsel %vm1648_vm8, %v1641_v48, %v3002_v22  ;;  %v4781_v28 = vld [vmem:[#allocation9_spill] sm:$0xff]  ;;  %v4782_v49 = vld [vmem:[#allocation10_spill] sm:$0xff] }
 0x17d   : > { %v3010_v21 = vpop.permute.xlu0 %3009  ;;  %v1675_v17 = vsel %vm1648_vm8, %v1642_v5, %v3006_v23  ;;  %v1676_v1 = vsel %vm1648_vm8, %v1643_v39, %v3007_v45  ;;  %v4783_v39 = vld [vmem:[#allocation11_spill] sm:$0xff] }
 0x17e   : > { %v3015_v32 = vpop.permute.xlu1 %3014  ;;  %v3012_v25 = vunpack.i.h.bf16 %v3010_v21  ;;  %v3011_v52 = vunpack.i.l.bf16 %v3010_v21 }
 0x17f   : > { %v3017_v4 = vunpack.i.h.bf16 %v3015_v32  ;;  %v3016_v11 = vunpack.i.l.bf16 %v3015_v32 }
 0x180   : > { %v1706_v50 = vsel %vm1681_vm9, %v1673_v37, %v3011_v52  ;;  %v1707_v8 = vsel %vm1681_vm9, %v1674_v3, %v3012_v25  ;;  %v4784_v25 = vld [vmem:[#allocation12_spill] sm:$0xff] }
 0x181   : > { %v3020_v40 = vpop.permute.xlu0 %3019  ;;  %v1708_v59 = vsel %vm1681_vm9, %v1675_v17, %v3016_v11  ;;  %v1709_v53 = vsel %vm1681_vm9, %v1676_v1, %v3017_v4 }
 0x182   : > { %v3025_v14 = vpop.permute.xlu1 %3024  ;;  %v3022_v34 = vunpack.i.h.bf16 %v3020_v40  ;;  %v3021_v27 = vunpack.i.l.bf16 %v3020_v40 }
 0x183   : > { %v3027_v20 = vunpack.i.h.bf16 %v3025_v14  ;;  %v3026_v57 = vunpack.i.l.bf16 %v3025_v14 }
 0x184   : > { %v1739_v19 = vsel %vm1714_vm10, %v1706_v50, %v3021_v27  ;;  %v1740_v62 = vsel %vm1714_vm10, %v1707_v8, %v3022_v34 }
 0x185   : > { %v3030_v44 = vpop.permute.xlu0 %3029  ;;  %v1741_v26 = vsel %vm1714_vm10, %v1708_v59, %v3026_v57  ;;  %v1742_v10 = vsel %vm1714_vm10, %v1709_v53, %v3027_v20 }
 0x186   : > { %v3035_v31 = vpop.permute.xlu1 %3034  ;;  %v3032_v15 = vunpack.i.h.bf16 %v3030_v44  ;;  %v3031_v9 = vunpack.i.l.bf16 %v3030_v44 }
 0x187   : > { %v3037_v54 = vunpack.i.h.bf16 %v3035_v31  ;;  %v3036_v41 = vunpack.i.l.bf16 %v3035_v31 }
 0x188   : > { %v1772_v43 = vsel %vm1747_vm11, %v1739_v19, %v3031_v9  ;;  %v1773_v36 = vsel %vm1747_vm11, %v1740_v62, %v3032_v15 }
 0x189   : > { %v3040_v60 = vpop.permute.xlu0 %3039  ;;  %v1774_v0 = vsel %vm1747_vm11, %v1741_v26, %v3036_v41  ;;  %v1775_v24 = vsel %vm1747_vm11, %v1742_v10, %v3037_v54 }
 0x18a   : > { %v3042_v7 = vunpack.i.h.bf16 %v3040_v60  ;;  %v3041_v63 = vunpack.i.l.bf16 %v3040_v60  ;;  %v3045_v33 = vpop.permute.xlu1 %3044 }
 0x18b   : > { %v3047_v55 = vunpack.i.h.bf16 %v3045_v33  ;;  %v3046_v21 = vunpack.i.l.bf16 %v3045_v33 }
 0x18c   : > { %v1805_v61 = vsel %vm1780_vm12, %v1772_v43, %v3041_v63  ;;  %v1806_v32 = vsel %vm1780_vm12, %v1773_v36, %v3042_v7 }
 0x18d   : > { %v1825_v56 = vpack.c.bf16 %v1806_v32, %v1805_v61  ;;  %v1807_v35 = vsel %vm1780_vm12, %v1774_v0, %v3046_v21  ;;  %v1808_v42 = vsel %vm1780_vm12, %v1775_v24, %v3047_v55  ;;  %v3050_v2 = vpop.permute.xlu0 %3049 }
 0x18e   : > { %v1826_v58 = vpack.c.bf16 %v1808_v42, %v1807_v35  ;;  %v3055_v46 = vpop.permute.xlu1 %3054  ;;  %v3052_v18 = vunpack.i.h.bf16 %v3050_v2  ;;  %v3051_v30 = vunpack.i.l.bf16 %v3050_v2 }
 0x18f   : > { %2435 = vmatprep.mubr.msk.bf16.mxu1 %vm1832_vm13, %v1825_v56  ;;  %v3057_v38 = vunpack.i.h.bf16 %v3055_v46  ;;  %v3056_v12 = vunpack.i.l.bf16 %v3055_v46 }
 0x190   : > { %2436 = vmatmul.mubr.msk.bf16.gmra.mrb[8].mxu1 %vm1832_vm13, %v1826_v58  ;;  %v1644_v14 = vsel %vm1615_vm7, %v4781_v28, %v3051_v30  ;;  %v1645_v48 = vsel %vm1615_vm7, %v4782_v49, %v3052_v18 }
 0x191   : > { %v3060_v51 = vpop.permute.xlu0 %3059  ;;  %v1647_v5 = vsel %vm1615_vm7, %v4783_v39, %v3057_v38  ;;  %v1646_v52 = vsel %vm1615_vm7, %v4784_v25, %v3056_v12 }
 0x192   : > { %v3065_v29 = vpop.permute.xlu1 %3064  ;;  %v3062_v47 = vunpack.i.h.bf16 %v3060_v51  ;;  %v3061_v6 = vunpack.i.l.bf16 %v3060_v51 }
 0x193   : > { %v3067_v45 = vunpack.i.h.bf16 %v3065_v29  ;;  %v3066_v23 = vunpack.i.l.bf16 %v3065_v29 }
 0x194   : > { %v1677_v20 = vsel %vm1648_vm8, %v1644_v14, %v3061_v6  ;;  %v1678_v57 = vsel %vm1648_vm8, %v1645_v48, %v3062_v47 }
 0x195   : > { %v3070_v13 = vpop.permute.xlu0 %3069  ;;  %v1679_v15 = vsel %vm1648_vm8, %v1646_v52, %v3066_v23  ;;  %v1680_v9 = vsel %vm1648_vm8, %v1647_v5, %v3067_v45 }
 0x196   : > { %v3075_v16 = vpop.permute.xlu1 %3074  ;;  %v3072_v4 = vunpack.i.h.bf16 %v3070_v13  ;;  %v3071_v11 = vunpack.i.l.bf16 %v3070_v13 }
 0x197   : > { %v3077_v34 = vunpack.i.h.bf16 %v3075_v16  ;;  %v3076_v27 = vunpack.i.l.bf16 %v3075_v16 }
 0x198   : > { %v1710_v54 = vsel %vm1681_vm9, %v1677_v20, %v3071_v11  ;;  %v1711_v41 = vsel %vm1681_vm9, %v1678_v57, %v3072_v4 }
 0x199   : > { %v3080_v40 = vpop.permute.xlu0 %3079  ;;  %v1712_v19 = vsel %vm1681_vm9, %v1679_v15, %v3076_v27  ;;  %v1713_v62 = vsel %vm1681_vm9, %v1680_v9, %v3077_v34 }
 0x19a   : > { %v3085_v22 = vpop.permute.xlu1 %3084  ;;  %v3082_v44 = vunpack.i.h.bf16 %v3080_v40  ;;  %v3081_v37 = vunpack.i.l.bf16 %v3080_v40 }
 0x19b   : > { %v3087_v31 = vunpack.i.h.bf16 %v3085_v22  ;;  %v3086_v17 = vunpack.i.l.bf16 %v3085_v22 }
 0x19c   : > { %v1743_v60 = vsel %vm1714_vm10, %v1710_v54, %v3081_v37  ;;  %v1744_v26 = vsel %vm1714_vm10, %v1711_v41, %v3082_v44 }
 0x19d   : > { %v3090_v3 = vpop.permute.xlu0 %3089  ;;  %v1745_v7 = vsel %vm1714_vm10, %v1712_v19, %v3086_v17  ;;  %v1746_v63 = vsel %vm1714_vm10, %v1713_v62, %v3087_v31 }
 0x19e   : > { %v3095_v1 = vpop.permute.xlu1 %3094  ;;  %v3092_v50 = vunpack.i.h.bf16 %v3090_v3  ;;  %v3091_v8 = vunpack.i.l.bf16 %v3090_v3 }
 0x19f   : > { %v3097_v59 = vunpack.i.h.bf16 %v3095_v1  ;;  %v3096_v53 = vunpack.i.l.bf16 %v3095_v1 }
 0x1a0   : > { %v1776_v55 = vsel %vm1747_vm11, %v1743_v60, %v3091_v8  ;;  %v1777_v21 = vsel %vm1747_vm11, %v1744_v26, %v3092_v50 }
 0x1a1   : > { %v3100_v10 = vpop.permute.xlu0 %3099  ;;  %v1778_v61 = vsel %vm1747_vm11, %v1745_v7, %v3096_v53  ;;  %v1779_v32 = vsel %vm1747_vm11, %v1746_v63, %v3097_v59 }
 0x1a2   : > { %v3102_v33 = vunpack.i.h.bf16 %v3100_v10  ;;  %v3101_v43 = vunpack.i.l.bf16 %v3100_v10  ;;  %v3105_v36 = vpop.permute.xlu1 %3104 }
 0x1a3   : > { %v3107_v0 = vunpack.i.h.bf16 %v3105_v36  ;;  %v3106_v24 = vunpack.i.l.bf16 %v3105_v36 }
 0x1a4   : > { %v1809_v56 = vsel %vm1780_vm12, %v1776_v55, %v3101_v43  ;;  %v1810_v35 = vsel %vm1780_vm12, %v1777_v21, %v3102_v33 }
 0x1a5   : > { %v1827_v42 = vpack.c.bf16 %v1810_v35, %v1809_v56  ;;  %v1811_v2 = vsel %vm1780_vm12, %v1778_v61, %v3106_v24  ;;  %v1812_v58 = vsel %vm1780_vm12, %v1779_v32, %v3107_v0 }
 0x1a6   : > { %v1828_v46 = vpack.c.bf16 %v1812_v58, %v1811_v2 }
 0x1a7   : > { %2439 = vmatprep.mubr.msk.bf16.mxu1 %vm1832_vm13, %v1827_v42 }
 0x1a8   : > { %2440 = vmatmul.mubr.msk.bf16.gmra.mrb[12].mxu1 %vm1832_vm13, %v1828_v46 }
 0x1de   : > { %v2413_v51 = vpop.f32.mrb[0].mxu0 }
 0x1df   : > { %2048 = vst.msk [vmem:[%s4541_s10 + $0x10] sm:$0xff] %vm412_vm0, %v2413_v51  ;;  %v1919_v29 = vpop.f32.mrb[1].mxu0  ;;  %v2150_v30 = vmul.f32 %v2413_v51, %v2413_v51  ;;  %v2081_v6 = vsel %vm412_vm0, %v2413_v51, 0.0 }
 0x1e0   : > { %2046 = vst.msk [vmem:[%s4541_s10] sm:$0xff] %vm412_vm0, %v1919_v29  ;;  %v2148_v13 = vmul.f32 %v1919_v29, %v1919_v29  ;;  %v2414_v16 = vpop.f32.mrb[2].mxu0  ;;  %v2078_v38 = vsel %vm412_vm0, %v1919_v29, 0.0 }
 0x1e1   : > { %2049 = vst.msk [vmem:[%s4541_s10 + $0x18] sm:$0xff] %vm412_vm0, %v2414_v16  ;;  %v1922_v18 = vpop.f32.mrb[3].mxu0  ;;  %v2151_v28 = vmul.f32 %v2414_v16, %v2414_v16  ;;  %v2183_v45 = vsel %vm412_vm0, %v2150_v30, 0.0  ;;  %v2083_v23 = vsel %vm412_vm0, %v2414_v16, 0.0 }
 0x1e2   : > { %2047 = vst.msk [vmem:[%s4541_s10 + $0x8] sm:$0xff] %vm412_vm0, %v1922_v18  ;;  %v2079_v12 = vsel %vm412_vm0, %v1922_v18, 0.0  ;;  %v2149_v40 = vmul.f32 %v1922_v18, %v1922_v18  ;;  %v2180_v22 = vsel %vm412_vm0, %v2148_v13, 0.0 }
 0x1e3   : > { %v2080_v47 = vadd.f32 %v2079_v12, %v2078_v38  ;;  %v2185_v25 = vsel %vm412_vm0, %v2151_v28, 0.0 }
 0x1e4   : > { %v2181_v14 = vsel %vm412_vm0, %v2149_v40, 0.0 }
 0x1e5   : > { %v2082_v49 = vadd.f32 %v2081_v6, %v2080_v47  ;;  %v2182_v48 = vadd.f32 %v2181_v14, %v2180_v22 }
 0x1e7   : > { %v2184_v39 = vadd.f32 %v2183_v45, %v2182_v48  ;;  %v2084_v5 = vadd.f32 %v2083_v23, %v2082_v49 }
 0x1e9   : > { %v2186_v52 = vadd.f32 %v2185_v25, %v2184_v39 }
 0x1f2   : > { %v2417_v4 = vpop.f32.mrb[4].mxu0 }
 0x1f3   : > { %2052 = vst.msk [vmem:[%s4541_s10 + $0x30] sm:$0xff] %vm412_vm0, %v2417_v4  ;;  %v1935_v11 = vpop.f32.mrb[5].mxu0  ;;  %v2154_v20 = vmul.f32 %v2417_v4, %v2417_v4  ;;  %v2089_v9 = vsel %vm412_vm0, %v2417_v4, 0.0 }
 0x1f4   : > { %2050 = vst.msk [vmem:[%s4541_s10 + $0x20] sm:$0xff] %vm412_vm0, %v1935_v11  ;;  %v2085_v34 = vsel %vm412_vm0, %v1935_v11, 0.0  ;;  %v2152_v27 = vmul.f32 %v1935_v11, %v1935_v11  ;;  %v2418_v44 = vpop.f32.mrb[6].mxu0 }
 0x1f5   : > { %v2086_v37 = vadd.f32 %v2085_v34, %v2084_v5  ;;  %2053 = vst.msk [vmem:[%s4541_s10 + $0x38] sm:$0xff] %vm412_vm0, %v2418_v44  ;;  %v1938_v3 = vpop.f32.mrb[7].mxu0  ;;  %v2155_v50 = vmul.f32 %v2418_v44, %v2418_v44  ;;  %v2191_v59 = vsel %vm412_vm0, %v2154_v20, 0.0  ;;  %v2091_v53 = vsel %vm412_vm0, %v2418_v44, 0.0 }
 0x1f6   : > { %v2187_v57 = vsel %vm412_vm0, %v2152_v27, 0.0  ;;  %2051 = vst.msk [vmem:[%s4541_s10 + $0x28] sm:$0xff] %vm412_vm0, %v1938_v3  ;;  %v2087_v31 = vsel %vm412_vm0, %v1938_v3, 0.0  ;;  %v2153_v17 = vmul.f32 %v1938_v3, %v1938_v3 }
 0x1f7   : > { %v2188_v1 = vadd.f32 %v2187_v57, %v2186_v52  ;;  %v2088_v15 = vadd.f32 %v2087_v31, %v2086_v37  ;;  %v2193_v60 = vsel %vm412_vm0, %v2155_v50, 0.0 }
 0x1f8   : > { %v2189_v8 = vsel %vm412_vm0, %v2153_v17, 0.0 }
 0x1f9   : > { %v2090_v54 = vadd.f32 %v2089_v9, %v2088_v15  ;;  %v2190_v41 = vadd.f32 %v2189_v8, %v2188_v1 }
 0x1fb   : > { %v2192_v19 = vadd.f32 %v2191_v59, %v2190_v41  ;;  %v2092_v62 = vadd.f32 %v2091_v53, %v2090_v54 }
 0x1fd   : > { %v2194_v26 = vadd.f32 %v2193_v60, %v2192_v19 }
 0x206   : > { %v2421_v10 = vpop.f32.mrb[8].mxu0 }
 0x207   : > { %2056 = vst.msk [vmem:[%s4541_s10 + $0x50] sm:$0xff] %vm412_vm0, %v2421_v10  ;;  %v1951_v7 = vpop.f32.mrb[9].mxu0  ;;  %v2158_v21 = vmul.f32 %v2421_v10, %v2421_v10  ;;  %v2097_v35 = vsel %vm412_vm0, %v2421_v10, 0.0 }
 0x208   : > { %2054 = vst.msk [vmem:[%s4541_s10 + $0x40] sm:$0xff] %vm412_vm0, %v1951_v7  ;;  %v2093_v63 = vsel %vm412_vm0, %v1951_v7, 0.0  ;;  %v2156_v33 = vmul.f32 %v1951_v7, %v1951_v7  ;;  %v2422_v43 = vpop.f32.mrb[10].mxu0 }
 0x209   : > { %v2094_v36 = vadd.f32 %v2093_v63, %v2092_v62  ;;  %2057 = vst.msk [vmem:[%s4541_s10 + $0x58] sm:$0xff] %vm412_vm0, %v2422_v43  ;;  %v1954_v55 = vpop.f32.mrb[11].mxu0  ;;  %v2159_v42 = vmul.f32 %v2422_v43, %v2422_v43  ;;  %v2199_v51 = vsel %vm412_vm0, %v2158_v21, 0.0  ;;  %v2099_v29 = vsel %vm412_vm0, %v2422_v43, 0.0 }
 0x20a   : > { %v2195_v0 = vsel %vm412_vm0, %v2156_v33, 0.0  ;;  %2055 = vst.msk [vmem:[%s4541_s10 + $0x48] sm:$0xff] %vm412_vm0, %v1954_v55  ;;  %v2095_v24 = vsel %vm412_vm0, %v1954_v55, 0.0  ;;  %v2157_v61 = vmul.f32 %v1954_v55, %v1954_v55 }
 0x20b   : > { %v2196_v32 = vadd.f32 %v2195_v0, %v2194_v26  ;;  %v2096_v56 = vadd.f32 %v2095_v24, %v2094_v36  ;;  %v2201_v18 = vsel %vm412_vm0, %v2159_v42, 0.0 }
 0x20c   : > { %v2197_v2 = vsel %vm412_vm0, %v2157_v61, 0.0 }
 0x20d   : > { %v2098_v58 = vadd.f32 %v2097_v35, %v2096_v56  ;;  %v2198_v46 = vadd.f32 %v2197_v2, %v2196_v32 }
 0x20f   : > { %v2200_v13 = vadd.f32 %v2199_v51, %v2198_v46  ;;  %v2100_v16 = vadd.f32 %v2099_v29, %v2098_v58 }
 0x211   : > { %v2202_v30 = vadd.f32 %v2201_v18, %v2200_v13 }
 0x21b   : > { %v2425_v38 = vpop.f32.mrb[12].mxu0 }
 0x21c   : > { %2060 = vst.msk [vmem:[%s4541_s10 + $0x70] sm:$0xff] %vm412_vm0, %v2425_v38  ;;  %v1967_v12 = vpop.f32.mrb[13].mxu0  ;;  %v2162_v14 = vmul.f32 %v2425_v38, %v2425_v38  ;;  %v2105_v5 = vsel %vm412_vm0, %v2425_v38, 0.0 }
 0x21d   : > { %2058 = vst.msk [vmem:[%s4541_s10 + $0x60] sm:$0xff] %vm412_vm0, %v1967_v12  ;;  %v2101_v40 = vsel %vm412_vm0, %v1967_v12, 0.0  ;;  %v2160_v47 = vmul.f32 %v1967_v12, %v1967_v12  ;;  %v2426_v6 = vpop.f32.mrb[14].mxu0 }
 0x21e   : > { %v2102_v22 = vadd.f32 %v2101_v40, %v2100_v16  ;;  %2061 = vst.msk [vmem:[%s4541_s10 + $0x78] sm:$0xff] %vm412_vm0, %v2426_v6  ;;  %v1970_v28 = vpop.f32.mrb[15].mxu0  ;;  %v2163_v25 = vmul.f32 %v2426_v6, %v2426_v6  ;;  %v2207_v34 = vsel %vm412_vm0, %v2162_v14, 0.0  ;;  %v2107_v27 = vsel %vm412_vm0, %v2426_v6, 0.0 }
 0x21f   : > { %v2203_v49 = vsel %vm412_vm0, %v2160_v47, 0.0  ;;  %2059 = vst.msk [vmem:[%s4541_s10 + $0x68] sm:$0xff] %vm412_vm0, %v1970_v28  ;;  %v2103_v48 = vsel %vm412_vm0, %v1970_v28, 0.0  ;;  %v2161_v45 = vmul.f32 %v1970_v28, %v1970_v28 }
 0x220   : > { %v2204_v23 = vadd.f32 %v2203_v49, %v2202_v30  ;;  %v2104_v39 = vadd.f32 %v2103_v48, %v2102_v22  ;;  %v2209_v3 = vsel %vm412_vm0, %v2163_v25, 0.0 }
 0x221   : > { %v2205_v52 = vsel %vm412_vm0, %v2161_v45, 0.0 }
 0x222   : > { %v2106_v4 = vadd.f32 %v2105_v5, %v2104_v39  ;;  %v2206_v11 = vadd.f32 %v2205_v52, %v2204_v23 }
 0x224   : > { %v2208_v44 = vadd.f32 %v2207_v34, %v2206_v11  ;;  %v2108_v37 = vadd.f32 %v2107_v27, %v2106_v4 }
 0x226   : > { %v2210_v20 = vadd.f32 %v2209_v3, %v2208_v44 }
 0x233   : > { %v2429_v57 = vpop.f32.mrb[0].mxu1 }
 0x234   : > { %2064 = vst.msk [vmem:[%s4541_s10 + $0x90] sm:$0xff] %vm412_vm0, %v2429_v57  ;;  %v1983_v31 = vpop.f32.mrb[1].mxu1  ;;  %v2166_v8 = vmul.f32 %v2429_v57, %v2429_v57  ;;  %v2113_v62 = vsel %vm412_vm0, %v2429_v57, 0.0 }
 0x235   : > { %2062 = vst.msk [vmem:[%s4541_s10 + $0x80] sm:$0xff] %vm412_vm0, %v1983_v31  ;;  %v2109_v17 = vsel %vm412_vm0, %v1983_v31, 0.0  ;;  %v2164_v1 = vmul.f32 %v1983_v31, %v1983_v31  ;;  %v2430_v15 = vpop.f32.mrb[2].mxu1 }
 0x236   : > { %v2110_v9 = vadd.f32 %v2109_v17, %v2108_v37  ;;  %2065 = vst.msk [vmem:[%s4541_s10 + $0x98] sm:$0xff] %vm412_vm0, %v2430_v15  ;;  %v1986_v50 = vpop.f32.mrb[3].mxu1  ;;  %v2167_v60 = vmul.f32 %v2430_v15, %v2430_v15  ;;  %v2215_v63 = vsel %vm412_vm0, %v2166_v8, 0.0  ;;  %v2115_v33 = vsel %vm412_vm0, %v2430_v15, 0.0 }
 0x237   : > { %v2211_v54 = vsel %vm412_vm0, %v2164_v1, 0.0  ;;  %2063 = vst.msk [vmem:[%s4541_s10 + $0x88] sm:$0xff] %vm412_vm0, %v1986_v50  ;;  %v2111_v41 = vsel %vm412_vm0, %v1986_v50, 0.0  ;;  %v2165_v59 = vmul.f32 %v1986_v50, %v1986_v50 }
 0x238   : > { %v2212_v53 = vadd.f32 %v2211_v54, %v2210_v20  ;;  %v2112_v19 = vadd.f32 %v2111_v41, %v2110_v9  ;;  %v2217_v55 = vsel %vm412_vm0, %v2167_v60, 0.0 }
 0x239   : > { %v2213_v26 = vsel %vm412_vm0, %v2165_v59, 0.0 }
 0x23a   : > { %v2114_v10 = vadd.f32 %v2113_v62, %v2112_v19  ;;  %v2214_v7 = vadd.f32 %v2213_v26, %v2212_v53 }
 0x23c   : > { %v2216_v43 = vadd.f32 %v2215_v63, %v2214_v7  ;;  %v2116_v36 = vadd.f32 %v2115_v33, %v2114_v10 }
 0x23e   : > { %v2218_v21 = vadd.f32 %v2217_v55, %v2216_v43 }
 0x24b   : > { %v2433_v0 = vpop.f32.mrb[4].mxu1 }
 0x24c   : > { %2068 = vst.msk [vmem:[%s4541_s10 + $0xb0] sm:$0xff] %vm412_vm0, %v2433_v0  ;;  %v1999_v24 = vpop.f32.mrb[5].mxu1  ;;  %v2170_v2 = vmul.f32 %v2433_v0, %v2433_v0  ;;  %v2121_v16 = vsel %vm412_vm0, %v2433_v0, 0.0 }
 0x24d   : > { %2066 = vst.msk [vmem:[%s4541_s10 + $0xa0] sm:$0xff] %vm412_vm0, %v1999_v24  ;;  %v2117_v61 = vsel %vm412_vm0, %v1999_v24, 0.0  ;;  %v2168_v32 = vmul.f32 %v1999_v24, %v1999_v24  ;;  %v2434_v56 = vpop.f32.mrb[6].mxu1 }
 0x24e   : > { %v2118_v35 = vadd.f32 %v2117_v61, %v2116_v36  ;;  %2069 = vst.msk [vmem:[%s4541_s10 + $0xb8] sm:$0xff] %vm412_vm0, %v2434_v56  ;;  %v2002_v42 = vpop.f32.mrb[7].mxu1  ;;  %v2171_v18 = vmul.f32 %v2434_v56, %v2434_v56  ;;  %v2223_v40 = vsel %vm412_vm0, %v2170_v2, 0.0  ;;  %v2123_v47 = vsel %vm412_vm0, %v2434_v56, 0.0 }
 0x24f   : > { %v2219_v58 = vsel %vm412_vm0, %v2168_v32, 0.0  ;;  %2067 = vst.msk [vmem:[%s4541_s10 + $0xa8] sm:$0xff] %vm412_vm0, %v2002_v42  ;;  %v2119_v46 = vsel %vm412_vm0, %v2002_v42, 0.0  ;;  %v2169_v51 = vmul.f32 %v2002_v42, %v2002_v42 }
 0x250   : > { %v2220_v29 = vadd.f32 %v2219_v58, %v2218_v21  ;;  %v2120_v13 = vadd.f32 %v2119_v46, %v2118_v35  ;;  %v2225_v28 = vsel %vm412_vm0, %v2171_v18, 0.0 }
 0x251   : > { %v2221_v30 = vsel %vm412_vm0, %v2169_v51, 0.0 }
 0x252   : > { %v2122_v38 = vadd.f32 %v2121_v16, %v2120_v13  ;;  %v2222_v12 = vadd.f32 %v2221_v30, %v2220_v29 }
 0x254   : > { %v2224_v6 = vadd.f32 %v2223_v40, %v2222_v12  ;;  %v2124_v22 = vadd.f32 %v2123_v47, %v2122_v38 }
 0x256   : > { %v2226_v14 = vadd.f32 %v2225_v28, %v2224_v6 }
 0x263   : > { %v2437_v49 = vpop.f32.mrb[8].mxu1 }
 0x264   : > { %2072 = vst.msk [vmem:[%s4541_s10 + $0xd0] sm:$0xff] %vm412_vm0, %v2437_v49  ;;  %v2015_v48 = vpop.f32.mrb[9].mxu1  ;;  %v2174_v52 = vmul.f32 %v2437_v49, %v2437_v49  ;;  %v2129_v37 = vsel %vm412_vm0, %v2437_v49, 0.0 }
 0x265   : > { %2070 = vst.msk [vmem:[%s4541_s10 + $0xc0] sm:$0xff] %vm412_vm0, %v2015_v48  ;;  %v2125_v45 = vsel %vm412_vm0, %v2015_v48, 0.0  ;;  %v2172_v23 = vmul.f32 %v2015_v48, %v2015_v48  ;;  %v2438_v39 = vpop.f32.mrb[10].mxu1 }
 0x266   : > { %v2126_v5 = vadd.f32 %v2125_v45, %v2124_v22  ;;  %2073 = vst.msk [vmem:[%s4541_s10 + $0xd8] sm:$0xff] %vm412_vm0, %v2438_v39  ;;  %v2018_v25 = vpop.f32.mrb[11].mxu1  ;;  %v2175_v3 = vmul.f32 %v2438_v39, %v2438_v39  ;;  %v2231_v17 = vsel %vm412_vm0, %v2174_v52, 0.0  ;;  %v2131_v1 = vsel %vm412_vm0, %v2438_v39, 0.0 }
 0x267   : > { %v2227_v4 = vsel %vm412_vm0, %v2172_v23, 0.0  ;;  %2071 = vst.msk [vmem:[%s4541_s10 + $0xc8] sm:$0xff] %vm412_vm0, %v2018_v25  ;;  %v2127_v11 = vsel %vm412_vm0, %v2018_v25, 0.0  ;;  %v2173_v34 = vmul.f32 %v2018_v25, %v2018_v25 }
 0x268   : > { %v2228_v27 = vadd.f32 %v2227_v4, %v2226_v14  ;;  %v2128_v44 = vadd.f32 %v2127_v11, %v2126_v5  ;;  %v2233_v50 = vsel %vm412_vm0, %v2175_v3, 0.0 }
 0x269   : > { %v2229_v20 = vsel %vm412_vm0, %v2173_v34, 0.0 }
 0x26a   : > { %v2130_v57 = vadd.f32 %v2129_v37, %v2128_v44  ;;  %v2230_v31 = vadd.f32 %v2229_v20, %v2228_v27 }
 0x26c   : > { %v2232_v15 = vadd.f32 %v2231_v17, %v2230_v31  ;;  %v2132_v9 = vadd.f32 %v2131_v1, %v2130_v57 }
 0x26e   : > { %v2234_v8 = vadd.f32 %v2233_v50, %v2232_v15 }
 0x27b   : > { %v2441_v54 = vpop.f32.mrb[12].mxu1 }
 0x27c   : > { %2076 = vst.msk [vmem:[%s4541_s10 + $0xf0] sm:$0xff] %vm412_vm0, %v2441_v54  ;;  %v2031_v41 = vpop.f32.mrb[13].mxu1  ;;  %v2178_v26 = vmul.f32 %v2441_v54, %v2441_v54  ;;  %v2137_v36 = vsel %vm412_vm0, %v2441_v54, 0.0 }
 0x27d   : > { %2074 = vst.msk [vmem:[%s4541_s10 + $0xe0] sm:$0xff] %vm412_vm0, %v2031_v41  ;;  %v2133_v59 = vsel %vm412_vm0, %v2031_v41, 0.0  ;;  %v2176_v53 = vmul.f32 %v2031_v41, %v2031_v41  ;;  %v2442_v19 = vpop.f32.mrb[14].mxu1 }
 0x27e   : > { %v2134_v62 = vadd.f32 %v2133_v59, %v2132_v9  ;;  %2077 = vst.msk [vmem:[%s4541_s10 + $0xf8] sm:$0xff] %vm412_vm0, %v2442_v19  ;;  %v2034_v60 = vpop.f32.mrb[15].mxu1  ;;  %v2179_v55 = vmul.f32 %v2442_v19, %v2442_v19  ;;  %v2239_v61 = vsel %vm412_vm0, %v2178_v26, 0.0  ;;  %v2139_v32 = vsel %vm412_vm0, %v2442_v19, 0.0 }
 0x27f   : > { %v2235_v10 = vsel %vm412_vm0, %v2176_v53, 0.0  ;;  %2075 = vst.msk [vmem:[%s4541_s10 + $0xe8] sm:$0xff] %vm412_vm0, %v2034_v60  ;;  %v2135_v7 = vsel %vm412_vm0, %v2034_v60, 0.0  ;;  %v2177_v63 = vmul.f32 %v2034_v60, %v2034_v60 }
 0x280   : > { %v2236_v33 = vadd.f32 %v2235_v10, %v2234_v8  ;;  %v2136_v43 = vadd.f32 %v2135_v7, %v2134_v62  ;;  %v2241_v42 = vsel %vm412_vm0, %v2179_v55, 0.0 }
 0x281   : > { %v2237_v21 = vsel %vm412_vm0, %v2177_v63, 0.0 }
 0x282   : > { %v2138_v0 = vadd.f32 %v2137_v36, %v2136_v43  ;;  %v2238_v24 = vadd.f32 %v2237_v21, %v2236_v33 }
 0x284   : > { %v2140_v56 = vadd.f32 %v2139_v32, %v2138_v0  ;;  %v2240_v35 = vadd.f32 %v2239_v61, %v2238_v24 }
 0x286   : > { %v2141_v2 = vrot.slane %v2140_v56, 4  ;;  %v2242_v58 = vadd.f32 %v2241_v42, %v2240_v35 }
 0x288   : > { %v2142_v46 = vadd.f32 %v2141_v2, %v2140_v56  ;;  %v2243_v51 = vrot.slane %v2242_v58, 4 }
 0x28a   : > { %v2143_v29 = vrot.slane %v2142_v46, 2  ;;  %v2244_v13 = vadd.f32 %v2243_v51, %v2242_v58 }
 0x28c   : > { %v2144_v16 = vadd.f32 %v2143_v29, %v2142_v46  ;;  %v2245_v18 = vrot.slane %v2244_v13, 2 }
 0x28e   : > { %v2145_v30 = vrot.slane %v2144_v16, 1  ;;  %v2246_v38 = vadd.f32 %v2245_v18, %v2244_v13 }
 0x290   : > { %v2146_v12 = vadd.f32 %v2145_v30, %v2144_v16  ;;  %v2247_v40 = vrot.slane %v2246_v38, 1 }
 0x292   : > { %2147 = vst.msk [vmem:[%s265_s12] sm:$0x1] %vm422_vm2, %v2146_v12  ;;  %v2248_v47 = vadd.f32 %v2247_v40, %v2246_v38 }
 0x294   : > { %2249 = vst.msk [vmem:[%s268_s15] sm:$0x1] %vm422_vm2, %v2248_v47 }
 0x295 PF: > { %s17_s21 = sadd.s32 1, %s3144_s21  }
 0x296   : > { %p14_p4 = scmp.ge.s32.totalorder %s17_s21, 4  }
 0x298   :  { %16 = sbr.rel (!%p14_p4) target bundleno = 1 (0x1), region = 92 }

// kernel: tile.14
= control target key start
LH: loop header
LB: loop body
LE: loop exit
PB: predicated region body
PF: predicated region fallthrough
CT: control target
= control target key end

     0   :  { %s40_s0 = inlined_call_operand.vmem [shape: f32[4], index: 0, kind: input, shape index: {}]   ;;  %s41_s1 = inlined_call_operand.vmem [shape: f32[32,4], index: 1, kind: output, shape index: {}]  }
   0x1   :  { %v4_v0 = vld [vmem:[%s40_s0] ss:$0 sm:$0xff] }
   0x2   :  { %5 = vst [vmem:[%s41_s1] sm:$0xff] %v4_v0  ;;  %12 = vst [vmem:[%s41_s1 + $0x8] sm:$0xff] %v4_v0 }
   0x3   :  { %13 = vst [vmem:[%s41_s1 + $0x10] sm:$0xff] %v4_v0  ;;  %14 = vst [vmem:[%s41_s1 + $0x18] sm:$0xff] %v4_v0 }

// kernel: tile.15
= control target key start
LH: loop header
LB: loop body
LE: loop exit
PB: predicated region body
PF: predicated region fallthrough
CT: control target
= control target key end

     0   :  { %s259_s10 = smov 124   ;;  %s260_s11 = smov 116   ;;  %vm3_vm0 = vcmask 31744   ;;  %vm9_vm1 = vcmask 1048544   ;;  %vm15_vm2 = vcmask 1015744   ;;  %vm21_vm3 = vcmask 982944   ;;  %s399_s0 = inlined_call_operand.vmem [shape: f32[32,4], index: 0, kind: input, shape index: {}]   ;;  %s400_s1 = inlined_call_operand.vmem [shape: f32[1,128], index: 1, kind: output, shape index: {}]  }
   0x1   :  { %v197_v0 = vld [vmem:[%s399_s0 + $0x1f] sm:$0x1]   ;;  %v199_v1 = vld [vmem:[%s399_s0 + $0x1d] sm:$0x1]   ;;  %v198_v2 = vld [vmem:[%s399_s0 + $0x1e] sm:$0x1]  }
   0x2   :  { %7 = vrot.lane.b32.xlu0 %v197_v0, %s259_s10  ;;  %19 = vrot.lane.b32.xlu1 %v199_v1, %s260_s11  ;;  %v200_v3 = vld [vmem:[%s399_s0 + $0x1c] sm:$0x1]   ;;  %s261_s16 = smov 120   ;;  %s262_s17 = smov 112   ;;  %v201_v4 = vld [vmem:[%s399_s0 + $0x1b] sm:$0x1]  }
   0x3   :  { %v202_v5 = vld [vmem:[%s399_s0 + $0x1a] sm:$0x1]   ;;  %s263_s22 = smov 108   ;;  %s264_s23 = smov 104   ;;  %v203_v6 = vld [vmem:[%s399_s0 + $0x19] sm:$0x1]  }
   0x4   :  { %v204_v7 = vld [vmem:[%s399_s0 + $0x18] sm:$0x1]   ;;  %s265_s28 = smov 100   ;;  %s266_s29 = smov 96   ;;  %v205_v8 = vld [vmem:[%s399_s0 + $0x17] sm:$0x1]  }
   0x5   :  { %v206_v9 = vld [vmem:[%s399_s0 + $0x16] sm:$0x1]   ;;  %v2_v10 = vld [vmem:[%s399_s0] sm:$0x1]   ;;  %s267_s7 = smov 92   ;;  %s268_s8 = smov 88  }
   0x6   :  { %13 = vrot.lane.b32.xlu0 %v198_v2, %s261_s16  ;;  %25 = vrot.lane.b32.xlu1 %v200_v3, %s262_s17  ;;  %4 = vst.msk [vmem:[#allocation0] sm:$0x1] %vm3_vm0, %v2_v10   ;;  %v207_v11 = vld [vmem:[%s399_s0 + $0x15] sm:$0x1]   ;;  %v208_v12 = vld [vmem:[%s399_s0 + $0x14] sm:$0x1]  }
   0x7   :  { %s269_s13 = smov 84   ;;  %s270_s14 = smov 80   ;;  %v209_v13 = vld [vmem:[%s399_s0 + $0x13] sm:$0x1]   ;;  %v210_v14 = vld [vmem:[%s399_s0 + $0x12] sm:$0x1]  }
   0x8   :  { %s271_s19 = smov 76   ;;  %s272_s20 = smov 72   ;;  %v211_v15 = vld [vmem:[%s399_s0 + $0x11] sm:$0x1]   ;;  %v212_v16 = vld [vmem:[%s399_s0 + $0x10] sm:$0x1]  }
   0x9   :  { %s273_s25 = smov 68   ;;  %s274_s26 = smov 64   ;;  %v213_v17 = vld [vmem:[%s399_s0 + $0xf] sm:$0x1]   ;;  %v214_v18 = vld [vmem:[%s399_s0 + $0xe] sm:$0x1]  }
   0xa   :  { %31 = vrot.lane.b32.xlu0 %v201_v4, %s263_s22  ;;  %37 = vrot.lane.b32.xlu1 %v202_v5, %s264_s23  ;;  %s275_s2 = smov 60   ;;  %s276_s3 = smov 56   ;;  %v215_v19 = vld [vmem:[%s399_s0 + $0xd] sm:$0x1]   ;;  %v216_v20 = vld [vmem:[%s399_s0 + $0xc] sm:$0x1]  }
   0xb   :  { %s278_s9 = smov 48   ;;  %v217_v21 = vld [vmem:[%s399_s0 + $0xb] sm:$0x1]   ;;  %v218_v22 = vld [vmem:[%s399_s0 + $0xa] sm:$0x1]   ;;  %s280_s15 = smov 40  }
   0xc   :  { %v219_v23 = vld [vmem:[%s399_s0 + $0x9] sm:$0x1]   ;;  %v220_v24 = vld [vmem:[%s399_s0 + $0x8] sm:$0x1]   ;;  %s282_s21 = smov 32   ;;  %s284_s27 = smov 24  }
   0xd   :  { %v221_v25 = vld [vmem:[%s399_s0 + $0x7] sm:$0x1]   ;;  %v222_v26 = vld [vmem:[%s399_s0 + $0x6] sm:$0x1]   ;;  %v223_v27 = vld [vmem:[%s399_s0 + $0x5] sm:$0x1]  }
   0xe   :  { %43 = vrot.lane.b32.xlu0 %v203_v6, %s265_s28  ;;  %49 = vrot.lane.b32.xlu1 %v204_v7, %s266_s29  ;;  %v224_v28 = vld [vmem:[%s399_s0 + $0x4] sm:$0x1]   ;;  %s286_s4 = smov 16   ;;  %v225_v29 = vld [vmem:[%s399_s0 + $0x3] sm:$0x1]   ;;  %s288_s10 = smov 8  }
   0xf   :  { %v226_v30 = vld [vmem:[%s399_s0 + $0x2] sm:$0x1]   ;;  %v227_v31 = vld [vmem:[%s399_s0 + $0x1] sm:$0x1]   ;;  %s289_s0 = smov 4   ;;  %vm27_vm4 = vcmask 950144  }
  0x10   :  { %vm33_vm5 = vcmask 917344   ;;  %vm39_vm6 = vcmask 884544   ;;  %vm45_vm7 = vcmask 851744   ;;  %vm51_vm8 = vcmask 818944  }
  0x11   :  { %vm57_vm9 = vcmask 786144   ;;  %vm63_vm10 = vcmask 753344   ;;  %vm69_vm11 = vcmask 720544   ;;  %vm75_vm12 = vcmask 687744  }
  0x12   :  { %55 = vrot.lane.b32.xlu0 %v205_v8, %s267_s7  ;;  %61 = vrot.lane.b32.xlu1 %v206_v9, %s268_s8  ;;  %s277_s8 = smov 52   ;;  %vm81_vm13 = vcmask 654944   ;;  %vm87_vm14 = vcmask 622144   ;;  %vm93_vm15 = vcmask 589344   ;;  %vm99_vm0 = vcmask 556544  }
  0x16   :  { %67 = vrot.lane.b32.xlu0 %v207_v11, %s269_s13  ;;  %73 = vrot.lane.b32.xlu1 %v208_v12, %s270_s14  ;;  %s279_s14 = smov 44  }
  0x1a   :  { %79 = vrot.lane.b32.xlu0 %v209_v13, %s271_s19  ;;  %85 = vrot.lane.b32.xlu1 %v210_v14, %s272_s20  ;;  %s281_s20 = smov 36  }
  0x1e   :  { %91 = vrot.lane.b32.xlu0 %v211_v15, %s273_s25  ;;  %97 = vrot.lane.b32.xlu1 %v212_v16, %s274_s26  ;;  %s283_s26 = smov 28  }
  0x22   :  { %103 = vrot.lane.b32.xlu0 %v213_v17, %s275_s2  ;;  %109 = vrot.lane.b32.xlu1 %v214_v18, %s276_s3  ;;  %s285_s3 = smov 20  }
  0x26   :  { %115 = vrot.lane.b32.xlu0 %v215_v19, %s277_s8  ;;  %121 = vrot.lane.b32.xlu1 %v216_v20, %s278_s9  ;;  %s287_s9 = smov 12  }
  0x2a   :  { %127 = vrot.lane.b32.xlu0 %v217_v21, %s279_s14  ;;  %133 = vrot.lane.b32.xlu1 %v218_v22, %s280_s15 }
  0x2e   :  { %139 = vrot.lane.b32.xlu0 %v219_v23, %s281_s20  ;;  %145 = vrot.lane.b32.xlu1 %v220_v24, %s282_s21 }
  0x32   :  { %151 = vrot.lane.b32.xlu0 %v221_v25, %s283_s26  ;;  %157 = vrot.lane.b32.xlu1 %v222_v26, %s284_s27 }
  0x36   :  { %163 = vrot.lane.b32.xlu0 %v223_v27, %s285_s3  ;;  %169 = vrot.lane.b32.xlu1 %v224_v28, %s286_s4 }
  0x3a   :  { %175 = vrot.lane.b32.xlu0 %v225_v29, %s287_s9  ;;  %181 = vrot.lane.b32.xlu1 %v226_v30, %s288_s10 }
  0x3e   :  { %187 = vrot.lane.b32.xlu0 %v227_v31, %s289_s0 }
  0x74   :  { %v8_v32 = vpop.permute.xlu0 %7   ;;  %v20_v33 = vpop.permute.xlu1 %19  }
  0x75   :  { %10 = vst.msk [vmem:[#allocation0] sm:$0x1] %vm9_vm1, %v8_v32   ;;  %vm105_vm1 = vcmask 523744  }
  0x78   :  { %v14_v34 = vpop.permute.xlu0 %13   ;;  %v26_v35 = vpop.permute.xlu1 %25  }
  0x79   :  { %16 = vst.msk [vmem:[#allocation0] sm:$0x1] %vm15_vm2, %v14_v34   ;;  %vm111_vm2 = vcmask 490944  }
  0x7a   :  { %22 = vst.msk [vmem:[#allocation0] sm:$0x1] %vm21_vm3, %v20_v33   ;;  %vm117_vm3 = vcmask 458144  }
  0x7b   :  { %28 = vst.msk [vmem:[#allocation0] sm:$0x1] %vm27_vm4, %v26_v35   ;;  %vm123_vm4 = vcmask 425344  }
  0x7c   :  { %v32_v36 = vpop.permute.xlu0 %31   ;;  %v38_v37 = vpop.permute.xlu1 %37  }
  0x7d   :  { %34 = vst.msk [vmem:[#allocation0] sm:$0x1] %vm33_vm5, %v32_v36   ;;  %vm129_vm5 = vcmask 392544  }
  0x7e   :  { %40 = vst.msk [vmem:[#allocation0] sm:$0x1] %vm39_vm6, %v38_v37   ;;  %vm135_vm6 = vcmask 359744  }
  0x80   :  { %v44_v38 = vpop.permute.xlu0 %43   ;;  %v50_v39 = vpop.permute.xlu1 %49  }
  0x81   :  { %46 = vst.msk [vmem:[#allocation0] sm:$0x1] %vm45_vm7, %v44_v38   ;;  %vm141_vm7 = vcmask 326944  }
  0x82   :  { %52 = vst.msk [vmem:[#allocation0] sm:$0x1] %vm51_vm8, %v50_v39   ;;  %vm147_vm8 = vcmask 294144  }
  0x84   :  { %v56_v40 = vpop.permute.xlu0 %55   ;;  %v62_v41 = vpop.permute.xlu1 %61  }
  0x85   :  { %58 = vst.msk [vmem:[#allocation0] sm:$0x1] %vm57_vm9, %v56_v40   ;;  %vm153_vm9 = vcmask 261344  }
  0x86   :  { %64 = vst.msk [vmem:[#allocation0] sm:$0x1] %vm63_vm10, %v62_v41   ;;  %vm159_vm10 = vcmask 228544  }
  0x88   :  { %v68_v42 = vpop.permute.xlu0 %67   ;;  %v74_v43 = vpop.permute.xlu1 %73  }
  0x89   :  { %70 = vst.msk [vmem:[#allocation0] sm:$0x1] %vm69_vm11, %v68_v42   ;;  %vm165_vm11 = vcmask 195744  }
  0x8a   :  { %76 = vst.msk [vmem:[#allocation0] sm:$0x1] %vm75_vm12, %v74_v43   ;;  %vm171_vm12 = vcmask 162944  }
  0x8c   :  { %v80_v44 = vpop.permute.xlu0 %79   ;;  %v86_v45 = vpop.permute.xlu1 %85  }
  0x8d   :  { %82 = vst.msk [vmem:[#allocation0] sm:$0x1] %vm81_vm13, %v80_v44   ;;  %vm177_vm13 = vcmask 130144  }
  0x8e   :  { %88 = vst.msk [vmem:[#allocation0] sm:$0x1] %vm87_vm14, %v86_v45   ;;  %vm183_vm14 = vcmask 97344  }
  0x90   :  { %v92_v46 = vpop.permute.xlu0 %91   ;;  %v98_v47 = vpop.permute.xlu1 %97  }
  0x91   :  { %94 = vst.msk [vmem:[#allocation0] sm:$0x1] %vm93_vm15, %v92_v46   ;;  %vm189_vm15 = vcmask 64544  }
  0x92   :  { %100 = vst.msk [vmem:[#allocation0] sm:$0x1] %vm99_vm0, %v98_v47  }
  0x94   :  { %v104_v48 = vpop.permute.xlu0 %103   ;;  %v110_v49 = vpop.permute.xlu1 %109  }
  0x95   :  { %106 = vst.msk [vmem:[#allocation0] sm:$0x1] %vm105_vm1, %v104_v48  }
  0x96   :  { %112 = vst.msk [vmem:[#allocation0] sm:$0x1] %vm111_vm2, %v110_v49  }
  0x98   :  { %v116_v50 = vpop.permute.xlu0 %115   ;;  %v122_v51 = vpop.permute.xlu1 %121  }
  0x99   :  { %118 = vst.msk [vmem:[#allocation0] sm:$0x1] %vm117_vm3, %v116_v50  }
  0x9a   :  { %124 = vst.msk [vmem:[#allocation0] sm:$0x1] %vm123_vm4, %v122_v51  }
  0x9c   :  { %v128_v52 = vpop.permute.xlu0 %127   ;;  %v134_v53 = vpop.permute.xlu1 %133  }
  0x9d   :  { %130 = vst.msk [vmem:[#allocation0] sm:$0x1] %vm129_vm5, %v128_v52  }
  0x9e   :  { %136 = vst.msk [vmem:[#allocation0] sm:$0x1] %vm135_vm6, %v134_v53  }
  0xa0   :  { %v140_v54 = vpop.permute.xlu0 %139   ;;  %v146_v55 = vpop.permute.xlu1 %145  }
  0xa1   :  { %142 = vst.msk [vmem:[#allocation0] sm:$0x1] %vm141_vm7, %v140_v54  }
  0xa2   :  { %148 = vst.msk [vmem:[#allocation0] sm:$0x1] %vm147_vm8, %v146_v55  }
  0xa4   :  { %v152_v56 = vpop.permute.xlu0 %151   ;;  %v158_v57 = vpop.permute.xlu1 %157  }
  0xa5   :  { %154 = vst.msk [vmem:[#allocation0] sm:$0x1] %vm153_vm9, %v152_v56  }
  0xa6   :  { %160 = vst.msk [vmem:[#allocation0] sm:$0x1] %vm159_vm10, %v158_v57  }
  0xa8   :  { %v164_v58 = vpop.permute.xlu0 %163   ;;  %v170_v59 = vpop.permute.xlu1 %169  }
  0xa9   :  { %166 = vst.msk [vmem:[#allocation0] sm:$0x1] %vm165_vm11, %v164_v58  }
  0xaa   :  { %172 = vst.msk [vmem:[#allocation0] sm:$0x1] %vm171_vm12, %v170_v59  }
  0xac   :  { %v176_v60 = vpop.permute.xlu0 %175   ;;  %v182_v61 = vpop.permute.xlu1 %181  }
  0xad   :  { %178 = vst.msk [vmem:[#allocation0] sm:$0x1] %vm177_vm13, %v176_v60  }
  0xae   :  { %184 = vst.msk [vmem:[#allocation0] sm:$0x1] %vm183_vm14, %v182_v61  }
  0xb0   :  { %v188_v62 = vpop.permute.xlu0 %187  }
  0xb1   :  { %190 = vst.msk [vmem:[#allocation0] sm:$0x1] %vm189_vm15, %v188_v62  }
  0xb8   :  { %v194_v63 = vld [vmem:[#allocation0] sm:$0x1] }
  0xb9   :  { %196 = vst [vmem:[%s400_s1] sm:$0x1] %v194_v63 }

// kernel: resblock_forward.5
= control target key start
LH: loop header
LB: loop body
LE: loop exit
PB: predicated region body
PF: predicated region fallthrough
CT: control target
= control target key end

     0   :  { %s320_s15 = smov 0   ;;  %s364_s0 = inlined_call_operand.vmem [shape: f32[16,128], index: 0, kind: input, shape index: {}]   ;;  %s365_s1 = inlined_call_operand.vmem [shape: f32[16,128], index: 1, kind: input, shape index: {}]   ;;  %s366_s2 = inlined_call_operand.vmem [shape: f32[1,128], index: 2, kind: input, shape index: {}]   ;;  %s367_s3 = inlined_call_operand.vmem [shape: f32[1,128], index: 3, kind: input, shape index: {}]   ;;  %s368_s4 = inlined_call_operand.vmem [shape: f32[16,128], index: 4, kind: output, shape index: {}]  }
   0x1 LB: > { %s296_s16 = sadd.s32 4294967295, %s322_s15   ;;  %p300_p0 = scmp.ge.s32.totalorder %s322_s15, 1  ;;  %s322_s15 = sphi %s320_s15, %s14_s15  }
   0x2   : > { %p170_p1 = scmp.lt.s32.totalorder %s322_s15, 3 }
   0x4   : > { %p171_p2 = pnand %p300_p0, %p170_p1 }
   0x5   : > { %p198_p3 = scmp.lt.s32.totalorder (!%p171_p2), %s296_s16, 1  ;;  %v304_v0 = vld [vmem:[%s366_s2] ss:$0 sm:$0xff] (!%p171_p2) }
   0x6   : > { %174 = sbr.rel (%p171_p2) target bundleno = 26 (0x1a), region = 36  ;;  %v305_v2 = vld [vmem:[%s367_s3] ss:$0 sm:$0xff] (!%p171_p2) }
   0xd   : > { %s370_s16 = smov (!%p198_p3, %s296_s16), 1 }
   0xe   : > { %s301_s17 = sshll.u32 %s370_s16, 3 }
   0xf   : > { %s201_s22 = scalar_lea.vmem %s364_s0, %s301_s17  ;;  %s205_s25 = scalar_lea.vmem %s365_s1, %s301_s17 }
  0x10   : > { %v210_v1 = vld [vmem:[%s201_s22] sm:$0xff]  ;;  %s209_s30 = scalar_lea.vmem %s368_s4, %s301_s17 }
  0x11   : > { %v218_v3 = vmul.f32 %v304_v0, %v210_v1  ;;  %v227_v4 = vld [vmem:[%s205_s25] sm:$0xff] }
  0x13   : > { %v226_v5 = vadd.f32 %v305_v2, %v218_v3 }
  0x15   : > { %v228_v6 = vadd.f32 %v227_v4, %v226_v5 }
  0x17   : > { %v229_v7 = vmax.f32 %v228_v6, 0.0 }
  0x19   : > { %230 = vst [vmem:[%s209_s30] sm:$0xff] %v229_v7 }
  0x1a PF: > { %s14_s15 = sadd.s32 1, %s322_s15  }
  0x1b   : > { %p11_p4 = scmp.ge.s32.totalorder %s14_s15, 4  }
  0x1d   :  { %13 = sbr.rel (!%p11_p4) target bundleno = 1 (0x1), region = 69 }

// kernel: resblock_forward.4
= control target key start
LH: loop header
LB: loop body
LE: loop exit
PB: predicated region body
PF: predicated region fallthrough
CT: control target
= control target key end

     0   :  { %s4032_s21 = smov 0   ;;  %s5158_s0 = inlined_call_operand.vmem [shape: f32[2,16,16,4], index: 0, kind: input, shape index: {}]   ;;  %s5159_s1 = inlined_call_operand.vmem [shape: f32[1,4], index: 1, kind: input, shape index: {}]   ;;  %s5160_s2 = inlined_call_operand.vmem [shape: f32[1,4], index: 2, kind: input, shape index: {}]   ;;  %s5161_s3 = inlined_call_operand.vmem [shape: f32[36,4], index: 3, kind: input, shape index: {}]   ;;  %s5162_s4 = inlined_call_operand.vmem [shape: f32[2,16,16,4], index: 4, kind: output, shape index: {0}]   ;;  %s5163_s5 = inlined_call_operand.vmem [shape: f32[2,1,4], index: 5, kind: output, shape index: {1}]   ;;  %s5164_s6 = inlined_call_operand.vmem [shape: f32[2,1,4], index: 6, kind: output, shape index: {2}]  }
   0x1 LB: > { %s3093_s22 = sadd.s32 4294967295, %s3994_s21   ;;  %p3097_p0 = scmp.ge.s32.totalorder %s3994_s21, 1  ;;  %s3994_s21 = sphi %s4032_s21, %s17_s21  }
   0x2   : > { %p217_p1 = scmp.lt.s32.totalorder %s3994_s21, 3 }
   0x4   : > { %p218_p2 = pnand %p3097_p0, %p217_p1 }
   0x6   : > { %221 = sbr.rel (%p218_p2) target bundleno = 568 (0x238), region = 36 }
   0xd   : > { %v541_v0 = vld [vmem:[%s5161_s3] sm:$0xff]  ;;  %vm937_vm0 = vcmask 1041408   ;;  %v543_v1 = vld [vmem:[%s5161_s3 + $0x10] sm:$0xff]  ;;  %vm412_vm1 = vcmask 31744   ;;  %vm415_vm2 = vcmask 25600   ;;  %v3996_v4 = vmov 0.0  }
   0xe   : > { %v4046_v2 = vpack.c.bf16 %v541_v0, %v541_v0  ;;  %v4048_v3 = vpack.c.bf16 %v543_v1, %v543_v1  ;;  %413 = vst.msk [vmem:[#allocation2] sm:$0xff] %vm412_vm1, %v3996_v4  ;;  %414 = vst.msk [vmem:[#allocation2 + $0x8] sm:$0xff] %vm412_vm1, %v3996_v4  ;;  %p253_p3 = scmp.lt.s32.totalorder %s3093_s22, 1  ;;  %vm422_vm3 = vcmask 24576   ;;  %v4103_v9 = vld [vmem:[%s5159_s1] ss:$0 sm:$0xff] }
   0xf   : > { %416 = vst.msk [vmem:[#allocation2 + $0x10] sm:$0x3] %vm415_vm2, %v3996_v4  ;;  %420 = vst.msk [vmem:[#allocation2 + $0x1a8] sm:$0x3] %vm415_vm2, %v3996_v4  ;;  %v4118_v10 = vld [vmem:[%s5160_s2] ss:$0 sm:$0xff] }
  0x10   : > { %5185 = vst [vmem:[#allocation3_spill] sm:$0xff] %v4048_v3  ;;  %418 = vst.msk [vmem:[#allocation2 + $0x198] sm:$0xff] %vm412_vm1, %v3996_v4  ;;  %v888_v5 = vrot.slane %v4046_v2, 2  ;;  %3973 = vmatprep.subr.msk.bf16.mxu0 %vm937_vm0, %v4048_v3  ;;  %v4059_v6 = vsel %vm937_vm0, %v4048_v3, 0  ;;  %s5218_s22 = smov (!%p253_p3, %s3093_s22), 1  ;;  %v1980_v7 = vrot.slane %v4048_v3, 2 }
  0x11   : > { %419 = vst.msk [vmem:[#allocation2 + $0x1a0] sm:$0xff] %vm412_vm1, %v3996_v4  ;;  %5186 = vst [vmem:[#allocation4_spill] sm:$0xff] %v4059_v6  ;;  %3542 = vmatpush3.bf16.msra.mxu0 %v4059_v6  ;;  %s3250_s27 = sshll.u32 %s5218_s22, 8  ;;  %vm594_vm4 = vcmask 1046528   ;;  %vm707_vm5 = vcmask 1045504   ;;  %s265_s24 = scalar_lea.vmem %s5163_s5, %s5218_s22 }
  0x12   : > { %423 = vst.msk [vmem:[#allocation2 + $0x18] sm:$0x1] %vm422_vm3, %v3996_v4  ;;  %439 = vst.msk [vmem:[#allocation2 + $0x29] sm:$0x1] %vm422_vm3, %v3996_v4  ;;  %3969 = vmatprep.subr.msk.bf16.mxu1 %vm937_vm0, %v888_v5  ;;  %v939_v8 = vsel %vm937_vm0, %v888_v5, 0  ;;  %3975 = vmatprep.subr.msk.bf16.mxu0 %vm937_vm0, %v1980_v7  ;;  %s4113_s8 = scalar_lea.vmem %s5158_s0, %s3250_s27  ;;  %s5007_s19 = scalar_lea.vmem %s5162_s4, %s3250_s27 }
  0x13   : > { %424 = vst.msk [vmem:[#allocation2 + $0x30] sm:$0x1] %vm422_vm3, %v3996_v4  ;;  %425 = vst.msk [vmem:[#allocation2 + $0x48] sm:$0x1] %vm422_vm3, %v3996_v4  ;;  %3406 = vmatpush3.bf16.msra.mxu1 %v939_v8  ;;  %v270_v11 = vld [vmem:[%s4113_s8] sm:$0xff]  ;;  %v271_v12 = vld [vmem:[%s4113_s8 + $0x8] sm:$0xff]  ;;  %s268_s27 = scalar_lea.vmem %s5164_s6, %s5218_s22 }
  0x14   : > { %426 = vst.msk [vmem:[#allocation2 + $0x60] sm:$0x1] %vm422_vm3, %v3996_v4  ;;  %427 = vst.msk [vmem:[#allocation2 + $0x78] sm:$0x1] %vm422_vm3, %v3996_v4  ;;  %3970 = vmatprep.subr.msk.bf16.mxu1 %vm937_vm0, %v4046_v2  ;;  %v272_v13 = vld [vmem:[%s4113_s8 + $0x10] sm:$0xff]  ;;  %v309_v17 = vmul.f32 %v4103_v9, %v270_v11  ;;  %v310_v18 = vmul.f32 %v4103_v9, %v271_v12  ;;  %v273_v23 = vld [vmem:[%s4113_s8 + $0x18] sm:$0xff] }
  0x15   : > { %428 = vst.msk [vmem:[#allocation2 + $0x90] sm:$0x1] %vm422_vm3, %v3996_v4  ;;  %429 = vst.msk [vmem:[#allocation2 + $0xa8] sm:$0x1] %vm422_vm3, %v3996_v4  ;;  %v4125_v14 = vld [vmem:[#allocation2] sm:$0xff]  ;;  %v4127_v15 = vld [vmem:[#allocation2 + $0x8] sm:$0xff]  ;;  %v311_v19 = vmul.f32 %v4103_v9, %v272_v13  ;;  %v312_v31 = vmul.f32 %v4103_v9, %v273_v23 }
  0x16   : > { %430 = vst.msk [vmem:[#allocation2 + $0xc0] sm:$0x1] %vm422_vm3, %v3996_v4  ;;  %431 = vst.msk [vmem:[#allocation2 + $0xd8] sm:$0x1] %vm422_vm3, %v3996_v4  ;;  %v4129_v16 = vld [vmem:[#allocation2 + $0x10] sm:$0x3]  ;;  %v348_v25 = vadd.f32 %v4118_v10, %v309_v17  ;;  %v349_v26 = vadd.f32 %v4118_v10, %v310_v18 }
  0x17   : > { %432 = vst.msk [vmem:[#allocation2 + $0xf0] sm:$0x1] %vm422_vm3, %v3996_v4  ;;  %433 = vst.msk [vmem:[#allocation2 + $0x108] sm:$0x1] %vm422_vm3, %v3996_v4  ;;  %v595_v20 = vrot.slane %v4125_v14, 1  ;;  %v596_v21 = vrot.slane %v4127_v15, 1  ;;  %v350_v32 = vadd.f32 %v4118_v10, %v311_v19  ;;  %v351_v41 = vadd.f32 %v4118_v10, %v312_v31 }
  0x18   : > { %434 = vst.msk [vmem:[#allocation2 + $0x120] sm:$0x1] %vm422_vm3, %v3996_v4  ;;  %435 = vst.msk [vmem:[#allocation2 + $0x138] sm:$0x1] %vm422_vm3, %v3996_v4  ;;  %v598_v22 = vrot.slane %v4129_v16, 1  ;;  %v274_v24 = vld [vmem:[%s4113_s8 + $0x20] sm:$0xff] }
  0x19   : > { %436 = vst.msk [vmem:[#allocation2 + $0x150] sm:$0x1] %vm422_vm3, %v3996_v4  ;;  %437 = vst.msk [vmem:[#allocation2 + $0x168] sm:$0x1] %vm422_vm3, %v3996_v4  ;;  %v275_v27 = vld [vmem:[%s4113_s8 + $0x28] sm:$0xff]  ;;  %v276_v28 = vld [vmem:[%s4113_s8 + $0x30] sm:$0xff]  ;;  %v597_v29 = vsel %vm594_vm4, %v595_v20, %v596_v21  ;;  %v313_v39 = vmul.f32 %v4103_v9, %v274_v24 }
  0x1a   : > { %438 = vst.msk [vmem:[#allocation2 + $0x180] sm:$0x1] %vm422_vm3, %v3996_v4  ;;  %440 = vst.msk [vmem:[#allocation2 + $0x41] sm:$0x1] %vm422_vm3, %v3996_v4  ;;  %v599_v30 = vsel %vm594_vm4, %v596_v21, %v598_v22  ;;  %v277_v33 = vld [vmem:[%s4113_s8 + $0x38] sm:$0xff]  ;;  %v278_v34 = vld [vmem:[%s4113_s8 + $0x40] sm:$0xff]  ;;  %v314_v43 = vmul.f32 %v4103_v9, %v275_v27  ;;  %v315_v44 = vmul.f32 %v4103_v9, %v276_v28 }
  0x1b   : > { %441 = vst.msk [vmem:[#allocation2 + $0x59] sm:$0x1] %vm422_vm3, %v3996_v4  ;;  %442 = vst.msk [vmem:[#allocation2 + $0x71] sm:$0x1] %vm422_vm3, %v3996_v4  ;;  %v279_v35 = vld [vmem:[%s4113_s8 + $0x48] sm:$0xff]  ;;  %v871_v36 = vpack.c.bf16 %v599_v30, %v597_v29  ;;  %v380_v37 = vmax.f32 %v348_v25, 0.0  ;;  %v352_v45 = vadd.f32 %v4118_v10, %v313_v39  ;;  %v316_v46 = vmul.f32 %v4103_v9, %v277_v33 }
  0x1c   : > { %443 = vst.msk [vmem:[#allocation2 + $0x89] sm:$0x1] %vm422_vm3, %v3996_v4  ;;  %444 = vst.msk [vmem:[#allocation2 + $0xa1] sm:$0x1] %vm422_vm3, %v3996_v4  ;;  %v381_v38 = vmax.f32 %v349_v26, 0.0  ;;  %v280_v40 = vld [vmem:[%s4113_s8 + $0x50] sm:$0xff]  ;;  %v317_v47 = vmul.f32 %v4103_v9, %v278_v34  ;;  %v318_v48 = vmul.f32 %v4103_v9, %v279_v35  ;;  %v353_v51 = vadd.f32 %v4118_v10, %v314_v43 }
  0x1d   : > { %445 = vst.msk [vmem:[#allocation2 + $0xb9] sm:$0x1] %vm422_vm3, %v3996_v4  ;;  %446 = vst.msk [vmem:[#allocation2 + $0xd1] sm:$0x1] %vm422_vm3, %v3996_v4  ;;  %v382_v42 = vmax.f32 %v350_v32, 0.0  ;;  %3407 = vmatprep.mubr.msk.bf16.mxu1 %vm412_vm1, %v871_v36  ;;  %v281_v49 = vld [vmem:[%s4113_s8 + $0x58] sm:$0xff]  ;;  %v354_v52 = vadd.f32 %v4118_v10, %v315_v44  ;;  %v319_v53 = vmul.f32 %v4103_v9, %v280_v40 }
  0x1e   : > { %447 = vst.msk [vmem:[#allocation2 + $0xe9] sm:$0x1] %vm422_vm3, %v3996_v4  ;;  %448 = vst.msk [vmem:[#allocation2 + $0x101] sm:$0x1] %vm422_vm3, %v3996_v4  ;;  %v383_v50 = vmax.f32 %v351_v41, 0.0  ;;  %v282_v54 = vld [vmem:[%s4113_s8 + $0x60] sm:$0xff]  ;;  %v355_v56 = vadd.f32 %v4118_v10, %v316_v46  ;;  %v356_v57 = vadd.f32 %v4118_v10, %v317_v47  ;;  %v357_v58 = vadd.f32 %v4118_v10, %v318_v48 }
  0x1f   : > { %449 = vst.msk [vmem:[#allocation2 + $0x119] sm:$0x1] %vm422_vm3, %v3996_v4  ;;  %450 = vst.msk [vmem:[#allocation2 + $0x131] sm:$0x1] %vm422_vm3, %v3996_v4  ;;  %v384_v55 = vmax.f32 %v352_v45, 0.0  ;;  %v283_v59 = vld [vmem:[%s4113_s8 + $0x68] sm:$0xff]  ;;  %v320_v63 = vmul.f32 %v4103_v9, %v281_v49  ;;  %v358_v0 = vadd.f32 %v4118_v10, %v319_v53  ;;  %v321_v12 = vmul.f32 %v4103_v9, %v282_v54 }
  0x20   : > { %451 = vst.msk [vmem:[#allocation2 + $0x149] sm:$0x1] %vm422_vm3, %v3996_v4  ;;  %452 = vst.msk [vmem:[#allocation2 + $0x161] sm:$0x1] %vm422_vm3, %v3996_v4  ;;  %v284_v60 = vld [vmem:[%s4113_s8 + $0x70] sm:$0xff]  ;;  %v385_v61 = vmax.f32 %v353_v51, 0.0  ;;  %v322_v19 = vmul.f32 %v4103_v9, %v283_v59 }
  0x21   : > { %453 = vst.msk [vmem:[#allocation2 + $0x179] sm:$0x1] %vm422_vm3, %v3996_v4  ;;  %454 = vst.msk [vmem:[#allocation2 + $0x191] sm:$0x1] %vm422_vm3, %v3996_v4  ;;  %v386_v62 = vmax.f32 %v354_v52, 0.0  ;;  %v285_v1 = vld [vmem:[%s4113_s8 + $0x78] sm:$0xff]  ;;  %v359_v17 = vadd.f32 %v4118_v10, %v320_v63  ;;  %v323_v20 = vmul.f32 %v4103_v9, %v284_v60  ;;  %v360_v21 = vadd.f32 %v4118_v10, %v321_v12 }
  0x22   : > { %455 = vst.msk [vmem:[#allocation2 + $0x19] sm:$0xff] %vm412_vm1, %v380_v37  ;;  %456 = vst.msk [vmem:[#allocation2 + $0x21] sm:$0xff] %vm412_vm1, %v381_v38  ;;  %v286_v4 = vld [vmem:[%s4113_s8 + $0x80] sm:$0xff]  ;;  %v387_v5 = vmax.f32 %v355_v56, 0.0  ;;  %v388_v8 = vmax.f32 %v356_v57, 0.0  ;;  %v389_v11 = vmax.f32 %v357_v58, 0.0  ;;  %v324_v22 = vmul.f32 %v4103_v9, %v285_v1 }
  0x23   : > { %457 = vst.msk [vmem:[#allocation2 + $0x31] sm:$0xff] %vm412_vm1, %v382_v42  ;;  %458 = vst.msk [vmem:[#allocation2 + $0x39] sm:$0xff] %vm412_vm1, %v383_v50  ;;  %v287_v13 = vld [vmem:[%s4113_s8 + $0x88] sm:$0xff]  ;;  %v390_v18 = vmax.f32 %v358_v0, 0.0  ;;  %v325_v23 = vmul.f32 %v4103_v9, %v286_v4  ;;  %v544_v24 = vld [vmem:[%s5161_s3 + $0x18] sm:$0xff]  ;;  %v391_v29 = vmax.f32 %v359_v17, 0.0  ;;  %v361_v30 = vadd.f32 %v4118_v10, %v322_v19 }
  0x24   : > { %459 = vst.msk [vmem:[#allocation2 + $0x49] sm:$0xff] %vm412_vm1, %v384_v55  ;;  %460 = vst.msk [vmem:[#allocation2 + $0x51] sm:$0xff] %vm412_vm1, %v385_v61  ;;  %v542_v25 = vld [vmem:[%s5161_s3 + $0x8] sm:$0xff]  ;;  %v362_v31 = vadd.f32 %v4118_v10, %v323_v20  ;;  %v326_v32 = vmul.f32 %v4103_v9, %v287_v13  ;;  %v392_v37 = vmax.f32 %v360_v21, 0.0  ;;  %v1151_v38 = vsel %vm937_vm0, %v4046_v2, 0  ;;  %v288_v58 = vld [vmem:[%s4113_s8 + $0x90] sm:$0xff] }
  0x25   : > { %461 = vst.msk [vmem:[#allocation2 + $0x61] sm:$0xff] %vm412_vm1, %v386_v62  ;;  %462 = vst.msk [vmem:[#allocation2 + $0x69] sm:$0xff] %vm412_vm1, %v387_v5  ;;  %v393_v40 = vmax.f32 %v361_v30, 0.0  ;;  %v4217_v41 = vpack.c.bf16 %v544_v24, %v544_v24  ;;  %v4226_v2 = vpack.c.bf16 %v542_v25, %v542_v25  ;;  %v1985_v50 = vsel %vm937_vm0, %v1980_v7, 0  ;;  %v289_v21 = vld [vmem:[%s4113_s8 + $0x98] sm:$0xff] }
  0x26   : > { %463 = vst.msk [vmem:[#allocation2 + $0x79] sm:$0xff] %vm412_vm1, %v388_v8  ;;  %464 = vst.msk [vmem:[#allocation2 + $0x81] sm:$0xff] %vm412_vm1, %v389_v11  ;;  %v394_v46 = vmax.f32 %v362_v31, 0.0  ;;  %v363_v56 = vadd.f32 %v4118_v10, %v324_v22  ;;  %v364_v57 = vadd.f32 %v4118_v10, %v325_v23  ;;  %v365_v7 = vadd.f32 %v4118_v10, %v326_v32 }
  0x27   : > { %465 = vst.msk [vmem:[#allocation2 + $0x91] sm:$0xff] %vm412_vm1, %v390_v18  ;;  %466 = vst.msk [vmem:[#allocation2 + $0x99] sm:$0xff] %vm412_vm1, %v391_v29 }
  0x28   : > { %467 = vst.msk [vmem:[#allocation2 + $0xa9] sm:$0xff] %vm412_vm1, %v392_v37  ;;  %468 = vst.msk [vmem:[#allocation2 + $0xb1] sm:$0xff] %vm412_vm1, %v393_v40  ;;  %v328_v40 = vmul.f32 %v4103_v9, %v289_v21 }
  0x29   : > { %v4198_v26 = vld [vmem:[#allocation2 + $0x18] sm:$0xff]  ;;  %v4200_v27 = vld [vmem:[#allocation2 + $0x20] sm:$0xff]  ;;  %v4202_v28 = vld [vmem:[#allocation2 + $0x28] sm:$0x3]  ;;  %469 = vst.msk [vmem:[#allocation2 + $0xc1] sm:$0xff] %vm412_vm1, %v394_v46 }
  0x2a   : > { %v600_v33 = vrot.slane %v4198_v26, 1  ;;  %v601_v34 = vrot.slane %v4200_v27, 1  ;;  %v603_v35 = vrot.slane %v4202_v28, 1  ;;  %v4211_v36 = vld [vmem:[#allocation2 + $0x30] sm:$0xff]  ;;  %v4221_v44 = vld [vmem:[#allocation2 + $0x38] sm:$0xff] }
  0x2b   : > { %v605_v39 = vrot.slane %v4211_v36, 1  ;;  %v4223_v45 = vld [vmem:[#allocation2 + $0x40] sm:$0x3]  ;;  %v606_v48 = vrot.slane %v4221_v44, 1  ;;  %v4233_v51 = vld [vmem:[#allocation2 + $0x48] sm:$0xff]  ;;  %v4236_v52 = vld [vmem:[#allocation2 + $0x50] sm:$0xff] }
  0x2c   : > { %v602_v42 = vsel %vm594_vm4, %v600_v33, %v601_v34  ;;  %v604_v43 = vsel %vm594_vm4, %v601_v34, %v603_v35  ;;  %v608_v49 = vrot.slane %v4223_v45, 1  ;;  %v4238_v53 = vld [vmem:[#allocation2 + $0x58] sm:$0x3]  ;;  %v610_v54 = vrot.slane %v4233_v51, 1  ;;  %v4241_v55 = vld [vmem:[#allocation2 + $0x60] sm:$0xff]  ;;  %v4254_v63 = vld [vmem:[#allocation2 + $0x68] sm:$0xff] }
  0x2d   : > { %v872_v47 = vpack.c.bf16 %v604_v43, %v602_v42  ;;  %v607_v59 = vsel %vm594_vm4, %v605_v39, %v606_v48  ;;  %v611_v61 = vrot.slane %v4236_v52, 1  ;;  %v613_v62 = vrot.slane %v4238_v53, 1  ;;  %v4256_v0 = vld [vmem:[#allocation2 + $0x70] sm:$0x3]  ;;  %v4258_v1 = vld [vmem:[#allocation2 + $0x78] sm:$0xff]  ;;  %v4265_v12 = vld [vmem:[#allocation2 + $0x80] sm:$0xff] }
  0x2e   : > { %v609_v60 = vsel %vm594_vm4, %v606_v48, %v608_v49  ;;  %v615_v5 = vrot.slane %v4241_v55, 1  ;;  %v616_v8 = vrot.slane %v4254_v63, 1  ;;  %v618_v11 = vrot.slane %v4256_v0, 1  ;;  %v4267_v13 = vld [vmem:[#allocation2 + $0x88] sm:$0x3]  ;;  %v4285_v29 = vld [vmem:[#allocation2 + $0x90] sm:$0xff] }
  0x2f   : > { %3408 = vmatmul.mubr.msk.bf16.vlgmr.msra.gmra.mrb[0].mxu1 %vm412_vm1, %v872_v47  ;;  %3543 = vmatprep.mubr.msk.bf16.mxu0 %vm412_vm1, %v872_v47  ;;  %v4260_v4 = vpack.c.bf16 %v609_v60, %v607_v59  ;;  %v612_v17 = vsel %vm594_vm4, %v610_v54, %v611_v61  ;;  %v614_v18 = vsel %vm594_vm4, %v611_v61, %v613_v62  ;;  %v620_v19 = vrot.slane %v4258_v1, 1  ;;  %v4287_v30 = vld [vmem:[#allocation2 + $0x98] sm:$0xff]  ;;  %v4289_v31 = vld [vmem:[#allocation2 + $0xa0] sm:$0x3]  ;;  %v4291_v32 = vld [vmem:[#allocation2 + $0xa8] sm:$0xff] }
  0x30   : > { %3440 = vmatpush3.bf16.msra.mxu1 %v1151_v38  ;;  %v621_v20 = vrot.slane %v4265_v12, 1  ;;  %v4280_v22 = vpack.c.bf16 %v614_v18, %v612_v17  ;;  %v617_v23 = vsel %vm594_vm4, %v615_v5, %v616_v8  ;;  %v619_v24 = vsel %vm594_vm4, %v616_v8, %v618_v11  ;;  %v4298_v37 = vld [vmem:[#allocation2 + $0xb0] sm:$0xff]  ;;  %v4300_v38 = vld [vmem:[#allocation2 + $0xb8] sm:$0x3]  ;;  %v291_v60 = vld [vmem:[%s4113_s8 + $0xa8] sm:$0xff] }
  0x31   : > { %5187 = vst [vmem:[#allocation5_spill] sm:$0xff] %v4260_v4  ;;  %3971 = vmatprep.subr.msk.bf16.mxu1 %vm937_vm0, %v4226_v2  ;;  %3544 = vmatmul.mubr.msk.bf16.vlgmr.msra.gmra.mrb[0].mxu0 %vm412_vm1, %v4260_v4  ;;  %v623_v25 = vrot.slane %v4267_v13, 1  ;;  %v327_v33 = vmul.f32 %v4103_v9, %v288_v58  ;;  %v395_v39 = vmax.f32 %v363_v56, 0.0  ;;  %v4305_v42 = vpack.c.bf16 %v619_v24, %v617_v23  ;;  %v290_v56 = vld [vmem:[%s4113_s8 + $0xa0] sm:$0xff]  ;;  %v292_v23 = vld [vmem:[%s4113_s8 + $0xb0] sm:$0xff] }
  0x32   : > { %3411 = vmatprep.mubr.msk.bf16.mxu1 %vm412_vm1, %v4260_v4  ;;  %5188 = vst [vmem:[#allocation6_spill] sm:$0xff] %v4280_v22  ;;  %3576 = vmatpush3.bf16.msra.mxu0 %v1985_v50  ;;  %v622_v34 = vsel %vm594_vm4, %v620_v19, %v621_v20  ;;  %v625_v43 = vrot.slane %v4285_v29, 1  ;;  %v626_v46 = vrot.slane %v4287_v30, 1  ;;  %v628_v47 = vrot.slane %v4289_v31, 1  ;;  %v4332_v11 = vld [vmem:[#allocation2 + $0xc0] sm:$0xff] }
  0x33   : > { %3547 = vmatprep.mubr.msk.bf16.mxu0 %vm412_vm1, %v4280_v22  ;;  %v624_v35 = vsel %vm594_vm4, %v621_v20, %v623_v25  ;;  %3976 = vmatprep.subr.msk.bf16.mxu0 %vm937_vm0, %v4217_v41  ;;  %5189 = vst [vmem:[#allocation7_spill] sm:$0xff] %v4305_v42  ;;  %v630_v48 = vrot.slane %v4291_v32, 1  ;;  %v631_v49 = vrot.slane %v4298_v37, 1  ;;  %470 = vst.msk [vmem:[#allocation2 + $0xc9] sm:$0xff] %vm412_vm1, %v395_v39  ;;  %v396_v50 = vmax.f32 %v364_v57, 0.0 }
  0x34   : > { %v397_v54 = vmax.f32 %v365_v7, 0.0  ;;  %v4316_v58 = vpack.c.bf16 %v624_v35, %v622_v34  ;;  %v633_v59 = vrot.slane %v4300_v38, 1  ;;  %v366_v57 = vadd.f32 %v4118_v10, %v327_v33  ;;  %v293_v35 = vld [vmem:[%s4113_s8 + $0xb8] sm:$0xff] }
  0x35   : > { %471 = vst.msk [vmem:[#allocation2 + $0xd9] sm:$0xff] %vm412_vm1, %v396_v50  ;;  %v367_v7 = vadd.f32 %v4118_v10, %v328_v40  ;;  %v329_v61 = vmul.f32 %v4103_v9, %v290_v56  ;;  %v627_v62 = vsel %vm594_vm4, %v625_v43, %v626_v46  ;;  %v629_v5 = vsel %vm594_vm4, %v626_v46, %v628_v47 }
  0x36   : > { %5190 = vst [vmem:[#allocation8_spill] sm:$0xff] %v4316_v58  ;;  %472 = vst.msk [vmem:[#allocation2 + $0xe1] sm:$0xff] %vm412_vm1, %v397_v54  ;;  %v632_v8 = vsel %vm594_vm4, %v630_v48, %v631_v49  ;;  %v330_v17 = vmul.f32 %v4103_v9, %v291_v60  ;;  %v634_v18 = vsel %vm594_vm4, %v631_v49, %v633_v59  ;;  %v398_v19 = vmax.f32 %v366_v57, 0.0  ;;  %v294_v57 = vld [vmem:[%s4113_s8 + $0xc0] sm:$0xff] }
  0x37   : > { %3412 = vmatmul.mubr.msk.bf16.gmra.mrb[4].mxu1 %vm412_vm1, %v4280_v22  ;;  %v399_v20 = vmax.f32 %v367_v7, 0.0  ;;  %v368_v21 = vadd.f32 %v4118_v10, %v329_v61  ;;  %v713_v24 = vrot.slane %v4198_v26, 2  ;;  %v714_v25 = vrot.slane %v4200_v27, 2 }
  0x38   : > { %3415 = vmatprep.mubr.msk.bf16.mxu1 %vm412_vm1, %v4305_v42  ;;  %v716_v33 = vrot.slane %v4202_v28, 2  ;;  %v369_v34 = vadd.f32 %v4118_v10, %v330_v17  ;;  %v4345_v39 = vpack.c.bf16 %v629_v5, %v627_v62  ;;  %v635_v46 = vrot.slane %v4332_v11, 1  ;;  %473 = vst.msk [vmem:[#allocation2 + $0xf1] sm:$0xff] %vm412_vm1, %v398_v19 }
  0x39   : > { %3548 = vmatmul.mubr.msk.bf16.gmra.mrb[4].mxu0 %vm412_vm1, %v4305_v42  ;;  %474 = vst.msk [vmem:[#allocation2 + $0xf9] sm:$0xff] %vm412_vm1, %v399_v20  ;;  %v400_v47 = vmax.f32 %v368_v21, 0.0  ;;  %v331_v50 = vmul.f32 %v4103_v9, %v292_v23  ;;  %v718_v54 = vrot.slane %v4211_v36, 2  ;;  %v4360_v56 = vpack.c.bf16 %v634_v18, %v632_v8  ;;  %v295_v18 = vld [vmem:[%s4113_s8 + $0xc8] sm:$0xff] }
  0x3a   : > { %3551 = vmatprep.mubr.msk.bf16.mxu0 %vm412_vm1, %v4316_v58  ;;  %5191 = vst [vmem:[#allocation9_spill] sm:$0xff] %v4345_v39  ;;  %v4347_v40 = vld [vmem:[#allocation2 + $0xc8] sm:$0xff]  ;;  %v4349_v43 = vld [vmem:[#allocation2 + $0xd0] sm:$0x3]  ;;  %v401_v49 = vmax.f32 %v369_v34, 0.0  ;;  %v332_v60 = vmul.f32 %v4103_v9, %v293_v35  ;;  %v719_v7 = vrot.slane %v4221_v44, 2  ;;  %v715_v8 = vsel %vm707_vm5, %v713_v24, %v714_v25 }
  0x3b   : > { %v636_v28 = vrot.slane %v4347_v40, 1  ;;  %v638_v48 = vrot.slane %v4349_v43, 1  ;;  %5192 = vst [vmem:[#allocation10_spill] sm:$0xff] %v4360_v56  ;;  %475 = vst.msk [vmem:[#allocation2 + $0x109] sm:$0xff] %vm412_vm1, %v400_v47  ;;  %v721_v61 = vrot.slane %v4223_v45, 2  ;;  %v717_v17 = vsel %vm707_vm5, %v714_v25, %v716_v33  ;;  %v296_v47 = vld [vmem:[%s4113_s8 + $0xd0] sm:$0xff] }
  0x3c   : > { %v4362_v59 = vld [vmem:[#allocation2 + $0xd8] sm:$0xff]  ;;  %476 = vst.msk [vmem:[#allocation2 + $0x111] sm:$0xff] %vm412_vm1, %v401_v49  ;;  %v723_v20 = vrot.slane %v4233_v51, 2  ;;  %v724_v45 = vrot.slane %v4236_v52, 2  ;;  %v726_v21 = vrot.slane %v4238_v53, 2  ;;  %v370_v25 = vadd.f32 %v4118_v10, %v331_v50 }
  0x3d   : > { %v4371_v62 = vld [vmem:[#allocation2 + $0xe0] sm:$0xff]  ;;  %v4373_v5 = vld [vmem:[#allocation2 + $0xe8] sm:$0x3]  ;;  %v637_v19 = vsel %vm594_vm4, %v635_v46, %v636_v28  ;;  %v639_v23 = vsel %vm594_vm4, %v636_v28, %v638_v48  ;;  %v640_v24 = vrot.slane %v4362_v59, 1  ;;  %v371_v33 = vadd.f32 %v4118_v10, %v332_v60 }
  0x3e   : > { %v641_v34 = vrot.slane %v4371_v62, 1  ;;  %v643_v35 = vrot.slane %v4373_v5, 1  ;;  %v333_v53 = vmul.f32 %v4103_v9, %v294_v57  ;;  %v334_v46 = vmul.f32 %v4103_v9, %v295_v18 }
  0x3f   : > { %3416 = vmatmul.mubr.msk.bf16.gmra.mrb[8].mxu1 %vm412_vm1, %v4316_v58  ;;  %v720_v28 = vsel %vm707_vm5, %v718_v54, %v719_v7  ;;  %v722_v48 = vsel %vm707_vm5, %v719_v7, %v721_v61  ;;  %v4398_v49 = vld [vmem:[#allocation2 + $0xf0] sm:$0xff]  ;;  %v402_v6 = vmax.f32 %v370_v25, 0.0  ;;  %v4408_v54 = vpack.c.bf16 %v639_v23, %v637_v19 }
  0x40   : > { %3419 = vmatprep.mubr.msk.bf16.mxu1 %vm412_vm1, %v4345_v39  ;;  %v4400_v50 = vld [vmem:[#allocation2 + $0xf8] sm:$0xff]  ;;  %v4402_v60 = vld [vmem:[#allocation2 + $0x100] sm:$0x3]  ;;  %v645_v58 = vrot.slane %v4398_v49, 1  ;;  %v372_v42 = vadd.f32 %v4118_v10, %v333_v53  ;;  %v4410_v7 = vpack.c.bf16 %v717_v17, %v715_v8  ;;  %v373_v61 = vadd.f32 %v4118_v10, %v334_v46 }
  0x41   : > { %3552 = vmatmul.mubr.msk.bf16.gmra.mrb[8].mxu0 %vm412_vm1, %v4345_v39  ;;  %v403_v39 = vmax.f32 %v371_v33, 0.0  ;;  %v646_v57 = vrot.slane %v4400_v50, 1  ;;  %v648_v18 = vrot.slane %v4402_v60, 1  ;;  %5193 = vst [vmem:[#allocation11_spill] sm:$0xff] %v4408_v54  ;;  %477 = vst.msk [vmem:[#allocation2 + $0x121] sm:$0xff] %vm412_vm1, %v402_v6  ;;  %v642_v25 = vsel %vm594_vm4, %v640_v24, %v641_v34  ;;  %v297_v53 = vld [vmem:[%s4113_s8 + $0xd8] sm:$0xff] }
  0x42   : > { %3555 = vmatprep.mubr.msk.bf16.mxu0 %vm412_vm1, %v4360_v56  ;;  %5194 = vst [vmem:[#allocation12_spill] sm:$0xff] %v4410_v7  ;;  %v644_v33 = vsel %vm594_vm4, %v641_v34, %v643_v35  ;;  %v404_v22 = vmax.f32 %v372_v42, 0.0  ;;  %v335_v8 = vmul.f32 %v4103_v9, %v296_v47  ;;  %v4423_v6 = vpack.c.bf16 %v722_v48, %v720_v28  ;;  %v4427_v19 = vld [vmem:[#allocation2 + $0x108] sm:$0xff] }
  0x43   : > { %478 = vst.msk [vmem:[#allocation2 + $0x129] sm:$0xff] %vm412_vm1, %v403_v39  ;;  %v647_v39 = vsel %vm594_vm4, %v645_v58, %v646_v57  ;;  %v649_v17 = vsel %vm594_vm4, %v646_v57, %v648_v18  ;;  %v4429_v23 = vld [vmem:[#allocation2 + $0x110] sm:$0xff]  ;;  %v405_v24 = vmax.f32 %v373_v61, 0.0  ;;  %v4431_v42 = vld [vmem:[#allocation2 + $0x118] sm:$0x3]  ;;  %v725_v34 = vsel %vm707_vm5, %v723_v20, %v724_v45  ;;  %v298_v58 = vld [vmem:[%s4113_s8 + $0xe0] sm:$0xff] }
  0x44   : > { %v727_v35 = vsel %vm707_vm5, %v724_v45, %v726_v21  ;;  %v728_v46 = vrot.slane %v4241_v55, 2  ;;  %v729_v47 = vrot.slane %v4254_v63, 2  ;;  %479 = vst.msk [vmem:[#allocation2 + $0x139] sm:$0xff] %vm412_vm1, %v404_v22  ;;  %v299_v28 = vld [vmem:[%s4113_s8 + $0xe8] sm:$0xff]  ;;  %v4442_v48 = vpack.c.bf16 %v644_v33, %v642_v25 }
  0x45   : > { %v731_v57 = vrot.slane %v4256_v0, 2  ;;  %480 = vst.msk [vmem:[#allocation2 + $0x141] sm:$0xff] %vm412_vm1, %v405_v24  ;;  %v733_v20 = vrot.slane %v4258_v1, 2  ;;  %v336_v45 = vmul.f32 %v4103_v9, %v297_v53  ;;  %v4450_v21 = vpack.c.bf16 %v649_v17, %v647_v39 }
  0x46   : > { %5195 = vst [vmem:[#allocation13_spill] sm:$0xff] %v4442_v48  ;;  %v650_v22 = vrot.slane %v4427_v19, 1  ;;  %v651_v18 = vrot.slane %v4429_v23, 1  ;;  %v374_v61 = vadd.f32 %v4118_v10, %v335_v8  ;;  %v653_v25 = vrot.slane %v4431_v42, 1 }
  0x47   : > { %3420 = vmatmul.mubr.msk.bf16.gmra.mrb[12].mxu1 %vm412_vm1, %v4360_v56  ;;  %5196 = vst [vmem:[#allocation14_spill] sm:$0xff] %v4450_v21  ;;  %v375_v0 = vadd.f32 %v4118_v10, %v336_v45  ;;  %v337_v33 = vmul.f32 %v4103_v9, %v298_v58  ;;  %v338_v24 = vmul.f32 %v4103_v9, %v299_v28  ;;  %v734_v17 = vrot.slane %v4265_v12, 2 }
  0x48   : > { %3423 = vmatprep.mubr.msk.bf16.mxu1 %vm412_vm1, %v4408_v54  ;;  %v4459_v53 = vld [vmem:[#allocation2 + $0x120] sm:$0xff]  ;;  %v406_v56 = vmax.f32 %v374_v61, 0.0  ;;  %v4470_v4 = vpack.c.bf16 %v4200_v27, %v4198_v26  ;;  %v736_v61 = vrot.slane %v4267_v13, 2  ;;  %v2186_v27 = vsel %vm937_vm0, %v4217_v41, 0 }
  0x49   : > { %3556 = vmatmul.mubr.msk.bf16.gmra.mrb[12].mxu0 %vm412_vm1, %v4408_v54  ;;  %v655_v58 = vrot.slane %v4459_v53, 1  ;;  %v407_v3 = vmax.f32 %v375_v0, 0.0  ;;  %v376_v8 = vadd.f32 %v4118_v10, %v337_v33  ;;  %v377_v26 = vadd.f32 %v4118_v10, %v338_v24 }
  0x4a   : > { %3577 = vmatprep.mubr.msk.bf16.mxu0 %vm412_vm1, %v4410_v7  ;;  %v4461_v54 = vld [vmem:[#allocation2 + $0x128] sm:$0xff]  ;;  %v4463_v39 = vld [vmem:[#allocation2 + $0x130] sm:$0x3]  ;;  %v4477_v7 = vpack.c.bf16 %v727_v35, %v725_v34  ;;  %481 = vst.msk [vmem:[#allocation2 + $0x151] sm:$0xff] %vm412_vm1, %v406_v56  ;;  %v652_v0 = vsel %vm594_vm4, %v650_v22, %v651_v18  ;;  %v5180_v13 = vrot.slane %v4217_v41, 2  ;;  %v730_v22 = vsel %vm707_vm5, %v728_v46, %v729_v47 }
  0x4b   : > { %5197 = vst [vmem:[#allocation15_spill] sm:$0xff] %v4463_v39  ;;  %v656_v28 = vrot.slane %v4461_v54, 1  ;;  %v658_v45 = vrot.slane %v4463_v39, 1  ;;  %v4489_v34 = vld [vmem:[#allocation2 + $0x138] sm:$0xff]  ;;  %482 = vst.msk [vmem:[#allocation2 + $0x159] sm:$0xff] %vm412_vm1, %v407_v3  ;;  %v408_v39 = vmax.f32 %v376_v8, 0.0  ;;  %v735_v3 = vsel %vm707_vm5, %v733_v20, %v734_v17 }
  0x4c   : > { %v4495_v33 = vld [vmem:[#allocation2 + $0x140] sm:$0xff]  ;;  %v4497_v24 = vld [vmem:[#allocation2 + $0x148] sm:$0x3]  ;;  %v741_v20 = vrot.slane %v4289_v31, 2 }
  0x4d   : > { %v657_v56 = vsel %vm594_vm4, %v655_v58, %v656_v28  ;;  %v659_v35 = vsel %vm594_vm4, %v656_v28, %v658_v45  ;;  %v660_v58 = vrot.slane %v4489_v34, 1  ;;  %v661_v8 = vrot.slane %v4495_v33, 1  ;;  %483 = vst.msk [vmem:[#allocation2 + $0x169] sm:$0xff] %vm412_vm1, %v408_v39 }
  0x4e   : > { %v737_v28 = vsel %vm707_vm5, %v734_v17, %v736_v61  ;;  %v4513_v46 = vpack.c.bf16 %v659_v35, %v657_v56  ;;  %v744_v61 = vrot.slane %v4298_v37, 2  ;;  %v746_v56 = vrot.slane %v4300_v38, 2 }
  0x4f   : > { %3424 = vmatmul.mubr.msk.bf16.gmra.mrb[16].mxu1 %vm412_vm1, %v4442_v48  ;;  %v654_v48 = vsel %vm594_vm4, %v651_v18, %v653_v25  ;;  %v732_v18 = vsel %vm707_vm5, %v729_v47, %v731_v57  ;;  %v663_v47 = vrot.slane %v4497_v24, 1  ;;  %v739_v57 = vrot.slane %v4287_v30, 2 }
  0x50   : > { %3427 = vmatprep.mubr.msk.bf16.mxu1 %vm412_vm1, %v4450_v21  ;;  %v409_v21 = vmax.f32 %v377_v26, 0.0  ;;  %v4504_v25 = vpack.c.bf16 %v654_v48, %v652_v0  ;;  %5199 = vst [vmem:[#allocation17_spill] sm:$0xff] %v4513_v46  ;;  %v738_v48 = vrot.slane %v4285_v29, 2  ;;  %v4522_v45 = vpack.c.bf16 %v732_v18, %v730_v22 }
  0x51   : > { %3578 = vmatmul.mubr.msk.bf16.vlgmr.msra.gmra.mrb[0].mxu0 %vm412_vm1, %v4423_v6  ;;  %v4524_v17 = vpack.c.bf16 %v737_v28, %v735_v3  ;;  %v4526_v39 = vld [vmem:[#allocation2 + $0x150] sm:$0xff]  ;;  %v662_v26 = vsel %vm594_vm4, %v660_v58, %v661_v8  ;;  %v4541_v35 = vpack.c.bf16 %v4221_v44, %v4211_v36  ;;  %v664_v22 = vsel %vm594_vm4, %v661_v8, %v663_v47 }
  0x52   : > { %3610 = vmatpush3.bf16.msra.mxu0 %v2186_v27  ;;  %5198 = vst [vmem:[#allocation16_spill] sm:$0xff] %v4504_v25  ;;  %3581 = vmatprep.mubr.msk.bf16.mxu0 %vm412_vm1, %v4477_v7  ;;  %484 = vst.msk [vmem:[#allocation2 + $0x171] sm:$0xff] %vm412_vm1, %v409_v21  ;;  %v743_v21 = vrot.slane %v4291_v32, 2  ;;  %v4533_v27 = vld [vmem:[#allocation2 + $0x158] sm:$0xff]  ;;  %v4535_v0 = vld [vmem:[#allocation2 + $0x160] sm:$0x3]  ;;  %v4550_v58 = vpack.c.bf16 %v4236_v52, %v4233_v51  ;;  %v740_v28 = vsel %vm707_vm5, %v738_v48, %v739_v57 }
  0x53   : > { %3977 = vmatprep.subr.msk.bf16.mxu0 %vm937_vm0, %v5180_v13  ;;  %v665_v31 = vrot.slane %v4526_v39, 1  ;;  %v666_v18 = vrot.slane %v4533_v27, 1  ;;  %v668_v3 = vrot.slane %v4535_v0, 1  ;;  %v742_v38 = vsel %vm707_vm5, %v739_v57, %v741_v20 }
  0x54   : > { %v4558_v8 = vld [vmem:[#allocation2 + $0x168] sm:$0xff]  ;;  %v748_v51 = vrot.slane %v4332_v11, 2  ;;  %v749_v52 = vrot.slane %v4347_v40, 2  ;;  %v4566_v48 = vpack.c.bf16 %v664_v22, %v662_v26  ;;  %v745_v57 = vsel %vm707_vm5, %v743_v21, %v744_v61 }
  0x55   : > { %v667_v36 = vsel %vm594_vm4, %v665_v31, %v666_v18  ;;  %v669_v44 = vsel %vm594_vm4, %v666_v18, %v668_v3  ;;  %v747_v20 = vsel %vm707_vm5, %v744_v61, %v746_v56  ;;  %v751_v31 = vrot.slane %v4349_v43, 2 }
  0x56   : > { %v4573_v18 = vpack.c.bf16 %v669_v44, %v667_v36  ;;  %v670_v3 = vrot.slane %v4558_v8, 1  ;;  %v4578_v26 = vpack.c.bf16 %v742_v38, %v740_v28  ;;  %v4582_v22 = vpack.c.bf16 %v4254_v63, %v4241_v55  ;;  %v300_v36 = vld [vmem:[%s4113_s8 + $0xf0] sm:$0xff]  ;;  %v301_v44 = vld [vmem:[%s4113_s8 + $0xf8] sm:$0xff] }
  0x57   : > { %3428 = vmatmul.mubr.msk.bf16.gmra.mrb[20].mxu1 %vm412_vm1, %v4504_v25  ;;  %v753_v21 = vrot.slane %v4362_v59, 2  ;;  %v754_v43 = vrot.slane %v4371_v62, 2  ;;  %v756_v61 = vrot.slane %v4373_v5, 2  ;;  %v4589_v56 = vpack.c.bf16 %v4265_v12, %v4258_v1 }
  0x58   : > { %3431 = vmatprep.mubr.msk.bf16.mxu1 %vm412_vm1, %v4513_v46  ;;  %v4593_v28 = vpack.c.bf16 %v747_v20, %v745_v57  ;;  %v750_v38 = vsel %vm707_vm5, %v748_v51, %v749_v52  ;;  %v752_v55 = vsel %vm707_vm5, %v749_v52, %v751_v31  ;;  %v4603_v1 = vpack.c.bf16 %v4287_v30, %v4285_v29 }
  0x59   : > { %3582 = vmatmul.mubr.msk.bf16.gmra.mrb[4].mxu0 %vm412_vm1, %v4522_v45  ;;  %v4560_v47 = vld [vmem:[#allocation2 + $0x170] sm:$0xff]  ;;  %v4562_v13 = vld [vmem:[#allocation2 + $0x178] sm:$0x3]  ;;  %v4607_v12 = vpack.c.bf16 %v4298_v37, %v4291_v32  ;;  %v708_v51 = vrot.slane %v4125_v14, 2  ;;  %v709_v52 = vrot.slane %v4127_v15, 2  ;;  %v711_v57 = vrot.slane %v4129_v16, 2 }
  0x5a   : > { %3585 = vmatprep.mubr.msk.bf16.mxu0 %vm412_vm1, %v4524_v17  ;;  %v671_v46 = vrot.slane %v4560_v47, 1  ;;  %v673_v25 = vrot.slane %v4562_v13, 1  ;;  %v757_v29 = vsel %vm707_vm5, %v754_v43, %v756_v61  ;;  %v758_v30 = vrot.slane %v4398_v49, 2 }
  0x5b   : > { %v759_v32 = vrot.slane %v4400_v50, 2  ;;  %v339_v16 = vmul.f32 %v4103_v9, %v300_v36  ;;  %v340_v20 = vmul.f32 %v4103_v9, %v301_v44  ;;  %v761_v31 = vrot.slane %v4402_v60, 2 }
  0x5c   : > { %v672_v63 = vsel %vm594_vm4, %v670_v3, %v671_v46  ;;  %v674_v5 = vsel %vm594_vm4, %v671_v46, %v673_v25  ;;  %v755_v25 = vsel %vm707_vm5, %v753_v21, %v754_v43  ;;  %v4624_v46 = vpack.c.bf16 %v752_v55, %v750_v38 }
  0x5d   : > { %v4620_v37 = vpack.c.bf16 %v674_v5, %v672_v63  ;;  %v4631_v3 = vpack.c.bf16 %v4347_v40, %v4332_v11  ;;  %v4635_v21 = vpack.c.bf16 %v4371_v62, %v4362_v59  ;;  %v4639_v43 = vpack.c.bf16 %v4400_v50, %v4398_v49 }
  0x5e   : > { %v4641_v61 = vpack.c.bf16 %v757_v29, %v755_v25  ;;  %v378_v38 = vadd.f32 %v4118_v10, %v339_v16  ;;  %v379_v9 = vadd.f32 %v4118_v10, %v340_v20  ;;  %v4647_v60 = vpack.c.bf16 %v4429_v23, %v4427_v19 }
  0x5f   : > { %3432 = vmatmul.mubr.msk.bf16.gmra.mrb[24].mxu1 %vm412_vm1, %v4566_v48  ;;  %v4651_v11 = vpack.c.bf16 %v4461_v54, %v4459_v53  ;;  %v4655_v40 = vpack.c.bf16 %v4495_v33, %v4489_v34  ;;  %v4659_v59 = vpack.c.bf16 %v4533_v27, %v4526_v39  ;;  %v4663_v62 = vpack.c.bf16 %v4560_v47, %v4558_v8 }
  0x60   : > { %3435 = vmatprep.mubr.msk.bf16.mxu1 %vm412_vm1, %v4573_v18  ;;  %v410_v10 = vmax.f32 %v378_v38, 0.0  ;;  %v411_v49 = vmax.f32 %v379_v9, 0.0  ;;  %v4668_v50 = vsel %vm707_vm5, %v708_v51, %v709_v52  ;;  %v4671_v55 = vsel %vm707_vm5, %v709_v52, %v711_v57 }
  0x61   : > { %3586 = vmatmul.mubr.msk.bf16.gmra.mrb[8].mxu0 %vm412_vm1, %v4578_v26  ;;  %v5200_v63 = vpack.c.bf16 %v4127_v15, %v4125_v14  ;;  %v763_v5 = vrot.slane %v4427_v19, 2  ;;  %v764_v36 = vrot.slane %v4429_v23, 2  ;;  %v766_v44 = vrot.slane %v4431_v42, 2 }
  0x62   : > { %3589 = vmatprep.mubr.msk.bf16.mxu0 %vm412_vm1, %v4593_v28  ;;  %v1315_v25 = vpack.c.bf16 %v4671_v55, %v4668_v50  ;;  %485 = vst.msk [vmem:[#allocation2 + $0x181] sm:$0xff] %vm412_vm1, %v410_v10  ;;  %486 = vst.msk [vmem:[#allocation2 + $0x189] sm:$0xff] %vm412_vm1, %v411_v49  ;;  %v760_v14 = vsel %vm707_vm5, %v758_v30, %v759_v32  ;;  %v762_v15 = vsel %vm707_vm5, %v759_v32, %v761_v31  ;;  %v5201_v32 = vld [vmem:[#allocation15_spill] sm:$0xff]  ;;  %v538_v55 = vld [vmem:[#allocation2 + $0x198] sm:$0xff] }
  0x63   : > { %v765_v19 = vsel %vm707_vm5, %v763_v5, %v764_v36  ;;  %v767_v23 = vsel %vm707_vm5, %v764_v36, %v766_v44  ;;  %v1380_v42 = vsel %vm937_vm0, %v4226_v2, 0  ;;  %v1577_v51 = vrot.slane %v4226_v2, 2  ;;  %v5204_v50 = vld [vmem:[#allocation3_spill] sm:$0xff] }
  0x64   : > { %v4695_v52 = vpack.c.bf16 %v762_v15, %v760_v14  ;;  %v4699_v57 = vpack.c.bf16 %v767_v23, %v765_v19  ;;  %v768_v29 = vrot.slane %v4459_v53, 2  ;;  %v769_v30 = vrot.slane %v4461_v54, 2 }
  0x65   : > { %v771_v16 = vrot.slane %v5201_v32, 2  ;;  %v773_v20 = vrot.slane %v4489_v34, 2  ;;  %v774_v31 = vrot.slane %v4495_v33, 2  ;;  %v776_v38 = vrot.slane %v4497_v24, 2 }
  0x66   : > { %v770_v54 = vsel %vm707_vm5, %v768_v29, %v769_v30  ;;  %v778_v10 = vrot.slane %v4526_v39, 2  ;;  %v779_v49 = vrot.slane %v4533_v27, 2  ;;  %v783_v5 = vrot.slane %v4558_v8, 2 }
  0x67   : > { %3436 = vmatmul.mubr.msk.bf16.gmra.mrb[28].mxu1 %vm412_vm1, %v4620_v37  ;;  %v772_v53 = vsel %vm707_vm5, %v769_v30, %v771_v16  ;;  %v775_v34 = vsel %vm707_vm5, %v773_v20, %v774_v31  ;;  %v777_v33 = vsel %vm707_vm5, %v774_v31, %v776_v38  ;;  %v784_v36 = vrot.slane %v4560_v47, 2 }
  0x68   : > { %3441 = vmatprep.mubr.msk.bf16.mxu1 %vm412_vm1, %v5200_v63  ;;  %v4720_v9 = vpack.c.bf16 %v772_v53, %v770_v54  ;;  %v4724_v24 = vpack.c.bf16 %v777_v33, %v775_v34  ;;  %v781_v63 = vrot.slane %v4535_v0, 2  ;;  %v786_v44 = vrot.slane %v4562_v13, 2  ;;  %v545_v33 = vld [vmem:[%s5161_s3 + $0x20] sm:$0xf] }
  0x69   : > { %3590 = vmatmul.mubr.msk.bf16.gmra.mrb[12].mxu0 %vm412_vm1, %v4624_v46  ;;  %v780_v39 = vsel %vm707_vm5, %v778_v10, %v779_v49  ;;  %v785_v0 = vsel %vm707_vm5, %v783_v5, %v784_v36  ;;  %v535_v15 = vld [vmem:[#allocation2 + $0x180] sm:$0xff]  ;;  %v536_v8 = vld [vmem:[#allocation2 + $0x188] sm:$0xff]  ;;  %v537_v19 = vld [vmem:[#allocation2 + $0x190] sm:$0x3]  ;;  %v5202_v10 = vrot.slane %v4217_v41, 2  ;;  %v1582_v41 = vsel %vm937_vm0, %v1577_v51, 0 }
  0x6a   : > { %3593 = vmatprep.mubr.msk.bf16.mxu0 %vm412_vm1, %v4641_v61  ;;  %v782_v27 = vsel %vm707_vm5, %v779_v49, %v781_v63  ;;  %v787_v14 = vsel %vm707_vm5, %v784_v36, %v786_v44  ;;  %v830_v23 = vrot.slane %v535_v15, 2  ;;  %v833_v29 = vrot.slane %v537_v19, 2  ;;  %v5203_v5 = vld [vmem:[#allocation12_spill] sm:$0xff]  ;;  %v540_v44 = vld [vmem:[#allocation2 + $0x1a8] sm:$0x3] }
  0x6b   : > { %v4742_v47 = vpack.c.bf16 %v782_v27, %v780_v39  ;;  %v4746_v13 = vpack.c.bf16 %v787_v14, %v785_v0  ;;  %v823_v16 = vrot.slane %v535_v15, 1  ;;  %v824_v20 = vrot.slane %v536_v8, 1 }
  0x6c   : > { %v826_v31 = vrot.slane %v537_v19, 1  ;;  %v2388_v49 = vsel %vm937_vm0, %v5202_v10, 0  ;;  %v2583_v63 = vpack.c.bf16 %v545_v33, %v545_v33  ;;  %v4834_v2 = vpack.c.bf16 %v536_v8, %v535_v15  ;;  %v5216_v33 = vld [vmem:[#allocation17_spill] sm:$0xff] }
  0x6d   : > { %v825_v54 = vsel %vm594_vm4, %v823_v16, %v824_v20  ;;  %v850_v39 = vrot.slane %v540_v44, 2  ;;  %v5211_v16 = vld [vmem:[#allocation11_spill] sm:$0xff] }
  0x6e   : > { %v827_v53 = vsel %vm594_vm4, %v824_v20, %v826_v31  ;;  %v2589_v19 = vsel %vm937_vm0, %v2583_v63, 0  ;;  %v5212_v20 = vld [vmem:[#allocation13_spill] sm:$0xff]  ;;  %v5213_v31 = vld [vmem:[#allocation14_spill] sm:$0xff] }
  0x6f   : > { %3442 = vmatmul.mubr.msk.bf16.vlgmr.msra.gmra.mrb[0].mxu1 %vm412_vm1, %v4470_v4  ;;  %v4762_v34 = vpack.c.bf16 %v827_v53, %v825_v54  ;;  %v5214_v54 = vld [vmem:[#allocation4_spill] sm:$0xff] }
  0x70   : > { %3474 = vmatpush3.bf16.msra.mxu1 %v1380_v42  ;;  %3445 = vmatprep.mubr.msk.bf16.mxu1 %vm412_vm1, %v4541_v35  ;;  %v831_v42 = vrot.slane %v536_v8, 2  ;;  %v5205_v8 = vld [vmem:[#allocation5_spill] sm:$0xff]  ;;  %v5215_v53 = vld [vmem:[#allocation16_spill] sm:$0xff] }
  0x71   : > { %3972 = vmatprep.subr.msk.bf16.mxu1 %vm937_vm0, %v1577_v51  ;;  %3594 = vmatmul.mubr.msk.bf16.gmra.mrb[16].mxu0 %vm412_vm1, %v4695_v52  ;;  %v847_v51 = vrot.slane %v538_v55, 2 }
  0x72   : > { %3597 = vmatprep.mubr.msk.bf16.mxu0 %vm412_vm1, %v4699_v57  ;;  %v832_v30 = vsel %vm707_vm5, %v830_v23, %v831_v42  ;;  %v834_v32 = vsel %vm707_vm5, %v831_v42, %v833_v29  ;;  %v5206_v23 = vld [vmem:[#allocation6_spill] sm:$0xff]  ;;  %v5207_v42 = vld [vmem:[#allocation7_spill] sm:$0xff]  ;;  %v5208_v29 = vld [vmem:[#allocation8_spill] sm:$0xff] }
  0x73   : > { %v4756_v38 = vpack.c.bf16 %v834_v32, %v832_v30  ;;  %v5209_v30 = vld [vmem:[#allocation9_spill] sm:$0xff]  ;;  %v5210_v32 = vld [vmem:[#allocation10_spill] sm:$0xff] }
  0x77   : > { %3446 = vmatmul.mubr.msk.bf16.gmra.mrb[4].mxu1 %vm412_vm1, %v4550_v58 }
  0x78   : > { %3449 = vmatprep.mubr.msk.bf16.mxu1 %vm412_vm1, %v4582_v22 }
  0x79   : > { %3598 = vmatmul.mubr.msk.bf16.gmra.mrb[20].mxu0 %vm412_vm1, %v4720_v9 }
  0x7a   : > { %3601 = vmatprep.mubr.msk.bf16.mxu0 %vm412_vm1, %v4724_v24 }
  0x7f   : > { %3450 = vmatmul.mubr.msk.bf16.gmra.mrb[8].mxu1 %vm412_vm1, %v4589_v56 }
  0x80   : > { %3453 = vmatprep.mubr.msk.bf16.mxu1 %vm412_vm1, %v4603_v1 }
  0x81   : > { %3602 = vmatmul.mubr.msk.bf16.gmra.mrb[24].mxu0 %vm412_vm1, %v4742_v47 }
  0x82   : > { %3605 = vmatprep.mubr.msk.bf16.mxu0 %vm412_vm1, %v4746_v13 }
  0x87   : > { %3454 = vmatmul.mubr.msk.bf16.gmra.mrb[12].mxu1 %vm412_vm1, %v4607_v12 }
  0x88   : > { %3457 = vmatprep.mubr.msk.bf16.mxu1 %vm412_vm1, %v4631_v3 }
  0x89   : > { %3606 = vmatmul.mubr.msk.bf16.gmra.mrb[28].mxu0 %vm412_vm1, %v4756_v38 }
  0x8a   : > { %3611 = vmatprep.mubr.msk.bf16.mxu0 %vm412_vm1, %v4541_v35 }
  0x8f   : > { %3458 = vmatmul.mubr.msk.bf16.gmra.mrb[16].mxu1 %vm412_vm1, %v4635_v21 }
  0x90   : > { %3461 = vmatprep.mubr.msk.bf16.mxu1 %vm412_vm1, %v4639_v43 }
  0x91   : > { %3612 = vmatmul.mubr.msk.bf16.vlgmr.msra.gmra.mrb[0].mxu0 %vm412_vm1, %v4550_v58 }
  0x92   : > { %3644 = vmatpush3.bf16.msra.mxu0 %v2388_v49  ;;  %3615 = vmatprep.mubr.msk.bf16.mxu0 %vm412_vm1, %v4582_v22 }
  0x93   : > { %3978 = vmatprep.subr.msk.bf16.mxu0 %vm937_vm0, %v2583_v63 }
  0x97   : > { %3462 = vmatmul.mubr.msk.bf16.gmra.mrb[20].mxu1 %vm412_vm1, %v4647_v60 }
  0x98   : > { %3465 = vmatprep.mubr.msk.bf16.mxu1 %vm412_vm1, %v4651_v11 }
  0x99   : > { %3616 = vmatmul.mubr.msk.bf16.gmra.mrb[4].mxu0 %vm412_vm1, %v4589_v56 }
  0x9a   : > { %3619 = vmatprep.mubr.msk.bf16.mxu0 %vm412_vm1, %v4603_v1 }
  0x9f   : > { %3466 = vmatmul.mubr.msk.bf16.gmra.mrb[24].mxu1 %vm412_vm1, %v4655_v40 }
  0xa0   : > { %3469 = vmatprep.mubr.msk.bf16.mxu1 %vm412_vm1, %v4659_v59 }
  0xa1   : > { %3620 = vmatmul.mubr.msk.bf16.gmra.mrb[8].mxu0 %vm412_vm1, %v4607_v12 }
  0xa2   : > { %3623 = vmatprep.mubr.msk.bf16.mxu0 %vm412_vm1, %v4631_v3 }
  0xa7   : > { %3470 = vmatmul.mubr.msk.bf16.gmra.mrb[28].mxu1 %vm412_vm1, %v4663_v62 }
  0xa8   : > { %3475 = vmatprep.mubr.msk.bf16.mxu1 %vm412_vm1, %v1315_v25  ;;  %v539_v25 = vld [vmem:[#allocation2 + $0x1a0] sm:$0xff] }
  0xa9   : > { %3624 = vmatmul.mubr.msk.bf16.gmra.mrb[12].mxu0 %vm412_vm1, %v4635_v21  ;;  %v848_v36 = vrot.slane %v539_v25, 2  ;;  %v2181_v27 = vpack.c.bf16 %v539_v25, %v538_v55 }
  0xaa   : > { %3627 = vmatprep.mubr.msk.bf16.mxu0 %vm412_vm1, %v4639_v43 }
  0xab   : > { %v4845_v0 = vsel %vm707_vm5, %v847_v51, %v848_v36  ;;  %v4848_v14 = vsel %vm707_vm5, %v848_v36, %v850_v39 }
  0xac   : > { %v2584_v15 = vpack.c.bf16 %v4848_v14, %v4845_v0 }
  0xaf   : > { %3476 = vmatmul.mubr.msk.bf16.vlgmr.msra.gmra.mrb[0].mxu1 %vm412_vm1, %v5203_v5 }
  0xb0   : > { %3508 = vmatpush3.bf16.msra.mxu1 %v1582_v41  ;;  %3479 = vmatprep.mubr.msk.bf16.mxu1 %vm412_vm1, %v4423_v6 }
  0xb1   : > { %3974 = vmatprep.subr.msk.bf16.mxu1 %vm937_vm0, %v5204_v50  ;;  %3628 = vmatmul.mubr.msk.bf16.gmra.mrb[16].mxu0 %vm412_vm1, %v4647_v60 }
  0xb2   : > { %3631 = vmatprep.mubr.msk.bf16.mxu0 %vm412_vm1, %v4651_v11 }
  0xb7   : > { %3480 = vmatmul.mubr.msk.bf16.gmra.mrb[4].mxu1 %vm412_vm1, %v4477_v7 }
  0xb8   : > { %3483 = vmatprep.mubr.msk.bf16.mxu1 %vm412_vm1, %v4522_v45 }
  0xb9   : > { %3632 = vmatmul.mubr.msk.bf16.gmra.mrb[20].mxu0 %vm412_vm1, %v4655_v40 }
  0xba   : > { %3635 = vmatprep.mubr.msk.bf16.mxu0 %vm412_vm1, %v4659_v59 }
  0xbf   : > { %3484 = vmatmul.mubr.msk.bf16.gmra.mrb[8].mxu1 %vm412_vm1, %v4524_v17 }
  0xc0   : > { %3487 = vmatprep.mubr.msk.bf16.mxu1 %vm412_vm1, %v4578_v26 }
  0xc1   : > { %3636 = vmatmul.mubr.msk.bf16.gmra.mrb[24].mxu0 %vm412_vm1, %v4663_v62 }
  0xc2   : > { %3639 = vmatprep.mubr.msk.bf16.mxu0 %vm412_vm1, %v4834_v2 }
  0xc7   : > { %3488 = vmatmul.mubr.msk.bf16.gmra.mrb[12].mxu1 %vm412_vm1, %v4593_v28 }
  0xc8   : > { %3491 = vmatprep.mubr.msk.bf16.mxu1 %vm412_vm1, %v4624_v46 }
  0xc9   : > { %3640 = vmatmul.mubr.msk.bf16.gmra.mrb[28].mxu0 %vm412_vm1, %v2181_v27 }
  0xca   : > { %3645 = vmatprep.mubr.msk.bf16.mxu0 %vm412_vm1, %v5205_v8 }
  0xcf   : > { %3492 = vmatmul.mubr.msk.bf16.gmra.mrb[16].mxu1 %vm412_vm1, %v4641_v61 }
  0xd0   : > { %3495 = vmatprep.mubr.msk.bf16.mxu1 %vm412_vm1, %v4695_v52 }
  0xd1   : > { %3646 = vmatmul.mubr.msk.bf16.vlgmr.msra.gmra.mrb[0].mxu0 %vm412_vm1, %v5206_v23 }
  0xd2   : > { %3678 = vmatpush3.bf16.msra.mxu0 %v2589_v19  ;;  %3649 = vmatprep.mubr.msk.bf16.mxu0 %vm412_vm1, %v5207_v42 }
  0xd7   : > { %3496 = vmatmul.mubr.msk.bf16.gmra.mrb[20].mxu1 %vm412_vm1, %v4699_v57 }
  0xd8   : > { %3499 = vmatprep.mubr.msk.bf16.mxu1 %vm412_vm1, %v4720_v9 }
  0xd9   : > { %3650 = vmatmul.mubr.msk.bf16.gmra.mrb[4].mxu0 %vm412_vm1, %v5208_v29 }
  0xda   : > { %3653 = vmatprep.mubr.msk.bf16.mxu0 %vm412_vm1, %v5209_v30 }
  0xdf   : > { %3500 = vmatmul.mubr.msk.bf16.gmra.mrb[24].mxu1 %vm412_vm1, %v4724_v24 }
  0xe0   : > { %3503 = vmatprep.mubr.msk.bf16.mxu1 %vm412_vm1, %v4742_v47 }
  0xe1   : > { %3654 = vmatmul.mubr.msk.bf16.gmra.mrb[8].mxu0 %vm412_vm1, %v5210_v32 }
  0xe2   : > { %3657 = vmatprep.mubr.msk.bf16.mxu0 %vm412_vm1, %v5211_v16 }
  0xe7   : > { %3504 = vmatmul.mubr.msk.bf16.gmra.mrb[28].mxu1 %vm412_vm1, %v4746_v13 }
  0xe8   : > { %3509 = vmatprep.mubr.msk.bf16.mxu1 %vm412_vm1, %v4470_v4  ;;  %v840_v4 = vrot.slane %v538_v55, 1 }
  0xe9   : > { %3658 = vmatmul.mubr.msk.bf16.gmra.mrb[12].mxu0 %vm412_vm1, %v5212_v20 }
  0xea   : > { %3661 = vmatprep.mubr.msk.bf16.mxu0 %vm412_vm1, %v5213_v31 }
  0xef   : > { %3510 = vmatmul.mubr.msk.bf16.vlgmr.msra.gmra.mrb[0].mxu1 %vm412_vm1, %v4541_v35  ;;  %v841_v35 = vrot.slane %v539_v25, 1 }
  0xf0   : > { %3712 = vmatpush3.bf16.msra.mxu1 %v5214_v54  ;;  %3513 = vmatprep.mubr.msk.bf16.mxu1 %vm412_vm1, %v4550_v58  ;;  %v843_v58 = vrot.slane %v540_v44, 1 }
  0xf1   : > { %3662 = vmatmul.mubr.msk.bf16.gmra.mrb[16].mxu0 %vm412_vm1, %v5215_v53 }
  0xf2   : > { %3665 = vmatprep.mubr.msk.bf16.mxu0 %vm412_vm1, %v5216_v33 }
  0xf7   : > { %3514 = vmatmul.mubr.msk.bf16.gmra.mrb[4].mxu1 %vm412_vm1, %v4582_v22  ;;  %v842_v22 = vsel %vm594_vm4, %v840_v4, %v841_v35 }
  0xf8   : > { %3517 = vmatprep.mubr.msk.bf16.mxu1 %vm412_vm1, %v4589_v56  ;;  %v844_v56 = vsel %vm594_vm4, %v841_v35, %v843_v58 }
  0xf9   : > { %3666 = vmatmul.mubr.msk.bf16.gmra.mrb[20].mxu0 %vm412_vm1, %v4566_v48  ;;  %v2381_v10 = vpack.c.bf16 %v844_v56, %v842_v22 }
  0xfa   : > { %3669 = vmatprep.mubr.msk.bf16.mxu0 %vm412_vm1, %v4573_v18 }
  0xff   : > { %3518 = vmatmul.mubr.msk.bf16.gmra.mrb[8].mxu1 %vm412_vm1, %v4603_v1 }
 0x100   : > { %3521 = vmatprep.mubr.msk.bf16.mxu1 %vm412_vm1, %v4607_v12 }
 0x101   : > { %3670 = vmatmul.mubr.msk.bf16.gmra.mrb[24].mxu0 %vm412_vm1, %v4620_v37 }
 0x102   : > { %3673 = vmatprep.mubr.msk.bf16.mxu0 %vm412_vm1, %v4762_v34 }
 0x107   : > { %3522 = vmatmul.mubr.msk.bf16.gmra.mrb[12].mxu1 %vm412_vm1, %v4631_v3 }
 0x108   : > { %3525 = vmatprep.mubr.msk.bf16.mxu1 %vm412_vm1, %v4635_v21 }
 0x109   : > { %3674 = vmatmul.mubr.msk.bf16.gmra.mrb[28].mxu0 %vm412_vm1, %v2381_v10 }
 0x10a   : > { %3679 = vmatprep.mubr.msk.bf16.mxu0 %vm412_vm1, %v4423_v6 }
 0x10f   : > { %3526 = vmatmul.mubr.msk.bf16.gmra.mrb[16].mxu1 %vm412_vm1, %v4639_v43 }
 0x110   : > { %3529 = vmatprep.mubr.msk.bf16.mxu1 %vm412_vm1, %v4647_v60 }
 0x111   : > { %3680 = vmatmul.mubr.msk.bf16.vlgmr.msra.gmra.mrb[0].mxu0 %vm412_vm1, %v4477_v7 }
 0x112   : > { %3683 = vmatprep.mubr.msk.bf16.mxu0 %vm412_vm1, %v4522_v45 }
 0x117   : > { %3530 = vmatmul.mubr.msk.bf16.gmra.mrb[20].mxu1 %vm412_vm1, %v4651_v11 }
 0x118   : > { %3533 = vmatprep.mubr.msk.bf16.mxu1 %vm412_vm1, %v4655_v40 }
 0x119   : > { %3684 = vmatmul.mubr.msk.bf16.gmra.mrb[4].mxu0 %vm412_vm1, %v4524_v17 }
 0x11a   : > { %3687 = vmatprep.mubr.msk.bf16.mxu0 %vm412_vm1, %v4578_v26 }
 0x11f   : > { %3534 = vmatmul.mubr.msk.bf16.gmra.mrb[24].mxu1 %vm412_vm1, %v4659_v59 }
 0x120   : > { %3537 = vmatprep.mubr.msk.bf16.mxu1 %vm412_vm1, %v4663_v62 }
 0x121   : > { %3688 = vmatmul.mubr.msk.bf16.gmra.mrb[8].mxu0 %vm412_vm1, %v4593_v28 }
 0x122   : > { %3691 = vmatprep.mubr.msk.bf16.mxu0 %vm412_vm1, %v4624_v46 }
 0x127   : > { %3538 = vmatmul.mubr.msk.bf16.gmra.mrb[28].mxu1 %vm412_vm1, %v4834_v2 }
 0x128   : > { %3559 = vmatprep.mubr.msk.bf16.mxu1 %vm412_vm1, %v5212_v20 }
 0x129   : > { %3692 = vmatmul.mubr.msk.bf16.gmra.mrb[12].mxu0 %vm412_vm1, %v4641_v61 }
 0x12a   : > { %3695 = vmatprep.mubr.msk.bf16.mxu0 %vm412_vm1, %v4695_v52 }
 0x12f   : > { %3560 = vmatmul.mubr.msk.bf16.vlgmr.msra.gmra.mrb[16].mxu1 %vm412_vm1, %v5213_v31 }
 0x130   : > { %3563 = vmatprep.mubr.msk.bf16.mxu1 %vm412_vm1, %v5215_v53 }
 0x131   : > { %3696 = vmatmul.mubr.msk.bf16.gmra.mrb[16].mxu0 %vm412_vm1, %v4699_v57 }
 0x132   : > { %3699 = vmatprep.mubr.msk.bf16.mxu0 %vm412_vm1, %v4720_v9 }
 0x137   : > { %3564 = vmatmul.mubr.msk.bf16.gmra.mrb[20].mxu1 %vm412_vm1, %v5216_v33 }
 0x138   : > { %3567 = vmatprep.mubr.msk.bf16.mxu1 %vm412_vm1, %v4566_v48 }
 0x139   : > { %3700 = vmatmul.mubr.msk.bf16.gmra.mrb[20].mxu0 %vm412_vm1, %v4724_v24 }
 0x13a   : > { %3703 = vmatprep.mubr.msk.bf16.mxu0 %vm412_vm1, %v4742_v47 }
 0x13f   : > { %3568 = vmatmul.mubr.msk.bf16.gmra.mrb[24].mxu1 %vm412_vm1, %v4573_v18 }
 0x140   : > { %3571 = vmatprep.mubr.msk.bf16.mxu1 %vm412_vm1, %v4620_v37 }
 0x141   : > { %3704 = vmatmul.mubr.msk.bf16.gmra.mrb[24].mxu0 %vm412_vm1, %v4746_v13 }
 0x142   : > { %3707 = vmatprep.mubr.msk.bf16.mxu0 %vm412_vm1, %v4756_v38 }
 0x147   : > { %3572 = vmatmul.mubr.msk.bf16.gmra.mrb[28].mxu1 %vm412_vm1, %v4762_v34 }
 0x149   : > { %3708 = vmatmul.mubr.msk.bf16.gmra.mrb[28].mxu0 %vm412_vm1, %v2584_v15 }
 0x1c2   : > { %v3511_v7 = vpop.f32.mrb[0].mxu1 }
 0x1c3   : > { %v1618_v6 = vpop.f32.mrb[1].mxu1 }
 0x1c4   : > { %v3512_v45 = vpop.f32.mrb[2].mxu1 }
 0x1c5   : > { %v1621_v17 = vpop.f32.mrb[3].mxu1 }
 0x1ca   : > { %v3515_v48 = vpop.f32.mrb[4].mxu1 }
 0x1cb   : > { %v1634_v18 = vpop.f32.mrb[5].mxu1 }
 0x1cc   : > { %v3516_v26 = vpop.f32.mrb[6].mxu1 }
 0x1cd   : > { %v1637_v28 = vpop.f32.mrb[7].mxu1 }
 0x1d2   : > { %v4986_v1 = vpop.f32.mrb[8].mxu1 }
 0x1d3   : > { %v4988_v12 = vpop.f32.mrb[9].mxu1 }
 0x1d4   : > { %v4990_v37 = vpop.f32.mrb[10].mxu1 }
 0x1d5   : > { %v4992_v46 = vpop.f32.mrb[11].mxu1 }
 0x1da   : > { %v4994_v3 = vpop.f32.mrb[12].mxu1 }
 0x1db   : > { %v4996_v21 = vpop.f32.mrb[13].mxu1 }
 0x1dc   : > { %v4998_v43 = vpop.f32.mrb[14].mxu1 }
 0x1dd   : > { %v5000_v61 = vpop.f32.mrb[15].mxu1 }
 0x1e4   : > { %v3681_v60 = vpop.f32.mrb[0].mxu0 }
 0x1e5   : > { %v3713_v11 = vadd.f32 %v3681_v60, %v3511_v7  ;;  %v2625_v40 = vpop.f32.mrb[1].mxu0 }
 0x1e6   : > { %v3714_v59 = vadd.f32 %v2625_v40, %v1618_v6  ;;  %v3682_v62 = vpop.f32.mrb[2].mxu0 }
 0x1e7   : > { %2786 = vst.msk [vmem:[%s5007_s19 + $0x10] sm:$0xff] %vm412_vm1, %v3713_v11  ;;  %v3715_v52 = vadd.f32 %v3682_v62, %v3512_v45  ;;  %v2628_v57 = vpop.f32.mrb[3].mxu0  ;;  %v2888_v47 = vmul.f32 %v3713_v11, %v3713_v11  ;;  %v2819_v41 = vsel %vm412_vm1, %v3713_v11, 0.0 }
 0x1e8   : > { %2784 = vst.msk [vmem:[%s5007_s19] sm:$0xff] %vm412_vm1, %v3714_v59  ;;  %v2886_v9 = vmul.f32 %v3714_v59, %v3714_v59  ;;  %v3716_v24 = vadd.f32 %v2628_v57, %v1621_v17  ;;  %v2816_v13 = vsel %vm412_vm1, %v3714_v59, 0.0 }
 0x1e9   : > { %2787 = vst.msk [vmem:[%s5007_s19 + $0x18] sm:$0xff] %vm412_vm1, %v3715_v52  ;;  %v2889_v49 = vmul.f32 %v3715_v52, %v3715_v52  ;;  %v2921_v44 = vsel %vm412_vm1, %v2888_v47, 0.0  ;;  %v2821_v39 = vsel %vm412_vm1, %v3715_v52, 0.0 }
 0x1ea   : > { %2785 = vst.msk [vmem:[%s5007_s19 + $0x8] sm:$0xff] %vm412_vm1, %v3716_v24  ;;  %v2817_v38 = vsel %vm412_vm1, %v3716_v24, 0.0  ;;  %v2887_v34 = vmul.f32 %v3716_v24, %v3716_v24  ;;  %v2918_v5 = vsel %vm412_vm1, %v2886_v9, 0.0 }
 0x1eb   : > { %v2818_v63 = vadd.f32 %v2817_v38, %v2816_v13  ;;  %v2923_v14 = vsel %vm412_vm1, %v2889_v49, 0.0 }
 0x1ec   : > { %v2919_v50 = vsel %vm412_vm1, %v2887_v34, 0.0  ;;  %v3685_v2 = vpop.f32.mrb[4].mxu0 }
 0x1ed   : > { %v2820_v55 = vadd.f32 %v2819_v41, %v2818_v63  ;;  %v2920_v25 = vadd.f32 %v2919_v50, %v2918_v5  ;;  %v3717_v51 = vadd.f32 %v3685_v2, %v3515_v48  ;;  %v2641_v36 = vpop.f32.mrb[5].mxu0 }
 0x1ee   : > { %v3718_v27 = vadd.f32 %v2641_v36, %v1634_v18  ;;  %v3686_v0 = vpop.f32.mrb[6].mxu0 }
 0x1ef   : > { %v2922_v15 = vadd.f32 %v2921_v44, %v2920_v25  ;;  %2790 = vst.msk [vmem:[%s5007_s19 + $0x30] sm:$0xff] %vm412_vm1, %v3717_v51  ;;  %v2822_v8 = vadd.f32 %v2821_v39, %v2820_v55  ;;  %v2644_v19 = vpop.f32.mrb[7].mxu0  ;;  %v3719_v29 = vadd.f32 %v3686_v0, %v3516_v26  ;;  %v2892_v54 = vmul.f32 %v3717_v51, %v3717_v51 }
 0x1f0   : > { %2788 = vst.msk [vmem:[%s5007_s19 + $0x20] sm:$0xff] %vm412_vm1, %v3718_v27  ;;  %v2823_v23 = vsel %vm412_vm1, %v3718_v27, 0.0  ;;  %v2890_v42 = vmul.f32 %v3718_v27, %v3718_v27  ;;  %v3720_v30 = vadd.f32 %v2644_v19, %v1637_v28  ;;  %v2827_v35 = vsel %vm412_vm1, %v3717_v51, 0.0 }
 0x1f1   : > { %v2824_v32 = vadd.f32 %v2823_v23, %v2822_v8  ;;  %v2924_v16 = vadd.f32 %v2923_v14, %v2922_v15  ;;  %2791 = vst.msk [vmem:[%s5007_s19 + $0x38] sm:$0xff] %vm412_vm1, %v3719_v29  ;;  %v2893_v22 = vmul.f32 %v3719_v29, %v3719_v29  ;;  %v2829_v45 = vsel %vm412_vm1, %v3719_v29, 0.0 }
 0x1f2   : > { %v2925_v20 = vsel %vm412_vm1, %v2890_v42, 0.0  ;;  %2789 = vst.msk [vmem:[%s5007_s19 + $0x28] sm:$0xff] %vm412_vm1, %v3720_v30  ;;  %v2825_v31 = vsel %vm412_vm1, %v3720_v30, 0.0  ;;  %v2891_v4 = vmul.f32 %v3720_v30, %v3720_v30  ;;  %v2929_v26 = vsel %vm412_vm1, %v2892_v54, 0.0 }
 0x1f3   : > { %v2926_v53 = vadd.f32 %v2925_v20, %v2924_v16  ;;  %v2826_v33 = vadd.f32 %v2825_v31, %v2824_v32 }
 0x1f4   : > { %v3689_v58 = vpop.f32.mrb[8].mxu0  ;;  %v2927_v10 = vsel %vm412_vm1, %v2891_v4, 0.0 }
 0x1f5   : > { %v2828_v56 = vadd.f32 %v2827_v35, %v2826_v33  ;;  %v3721_v7 = vadd.f32 %v3689_v58, %v4986_v1  ;;  %v2657_v6 = vpop.f32.mrb[9].mxu0  ;;  %v2928_v17 = vadd.f32 %v2927_v10, %v2926_v53 }
 0x1f6   : > { %v3722_v48 = vadd.f32 %v2657_v6, %v4988_v12  ;;  %v3690_v18 = vpop.f32.mrb[10].mxu0  ;;  %v2931_v12 = vsel %vm412_vm1, %v2893_v22, 0.0 }
 0x1f7   : > { %2794 = vst.msk [vmem:[%s5007_s19 + $0x50] sm:$0xff] %vm412_vm1, %v3721_v7  ;;  %v2830_v28 = vadd.f32 %v2829_v45, %v2828_v56  ;;  %v3723_v60 = vadd.f32 %v3690_v18, %v4990_v37  ;;  %v2660_v11 = vpop.f32.mrb[11].mxu0  ;;  %v2930_v40 = vadd.f32 %v2929_v26, %v2928_v17  ;;  %v2896_v47 = vmul.f32 %v3721_v7, %v3721_v7 }
 0x1f8   : > { %2792 = vst.msk [vmem:[%s5007_s19 + $0x40] sm:$0xff] %vm412_vm1, %v3722_v48  ;;  %v2831_v1 = vsel %vm412_vm1, %v3722_v48, 0.0  ;;  %v2894_v59 = vmul.f32 %v3722_v48, %v3722_v48  ;;  %v3724_v62 = vadd.f32 %v2660_v11, %v4992_v46  ;;  %v2835_v38 = vsel %vm412_vm1, %v3721_v7, 0.0 }
 0x1f9   : > { %v2832_v52 = vadd.f32 %v2831_v1, %v2830_v28  ;;  %2795 = vst.msk [vmem:[%s5007_s19 + $0x58] sm:$0xff] %vm412_vm1, %v3723_v60  ;;  %v2932_v57 = vadd.f32 %v2931_v12, %v2930_v40  ;;  %v2897_v63 = vmul.f32 %v3723_v60, %v3723_v60  ;;  %v2837_v2 = vsel %vm412_vm1, %v3723_v60, 0.0 }
 0x1fa   : > { %v2933_v9 = vsel %vm412_vm1, %v2894_v59, 0.0  ;;  %2793 = vst.msk [vmem:[%s5007_s19 + $0x48] sm:$0xff] %vm412_vm1, %v3724_v62  ;;  %v2833_v37 = vsel %vm412_vm1, %v3724_v62, 0.0  ;;  %v2895_v24 = vmul.f32 %v3724_v62, %v3724_v62  ;;  %v2937_v36 = vsel %vm412_vm1, %v2896_v47, 0.0 }
 0x1fb   : > { %v2834_v13 = vadd.f32 %v2833_v37, %v2832_v52  ;;  %v2934_v34 = vadd.f32 %v2933_v9, %v2932_v57 }
 0x1fc   : > { %v2935_v46 = vsel %vm412_vm1, %v2895_v24, 0.0  ;;  %v3693_v49 = vpop.f32.mrb[12].mxu0 }
 0x1fd   : > { %v2836_v41 = vadd.f32 %v2835_v38, %v2834_v13  ;;  %v3725_v5 = vadd.f32 %v3693_v49, %v4994_v3  ;;  %v2673_v50 = vpop.f32.mrb[13].mxu0  ;;  %v2936_v55 = vadd.f32 %v2935_v46, %v2934_v34 }
 0x1fe   : > { %v3726_v25 = vadd.f32 %v2673_v50, %v4996_v21  ;;  %v3694_v51 = vpop.f32.mrb[14].mxu0  ;;  %v2939_v21 = vsel %vm412_vm1, %v2897_v63, 0.0 }
 0x1ff   : > { %2798 = vst.msk [vmem:[%s5007_s19 + $0x70] sm:$0xff] %vm412_vm1, %v3725_v5  ;;  %v2838_v44 = vadd.f32 %v2837_v2, %v2836_v41  ;;  %v3727_v39 = vadd.f32 %v3694_v51, %v4998_v43  ;;  %v2676_v27 = vpop.f32.mrb[15].mxu0  ;;  %v2938_v0 = vadd.f32 %v2937_v36, %v2936_v55  ;;  %v2900_v32 = vmul.f32 %v3725_v5, %v3725_v5 }
 0x200   : > { %2796 = vst.msk [vmem:[%s5007_s19 + $0x60] sm:$0xff] %vm412_vm1, %v3726_v25  ;;  %v2839_v3 = vsel %vm412_vm1, %v3726_v25, 0.0  ;;  %v2898_v14 = vmul.f32 %v3726_v25, %v3726_v25  ;;  %v3728_v15 = vadd.f32 %v2676_v27, %v5000_v61  ;;  %v2843_v61 = vsel %vm412_vm1, %v3725_v5, 0.0 }
 0x201   : > { %v2840_v8 = vadd.f32 %v2839_v3, %v2838_v44  ;;  %2799 = vst.msk [vmem:[%s5007_s19 + $0x78] sm:$0xff] %vm412_vm1, %v3727_v39  ;;  %v2940_v23 = vadd.f32 %v2939_v21, %v2938_v0  ;;  %v2901_v4 = vmul.f32 %v3727_v39, %v3727_v39  ;;  %v2845_v56 = vsel %vm412_vm1, %v3727_v39, 0.0 }
 0x202   : > { %v3561_v19 = vpop.f32.mrb[16].mxu1  ;;  %v2941_v42 = vsel %vm412_vm1, %v2898_v14, 0.0  ;;  %2797 = vst.msk [vmem:[%s5007_s19 + $0x68] sm:$0xff] %vm412_vm1, %v3728_v15  ;;  %v2841_v43 = vsel %vm412_vm1, %v3728_v15, 0.0  ;;  %v2899_v29 = vmul.f32 %v3728_v15, %v3728_v15  ;;  %v2945_v45 = vsel %vm412_vm1, %v2900_v32, 0.0 }
 0x203   : > { %v1883_v30 = vpop.f32.mrb[17].mxu1  ;;  %v2842_v16 = vadd.f32 %v2841_v43, %v2840_v8  ;;  %v2942_v31 = vadd.f32 %v2941_v42, %v2940_v23  ;;  %v2947_v40 = vsel %vm412_vm1, %v2901_v4, 0.0 }
 0x204   : > { %v3562_v20 = vpop.f32.mrb[18].mxu1  ;;  %v2943_v54 = vsel %vm412_vm1, %v2899_v29, 0.0  ;;  %v3697_v53 = vpop.f32.mrb[16].mxu0 }
 0x205   : > { %v1886_v33 = vpop.f32.mrb[19].mxu1  ;;  %v2844_v35 = vadd.f32 %v2843_v61, %v2842_v16  ;;  %v3729_v58 = vadd.f32 %v3697_v53, %v3561_v19  ;;  %v2689_v22 = vpop.f32.mrb[17].mxu0  ;;  %v2944_v10 = vadd.f32 %v2943_v54, %v2942_v31 }
 0x206   : > { %v3730_v7 = vadd.f32 %v2689_v22, %v1883_v30  ;;  %v3698_v6 = vpop.f32.mrb[18].mxu0 }
 0x207   : > { %2802 = vst.msk [vmem:[%s5007_s19 + $0x90] sm:$0xff] %vm412_vm1, %v3729_v58  ;;  %v2846_v17 = vadd.f32 %v2845_v56, %v2844_v35  ;;  %v3731_v48 = vadd.f32 %v3698_v6, %v3562_v20  ;;  %v2692_v18 = vpop.f32.mrb[19].mxu0  ;;  %v2946_v26 = vadd.f32 %v2945_v45, %v2944_v10  ;;  %v2904_v37 = vmul.f32 %v3729_v58, %v3729_v58 }
 0x208   : > { %2800 = vst.msk [vmem:[%s5007_s19 + $0x80] sm:$0xff] %vm412_vm1, %v3730_v7  ;;  %v2847_v28 = vsel %vm412_vm1, %v3730_v7, 0.0  ;;  %v2902_v60 = vmul.f32 %v3730_v7, %v3730_v7  ;;  %v3732_v11 = vadd.f32 %v2692_v18, %v1886_v33  ;;  %v2851_v13 = vsel %vm412_vm1, %v3729_v58, 0.0 }
 0x209   : > { %v2848_v1 = vadd.f32 %v2847_v28, %v2846_v17  ;;  %2803 = vst.msk [vmem:[%s5007_s19 + $0x98] sm:$0xff] %vm412_vm1, %v3731_v48  ;;  %v2948_v62 = vadd.f32 %v2947_v40, %v2946_v26  ;;  %v2905_v63 = vmul.f32 %v3731_v48, %v3731_v48  ;;  %v2853_v2 = vsel %vm412_vm1, %v3731_v48, 0.0 }
 0x20a   : > { %v3565_v59 = vpop.f32.mrb[20].mxu1  ;;  %v2949_v12 = vsel %vm412_vm1, %v2902_v60, 0.0  ;;  %2801 = vst.msk [vmem:[%s5007_s19 + $0x88] sm:$0xff] %vm412_vm1, %v3732_v11  ;;  %v2849_v52 = vsel %vm412_vm1, %v3732_v11, 0.0  ;;  %v2903_v57 = vmul.f32 %v3732_v11, %v3732_v11  ;;  %v2953_v36 = vsel %vm412_vm1, %v2904_v37, 0.0 }
 0x20b   : > { %v1899_v9 = vpop.f32.mrb[21].mxu1  ;;  %v2850_v24 = vadd.f32 %v2849_v52, %v2848_v1  ;;  %v2950_v38 = vadd.f32 %v2949_v12, %v2948_v62  ;;  %v2955_v21 = vsel %vm412_vm1, %v2905_v63, 0.0 }
 0x20c   : > { %v3566_v47 = vpop.f32.mrb[22].mxu1  ;;  %v2951_v34 = vsel %vm412_vm1, %v2903_v57, 0.0  ;;  %v3701_v46 = vpop.f32.mrb[20].mxu0 }
 0x20d   : > { %v1902_v49 = vpop.f32.mrb[23].mxu1  ;;  %v2852_v41 = vadd.f32 %v2851_v13, %v2850_v24  ;;  %v3733_v5 = vadd.f32 %v3701_v46, %v3565_v59  ;;  %v2705_v50 = vpop.f32.mrb[21].mxu0  ;;  %v2952_v55 = vadd.f32 %v2951_v34, %v2950_v38 }
 0x20e   : > { %v3734_v25 = vadd.f32 %v2705_v50, %v1899_v9  ;;  %v3702_v51 = vpop.f32.mrb[22].mxu0 }
 0x20f   : > { %2806 = vst.msk [vmem:[%s5007_s19 + $0xb0] sm:$0xff] %vm412_vm1, %v3733_v5  ;;  %v2854_v44 = vadd.f32 %v2853_v2, %v2852_v41  ;;  %v3735_v39 = vadd.f32 %v3702_v51, %v3566_v47  ;;  %v2708_v27 = vpop.f32.mrb[23].mxu0  ;;  %v2954_v0 = vadd.f32 %v2953_v36, %v2952_v55  ;;  %v2908_v32 = vmul.f32 %v3733_v5, %v3733_v5 }
 0x210   : > { %2804 = vst.msk [vmem:[%s5007_s19 + $0xa0] sm:$0xff] %vm412_vm1, %v3734_v25  ;;  %v2855_v3 = vsel %vm412_vm1, %v3734_v25, 0.0  ;;  %v2906_v14 = vmul.f32 %v3734_v25, %v3734_v25  ;;  %v3736_v15 = vadd.f32 %v2708_v27, %v1902_v49  ;;  %v2859_v61 = vsel %vm412_vm1, %v3733_v5, 0.0 }
 0x211   : > { %v2856_v8 = vadd.f32 %v2855_v3, %v2854_v44  ;;  %2807 = vst.msk [vmem:[%s5007_s19 + $0xb8] sm:$0xff] %vm412_vm1, %v3735_v39  ;;  %v2956_v23 = vadd.f32 %v2955_v21, %v2954_v0  ;;  %v2909_v4 = vmul.f32 %v3735_v39, %v3735_v39  ;;  %v2861_v56 = vsel %vm412_vm1, %v3735_v39, 0.0 }
 0x212   : > { %v3569_v19 = vpop.f32.mrb[24].mxu1  ;;  %v2957_v42 = vsel %vm412_vm1, %v2906_v14, 0.0  ;;  %2805 = vst.msk [vmem:[%s5007_s19 + $0xa8] sm:$0xff] %vm412_vm1, %v3736_v15  ;;  %v2857_v43 = vsel %vm412_vm1, %v3736_v15, 0.0  ;;  %v2907_v29 = vmul.f32 %v3736_v15, %v3736_v15  ;;  %v2961_v45 = vsel %vm412_vm1, %v2908_v32, 0.0 }
 0x213   : > { %v1915_v30 = vpop.f32.mrb[25].mxu1  ;;  %v2858_v16 = vadd.f32 %v2857_v43, %v2856_v8  ;;  %v2958_v31 = vadd.f32 %v2957_v42, %v2956_v23  ;;  %v2963_v40 = vsel %vm412_vm1, %v2909_v4, 0.0 }
 0x214   : > { %v3570_v20 = vpop.f32.mrb[26].mxu1  ;;  %v2959_v54 = vsel %vm412_vm1, %v2907_v29, 0.0  ;;  %v3705_v53 = vpop.f32.mrb[24].mxu0 }
 0x215   : > { %v1918_v33 = vpop.f32.mrb[27].mxu1  ;;  %v2860_v35 = vadd.f32 %v2859_v61, %v2858_v16  ;;  %v3737_v58 = vadd.f32 %v3705_v53, %v3569_v19  ;;  %v2721_v22 = vpop.f32.mrb[25].mxu0  ;;  %v2960_v10 = vadd.f32 %v2959_v54, %v2958_v31 }
 0x216   : > { %v3738_v7 = vadd.f32 %v2721_v22, %v1915_v30  ;;  %v3706_v6 = vpop.f32.mrb[26].mxu0 }
 0x217   : > { %2810 = vst.msk [vmem:[%s5007_s19 + $0xd0] sm:$0xff] %vm412_vm1, %v3737_v58  ;;  %v2862_v17 = vadd.f32 %v2861_v56, %v2860_v35  ;;  %v3739_v48 = vadd.f32 %v3706_v6, %v3570_v20  ;;  %v2724_v18 = vpop.f32.mrb[27].mxu0  ;;  %v2962_v26 = vadd.f32 %v2961_v45, %v2960_v10  ;;  %v2912_v37 = vmul.f32 %v3737_v58, %v3737_v58 }
 0x218   : > { %2808 = vst.msk [vmem:[%s5007_s19 + $0xc0] sm:$0xff] %vm412_vm1, %v3738_v7  ;;  %v2863_v28 = vsel %vm412_vm1, %v3738_v7, 0.0  ;;  %v2910_v60 = vmul.f32 %v3738_v7, %v3738_v7  ;;  %v3740_v11 = vadd.f32 %v2724_v18, %v1918_v33  ;;  %v2867_v13 = vsel %vm412_vm1, %v3737_v58, 0.0 }
 0x219   : > { %v2864_v1 = vadd.f32 %v2863_v28, %v2862_v17  ;;  %2811 = vst.msk [vmem:[%s5007_s19 + $0xd8] sm:$0xff] %vm412_vm1, %v3739_v48  ;;  %v2964_v62 = vadd.f32 %v2963_v40, %v2962_v26  ;;  %v2913_v63 = vmul.f32 %v3739_v48, %v3739_v48  ;;  %v2869_v2 = vsel %vm412_vm1, %v3739_v48, 0.0 }
 0x21a   : > { %v3573_v59 = vpop.f32.mrb[28].mxu1  ;;  %v2965_v12 = vsel %vm412_vm1, %v2910_v60, 0.0  ;;  %2809 = vst.msk [vmem:[%s5007_s19 + $0xc8] sm:$0xff] %vm412_vm1, %v3740_v11  ;;  %v2865_v52 = vsel %vm412_vm1, %v3740_v11, 0.0  ;;  %v2911_v57 = vmul.f32 %v3740_v11, %v3740_v11  ;;  %v2969_v36 = vsel %vm412_vm1, %v2912_v37, 0.0 }
 0x21b   : > { %v1931_v9 = vpop.f32.mrb[29].mxu1  ;;  %v2866_v24 = vadd.f32 %v2865_v52, %v2864_v1  ;;  %v2966_v38 = vadd.f32 %v2965_v12, %v2964_v62  ;;  %v2971_v21 = vsel %vm412_vm1, %v2913_v63, 0.0 }
 0x21c   : > { %v3574_v47 = vpop.f32.mrb[30].mxu1  ;;  %v2967_v34 = vsel %vm412_vm1, %v2911_v57, 0.0  ;;  %v3709_v46 = vpop.f32.mrb[28].mxu0 }
 0x21d   : > { %v1934_v49 = vpop.f32.mrb[31].mxu1  ;;  %v2868_v41 = vadd.f32 %v2867_v13, %v2866_v24  ;;  %v3741_v5 = vadd.f32 %v3709_v46, %v3573_v59  ;;  %v2737_v50 = vpop.f32.mrb[29].mxu0  ;;  %v2968_v55 = vadd.f32 %v2967_v34, %v2966_v38 }
 0x21e   : > { %v3742_v25 = vadd.f32 %v2737_v50, %v1931_v9  ;;  %v3710_v51 = vpop.f32.mrb[30].mxu0 }
 0x21f   : > { %2814 = vst.msk [vmem:[%s5007_s19 + $0xf0] sm:$0xff] %vm412_vm1, %v3741_v5  ;;  %v2870_v44 = vadd.f32 %v2869_v2, %v2868_v41  ;;  %v3743_v39 = vadd.f32 %v3710_v51, %v3574_v47  ;;  %v2740_v27 = vpop.f32.mrb[31].mxu0  ;;  %v2970_v0 = vadd.f32 %v2969_v36, %v2968_v55  ;;  %v2916_v29 = vmul.f32 %v3741_v5, %v3741_v5 }
 0x220   : > { %2812 = vst.msk [vmem:[%s5007_s19 + $0xe0] sm:$0xff] %vm412_vm1, %v3742_v25  ;;  %v2871_v3 = vsel %vm412_vm1, %v3742_v25, 0.0  ;;  %v2914_v14 = vmul.f32 %v3742_v25, %v3742_v25  ;;  %v3744_v15 = vadd.f32 %v2740_v27, %v1934_v49  ;;  %v2875_v32 = vsel %vm412_vm1, %v3741_v5, 0.0 }
 0x221   : > { %v2872_v8 = vadd.f32 %v2871_v3, %v2870_v44  ;;  %2815 = vst.msk [vmem:[%s5007_s19 + $0xf8] sm:$0xff] %vm412_vm1, %v3743_v39  ;;  %v2972_v19 = vadd.f32 %v2971_v21, %v2970_v0  ;;  %v2917_v61 = vmul.f32 %v3743_v39, %v3743_v39  ;;  %v2877_v54 = vsel %vm412_vm1, %v3743_v39, 0.0 }
 0x222   : > { %v2973_v23 = vsel %vm412_vm1, %v2914_v14, 0.0  ;;  %2813 = vst.msk [vmem:[%s5007_s19 + $0xe8] sm:$0xff] %vm412_vm1, %v3744_v15  ;;  %v2873_v42 = vsel %vm412_vm1, %v3744_v15, 0.0  ;;  %v2915_v43 = vmul.f32 %v3744_v15, %v3744_v15  ;;  %v2977_v33 = vsel %vm412_vm1, %v2916_v29, 0.0 }
 0x223   : > { %v2874_v30 = vadd.f32 %v2873_v42, %v2872_v8  ;;  %v2974_v16 = vadd.f32 %v2973_v23, %v2972_v19  ;;  %v2979_v58 = vsel %vm412_vm1, %v2917_v61, 0.0 }
 0x224   : > { %v2975_v20 = vsel %vm412_vm1, %v2915_v43, 0.0 }
 0x225   : > { %v2876_v31 = vadd.f32 %v2875_v32, %v2874_v30  ;;  %v2976_v53 = vadd.f32 %v2975_v20, %v2974_v16 }
 0x227   : > { %v2878_v4 = vadd.f32 %v2877_v54, %v2876_v31  ;;  %v2978_v35 = vadd.f32 %v2977_v33, %v2976_v53 }
 0x229   : > { %v2879_v22 = vrot.slane %v2878_v4, 4  ;;  %v2980_v56 = vadd.f32 %v2979_v58, %v2978_v35 }
 0x22b   : > { %v2880_v10 = vadd.f32 %v2879_v22, %v2878_v4  ;;  %v2981_v7 = vrot.slane %v2980_v56, 4 }
 0x22d   : > { %v2881_v6 = vrot.slane %v2880_v10, 2  ;;  %v2982_v45 = vadd.f32 %v2981_v7, %v2980_v56 }
 0x22f   : > { %v2882_v17 = vadd.f32 %v2881_v6, %v2880_v10  ;;  %v2983_v48 = vrot.slane %v2982_v45, 2 }
 0x231   : > { %v2883_v18 = vrot.slane %v2882_v17, 1  ;;  %v2984_v26 = vadd.f32 %v2983_v48, %v2982_v45 }
 0x233   : > { %v2884_v28 = vadd.f32 %v2883_v18, %v2882_v17  ;;  %v2985_v60 = vrot.slane %v2984_v26, 1 }
 0x235   : > { %2885 = vst.msk [vmem:[%s265_s24] sm:$0x1] %vm422_vm3, %v2884_v28  ;;  %v2986_v11 = vadd.f32 %v2985_v60, %v2984_v26 }
 0x237   : > { %2987 = vst.msk [vmem:[%s268_s27] sm:$0x1] %vm422_vm3, %v2986_v11 }
 0x238 PF: > { %s17_s21 = sadd.s32 1, %s3994_s21  }
 0x239   : > { %p14_p4 = scmp.ge.s32.totalorder %s17_s21, 4  }
 0x23b   :  { %16 = sbr.rel (!%p14_p4) target bundleno = 1 (0x1), region = 92 }

// kernel: resblock_forward.3
= control target key start
LH: loop header
LB: loop body
LE: loop exit
PB: predicated region body
PF: predicated region fallthrough
CT: control target
= control target key end

     0   :  { %s3748_s15 = smov 0   ;;  %s4737_s0 = inlined_call_operand.vmem [shape: f32[2,18,18,4], index: 0, kind: input, shape index: {}]   ;;  %s4738_s1 = inlined_call_operand.vmem [shape: f32[36,4], index: 1, kind: input, shape index: {}]   ;;  %s4739_s2 = inlined_call_operand.vmem [shape: f32[2,16,16,4], index: 2, kind: output, shape index: {0}]   ;;  %s4740_s3 = inlined_call_operand.vmem [shape: f32[2,1,4], index: 3, kind: output, shape index: {1}]   ;;  %s4741_s4 = inlined_call_operand.vmem [shape: f32[2,1,4], index: 4, kind: output, shape index: {2}]  }
   0x1 LB: > { %s2824_s16 = sadd.s32 4294967295, %s3721_s15   ;;  %p2828_p0 = scmp.ge.s32.totalorder %s3721_s15, 1  ;;  %s3721_s15 = sphi %s3748_s15, %s15_s15  }
   0x2   : > { %p167_p1 = scmp.lt.s32.totalorder %s3721_s15, 3 }
   0x4   : > { %p168_p2 = pnand %p2828_p0, %p167_p1 }
   0x6   : > { %171 = sbr.rel (%p168_p2) target bundleno = 548 (0x224), region = 28 }
   0xd   : > { %v270_v0 = vld [vmem:[%s4738_s1] sm:$0xff]  ;;  %vm667_vm0 = vcmask 1041408   ;;  %v272_v1 = vld [vmem:[%s4738_s1 + $0x10] sm:$0xff]  ;;  %p199_p3 = scmp.lt.s32.totalorder %s2824_s16, 1  ;;  %vm323_vm1 = vcmask 1046528   ;;  %v273_v16 = vld [vmem:[%s4738_s1 + $0x18] sm:$0xff] }
   0xe   : > { %v583_v2 = vpack.c.bf16 %v270_v0, %v270_v0  ;;  %v3762_v3 = vpack.c.bf16 %v272_v1, %v272_v1  ;;  %v271_v20 = vld [vmem:[%s4738_s1 + $0x8] sm:$0xff]  ;;  %vm618_vm2 = vcmask 31744   ;;  %v3832_v31 = vpack.c.bf16 %v273_v16, %v273_v16 }
   0xf   : > { %s4804_s16 = smov (!%p199_p3, %s2824_s16), 1  ;;  %v3859_v44 = vpack.c.bf16 %v271_v20, %v271_v20  ;;  %vm436_vm3 = vcmask 1045504   ;;  %vm2615_vm4 = vcmask 24576  }
  0x10   : > { %4767 = vst [vmem:[#allocation2_spill] sm:$0xff] %v3762_v3  ;;  %v617_v4 = vrot.slane %v583_v2, 2  ;;  %3700 = vmatprep.subr.msk.bf16.mxu0 %vm667_vm0, %v3762_v3  ;;  %v3770_v5 = vsel %vm667_vm0, %v3762_v3, 0  ;;  %v1710_v6 = vrot.slane %v3762_v3, 2  ;;  %s3706_s21 = smul.u32 432, %s4804_s16  ;;  %v881_v40 = vsel %vm667_vm0, %v583_v2, 0  ;;  %s211_s11 = scalar_lea.vmem %s4740_s3, %s4804_s16 }
  0x11   : > { %4768 = vst [vmem:[#allocation3_spill] sm:$0xff] %v3770_v5  ;;  %3269 = vmatpush3.bf16.msra.mxu0 %v3770_v5  ;;  %s2978_s5 = sshll.u32 %s4804_s16, 8  ;;  %s214_s14 = scalar_lea.vmem %s4741_s4, %s4804_s16 }
  0x12   : > { %3696 = vmatprep.subr.msk.bf16.mxu1 %vm667_vm0, %v617_v4  ;;  %v669_v7 = vsel %vm667_vm0, %v617_v4, 0  ;;  %3702 = vmatprep.subr.msk.bf16.mxu0 %vm667_vm0, %v1710_v6  ;;  %s3781_s24 = scalar_lea.vmem %s4737_s0, %s3706_s21  ;;  %v1715_v46 = vsel %vm667_vm0, %v1710_v6, 0  ;;  %s4588_s8 = scalar_lea.vmem %s4739_s2, %s2978_s5 }
  0x13   : > { %3133 = vmatpush3.bf16.msra.mxu1 %v669_v7  ;;  %v3784_v8 = vld [vmem:[%s3781_s24] sm:$0xff]  ;;  %v3787_v9 = vld [vmem:[%s3781_s24 + $0x8] sm:$0xff]  ;;  %v3790_v10 = vld [vmem:[%s3781_s24 + $0x10] sm:$0x3] }
  0x14   : > { %3697 = vmatprep.subr.msk.bf16.mxu1 %vm667_vm0, %v583_v2  ;;  %v324_v11 = vrot.slane %v3784_v8, 1  ;;  %v325_v12 = vrot.slane %v3787_v9, 1  ;;  %v327_v13 = vrot.slane %v3790_v10, 1  ;;  %v3797_v14 = vld [vmem:[%s3781_s24 + $0x18] sm:$0xff]  ;;  %v3800_v15 = vld [vmem:[%s3781_s24 + $0x20] sm:$0xff]  ;;  %v3817_v24 = vld [vmem:[%s3781_s24 + $0x30] sm:$0xff] }
  0x15   : > { %v3806_v17 = vld [vmem:[%s3781_s24 + $0x28] sm:$0x3]  ;;  %v329_v18 = vrot.slane %v3797_v14, 1  ;;  %v330_v19 = vrot.slane %v3800_v15, 1  ;;  %v3820_v25 = vld [vmem:[%s3781_s24 + $0x38] sm:$0xff]  ;;  %v3830_v30 = vld [vmem:[%s3781_s24 + $0x50] sm:$0xff]  ;;  %v3837_v33 = vpack.c.bf16 %v3800_v15, %v3797_v14 }
  0x16   : > { %v326_v21 = vsel %vm323_vm1, %v324_v11, %v325_v12  ;;  %v328_v22 = vsel %vm323_vm1, %v325_v12, %v327_v13  ;;  %v332_v23 = vrot.slane %v3806_v17, 1  ;;  %v3823_v26 = vld [vmem:[%s3781_s24 + $0x40] sm:$0x3]  ;;  %v3827_v29 = vld [vmem:[%s3781_s24 + $0x48] sm:$0xff]  ;;  %v334_v34 = vrot.slane %v3817_v24, 1  ;;  %v3857_v43 = vld [vmem:[%s3781_s24 + $0x78] sm:$0xff] }
  0x17   : > { %v600_v27 = vpack.c.bf16 %v328_v22, %v326_v21  ;;  %v331_v28 = vsel %vm323_vm1, %v329_v18, %v330_v19  ;;  %v335_v35 = vrot.slane %v3820_v25, 1  ;;  %v3842_v36 = vld [vmem:[%s3781_s24 + $0x58] sm:$0x3]  ;;  %v3845_v37 = vld [vmem:[%s3781_s24 + $0x60] sm:$0xff]  ;;  %v3848_v38 = vld [vmem:[%s3781_s24 + $0x68] sm:$0xff]  ;;  %v337_v41 = vrot.slane %v3823_v26, 1 }
  0x18   : > { %v333_v32 = vsel %vm323_vm1, %v330_v19, %v332_v23  ;;  %v3854_v42 = vld [vmem:[%s3781_s24 + $0x70] sm:$0x3]  ;;  %v339_v47 = vrot.slane %v3827_v29, 1  ;;  %v340_v48 = vrot.slane %v3830_v30, 1  ;;  %v3866_v49 = vld [vmem:[%s3781_s24 + $0x80] sm:$0xff]  ;;  %v342_v52 = vrot.slane %v3842_v36, 1 }
  0x19   : > { %3134 = vmatprep.mubr.msk.bf16.mxu1 %vm618_vm2, %v600_v27  ;;  %v601_v39 = vpack.c.bf16 %v333_v32, %v331_v28  ;;  %v336_v45 = vsel %vm323_vm1, %v334_v34, %v335_v35  ;;  %v3869_v50 = vld [vmem:[%s3781_s24 + $0x88] sm:$0x3]  ;;  %v338_v51 = vsel %vm323_vm1, %v335_v35, %v337_v41  ;;  %v344_v53 = vrot.slane %v3845_v37, 1  ;;  %v3900_v4 = vld [vmem:[%s3781_s24 + $0x90] sm:$0xff]  ;;  %v3903_v6 = vld [vmem:[%s3781_s24 + $0x98] sm:$0xff] }
  0x1a   : > { %v345_v54 = vrot.slane %v3848_v38, 1  ;;  %v3877_v55 = vpack.c.bf16 %v338_v51, %v336_v45  ;;  %v341_v56 = vsel %vm323_vm1, %v339_v47, %v340_v48  ;;  %v347_v57 = vrot.slane %v3854_v42, 1  ;;  %v3906_v7 = vld [vmem:[%s3781_s24 + $0xa0] sm:$0x3]  ;;  %v3911_v11 = vld [vmem:[%s3781_s24 + $0xa8] sm:$0xff]  ;;  %v3914_v12 = vld [vmem:[%s3781_s24 + $0xb0] sm:$0xff] }
  0x1b   : > { %3270 = vmatprep.mubr.msk.bf16.mxu0 %vm618_vm2, %v601_v39  ;;  %3135 = vmatmul.mubr.msk.bf16.vlgmr.msra.gmra.mrb[0].mxu1 %vm618_vm2, %v601_v39  ;;  %v349_v58 = vrot.slane %v3857_v43, 1  ;;  %v343_v59 = vsel %vm323_vm1, %v340_v48, %v342_v52  ;;  %v350_v60 = vrot.slane %v3866_v49, 1  ;;  %v352_v61 = vrot.slane %v3869_v50, 1  ;;  %v3917_v13 = vld [vmem:[%s3781_s24 + $0xb8] sm:$0x3]  ;;  %v3940_v34 = vld [vmem:[%s3781_s24 + $0xc0] sm:$0xff] }
  0x1c   : > { %3167 = vmatpush3.bf16.msra.mxu1 %v881_v40  ;;  %4769 = vst [vmem:[#allocation4_spill] sm:$0xff] %v3877_v55  ;;  %3271 = vmatmul.mubr.msk.bf16.vlgmr.msra.gmra.mrb[0].mxu0 %vm618_vm2, %v3877_v55  ;;  %v3891_v62 = vpack.c.bf16 %v343_v59, %v341_v56  ;;  %v346_v63 = vsel %vm323_vm1, %v344_v53, %v345_v54  ;;  %v354_v19 = vrot.slane %v3900_v4, 1  ;;  %v355_v20 = vrot.slane %v3903_v6, 1  ;;  %v3943_v35 = vld [vmem:[%s3781_s24 + $0xc8] sm:$0xff]  ;;  %v3948_v41 = vld [vmem:[%s3781_s24 + $0xd0] sm:$0x3] }
  0x1d   : > { %3698 = vmatprep.subr.msk.bf16.mxu1 %vm667_vm0, %v3859_v44  ;;  %3138 = vmatprep.mubr.msk.bf16.mxu1 %vm618_vm2, %v3877_v55  ;;  %v348_v0 = vsel %vm323_vm1, %v345_v54, %v347_v57  ;;  %v351_v1 = vsel %vm323_vm1, %v349_v58, %v350_v60  ;;  %v353_v2 = vsel %vm323_vm1, %v350_v60, %v352_v61  ;;  %v357_v21 = vrot.slane %v3906_v7, 1  ;;  %v3971_v54 = vld [vmem:[%s3781_s24 + $0xe8] sm:$0x3]  ;;  %v3976_v58 = vld [vmem:[%s3781_s24 + $0xf0] sm:$0xff]  ;;  %v3979_v59 = vld [vmem:[%s3781_s24 + $0xf8] sm:$0xff] }
  0x1e   : > { %4770 = vst [vmem:[#allocation5_spill] sm:$0xff] %v3891_v62  ;;  %3303 = vmatpush3.bf16.msra.mxu0 %v1715_v46  ;;  %3274 = vmatprep.mubr.msk.bf16.mxu0 %vm618_vm2, %v3891_v62  ;;  %v3919_v16 = vpack.c.bf16 %v348_v0, %v346_v63  ;;  %v3923_v18 = vpack.c.bf16 %v353_v2, %v351_v1  ;;  %v359_v22 = vrot.slane %v3911_v11, 1  ;;  %v360_v23 = vrot.slane %v3914_v12, 1  ;;  %v3988_v1 = vld [vmem:[%s3781_s24 + $0x100] sm:$0x3] }
  0x1f   : > { %3703 = vmatprep.subr.msk.bf16.mxu0 %vm667_vm0, %v3832_v31  ;;  %v362_v27 = vrot.slane %v3917_v13, 1  ;;  %v356_v28 = vsel %vm323_vm1, %v354_v19, %v355_v20  ;;  %v358_v32 = vsel %vm323_vm1, %v355_v20, %v357_v21  ;;  %v442_v45 = vrot.slane %v3797_v14, 2 }
  0x20   : > { %4771 = vst [vmem:[#allocation6_spill] sm:$0xff] %v3919_v16  ;;  %4772 = vst [vmem:[#allocation7_spill] sm:$0xff] %v3923_v18  ;;  %v361_v39 = vsel %vm323_vm1, %v359_v22, %v360_v23  ;;  %v443_v46 = vrot.slane %v3800_v15, 2  ;;  %v445_v47 = vrot.slane %v3806_v17, 2  ;;  %v3953_v48 = vpack.c.bf16 %v358_v32, %v356_v28  ;;  %v3965_v15 = vld [vmem:[%s3781_s24 + $0xd8] sm:$0xff]  ;;  %v3968_v17 = vld [vmem:[%s3781_s24 + $0xe0] sm:$0xff] }
  0x21   : > { %v363_v40 = vsel %vm323_vm1, %v360_v23, %v362_v27  ;;  %v364_v51 = vrot.slane %v3940_v34, 1  ;;  %v365_v52 = vrot.slane %v3943_v35, 1  ;;  %v367_v14 = vrot.slane %v3948_v41, 1  ;;  %v4004_v32 = vld [vmem:[%s3781_s24 + $0x108] sm:$0xff] }
  0x22   : > { %4773 = vst [vmem:[#allocation8_spill] sm:$0xff] %v3953_v48  ;;  %v3959_v53 = vpack.c.bf16 %v363_v40, %v361_v39  ;;  %v447_v56 = vrot.slane %v3817_v24, 2  ;;  %v448_v57 = vrot.slane %v3820_v25, 2  ;;  %v450_v60 = vrot.slane %v3823_v26, 2  ;;  %v4007_v39 = vld [vmem:[%s3781_s24 + $0x110] sm:$0xff] }
  0x23   : > { %3139 = vmatmul.mubr.msk.bf16.gmra.mrb[4].mxu1 %vm618_vm2, %v3891_v62  ;;  %v366_v61 = vsel %vm323_vm1, %v364_v51, %v365_v52  ;;  %v444_v63 = vsel %vm436_vm3, %v442_v45, %v443_v46  ;;  %v446_v0 = vsel %vm436_vm3, %v443_v46, %v445_v47  ;;  %v368_v2 = vsel %vm323_vm1, %v365_v52, %v367_v14  ;;  %v4010_v40 = vld [vmem:[%s3781_s24 + $0x118] sm:$0x3]  ;;  %v4019_v52 = vld [vmem:[%s3781_s24 + $0x120] sm:$0xff] }
  0x24   : > { %3142 = vmatprep.mubr.msk.bf16.mxu1 %vm618_vm2, %v3919_v16  ;;  %3275 = vmatmul.mubr.msk.bf16.gmra.mrb[4].mxu0 %vm618_vm2, %v3919_v16  ;;  %4774 = vst [vmem:[#allocation9_spill] sm:$0xff] %v3959_v53  ;;  %v369_v26 = vrot.slane %v3965_v15, 1  ;;  %v370_v19 = vrot.slane %v3968_v17, 1  ;;  %v372_v20 = vrot.slane %v3971_v54, 1  ;;  %v374_v21 = vrot.slane %v3976_v58, 1  ;;  %v4060_v62 = vld [vmem:[%s3781_s24 + $0x138] sm:$0xff] }
  0x25   : > { %3278 = vmatprep.mubr.msk.bf16.mxu0 %vm618_vm2, %v3923_v18  ;;  %v375_v22 = vrot.slane %v3979_v59, 1  ;;  %v377_v23 = vrot.slane %v3988_v1, 1  ;;  %v3999_v27 = vpack.c.bf16 %v368_v2, %v366_v61  ;;  %v4001_v28 = vpack.c.bf16 %v446_v0, %v444_v63  ;;  %v4028_v2 = vld [vmem:[%s3781_s24 + $0x128] sm:$0xff] }
  0x26   : > { %v371_v45 = vsel %vm323_vm1, %v369_v26, %v370_v19  ;;  %v373_v46 = vsel %vm323_vm1, %v370_v19, %v372_v20  ;;  %v449_v47 = vsel %vm436_vm3, %v447_v56, %v448_v57  ;;  %v451_v51 = vsel %vm436_vm3, %v448_v57, %v450_v60  ;;  %v4031_v26 = vld [vmem:[%s3781_s24 + $0x130] sm:$0x3] }
  0x27   : > { %4775 = vst [vmem:[#allocation10_spill] sm:$0xff] %v3999_v27  ;;  %v376_v14 = vsel %vm323_vm1, %v374_v21, %v375_v22  ;;  %v452_v61 = vrot.slane %v3827_v29, 2  ;;  %v453_v63 = vrot.slane %v3830_v30, 2  ;;  %v455_v0 = vrot.slane %v3842_v36, 2 }
  0x28   : > { %v378_v56 = vsel %vm323_vm1, %v375_v22, %v377_v23  ;;  %v379_v57 = vrot.slane %v4004_v32, 1  ;;  %v380_v60 = vrot.slane %v4007_v39, 1  ;;  %v382_v19 = vrot.slane %v4010_v40, 1 }
  0x29   : > { %v1916_v20 = vsel %vm667_vm0, %v3832_v31, 0  ;;  %v4044_v21 = vpack.c.bf16 %v373_v46, %v371_v45  ;;  %v384_v22 = vrot.slane %v4019_v52, 1  ;;  %v385_v23 = vrot.slane %v4028_v2, 1 }
  0x2a   : > { %v387_v5 = vrot.slane %v4031_v26, 1  ;;  %v456_v36 = vsel %vm436_vm3, %v453_v63, %v455_v0  ;;  %v383_v45 = vsel %vm323_vm1, %v380_v60, %v382_v19  ;;  %v457_v46 = vrot.slane %v3845_v37, 2 }
  0x2b   : > { %3143 = vmatmul.mubr.msk.bf16.gmra.mrb[8].mxu1 %vm618_vm2, %v3923_v18  ;;  %4776 = vst [vmem:[#allocation11_spill] sm:$0xff] %v4044_v21  ;;  %v381_v18 = vsel %vm323_vm1, %v379_v57, %v380_v60  ;;  %v458_v16 = vrot.slane %v3848_v38, 2  ;;  %v4073_v0 = vpack.c.bf16 %v3820_v25, %v3817_v24  ;;  %v386_v57 = vsel %vm323_vm1, %v384_v22, %v385_v23  ;;  %v4087_v24 = vld [vmem:[%s3781_s24 + $0x150] sm:$0xff]  ;;  %v4090_v25 = vld [vmem:[%s3781_s24 + $0x158] sm:$0xff] }
  0x2c   : > { %3146 = vmatprep.mubr.msk.bf16.mxu1 %vm618_vm2, %v3953_v48  ;;  %3279 = vmatmul.mubr.msk.bf16.gmra.mrb[8].mxu0 %vm618_vm2, %v3953_v48  ;;  %v454_v48 = vsel %vm436_vm3, %v452_v61, %v453_v63  ;;  %v463_v61 = vrot.slane %v3866_v49, 2  ;;  %v4069_v63 = vld [vmem:[%s3781_s24 + $0x148] sm:$0x3]  ;;  %v388_v60 = vsel %vm323_vm1, %v385_v23, %v387_v5  ;;  %v389_v19 = vrot.slane %v4060_v62, 1 }
  0x2d   : > { %3282 = vmatprep.mubr.msk.bf16.mxu0 %vm618_vm2, %v3959_v53  ;;  %v392_v5 = vrot.slane %v4069_v63, 1  ;;  %v4106_v23 = vpack.c.bf16 %v388_v60, %v386_v57  ;;  %v472_v57 = vrot.slane %v3911_v11, 2  ;;  %v473_v60 = vrot.slane %v3914_v12, 2 }
  0x2f   : > { %4781 = vst [vmem:[#allocation16_spill] sm:$0xff] %v4106_v23 }
  0x33   : > { %3147 = vmatmul.mubr.msk.bf16.gmra.mrb[12].mxu1 %vm618_vm2, %v3959_v53  ;;  %v4051_v53 = vpack.c.bf16 %v378_v56, %v376_v14  ;;  %v462_v14 = vrot.slane %v3857_v43, 2  ;;  %v4077_v56 = vpack.c.bf16 %v456_v36, %v454_v48  ;;  %v4095_v48 = vpack.c.bf16 %v383_v45, %v381_v18 }
  0x34   : > { %3150 = vmatprep.mubr.msk.bf16.mxu1 %vm618_vm2, %v3999_v27  ;;  %3283 = vmatmul.mubr.msk.bf16.gmra.mrb[12].mxu0 %vm618_vm2, %v3999_v27  ;;  %v4049_v27 = vpack.c.bf16 %v451_v51, %v449_v47  ;;  %v4063_v47 = vld [vmem:[%s3781_s24 + $0x140] sm:$0xff]  ;;  %v460_v51 = vrot.slane %v3854_v42, 2  ;;  %v465_v42 = vrot.slane %v3869_v50, 2  ;;  %v459_v36 = vsel %vm436_vm3, %v457_v46, %v458_v16 }
  0x35   : > { %3304 = vmatprep.mubr.msk.bf16.mxu0 %vm618_vm2, %v4001_v28  ;;  %4778 = vst [vmem:[#allocation13_spill] sm:$0xff] %v4051_v53  ;;  %4779 = vst [vmem:[#allocation14_spill] sm:$0xff] %v4077_v56  ;;  %v390_v55 = vrot.slane %v4063_v47, 1  ;;  %v4101_v50 = vpack.c.bf16 %v3830_v30, %v3827_v29  ;;  %v4111_v18 = vpack.c.bf16 %v3848_v38, %v3845_v37  ;;  %v394_v30 = vrot.slane %v4087_v24, 1 }
  0x36   : > { %4777 = vst [vmem:[#allocation12_spill] sm:$0xff] %v4049_v27  ;;  %4780 = vst [vmem:[#allocation15_spill] sm:$0xff] %v4095_v48  ;;  %v461_v22 = vsel %vm436_vm3, %v458_v16, %v460_v51  ;;  %v466_v29 = vsel %vm436_vm3, %v463_v61, %v465_v42  ;;  %v395_v45 = vrot.slane %v4090_v25, 1  ;;  %v467_v51 = vrot.slane %v3900_v4, 2 }
  0x37   : > { %v391_v46 = vsel %vm323_vm1, %v389_v19, %v390_v55  ;;  %v468_v37 = vrot.slane %v3903_v6, 2  ;;  %v4124_v38 = vpack.c.bf16 %v3866_v49, %v3857_v43  ;;  %v437_v42 = vrot.slane %v3784_v8, 2  ;;  %v4139_v43 = vld [vmem:[%s3781_s24 + $0x168] sm:$0xff] }
  0x38   : > { %v4134_v19 = vpack.c.bf16 %v461_v22, %v459_v36  ;;  %v4143_v49 = vpack.c.bf16 %v3903_v6, %v3900_v4  ;;  %v4154_v36 = vld [vmem:[%s3781_s24 + $0x178] sm:$0x3]  ;;  %v438_v4 = vrot.slane %v3787_v9, 2  ;;  %v440_v6 = vrot.slane %v3790_v10, 2 }
  0x3a   : > { %4783 = vst [vmem:[#allocation17_spill] sm:$0xff] %v4134_v19 }
  0x3b   : > { %3151 = vmatmul.mubr.msk.bf16.gmra.mrb[16].mxu1 %vm618_vm2, %v4044_v21  ;;  %v4093_v21 = vld [vmem:[%s3781_s24 + $0x160] sm:$0x3] }
  0x3c   : > { %3154 = vmatprep.mubr.msk.bf16.mxu1 %vm618_vm2, %v4051_v53  ;;  %3305 = vmatmul.mubr.msk.bf16.vlgmr.msra.gmra.mrb[0].mxu0 %vm618_vm2, %v4049_v27  ;;  %v464_v53 = vsel %vm436_vm3, %v462_v14, %v463_v61  ;;  %v397_v16 = vrot.slane %v4093_v21, 1  ;;  %v393_v14 = vsel %vm323_vm1, %v390_v55, %v392_v5  ;;  %v470_v61 = vrot.slane %v3906_v7, 2 }
  0x3d   : > { %3337 = vmatpush3.bf16.msra.mxu0 %v1916_v20  ;;  %3308 = vmatprep.mubr.msk.bf16.mxu0 %vm618_vm2, %v4077_v56  ;;  %v4782_v20 = vrot.slane %v3832_v31, 2  ;;  %v4136_v56 = vpack.c.bf16 %v466_v29, %v464_v53  ;;  %v396_v55 = vsel %vm323_vm1, %v394_v30, %v395_v45  ;;  %v475_v5 = vrot.slane %v3917_v13, 2 }
  0x3e   : > { %v398_v7 = vsel %vm323_vm1, %v395_v45, %v397_v16  ;;  %v4158_v53 = vpack.c.bf16 %v3914_v12, %v3911_v11  ;;  %v4164_v22 = vpack.c.bf16 %v393_v14, %v391_v46  ;;  %v469_v29 = vsel %vm436_vm3, %v467_v51, %v468_v37 }
  0x3f   : > { %3704 = vmatprep.subr.msk.bf16.mxu0 %vm667_vm0, %v4782_v20  ;;  %4784 = vst [vmem:[#allocation18_spill] sm:$0xff] %v4136_v56  ;;  %v4151_v20 = vld [vmem:[%s3781_s24 + $0x170] sm:$0xff]  ;;  %v471_v13 = vsel %vm436_vm3, %v468_v37, %v470_v61  ;;  %v474_v30 = vsel %vm436_vm3, %v472_v57, %v473_v60  ;;  %v399_v45 = vrot.slane %v4139_v43, 1  ;;  %v4172_v11 = vpack.c.bf16 %v3943_v35, %v3940_v34 }
  0x40   : > { %v4176_v10 = vpack.c.bf16 %v398_v7, %v396_v55  ;;  %v400_v12 = vrot.slane %v4151_v20, 1  ;;  %v402_v16 = vrot.slane %v4154_v36, 1  ;;  %v4182_v46 = vpack.c.bf16 %v3968_v17, %v3965_v15 }
  0x41   : > { %v476_v51 = vsel %vm436_vm3, %v473_v60, %v475_v5  ;;  %v4189_v37 = vpack.c.bf16 %v3979_v59, %v3976_v58  ;;  %v4193_v14 = vpack.c.bf16 %v4007_v39, %v4004_v32  ;;  %v4197_v61 = vpack.c.bf16 %v4028_v2, %v4019_v52 }
  0x42   : > { %v4201_v57 = vpack.c.bf16 %v4063_v47, %v4060_v62  ;;  %v4205_v55 = vpack.c.bf16 %v4090_v25, %v4087_v24  ;;  %v4209_v60 = vpack.c.bf16 %v4151_v20, %v4139_v43  ;;  %v4212_v7 = vsel %vm436_vm3, %v437_v42, %v438_v4 }
  0x43   : > { %3155 = vmatmul.mubr.msk.bf16.gmra.mrb[20].mxu1 %vm618_vm2, %v4095_v48  ;;  %v4215_v5 = vsel %vm436_vm3, %v438_v4, %v440_v6  ;;  %v477_v48 = vrot.slane %v3940_v34, 2  ;;  %v401_v3 = vsel %vm323_vm1, %v399_v45, %v400_v12  ;;  %v478_v42 = vrot.slane %v3943_v35, 2 }
  0x44   : > { %3158 = vmatprep.mubr.msk.bf16.mxu1 %vm618_vm2, %v4106_v23  ;;  %3309 = vmatmul.mubr.msk.bf16.gmra.mrb[4].mxu0 %vm618_vm2, %v4134_v19  ;;  %v4217_v23 = vpack.c.bf16 %v471_v13, %v469_v29  ;;  %v4224_v19 = vpack.c.bf16 %v476_v51, %v474_v30  ;;  %v480_v27 = vrot.slane %v3948_v41, 2  ;;  %v403_v4 = vsel %vm323_vm1, %v400_v12, %v402_v16 }
  0x45   : > { %3312 = vmatprep.mubr.msk.bf16.mxu0 %vm618_vm2, %v4136_v56  ;;  %v1045_v56 = vpack.c.bf16 %v4215_v5, %v4212_v7  ;;  %v482_v34 = vrot.slane %v3965_v15, 2  ;;  %v483_v6 = vrot.slane %v3968_v17, 2  ;;  %v485_v29 = vrot.slane %v3971_v54, 2  ;;  %v4789_v7 = vld [vmem:[#allocation17_spill] sm:$0xff] }
  0x46   : > { %v4239_v35 = vpack.c.bf16 %v403_v4, %v401_v3  ;;  %v479_v41 = vsel %vm436_vm3, %v477_v48, %v478_v42  ;;  %v481_v13 = vsel %vm436_vm3, %v478_v42, %v480_v27  ;;  %v584_v30 = vpack.c.bf16 %v3787_v9, %v3784_v8 }
  0x47   : > { %v484_v15 = vsel %vm436_vm3, %v482_v34, %v483_v6  ;;  %v486_v17 = vsel %vm436_vm3, %v483_v6, %v485_v29  ;;  %v4247_v54 = vpack.c.bf16 %v481_v13, %v479_v41  ;;  %v487_v3 = vrot.slane %v3976_v58, 2 }
  0x48   : > { %v4251_v45 = vpack.c.bf16 %v486_v17, %v484_v15  ;;  %v488_v48 = vrot.slane %v3979_v59, 2  ;;  %v490_v27 = vrot.slane %v3988_v1, 2  ;;  %v492_v8 = vrot.slane %v4004_v32, 2 }
  0x49   : > { %v493_v9 = vrot.slane %v4007_v39, 2  ;;  %v495_v12 = vrot.slane %v4010_v40, 2  ;;  %v1110_v32 = vsel %vm667_vm0, %v3859_v44, 0  ;;  %v1307_v39 = vrot.slane %v3859_v44, 2  ;;  %v4788_v44 = vld [vmem:[#allocation14_spill] sm:$0xff] }
  0x4a   : > { %v489_v58 = vsel %vm436_vm3, %v487_v3, %v488_v48  ;;  %v491_v59 = vsel %vm436_vm3, %v488_v48, %v490_v27  ;;  %v497_v42 = vrot.slane %v4019_v52, 2  ;;  %v498_v4 = vrot.slane %v4028_v2, 2 }
  0x4b   : > { %3159 = vmatmul.mubr.msk.bf16.gmra.mrb[24].mxu1 %vm618_vm2, %v4164_v22  ;;  %v494_v1 = vsel %vm436_vm3, %v492_v8, %v493_v9  ;;  %v496_v16 = vsel %vm436_vm3, %v493_v9, %v495_v12  ;;  %v4271_v40 = vpack.c.bf16 %v491_v59, %v489_v58  ;;  %v500_v34 = vrot.slane %v4031_v26, 2  ;;  %v264_v8 = vld [vmem:[%s3781_s24 + $0x180] sm:$0xff]  ;;  %v266_v9 = vld [vmem:[%s3781_s24 + $0x190] sm:$0x3] }
  0x4c   : > { %3162 = vmatprep.mubr.msk.bf16.mxu1 %vm618_vm2, %v4176_v10  ;;  %3313 = vmatmul.mubr.msk.bf16.gmra.mrb[8].mxu0 %vm618_vm2, %v4217_v23  ;;  %v4275_v51 = vpack.c.bf16 %v496_v16, %v494_v1  ;;  %v502_v6 = vrot.slane %v4060_v62, 2  ;;  %v503_v29 = vrot.slane %v4063_v47, 2  ;;  %v505_v41 = vrot.slane %v4069_v63, 2 }
  0x4d   : > { %3316 = vmatprep.mubr.msk.bf16.mxu0 %vm618_vm2, %v4224_v19  ;;  %v499_v52 = vsel %vm436_vm3, %v497_v42, %v498_v4  ;;  %v501_v2 = vsel %vm436_vm3, %v498_v4, %v500_v34  ;;  %v507_v13 = vrot.slane %v4087_v24, 2  ;;  %v510_v15 = vrot.slane %v4093_v21, 2 }
  0x4e   : > { %v504_v62 = vsel %vm436_vm3, %v502_v6, %v503_v29  ;;  %v506_v26 = vsel %vm436_vm3, %v503_v29, %v505_v41  ;;  %v4296_v47 = vpack.c.bf16 %v501_v2, %v499_v52  ;;  %v512_v17 = vrot.slane %v4139_v43, 2  ;;  %v265_v43 = vld [vmem:[%s3781_s24 + $0x188] sm:$0xff]  ;;  %v274_v52 = vld [vmem:[%s4738_s1 + $0x20] sm:$0xf] }
  0x4f   : > { %v4300_v63 = vpack.c.bf16 %v506_v26, %v504_v62  ;;  %v513_v3 = vrot.slane %v4151_v20, 2  ;;  %v515_v48 = vrot.slane %v4154_v36, 2  ;;  %v559_v12 = vrot.slane %v264_v8, 2 }
  0x50   : > { %v560_v58 = vrot.slane %v265_v43, 2  ;;  %v562_v59 = vrot.slane %v266_v9, 2  ;;  %v552_v1 = vrot.slane %v264_v8, 1  ;;  %v553_v16 = vrot.slane %v265_v43, 1 }
  0x51   : > { %v514_v21 = vsel %vm436_vm3, %v512_v17, %v513_v3  ;;  %v516_v27 = vsel %vm436_vm3, %v513_v3, %v515_v48  ;;  %v4785_v2 = vrot.slane %v3832_v31, 2  ;;  %v2313_v26 = vpack.c.bf16 %v274_v52, %v274_v52  ;;  %v269_v3 = vld [vmem:[%s3781_s24 + $0x1a8] sm:$0x3] }
  0x52   : > { %v4325_v36 = vpack.c.bf16 %v516_v27, %v514_v21  ;;  %v561_v42 = vsel %vm436_vm3, %v559_v12, %v560_v58  ;;  %v563_v4 = vsel %vm436_vm3, %v560_v58, %v562_v59  ;;  %v554_v34 = vsel %vm323_vm1, %v552_v1, %v553_v16  ;;  %v4793_v12 = vld [vmem:[#allocation6_spill] sm:$0xff]  ;;  %v4794_v58 = vld [vmem:[#allocation7_spill] sm:$0xff]  ;;  %v4795_v59 = vld [vmem:[#allocation8_spill] sm:$0xff] }
  0x53   : > { %3163 = vmatmul.mubr.msk.bf16.gmra.mrb[28].mxu1 %vm618_vm2, %v4239_v35  ;;  %v4339_v41 = vpack.c.bf16 %v563_v4, %v561_v42  ;;  %v2118_v62 = vsel %vm667_vm0, %v4785_v2, 0  ;;  %v1312_v31 = vsel %vm667_vm0, %v1307_v39, 0  ;;  %v4413_v5 = vpack.c.bf16 %v265_v43, %v264_v8  ;;  %v4791_v8 = vld [vmem:[#allocation4_spill] sm:$0xff]  ;;  %v4796_v1 = vld [vmem:[#allocation9_spill] sm:$0xff]  ;;  %v4800_v4 = vld [vmem:[#allocation3_spill] sm:$0xff] }
  0x54   : > { %3168 = vmatprep.mubr.msk.bf16.mxu1 %vm618_vm2, %v584_v30  ;;  %3317 = vmatmul.mubr.msk.bf16.gmra.mrb[12].mxu0 %vm618_vm2, %v4247_v54  ;;  %v508_v30 = vrot.slane %v4090_v25, 2  ;;  %v579_v48 = vrot.slane %v269_v3, 2  ;;  %v2319_v43 = vsel %vm667_vm0, %v2313_v26, 0  ;;  %v4799_v42 = vld [vmem:[#allocation13_spill] sm:$0xff] }
  0x55   : > { %3320 = vmatprep.mubr.msk.bf16.mxu0 %vm618_vm2, %v4251_v45 }
  0x56   : > { %v509_v24 = vsel %vm436_vm3, %v507_v13, %v508_v30  ;;  %v511_v25 = vsel %vm436_vm3, %v508_v30, %v510_v15  ;;  %v4786_v13 = vld [vmem:[#allocation12_spill] sm:$0xff]  ;;  %v268_v30 = vld [vmem:[%s3781_s24 + $0x1a0] sm:$0xff] }
  0x57   : > { %v4321_v20 = vpack.c.bf16 %v511_v25, %v509_v24  ;;  %v577_v17 = vrot.slane %v268_v30, 2 }
  0x59   : > { %v4430_v21 = vsel %vm436_vm3, %v577_v17, %v579_v48 }
  0x5b   : > { %3169 = vmatmul.mubr.msk.bf16.vlgmr.msra.gmra.mrb[0].mxu1 %vm618_vm2, %v3837_v33 }
  0x5c   : > { %3201 = vmatpush3.bf16.msra.mxu1 %v1110_v32  ;;  %3172 = vmatprep.mubr.msk.bf16.mxu1 %vm618_vm2, %v4073_v0  ;;  %v555_v32 = vrot.slane %v266_v9, 1  ;;  %v4792_v9 = vld [vmem:[#allocation5_spill] sm:$0xff] }
  0x5d   : > { %3699 = vmatprep.subr.msk.bf16.mxu1 %vm667_vm0, %v1307_v39  ;;  %3321 = vmatmul.mubr.msk.bf16.gmra.mrb[16].mxu0 %vm618_vm2, %v4271_v40  ;;  %v267_v39 = vld [vmem:[%s3781_s24 + $0x198] sm:$0xff] }
  0x5e   : > { %3324 = vmatprep.mubr.msk.bf16.mxu0 %vm618_vm2, %v4275_v51  ;;  %v556_v6 = vsel %vm323_vm1, %v553_v16, %v555_v32  ;;  %v576_v15 = vrot.slane %v267_v39, 2  ;;  %v1911_v24 = vpack.c.bf16 %v268_v30, %v267_v39  ;;  %v4797_v16 = vld [vmem:[#allocation10_spill] sm:$0xff]  ;;  %v4798_v32 = vld [vmem:[#allocation11_spill] sm:$0xff] }
  0x5f   : > { %v4337_v29 = vpack.c.bf16 %v556_v6, %v554_v34  ;;  %v4801_v34 = vld [vmem:[#allocation15_spill] sm:$0xff]  ;;  %v4802_v6 = vld [vmem:[#allocation16_spill] sm:$0xff] }
  0x60   : > { %v4427_v25 = vsel %vm436_vm3, %v576_v15, %v577_v17 }
  0x61   : > { %v2314_v27 = vpack.c.bf16 %v4430_v21, %v4427_v25 }
  0x63   : > { %3173 = vmatmul.mubr.msk.bf16.gmra.mrb[4].mxu1 %vm618_vm2, %v4101_v50 }
  0x64   : > { %3176 = vmatprep.mubr.msk.bf16.mxu1 %vm618_vm2, %v4111_v18 }
  0x65   : > { %3325 = vmatmul.mubr.msk.bf16.gmra.mrb[20].mxu0 %vm618_vm2, %v4296_v47 }
  0x66   : > { %3328 = vmatprep.mubr.msk.bf16.mxu0 %vm618_vm2, %v4300_v63 }
  0x6b   : > { %3177 = vmatmul.mubr.msk.bf16.gmra.mrb[8].mxu1 %vm618_vm2, %v4124_v38 }
  0x6c   : > { %3180 = vmatprep.mubr.msk.bf16.mxu1 %vm618_vm2, %v4143_v49 }
  0x6d   : > { %3329 = vmatmul.mubr.msk.bf16.gmra.mrb[24].mxu0 %vm618_vm2, %v4321_v20 }
  0x6e   : > { %3332 = vmatprep.mubr.msk.bf16.mxu0 %vm618_vm2, %v4325_v36 }
  0x73   : > { %3181 = vmatmul.mubr.msk.bf16.gmra.mrb[12].mxu1 %vm618_vm2, %v4158_v53 }
  0x74   : > { %3184 = vmatprep.mubr.msk.bf16.mxu1 %vm618_vm2, %v4172_v11 }
  0x75   : > { %3333 = vmatmul.mubr.msk.bf16.gmra.mrb[28].mxu0 %vm618_vm2, %v4339_v41 }
  0x76   : > { %3338 = vmatprep.mubr.msk.bf16.mxu0 %vm618_vm2, %v4073_v0 }
  0x7b   : > { %3185 = vmatmul.mubr.msk.bf16.gmra.mrb[16].mxu1 %vm618_vm2, %v4182_v46 }
  0x7c   : > { %3188 = vmatprep.mubr.msk.bf16.mxu1 %vm618_vm2, %v4189_v37 }
  0x7d   : > { %3339 = vmatmul.mubr.msk.bf16.vlgmr.msra.gmra.mrb[0].mxu0 %vm618_vm2, %v4101_v50 }
  0x7e   : > { %3371 = vmatpush3.bf16.msra.mxu0 %v2118_v62  ;;  %3342 = vmatprep.mubr.msk.bf16.mxu0 %vm618_vm2, %v4111_v18 }
  0x7f   : > { %3705 = vmatprep.subr.msk.bf16.mxu0 %vm667_vm0, %v2313_v26 }
  0x83   : > { %3189 = vmatmul.mubr.msk.bf16.gmra.mrb[20].mxu1 %vm618_vm2, %v4193_v14 }
  0x84   : > { %3192 = vmatprep.mubr.msk.bf16.mxu1 %vm618_vm2, %v4197_v61 }
  0x85   : > { %3343 = vmatmul.mubr.msk.bf16.gmra.mrb[4].mxu0 %vm618_vm2, %v4124_v38 }
  0x86   : > { %3346 = vmatprep.mubr.msk.bf16.mxu0 %vm618_vm2, %v4143_v49 }
  0x8b   : > { %3193 = vmatmul.mubr.msk.bf16.gmra.mrb[24].mxu1 %vm618_vm2, %v4201_v57 }
  0x8c   : > { %3196 = vmatprep.mubr.msk.bf16.mxu1 %vm618_vm2, %v4205_v55 }
  0x8d   : > { %3347 = vmatmul.mubr.msk.bf16.gmra.mrb[8].mxu0 %vm618_vm2, %v4158_v53 }
  0x8e   : > { %3350 = vmatprep.mubr.msk.bf16.mxu0 %vm618_vm2, %v4172_v11 }
  0x93   : > { %3197 = vmatmul.mubr.msk.bf16.gmra.mrb[28].mxu1 %vm618_vm2, %v4209_v60 }
  0x94   : > { %3202 = vmatprep.mubr.msk.bf16.mxu1 %vm618_vm2, %v1045_v56  ;;  %v4787_v56 = vld [vmem:[#allocation2_spill] sm:$0xff] }
  0x95   : > { %3351 = vmatmul.mubr.msk.bf16.gmra.mrb[12].mxu0 %vm618_vm2, %v4182_v46 }
  0x96   : > { %3354 = vmatprep.mubr.msk.bf16.mxu0 %vm618_vm2, %v4189_v37 }
  0x9b   : > { %3203 = vmatmul.mubr.msk.bf16.vlgmr.msra.gmra.mrb[0].mxu1 %vm618_vm2, %v4001_v28  ;;  %v4790_v28 = vld [vmem:[#allocation18_spill] sm:$0xff] }
  0x9c   : > { %3235 = vmatpush3.bf16.msra.mxu1 %v1312_v31  ;;  %3206 = vmatprep.mubr.msk.bf16.mxu1 %vm618_vm2, %v4786_v13 }
  0x9d   : > { %3701 = vmatprep.subr.msk.bf16.mxu1 %vm667_vm0, %v4787_v56  ;;  %3355 = vmatmul.mubr.msk.bf16.gmra.mrb[16].mxu0 %vm618_vm2, %v4193_v14 }
  0x9e   : > { %3358 = vmatprep.mubr.msk.bf16.mxu0 %vm618_vm2, %v4197_v61 }
  0xa3   : > { %3207 = vmatmul.mubr.msk.bf16.gmra.mrb[4].mxu1 %vm618_vm2, %v4788_v44 }
  0xa4   : > { %3210 = vmatprep.mubr.msk.bf16.mxu1 %vm618_vm2, %v4789_v7 }
  0xa5   : > { %3359 = vmatmul.mubr.msk.bf16.gmra.mrb[20].mxu0 %vm618_vm2, %v4201_v57 }
  0xa6   : > { %3362 = vmatprep.mubr.msk.bf16.mxu0 %vm618_vm2, %v4205_v55 }
  0xab   : > { %3211 = vmatmul.mubr.msk.bf16.gmra.mrb[8].mxu1 %vm618_vm2, %v4790_v28 }
  0xac   : > { %3214 = vmatprep.mubr.msk.bf16.mxu1 %vm618_vm2, %v4217_v23 }
  0xad   : > { %3363 = vmatmul.mubr.msk.bf16.gmra.mrb[24].mxu0 %vm618_vm2, %v4209_v60 }
  0xae   : > { %3366 = vmatprep.mubr.msk.bf16.mxu0 %vm618_vm2, %v4413_v5 }
  0xb3   : > { %3215 = vmatmul.mubr.msk.bf16.gmra.mrb[12].mxu1 %vm618_vm2, %v4224_v19 }
  0xb4   : > { %3218 = vmatprep.mubr.msk.bf16.mxu1 %vm618_vm2, %v4247_v54 }
  0xb5   : > { %3367 = vmatmul.mubr.msk.bf16.gmra.mrb[28].mxu0 %vm618_vm2, %v1911_v24 }
  0xb6   : > { %3372 = vmatprep.mubr.msk.bf16.mxu0 %vm618_vm2, %v4791_v8 }
  0xbb   : > { %3219 = vmatmul.mubr.msk.bf16.gmra.mrb[16].mxu1 %vm618_vm2, %v4251_v45 }
  0xbc   : > { %3222 = vmatprep.mubr.msk.bf16.mxu1 %vm618_vm2, %v4271_v40 }
  0xbd   : > { %3373 = vmatmul.mubr.msk.bf16.vlgmr.msra.gmra.mrb[0].mxu0 %vm618_vm2, %v4792_v9 }
  0xbe   : > { %3405 = vmatpush3.bf16.msra.mxu0 %v2319_v43  ;;  %3376 = vmatprep.mubr.msk.bf16.mxu0 %vm618_vm2, %v4793_v12 }
  0xc3   : > { %3223 = vmatmul.mubr.msk.bf16.gmra.mrb[20].mxu1 %vm618_vm2, %v4275_v51 }
  0xc4   : > { %3226 = vmatprep.mubr.msk.bf16.mxu1 %vm618_vm2, %v4296_v47 }
  0xc5   : > { %3377 = vmatmul.mubr.msk.bf16.gmra.mrb[4].mxu0 %vm618_vm2, %v4794_v58 }
  0xc6   : > { %3380 = vmatprep.mubr.msk.bf16.mxu0 %vm618_vm2, %v4795_v59 }
  0xcb   : > { %3227 = vmatmul.mubr.msk.bf16.gmra.mrb[24].mxu1 %vm618_vm2, %v4300_v63 }
  0xcc   : > { %3230 = vmatprep.mubr.msk.bf16.mxu1 %vm618_vm2, %v4321_v20 }
  0xcd   : > { %3381 = vmatmul.mubr.msk.bf16.gmra.mrb[8].mxu0 %vm618_vm2, %v4796_v1 }
  0xce   : > { %3384 = vmatprep.mubr.msk.bf16.mxu0 %vm618_vm2, %v4797_v16 }
  0xd3   : > { %3231 = vmatmul.mubr.msk.bf16.gmra.mrb[28].mxu1 %vm618_vm2, %v4325_v36 }
  0xd4   : > { %3236 = vmatprep.mubr.msk.bf16.mxu1 %vm618_vm2, %v3837_v33  ;;  %v569_v33 = vrot.slane %v267_v39, 1 }
  0xd5   : > { %3385 = vmatmul.mubr.msk.bf16.gmra.mrb[12].mxu0 %vm618_vm2, %v4798_v32 }
  0xd6   : > { %3388 = vmatprep.mubr.msk.bf16.mxu0 %vm618_vm2, %v4799_v42 }
  0xdb   : > { %3237 = vmatmul.mubr.msk.bf16.vlgmr.msra.gmra.mrb[0].mxu1 %vm618_vm2, %v4073_v0  ;;  %v570_v0 = vrot.slane %v268_v30, 1 }
  0xdc   : > { %3439 = vmatpush3.bf16.msra.mxu1 %v4800_v4  ;;  %3240 = vmatprep.mubr.msk.bf16.mxu1 %vm618_vm2, %v4101_v50  ;;  %v572_v50 = vrot.slane %v269_v3, 1 }
  0xdd   : > { %3389 = vmatmul.mubr.msk.bf16.gmra.mrb[16].mxu0 %vm618_vm2, %v4801_v34 }
  0xde   : > { %3392 = vmatprep.mubr.msk.bf16.mxu0 %vm618_vm2, %v4802_v6 }
  0xe3   : > { %3241 = vmatmul.mubr.msk.bf16.gmra.mrb[4].mxu1 %vm618_vm2, %v4111_v18  ;;  %v571_v18 = vsel %vm323_vm1, %v569_v33, %v570_v0 }
  0xe4   : > { %3244 = vmatprep.mubr.msk.bf16.mxu1 %vm618_vm2, %v4124_v38  ;;  %v573_v38 = vsel %vm323_vm1, %v570_v0, %v572_v50 }
  0xe5   : > { %3393 = vmatmul.mubr.msk.bf16.gmra.mrb[20].mxu0 %vm618_vm2, %v4164_v22  ;;  %v2111_v52 = vpack.c.bf16 %v573_v38, %v571_v18 }
  0xe6   : > { %3396 = vmatprep.mubr.msk.bf16.mxu0 %vm618_vm2, %v4176_v10 }
  0xeb   : > { %3245 = vmatmul.mubr.msk.bf16.gmra.mrb[8].mxu1 %vm618_vm2, %v4143_v49 }
  0xec   : > { %3248 = vmatprep.mubr.msk.bf16.mxu1 %vm618_vm2, %v4158_v53 }
  0xed   : > { %3397 = vmatmul.mubr.msk.bf16.gmra.mrb[24].mxu0 %vm618_vm2, %v4239_v35 }
  0xee   : > { %3400 = vmatprep.mubr.msk.bf16.mxu0 %vm618_vm2, %v4337_v29 }
  0xf3   : > { %3249 = vmatmul.mubr.msk.bf16.gmra.mrb[12].mxu1 %vm618_vm2, %v4172_v11 }
  0xf4   : > { %3252 = vmatprep.mubr.msk.bf16.mxu1 %vm618_vm2, %v4182_v46 }
  0xf5   : > { %3401 = vmatmul.mubr.msk.bf16.gmra.mrb[28].mxu0 %vm618_vm2, %v2111_v52 }
  0xf6   : > { %3406 = vmatprep.mubr.msk.bf16.mxu0 %vm618_vm2, %v4786_v13 }
  0xfb   : > { %3253 = vmatmul.mubr.msk.bf16.gmra.mrb[16].mxu1 %vm618_vm2, %v4189_v37 }
  0xfc   : > { %3256 = vmatprep.mubr.msk.bf16.mxu1 %vm618_vm2, %v4193_v14 }
  0xfd   : > { %3407 = vmatmul.mubr.msk.bf16.vlgmr.msra.gmra.mrb[0].mxu0 %vm618_vm2, %v4788_v44 }
  0xfe   : > { %3410 = vmatprep.mubr.msk.bf16.mxu0 %vm618_vm2, %v4789_v7 }
 0x103   : > { %3257 = vmatmul.mubr.msk.bf16.gmra.mrb[20].mxu1 %vm618_vm2, %v4197_v61 }
 0x104   : > { %3260 = vmatprep.mubr.msk.bf16.mxu1 %vm618_vm2, %v4201_v57 }
 0x105   : > { %3411 = vmatmul.mubr.msk.bf16.gmra.mrb[4].mxu0 %vm618_vm2, %v4790_v28 }
 0x106   : > { %3414 = vmatprep.mubr.msk.bf16.mxu0 %vm618_vm2, %v4217_v23 }
 0x10b   : > { %3261 = vmatmul.mubr.msk.bf16.gmra.mrb[24].mxu1 %vm618_vm2, %v4205_v55 }
 0x10c   : > { %3264 = vmatprep.mubr.msk.bf16.mxu1 %vm618_vm2, %v4209_v60 }
 0x10d   : > { %3415 = vmatmul.mubr.msk.bf16.gmra.mrb[8].mxu0 %vm618_vm2, %v4224_v19 }
 0x10e   : > { %3418 = vmatprep.mubr.msk.bf16.mxu0 %vm618_vm2, %v4247_v54 }
 0x113   : > { %3265 = vmatmul.mubr.msk.bf16.gmra.mrb[28].mxu1 %vm618_vm2, %v4413_v5 }
 0x114   : > { %3286 = vmatprep.mubr.msk.bf16.mxu1 %vm618_vm2, %v4798_v32 }
 0x115   : > { %3419 = vmatmul.mubr.msk.bf16.gmra.mrb[12].mxu0 %vm618_vm2, %v4251_v45 }
 0x116   : > { %3422 = vmatprep.mubr.msk.bf16.mxu0 %vm618_vm2, %v4271_v40 }
 0x11b   : > { %3287 = vmatmul.mubr.msk.bf16.vlgmr.msra.gmra.mrb[16].mxu1 %vm618_vm2, %v4799_v42 }
 0x11c   : > { %3290 = vmatprep.mubr.msk.bf16.mxu1 %vm618_vm2, %v4801_v34 }
 0x11d   : > { %3423 = vmatmul.mubr.msk.bf16.gmra.mrb[16].mxu0 %vm618_vm2, %v4275_v51 }
 0x11e   : > { %3426 = vmatprep.mubr.msk.bf16.mxu0 %vm618_vm2, %v4296_v47 }
 0x123   : > { %3291 = vmatmul.mubr.msk.bf16.gmra.mrb[20].mxu1 %vm618_vm2, %v4802_v6 }
 0x124   : > { %3294 = vmatprep.mubr.msk.bf16.mxu1 %vm618_vm2, %v4164_v22 }
 0x125   : > { %3427 = vmatmul.mubr.msk.bf16.gmra.mrb[20].mxu0 %vm618_vm2, %v4300_v63 }
 0x126   : > { %3430 = vmatprep.mubr.msk.bf16.mxu0 %vm618_vm2, %v4321_v20 }
 0x12b   : > { %3295 = vmatmul.mubr.msk.bf16.gmra.mrb[24].mxu1 %vm618_vm2, %v4176_v10 }
 0x12c   : > { %3298 = vmatprep.mubr.msk.bf16.mxu1 %vm618_vm2, %v4239_v35 }
 0x12d   : > { %3431 = vmatmul.mubr.msk.bf16.gmra.mrb[24].mxu0 %vm618_vm2, %v4325_v36 }
 0x12e   : > { %3434 = vmatprep.mubr.msk.bf16.mxu0 %vm618_vm2, %v4339_v41 }
 0x133   : > { %3299 = vmatmul.mubr.msk.bf16.gmra.mrb[28].mxu1 %vm618_vm2, %v4337_v29 }
 0x135   : > { %3435 = vmatmul.mubr.msk.bf16.gmra.mrb[28].mxu0 %vm618_vm2, %v2314_v27 }
 0x1ae   : > { %v3238_v23 = vpop.f32.mrb[0].mxu1 }
 0x1af   : > { %v1348_v19 = vpop.f32.mrb[1].mxu1 }
 0x1b0   : > { %v3239_v49 = vpop.f32.mrb[2].mxu1 }
 0x1b1   : > { %v1351_v53 = vpop.f32.mrb[3].mxu1 }
 0x1b6   : > { %v3242_v22 = vpop.f32.mrb[4].mxu1 }
 0x1b7   : > { %v1364_v11 = vpop.f32.mrb[5].mxu1 }
 0x1b8   : > { %v3243_v10 = vpop.f32.mrb[6].mxu1 }
 0x1b9   : > { %v1367_v46 = vpop.f32.mrb[7].mxu1 }
 0x1be   : > { %v4568_v37 = vpop.f32.mrb[8].mxu1 }
 0x1bf   : > { %v4570_v14 = vpop.f32.mrb[9].mxu1 }
 0x1c0   : > { %v4572_v61 = vpop.f32.mrb[10].mxu1 }
 0x1c1   : > { %v4574_v57 = vpop.f32.mrb[11].mxu1 }
 0x1c6   : > { %v4576_v55 = vpop.f32.mrb[12].mxu1 }
 0x1c7   : > { %v4578_v60 = vpop.f32.mrb[13].mxu1 }
 0x1c8   : > { %v4580_v35 = vpop.f32.mrb[14].mxu1 }
 0x1c9   : > { %v4582_v54 = vpop.f32.mrb[15].mxu1 }
 0x1d0   : > { %v3408_v45 = vpop.f32.mrb[0].mxu0 }
 0x1d1   : > { %v3440_v40 = vadd.f32 %v3408_v45, %v3238_v23  ;;  %v2355_v51 = vpop.f32.mrb[1].mxu0 }
 0x1d2   : > { %v3441_v47 = vadd.f32 %v2355_v51, %v1348_v19  ;;  %v3409_v63 = vpop.f32.mrb[2].mxu0 }
 0x1d3   : > { %2516 = vst.msk [vmem:[%s4588_s8 + $0x10] sm:$0xff] %vm618_vm2, %v3440_v40  ;;  %v3442_v20 = vadd.f32 %v3409_v63, %v3239_v49  ;;  %v2358_v36 = vpop.f32.mrb[3].mxu0  ;;  %v2619_v2 = vmul.f32 %v3440_v40, %v3440_v40  ;;  %v2549_v44 = vsel %vm618_vm2, %v3440_v40, 0.0 }
 0x1d4   : > { %2514 = vst.msk [vmem:[%s4588_s8] sm:$0xff] %vm618_vm2, %v3441_v47  ;;  %v2617_v29 = vmul.f32 %v3441_v47, %v3441_v47  ;;  %v3443_v41 = vadd.f32 %v2358_v36, %v1351_v53  ;;  %v2546_v62 = vsel %vm618_vm2, %v3441_v47, 0.0 }
 0x1d5   : > { %2517 = vst.msk [vmem:[%s4588_s8 + $0x18] sm:$0xff] %vm618_vm2, %v3442_v20  ;;  %v2620_v13 = vmul.f32 %v3442_v20, %v3442_v20  ;;  %v2652_v3 = vsel %vm618_vm2, %v2619_v2, 0.0  ;;  %v2551_v48 = vsel %vm618_vm2, %v3442_v20, 0.0 }
 0x1d6   : > { %2515 = vst.msk [vmem:[%s4588_s8 + $0x8] sm:$0xff] %vm618_vm2, %v3443_v41  ;;  %v2547_v26 = vsel %vm618_vm2, %v3443_v41, 0.0  ;;  %v2618_v31 = vmul.f32 %v3443_v41, %v3443_v41  ;;  %v2649_v7 = vsel %vm618_vm2, %v2617_v29, 0.0 }
 0x1d7   : > { %v2548_v56 = vadd.f32 %v2547_v26, %v2546_v62  ;;  %v2654_v21 = vsel %vm618_vm2, %v2620_v13, 0.0 }
 0x1d8   : > { %v2650_v28 = vsel %vm618_vm2, %v2618_v31, 0.0  ;;  %v3412_v5 = vpop.f32.mrb[4].mxu0 }
 0x1d9   : > { %v2550_v39 = vadd.f32 %v2549_v44, %v2548_v56  ;;  %v2651_v30 = vadd.f32 %v2650_v28, %v2649_v7  ;;  %v3444_v15 = vadd.f32 %v3412_v5, %v3242_v22  ;;  %v2371_v17 = vpop.f32.mrb[5].mxu0 }
 0x1da   : > { %v3445_v24 = vadd.f32 %v2371_v17, %v1364_v11  ;;  %v3413_v25 = vpop.f32.mrb[6].mxu0 }
 0x1db   : > { %v2653_v27 = vadd.f32 %v2652_v3, %v2651_v30  ;;  %2520 = vst.msk [vmem:[%s4588_s8 + $0x30] sm:$0xff] %vm618_vm2, %v3444_v15  ;;  %v2552_v8 = vadd.f32 %v2551_v48, %v2550_v39  ;;  %v2374_v43 = vpop.f32.mrb[7].mxu0  ;;  %v3446_v58 = vadd.f32 %v3413_v25, %v3243_v10  ;;  %v2623_v4 = vmul.f32 %v3444_v15, %v3444_v15 }
 0x1dc   : > { %2518 = vst.msk [vmem:[%s4588_s8 + $0x20] sm:$0xff] %vm618_vm2, %v3445_v24  ;;  %v2553_v9 = vsel %vm618_vm2, %v3445_v24, 0.0  ;;  %v2621_v12 = vmul.f32 %v3445_v24, %v3445_v24  ;;  %v3447_v59 = vadd.f32 %v2374_v43, %v1367_v46  ;;  %v2557_v0 = vsel %vm618_vm2, %v3444_v15, 0.0 }
 0x1dd   : > { %v2554_v1 = vadd.f32 %v2553_v9, %v2552_v8  ;;  %v2655_v16 = vadd.f32 %v2654_v21, %v2653_v27  ;;  %2521 = vst.msk [vmem:[%s4588_s8 + $0x38] sm:$0xff] %vm618_vm2, %v3446_v58  ;;  %v2624_v18 = vmul.f32 %v3446_v58, %v3446_v58  ;;  %v2559_v49 = vsel %vm618_vm2, %v3446_v58, 0.0 }
 0x1de   : > { %v2656_v32 = vsel %vm618_vm2, %v2621_v12, 0.0  ;;  %2519 = vst.msk [vmem:[%s4588_s8 + $0x28] sm:$0xff] %vm618_vm2, %v3447_v59  ;;  %v2555_v42 = vsel %vm618_vm2, %v3447_v59, 0.0  ;;  %v2622_v33 = vmul.f32 %v3447_v59, %v3447_v59  ;;  %v2660_v10 = vsel %vm618_vm2, %v2623_v4, 0.0 }
 0x1df   : > { %v2657_v34 = vadd.f32 %v2656_v32, %v2655_v16  ;;  %v2556_v6 = vadd.f32 %v2555_v42, %v2554_v1 }
 0x1e0   : > { %v3416_v50 = vpop.f32.mrb[8].mxu0  ;;  %v2658_v52 = vsel %vm618_vm2, %v2622_v33, 0.0 }
 0x1e1   : > { %v2558_v38 = vadd.f32 %v2557_v0, %v2556_v6  ;;  %v3448_v23 = vadd.f32 %v3416_v50, %v4568_v37  ;;  %v2387_v19 = vpop.f32.mrb[9].mxu0  ;;  %v2659_v53 = vadd.f32 %v2658_v52, %v2657_v34 }
 0x1e2   : > { %v3449_v22 = vadd.f32 %v2387_v19, %v4570_v14  ;;  %v3417_v11 = vpop.f32.mrb[10].mxu0  ;;  %v2662_v14 = vsel %vm618_vm2, %v2624_v18, 0.0 }
 0x1e3   : > { %2524 = vst.msk [vmem:[%s4588_s8 + $0x50] sm:$0xff] %vm618_vm2, %v3448_v23  ;;  %v2560_v46 = vadd.f32 %v2559_v49, %v2558_v38  ;;  %v3450_v45 = vadd.f32 %v3417_v11, %v4572_v61  ;;  %v2390_v40 = vpop.f32.mrb[11].mxu0  ;;  %v2661_v51 = vadd.f32 %v2660_v10, %v2659_v53  ;;  %v2627_v2 = vmul.f32 %v3448_v23, %v3448_v23 }
 0x1e4   : > { %2522 = vst.msk [vmem:[%s4588_s8 + $0x40] sm:$0xff] %vm618_vm2, %v3449_v22  ;;  %v2561_v37 = vsel %vm618_vm2, %v3449_v22, 0.0  ;;  %v2625_v47 = vmul.f32 %v3449_v22, %v3449_v22  ;;  %v3451_v63 = vadd.f32 %v2390_v40, %v4574_v57  ;;  %v2565_v26 = vsel %vm618_vm2, %v3448_v23, 0.0 }
 0x1e5   : > { %v2562_v20 = vadd.f32 %v2561_v37, %v2560_v46  ;;  %2525 = vst.msk [vmem:[%s4588_s8 + $0x58] sm:$0xff] %vm618_vm2, %v3450_v45  ;;  %v2663_v36 = vadd.f32 %v2662_v14, %v2661_v51  ;;  %v2628_v56 = vmul.f32 %v3450_v45, %v3450_v45  ;;  %v2567_v5 = vsel %vm618_vm2, %v3450_v45, 0.0 }
 0x1e6   : > { %v2664_v29 = vsel %vm618_vm2, %v2625_v47, 0.0  ;;  %2523 = vst.msk [vmem:[%s4588_s8 + $0x48] sm:$0xff] %vm618_vm2, %v3451_v63  ;;  %v2563_v61 = vsel %vm618_vm2, %v3451_v63, 0.0  ;;  %v2626_v41 = vmul.f32 %v3451_v63, %v3451_v63  ;;  %v2668_v17 = vsel %vm618_vm2, %v2627_v2, 0.0 }
 0x1e7   : > { %v2564_v62 = vadd.f32 %v2563_v61, %v2562_v20  ;;  %v2665_v31 = vadd.f32 %v2664_v29, %v2663_v36 }
 0x1e8   : > { %v2666_v57 = vsel %vm618_vm2, %v2626_v41, 0.0  ;;  %v3420_v13 = vpop.f32.mrb[12].mxu0 }
 0x1e9   : > { %v2566_v44 = vadd.f32 %v2565_v26, %v2564_v62  ;;  %v3452_v7 = vadd.f32 %v3420_v13, %v4576_v55  ;;  %v2403_v28 = vpop.f32.mrb[13].mxu0  ;;  %v2667_v39 = vadd.f32 %v2666_v57, %v2665_v31 }
 0x1ea   : > { %v3453_v30 = vadd.f32 %v2403_v28, %v4578_v60  ;;  %v3421_v15 = vpop.f32.mrb[14].mxu0  ;;  %v2670_v60 = vsel %vm618_vm2, %v2628_v56, 0.0 }
 0x1eb   : > { %2528 = vst.msk [vmem:[%s4588_s8 + $0x70] sm:$0xff] %vm618_vm2, %v3452_v7  ;;  %v2568_v3 = vadd.f32 %v2567_v5, %v2566_v44  ;;  %v3454_v48 = vadd.f32 %v3421_v15, %v4580_v35  ;;  %v2406_v24 = vpop.f32.mrb[15].mxu0  ;;  %v2669_v25 = vadd.f32 %v2668_v17, %v2667_v39  ;;  %v2631_v1 = vmul.f32 %v3452_v7, %v3452_v7 }
 0x1ec   : > { %2526 = vst.msk [vmem:[%s4588_s8 + $0x60] sm:$0xff] %vm618_vm2, %v3453_v30  ;;  %v2569_v55 = vsel %vm618_vm2, %v3453_v30, 0.0  ;;  %v2629_v21 = vmul.f32 %v3453_v30, %v3453_v30  ;;  %v3455_v27 = vadd.f32 %v2406_v24, %v4582_v54  ;;  %v2573_v54 = vsel %vm618_vm2, %v3452_v7, 0.0 }
 0x1ed   : > { %v2570_v8 = vadd.f32 %v2569_v55, %v2568_v3  ;;  %2529 = vst.msk [vmem:[%s4588_s8 + $0x78] sm:$0xff] %vm618_vm2, %v3454_v48  ;;  %v2671_v9 = vadd.f32 %v2670_v60, %v2669_v25  ;;  %v2632_v33 = vmul.f32 %v3454_v48, %v3454_v48  ;;  %v2575_v38 = vsel %vm618_vm2, %v3454_v48, 0.0 }
 0x1ee   : > { %v3288_v43 = vpop.f32.mrb[16].mxu1  ;;  %v2672_v12 = vsel %vm618_vm2, %v2629_v21, 0.0  ;;  %2527 = vst.msk [vmem:[%s4588_s8 + $0x68] sm:$0xff] %vm618_vm2, %v3455_v27  ;;  %v2571_v35 = vsel %vm618_vm2, %v3455_v27, 0.0  ;;  %v2630_v58 = vmul.f32 %v3455_v27, %v3455_v27  ;;  %v2676_v49 = vsel %vm618_vm2, %v2631_v1, 0.0 }
 0x1ef   : > { %v1613_v59 = vpop.f32.mrb[17].mxu1  ;;  %v2572_v16 = vadd.f32 %v2571_v35, %v2570_v8  ;;  %v2673_v42 = vadd.f32 %v2672_v12, %v2671_v9  ;;  %v2678_v51 = vsel %vm618_vm2, %v2632_v33, 0.0 }
 0x1f0   : > { %v3289_v32 = vpop.f32.mrb[18].mxu1  ;;  %v2674_v4 = vsel %vm618_vm2, %v2630_v58, 0.0  ;;  %v3424_v34 = vpop.f32.mrb[16].mxu0 }
 0x1f1   : > { %v1616_v6 = vpop.f32.mrb[19].mxu1  ;;  %v2574_v0 = vadd.f32 %v2573_v54, %v2572_v16  ;;  %v3456_v50 = vadd.f32 %v3424_v34, %v3288_v43  ;;  %v2419_v18 = vpop.f32.mrb[17].mxu0  ;;  %v2675_v52 = vadd.f32 %v2674_v4, %v2673_v42 }
 0x1f2   : > { %v3457_v23 = vadd.f32 %v2419_v18, %v1613_v59  ;;  %v3425_v19 = vpop.f32.mrb[18].mxu0 }
 0x1f3   : > { %2532 = vst.msk [vmem:[%s4588_s8 + $0x90] sm:$0xff] %vm618_vm2, %v3456_v50  ;;  %v2576_v53 = vadd.f32 %v2575_v38, %v2574_v0  ;;  %v3458_v22 = vadd.f32 %v3425_v19, %v3289_v32  ;;  %v2422_v11 = vpop.f32.mrb[19].mxu0  ;;  %v2677_v10 = vadd.f32 %v2676_v49, %v2675_v52  ;;  %v2635_v61 = vmul.f32 %v3456_v50, %v3456_v50 }
 0x1f4   : > { %2530 = vst.msk [vmem:[%s4588_s8 + $0x80] sm:$0xff] %vm618_vm2, %v3457_v23  ;;  %v2577_v46 = vsel %vm618_vm2, %v3457_v23, 0.0  ;;  %v2633_v45 = vmul.f32 %v3457_v23, %v3457_v23  ;;  %v3459_v40 = vadd.f32 %v2422_v11, %v1616_v6  ;;  %v2581_v62 = vsel %vm618_vm2, %v3456_v50, 0.0 }
 0x1f5   : > { %v2578_v37 = vadd.f32 %v2577_v46, %v2576_v53  ;;  %2533 = vst.msk [vmem:[%s4588_s8 + $0x98] sm:$0xff] %vm618_vm2, %v3458_v22  ;;  %v2679_v63 = vadd.f32 %v2678_v51, %v2677_v10  ;;  %v2636_v56 = vmul.f32 %v3458_v22, %v3458_v22  ;;  %v2583_v5 = vsel %vm618_vm2, %v3458_v22, 0.0 }
 0x1f6   : > { %v3292_v47 = vpop.f32.mrb[20].mxu1  ;;  %v2680_v14 = vsel %vm618_vm2, %v2633_v45, 0.0  ;;  %2531 = vst.msk [vmem:[%s4588_s8 + $0x88] sm:$0xff] %vm618_vm2, %v3459_v40  ;;  %v2579_v20 = vsel %vm618_vm2, %v3459_v40, 0.0  ;;  %v2634_v36 = vmul.f32 %v3459_v40, %v3459_v40  ;;  %v2684_v17 = vsel %vm618_vm2, %v2635_v61, 0.0 }
 0x1f7   : > { %v1629_v29 = vpop.f32.mrb[21].mxu1  ;;  %v2580_v41 = vadd.f32 %v2579_v20, %v2578_v37  ;;  %v2681_v26 = vadd.f32 %v2680_v14, %v2679_v63  ;;  %v2686_v60 = vsel %vm618_vm2, %v2636_v56, 0.0 }
 0x1f8   : > { %v3293_v2 = vpop.f32.mrb[22].mxu1  ;;  %v2682_v31 = vsel %vm618_vm2, %v2634_v36, 0.0  ;;  %v3428_v57 = vpop.f32.mrb[20].mxu0 }
 0x1f9   : > { %v1632_v13 = vpop.f32.mrb[23].mxu1  ;;  %v2582_v44 = vadd.f32 %v2581_v62, %v2580_v41  ;;  %v3460_v7 = vadd.f32 %v3428_v57, %v3292_v47  ;;  %v2435_v28 = vpop.f32.mrb[21].mxu0  ;;  %v2683_v39 = vadd.f32 %v2682_v31, %v2681_v26 }
 0x1fa   : > { %v3461_v30 = vadd.f32 %v2435_v28, %v1629_v29  ;;  %v3429_v15 = vpop.f32.mrb[22].mxu0 }
 0x1fb   : > { %2536 = vst.msk [vmem:[%s4588_s8 + $0xb0] sm:$0xff] %vm618_vm2, %v3460_v7  ;;  %v2584_v3 = vadd.f32 %v2583_v5, %v2582_v44  ;;  %v3462_v48 = vadd.f32 %v3429_v15, %v3293_v2  ;;  %v2438_v24 = vpop.f32.mrb[23].mxu0  ;;  %v2685_v25 = vadd.f32 %v2684_v17, %v2683_v39  ;;  %v2639_v1 = vmul.f32 %v3460_v7, %v3460_v7 }
 0x1fc   : > { %2534 = vst.msk [vmem:[%s4588_s8 + $0xa0] sm:$0xff] %vm618_vm2, %v3461_v30  ;;  %v2585_v55 = vsel %vm618_vm2, %v3461_v30, 0.0  ;;  %v2637_v21 = vmul.f32 %v3461_v30, %v3461_v30  ;;  %v3463_v27 = vadd.f32 %v2438_v24, %v1632_v13  ;;  %v2589_v54 = vsel %vm618_vm2, %v3460_v7, 0.0 }
 0x1fd   : > { %v2586_v8 = vadd.f32 %v2585_v55, %v2584_v3  ;;  %2537 = vst.msk [vmem:[%s4588_s8 + $0xb8] sm:$0xff] %vm618_vm2, %v3462_v48  ;;  %v2687_v9 = vadd.f32 %v2686_v60, %v2685_v25  ;;  %v2640_v33 = vmul.f32 %v3462_v48, %v3462_v48  ;;  %v2591_v38 = vsel %vm618_vm2, %v3462_v48, 0.0 }
 0x1fe   : > { %v3296_v43 = vpop.f32.mrb[24].mxu1  ;;  %v2688_v12 = vsel %vm618_vm2, %v2637_v21, 0.0  ;;  %2535 = vst.msk [vmem:[%s4588_s8 + $0xa8] sm:$0xff] %vm618_vm2, %v3463_v27  ;;  %v2587_v35 = vsel %vm618_vm2, %v3463_v27, 0.0  ;;  %v2638_v58 = vmul.f32 %v3463_v27, %v3463_v27  ;;  %v2692_v49 = vsel %vm618_vm2, %v2639_v1, 0.0 }
 0x1ff   : > { %v1645_v59 = vpop.f32.mrb[25].mxu1  ;;  %v2588_v16 = vadd.f32 %v2587_v35, %v2586_v8  ;;  %v2689_v42 = vadd.f32 %v2688_v12, %v2687_v9  ;;  %v2694_v51 = vsel %vm618_vm2, %v2640_v33, 0.0 }
 0x200   : > { %v3297_v32 = vpop.f32.mrb[26].mxu1  ;;  %v2690_v4 = vsel %vm618_vm2, %v2638_v58, 0.0  ;;  %v3432_v34 = vpop.f32.mrb[24].mxu0 }
 0x201   : > { %v1648_v6 = vpop.f32.mrb[27].mxu1  ;;  %v2590_v0 = vadd.f32 %v2589_v54, %v2588_v16  ;;  %v3464_v50 = vadd.f32 %v3432_v34, %v3296_v43  ;;  %v2451_v18 = vpop.f32.mrb[25].mxu0  ;;  %v2691_v52 = vadd.f32 %v2690_v4, %v2689_v42 }
 0x202   : > { %v3465_v23 = vadd.f32 %v2451_v18, %v1645_v59  ;;  %v3433_v19 = vpop.f32.mrb[26].mxu0 }
 0x203   : > { %2540 = vst.msk [vmem:[%s4588_s8 + $0xd0] sm:$0xff] %vm618_vm2, %v3464_v50  ;;  %v2592_v53 = vadd.f32 %v2591_v38, %v2590_v0  ;;  %v3466_v22 = vadd.f32 %v3433_v19, %v3297_v32  ;;  %v2454_v11 = vpop.f32.mrb[27].mxu0  ;;  %v2693_v10 = vadd.f32 %v2692_v49, %v2691_v52  ;;  %v2643_v61 = vmul.f32 %v3464_v50, %v3464_v50 }
 0x204   : > { %2538 = vst.msk [vmem:[%s4588_s8 + $0xc0] sm:$0xff] %vm618_vm2, %v3465_v23  ;;  %v2593_v46 = vsel %vm618_vm2, %v3465_v23, 0.0  ;;  %v2641_v45 = vmul.f32 %v3465_v23, %v3465_v23  ;;  %v3467_v40 = vadd.f32 %v2454_v11, %v1648_v6  ;;  %v2597_v62 = vsel %vm618_vm2, %v3464_v50, 0.0 }
 0x205   : > { %v2594_v37 = vadd.f32 %v2593_v46, %v2592_v53  ;;  %2541 = vst.msk [vmem:[%s4588_s8 + $0xd8] sm:$0xff] %vm618_vm2, %v3466_v22  ;;  %v2695_v63 = vadd.f32 %v2694_v51, %v2693_v10  ;;  %v2644_v56 = vmul.f32 %v3466_v22, %v3466_v22  ;;  %v2599_v5 = vsel %vm618_vm2, %v3466_v22, 0.0 }
 0x206   : > { %v3300_v47 = vpop.f32.mrb[28].mxu1  ;;  %v2696_v14 = vsel %vm618_vm2, %v2641_v45, 0.0  ;;  %2539 = vst.msk [vmem:[%s4588_s8 + $0xc8] sm:$0xff] %vm618_vm2, %v3467_v40  ;;  %v2595_v20 = vsel %vm618_vm2, %v3467_v40, 0.0  ;;  %v2642_v36 = vmul.f32 %v3467_v40, %v3467_v40  ;;  %v2700_v17 = vsel %vm618_vm2, %v2643_v61, 0.0 }
 0x207   : > { %v1661_v29 = vpop.f32.mrb[29].mxu1  ;;  %v2596_v41 = vadd.f32 %v2595_v20, %v2594_v37  ;;  %v2697_v26 = vadd.f32 %v2696_v14, %v2695_v63  ;;  %v2702_v60 = vsel %vm618_vm2, %v2644_v56, 0.0 }
 0x208   : > { %v3301_v2 = vpop.f32.mrb[30].mxu1  ;;  %v2698_v31 = vsel %vm618_vm2, %v2642_v36, 0.0  ;;  %v3436_v57 = vpop.f32.mrb[28].mxu0 }
 0x209   : > { %v1664_v13 = vpop.f32.mrb[31].mxu1  ;;  %v2598_v44 = vadd.f32 %v2597_v62, %v2596_v41  ;;  %v3468_v7 = vadd.f32 %v3436_v57, %v3300_v47  ;;  %v2467_v28 = vpop.f32.mrb[29].mxu0  ;;  %v2699_v39 = vadd.f32 %v2698_v31, %v2697_v26 }
 0x20a   : > { %v3469_v30 = vadd.f32 %v2467_v28, %v1661_v29  ;;  %v3437_v15 = vpop.f32.mrb[30].mxu0 }
 0x20b   : > { %2544 = vst.msk [vmem:[%s4588_s8 + $0xf0] sm:$0xff] %vm618_vm2, %v3468_v7  ;;  %v2600_v3 = vadd.f32 %v2599_v5, %v2598_v44  ;;  %v3470_v48 = vadd.f32 %v3437_v15, %v3301_v2  ;;  %v2470_v24 = vpop.f32.mrb[31].mxu0  ;;  %v2701_v25 = vadd.f32 %v2700_v17, %v2699_v39  ;;  %v2647_v58 = vmul.f32 %v3468_v7, %v3468_v7 }
 0x20c   : > { %2542 = vst.msk [vmem:[%s4588_s8 + $0xe0] sm:$0xff] %vm618_vm2, %v3469_v30  ;;  %v2601_v55 = vsel %vm618_vm2, %v3469_v30, 0.0  ;;  %v2645_v21 = vmul.f32 %v3469_v30, %v3469_v30  ;;  %v3471_v27 = vadd.f32 %v2470_v24, %v1664_v13  ;;  %v2605_v1 = vsel %vm618_vm2, %v3468_v7, 0.0 }
 0x20d   : > { %v2602_v8 = vadd.f32 %v2601_v55, %v2600_v3  ;;  %2545 = vst.msk [vmem:[%s4588_s8 + $0xf8] sm:$0xff] %vm618_vm2, %v3470_v48  ;;  %v2703_v43 = vadd.f32 %v2702_v60, %v2701_v25  ;;  %v2648_v54 = vmul.f32 %v3470_v48, %v3470_v48  ;;  %v2607_v4 = vsel %vm618_vm2, %v3470_v48, 0.0 }
 0x20e   : > { %v2704_v9 = vsel %vm618_vm2, %v2645_v21, 0.0  ;;  %2543 = vst.msk [vmem:[%s4588_s8 + $0xe8] sm:$0xff] %vm618_vm2, %v3471_v27  ;;  %v2603_v12 = vsel %vm618_vm2, %v3471_v27, 0.0  ;;  %v2646_v35 = vmul.f32 %v3471_v27, %v3471_v27  ;;  %v2708_v6 = vsel %vm618_vm2, %v2647_v58, 0.0 }
 0x20f   : > { %v2604_v59 = vadd.f32 %v2603_v12, %v2602_v8  ;;  %v2705_v16 = vadd.f32 %v2704_v9, %v2703_v43  ;;  %v2710_v50 = vsel %vm618_vm2, %v2648_v54, 0.0 }
 0x210   : > { %v2706_v32 = vsel %vm618_vm2, %v2646_v35, 0.0 }
 0x211   : > { %v2606_v42 = vadd.f32 %v2605_v1, %v2604_v59  ;;  %v2707_v34 = vadd.f32 %v2706_v32, %v2705_v16 }
 0x213   : > { %v2608_v33 = vadd.f32 %v2607_v4, %v2606_v42  ;;  %v2709_v0 = vadd.f32 %v2708_v6, %v2707_v34 }
 0x215   : > { %v2609_v18 = vrot.slane %v2608_v33, 4  ;;  %v2711_v38 = vadd.f32 %v2710_v50, %v2709_v0 }
 0x217   : > { %v2610_v52 = vadd.f32 %v2609_v18, %v2608_v33  ;;  %v2712_v23 = vrot.slane %v2711_v38, 4 }
 0x219   : > { %v2611_v19 = vrot.slane %v2610_v52, 2  ;;  %v2713_v49 = vadd.f32 %v2712_v23, %v2711_v38 }
 0x21b   : > { %v2612_v53 = vadd.f32 %v2611_v19, %v2610_v52  ;;  %v2714_v22 = vrot.slane %v2713_v49, 2 }
 0x21d   : > { %v2613_v11 = vrot.slane %v2612_v53, 1  ;;  %v2715_v10 = vadd.f32 %v2714_v22, %v2713_v49 }
 0x21f   : > { %v2614_v46 = vadd.f32 %v2613_v11, %v2612_v53  ;;  %v2716_v45 = vrot.slane %v2715_v10, 1 }
 0x221   : > { %2616 = vst.msk [vmem:[%s211_s11] sm:$0x1] %vm2615_vm4, %v2614_v46  ;;  %v2717_v40 = vadd.f32 %v2716_v45, %v2715_v10 }
 0x223   : > { %2718 = vst.msk [vmem:[%s214_s14] sm:$0x1] %vm2615_vm4, %v2717_v40 }
 0x224 PF: > { %s15_s15 = sadd.s32 1, %s3721_s15  }
 0x225   : > { %p12_p4 = scmp.ge.s32.totalorder %s15_s15, 4  }
 0x227   :  { %14 = sbr.rel (!%p12_p4) target bundleno = 1 (0x1), region = 82 }

</bundles_post_ra>
